<compile_context>
chip_gen: v7x
topology: tpu7x:2x2x1
jax: 0.10.0
libtpu: 0.0.40
codegen_flags: <defaults>
</compile_context>

<pallas_src>
import jax
import jax.numpy as jnp
from jax.experimental import pallas as pl
from jax.experimental.pallas import tpu as pltpu

_BF16 = jnp.bfloat16
_F32 = jnp.float32
_LANES = 128


def _round_up(n, m):
    return ((n + m - 1) // m) * m


# --------------------------------------------------------------------------------------
# parameter slab packing: many tiny arrays -> one DMA, sliced in-kernel at static offsets
# --------------------------------------------------------------------------------------
class _SlabBuilder:
    """Packs small 2-D parameter arrays into one lane-padded (rows, 128) slab.
    Each entry starts at a sublane-aligned row so in-kernel static slices stay tiled."""

    def __init__(self, dtype, row_align, width=_LANES):
        self.dtype, self.row_align, self.width = dtype, row_align, width
        self._arrays, self._metas, self._rows = [], [], 0

    def add(self, a):
        a = jnp.asarray(a)
        assert a.ndim == 2 and a.shape[1] <= self.width, a.shape
        meta = (self._rows, a.shape[0], a.shape[1])   # (row offset, rows, cols) - static
        self._arrays.append(a)
        self._metas.append(meta)
        self._rows += _round_up(a.shape[0], self.row_align)
        return meta

    def build(self):
        total = max(_round_up(self._rows, self.row_align), self.row_align)
        slab = jnp.zeros((total, self.width), self.dtype)
        for a, (r0, r, c) in zip(self._arrays, self._metas):
            slab = slab.at[r0:r0 + r, :c].set(a.astype(self.dtype))
        return slab


# --------------------------------------------------------------------------------------
# fused forward kernel (one grid step per batch block, everything VMEM-resident)
# --------------------------------------------------------------------------------------
def _build_fused_kernel(plan, Kt, Ko, eps=1e-5):

    def _get(ref, meta):
        r0, r, c = meta
        return ref[r0:r0 + r, :c]            # static ref slice: free

    def kernel(x_ref, w_ref, p_ref, o_ref):
        x = x_ref[...].astype(_F32)          # (Bb, T, V, Cin) channel-last, f32 math

        def tconv_glu(x, w, b, K):
            # Fused causal temporal conv + Align residual + GLU gate.
            #   w: (K*Cin, 2*Cout) bf16 -- [wp' | wq], Align folded into the LAST tap
            #      of the P half (exact: x_res == the k = K-1 im2col slice; do not
            #      change the tap order here or in _fuse_tconv independently).
            #   b: (1, 2*Cout) f32 -- [bp + align_bias, bq]
            # In-VMEM im2col -> a single MXU matmul instead of K accumulated dots.
            Bb, T_, V_, Cin = x.shape
            Tout = T_ - K + 1
            Cout = w.shape[1] // 2
            xcol = jnp.concatenate([x[:, k:k + Tout] for k in range(K)], axis=-1)
            pq = jnp.dot(xcol.reshape(Bb * Tout * V_, K * Cin).astype(_BF16), w,
                         preferred_element_type=_F32) + b
            y = pq[:, :Cout] * jax.nn.sigmoid(pq[:, Cout:])      # (P + x_in) * sigmoid(Q)
            return y.reshape(Bb, Tout, V_, Cout)

        def graph_conv(x, A, ab, W, wb, gso_b):
            # Align -> GSO mix (ONE batched contraction over all (b,t)) -> weight + bias
            # -> residual add -> ReLU.
            Bb, T_, V_, C0 = x.shape
            C1 = A.shape[1]
            M = Bb * T_
            xin = jnp.dot(x.reshape(M * V_, C0).astype(_BF16), A,
                          preferred_element_type=_F32) + ab            # (M*V, C1)
            xin3 = xin.reshape(M, V_, C1)
            gx = jnp.einsum('muv,mvc->muc', gso_b[:M], xin3.astype(_BF16),
                            preferred_element_type=_F32)               # (M, V, C1)
            y = jnp.dot(gx.reshape(M * V_, C1).astype(_BF16), W,
                        preferred_element_type=_F32) + wb
            return jnp.maximum(y + xin, 0.0).reshape(Bb, T_, V_, C1)

        def layer_norm(x, g, b):
            # nn.LayerNorm([V, C]): normalize the (V, C) slab of every (batch, timestep).
            Bb, T_, V_, C = x.shape
            inv_n = 1.0 / float(V_ * C)

            def mean2(v):
                s = jnp.sum(v, axis=-1, keepdims=True)
                return jnp.sum(s, axis=-2, keepdims=True) * inv_n

            mu = mean2(x)
            var = mean2((x - mu) ** 2)
            return (x - mu) * jax.lax.rsqrt(var + eps) * g + b

        Bb, T0, V, _ = x.shape
        # GSO broadcast hoisted once at the largest (b,t) count and sliced per block:
        # avoids one broadcast_in_dim per unrolled ST block (JAX does not CSE it).
        gso = _get(w_ref, plan["gso"])                      # (V, V) bf16
        m_max = Bb * (T0 - (Kt - 1))
        gso_b = jnp.broadcast_to(gso[None], (m_max, V, V))

        # ---- ST blocks: GLU tconv -> graph conv (+ReLU) -> GLU tconv -> LayerNorm ----
        for blk in plan["st"]:
            x = tconv_glu(x, _get(w_ref, blk["t1_w"]), _get(p_ref, blk["t1_b"]), Kt)
            x = graph_conv(x, _get(w_ref, blk["A"]), _get(p_ref, blk["ab"]),
                           _get(w_ref, blk["W"]), _get(p_ref, blk["wb"]), gso_b)
            x = tconv_glu(x, _get(w_ref, blk["t2_w"]), _get(p_ref, blk["t2_b"]), Kt)
            x = layer_norm(x, _get(p_ref, blk["ln_g"]), _get(p_ref, blk["ln_b"]))
            # TODO(synk): nn.Dropout(p=droprate) is identity in eval/inference; omitted.

        # ---- OutputBlock: GLU tconv (Ko) -> LayerNorm -> fc1 -> ReLU -> fc2 ----
        ob = plan["out"]
        x = tconv_glu(x, _get(w_ref, ob["t_w"]), _get(p_ref, ob["t_b"]), Ko)  # (Bb,1,V,c0)
        x = layer_norm(x, _get(p_ref, ob["ln_g"]), _get(p_ref, ob["ln_b"]))
        c0 = x.shape[-1]
        h = jnp.dot(x.reshape(Bb * V, c0).astype(_BF16), _get(w_ref, ob["w1"]),
                    preferred_element_type=_F32) + _get(p_ref, ob["b1"])
        h = jnp.maximum(h, 0.0)
        y = jnp.dot(h.astype(_BF16), _get(w_ref, ob["w2"]),
                    preferred_element_type=_F32) + _get(p_ref, ob["b2"])      # (Bb*V, Ce)
        cend = y.shape[-1]
        y3 = y.reshape(Bb, V, cend)
        # Lane-dense store: pack every batch row's (V, Cend) slab into V*Cend contiguous
        # lanes (128 here) via a lane concat of static slices (layout-safe, no
        # sublane->lane reshape), so the writeback is an unmasked store.
        o_ref[...] = jnp.concatenate([y3[:, v, :] for v in range(V)],
                                     axis=-1).astype(o_ref.dtype)

    return kernel


# --------------------------------------------------------------------------------------
# parameter construction (deterministic, synthetic) -- same math as the reference model
# --------------------------------------------------------------------------------------
def _lin(key, cin, cout):
    k1, k2 = jax.random.split(key)
    s = 1.0 / float(cin) ** 0.5
    w = jax.random.uniform(k1, (cin, cout), jnp.float32, -s, s)
    b = jax.random.uniform(k2, (cout,), jnp.float32, -s, s)
    return w, b


def _align(key, cin, cout):
    """Align: 1x1 conv if cin > cout, zero channel-pad if cin < cout, identity otherwise."""
    if cin == cout:
        return jnp.eye(cin, dtype=jnp.float32), jnp.zeros((cout,), jnp.float32)
    if cin < cout:
        A = jnp.zeros((cin, cout), jnp.float32).at[jnp.arange(cin), jnp.arange(cin)].set(1.0)
        return A, jnp.zeros((cout,), jnp.float32)
    return _lin(key, cin, cout)


def _tconv_params(key, Kt, cin, cout):
    k1, k2, k3 = jax.random.split(key, 3)
    wp, bp = _lin(k1, Kt * cin, cout)     # "P" half of the 2*Cout conv
    wq, bq = _lin(k2, Kt * cin, cout)     # "Q" (gate) half
    A, ab = _align(k3, cin, cout)
    return dict(wp=wp, bp=bp, wq=wq, bq=bq, A=A, ab=ab)


def _gc_params(key, cin, cout):
    k1, k2 = jax.random.split(key)
    A, ab = _align(k1, cin, cout)
    W, wb = _lin(k2, cout, cout)
    return dict(A=A, ab=ab, W=W, wb=wb)


def init_params(key, blocks, V, Kt, Ko):
    n_st = len(blocks) - 3
    keys = jax.random.split(key, 3 * n_st + 3)
    st, ki = [], 0
    for l in range(n_st):
        cin = blocks[l][-1]
        c0, c1, c2 = blocks[l + 1]
        st.append(dict(
            t1=_tconv_params(keys[ki], Kt, cin, c0),
            gc=_gc_params(keys[ki + 1], c0, c1),
            t2=_tconv_params(keys[ki + 2], Kt, c1, c2),
            ln_g=jnp.ones((V, c2), jnp.float32),
            ln_b=jnp.zeros((V, c2), jnp.float32),
        ))
        ki += 3
    c_last = blocks[-3][-1]
    c0, c1 = blocks[-2]
    end = blocks[-1][0]
    w1, b1 = _lin(keys[ki + 1], c0, c1)
    w2, b2 = _lin(keys[ki + 2], c1, end)
    out = dict(
        t=_tconv_params(keys[ki], Ko, c_last, c0),
        ln_g=jnp.ones((V, c0), jnp.float32),
        ln_b=jnp.zeros((V, c0), jnp.float32),
        w1=w1, b1=b1, w2=w2, b2=b2,
    )
    return dict(st_blocks=st, out=out)


def make_gso(key, V):
    a = jax.random.uniform(key, (V, V))
    a = (a + a.T) * 0.5
    a = jnp.where(a > 0.5, 1.0, 0.0) + jnp.eye(V)
    dinv = 1.0 / jnp.sqrt(jnp.sum(a, axis=1))
    return (a * dinv[:, None]) * dinv[None, :]


# --------------------------------------------------------------------------------------
# parameter fusion + slab packing for the fused kernel
# --------------------------------------------------------------------------------------
def _fuse_tconv(p, K, cin, cin_pad=None):
    """Single fused GLU-conv weight [wp' | wq] with the Align residual folded into the
    LAST temporal tap (exact: x_res equals the k = K-1 im2col slice -- keep the tap
    order in sync with the kernel's im2col).  Optionally zero-pads every tap's input
    channels from cin to cin_pad (matches the zero-padded input: exact)."""
    cout = p["wp"].shape[1]
    wp, wq, A = p["wp"], p["wq"], p["A"]
    if cin_pad is not None and cin_pad != cin:
        def pad_taps(w):
            w3 = w.reshape(K, cin, cout)
            return jnp.pad(w3, ((0, 0), (0, cin_pad - cin), (0, 0))).reshape(K * cin_pad, cout)
        wp, wq = pad_taps(wp), pad_taps(wq)
        A = jnp.pad(A, ((0, cin_pad - cin), (0, 0)))
        cin = cin_pad
    w = jnp.concatenate([wp, wq], axis=1)                     # (K*cin, 2*cout)
    w = w.at[(K - 1) * cin:, :cout].add(A)                    # fold Align into last tap
    b = jnp.concatenate([p["bp"] + p["ab"], p["bq"]])[None]   # (1, 2*cout)
    return w, b


def _pack_params(params, gso, Kt, Ko, blocks, cin_pad):
    wbld = _SlabBuilder(_BF16, row_align=16)   # MXU operands (weights + gso), bf16
    pbld = _SlabBuilder(_F32, row_align=8)     # biases / LayerNorm params, f32
    plan = {"gso": wbld.add(gso), "st": []}
    for l, blk in enumerate(params["st_blocks"]):
        cin = blocks[l][-1]
        c1 = blocks[l + 1][1]
        w1, b1 = _fuse_tconv(blk["t1"], Kt, cin, cin_pad if l == 0 else None)
        w2, b2 = _fuse_tconv(blk["t2"], Kt, c1)
        gc = blk["gc"]
        plan["st"].append(dict(
            t1_w=wbld.add(w1), t1_b=pbld.add(b1),
            A=wbld.add(gc["A"]), ab=pbld.add(gc["ab"].reshape(1, -1)),
            W=wbld.add(gc["W"]), wb=pbld.add(gc["wb"].reshape(1, -1)),
            t2_w=wbld.add(w2), t2_b=pbld.add(b2),
            ln_g=pbld.add(blk["ln_g"]), ln_b=pbld.add(blk["ln_b"]),
        ))
    ob = params["out"]
    wt, bt = _fuse_tconv(ob["t"], Ko, blocks[-3][-1])
    plan["out"] = dict(
        t_w=wbld.add(wt), t_b=pbld.add(bt),
        ln_g=pbld.add(ob["ln_g"]), ln_b=pbld.add(ob["ln_b"]),
        w1=wbld.add(ob["w1"]), b1=pbld.add(ob["b1"].reshape(1, -1)),
        w2=wbld.add(ob["w2"]), b2=pbld.add(ob["b2"].reshape(1, -1)),
    )
    return wbld.build(), pbld.build(), plan


def _estimate_cost(blocks, B, T, V, Kt, Ko):
    """Rough MXU flop / EUP transcendental counts (scheduler hint only)."""
    flops, transc = 0, 0
    t = T
    for l in range(len(blocks) - 3):
        cin = blocks[l][-1]
        c0, c1, c2 = blocks[l + 1]
        t -= Kt - 1
        flops += 2 * B * t * V * (Kt * cin) * (2 * c0)           # GLU tconv 1
        transc += B * t * V * c0
        flops += 2 * B * t * V * c0 * c1                         # align
        flops += 2 * B * t * c1 * V * V                          # GSO mix
        flops += 2 * B * t * V * c1 * c1                         # graph-conv weight
        t -= Kt - 1
        flops += 2 * B * t * V * (Kt * c1) * (2 * c2)            # GLU tconv 2
        transc += B * t * V * c2 + B * t                         # sigmoid + LN rsqrt
    c_last = blocks[-3][-1]
    c0, c1 = blocks[-2]
    cend = blocks[-1][0]
    flops += 2 * B * V * (Ko * c_last) * (2 * c0)                # output GLU tconv
    flops += 2 * B * V * c0 * c1 + 2 * B * V * c1 * cend         # fc1 + fc2
    transc += B * V * c0 + B
    return int(flops), int(transc)


# --------------------------------------------------------------------------------------
# forward pass (HomogeneousSTGCN, gcn conv, Ko > 1, task_type='measurement_forecast')
# --------------------------------------------------------------------------------------
def stgcn_forward(x_nchw, params, gso, Kt, Ko, blocks, block_batch=None):
    B, Cin, T, V = x_nchw.shape
    cin_pad = _round_up(Cin, 8)
    Cend = blocks[-1][0]

    # NCHW -> channel-last (B, T, V, C): channels on the lane axis for every matmul.
    # Zero-pad the input channels to a sublane-friendly multiple of 8 (the first-layer
    # weights are padded to match, so this is exact).
    x = jnp.transpose(x_nchw, (0, 2, 3, 1)).astype(jnp.float32)
    if cin_pad != Cin:
        x = jnp.pad(x, ((0, 0), (0, 0), (0, 0), (0, cin_pad - Cin)))

    wslab, pslab, plan = _pack_params(params, gso, Kt, Ko, blocks, cin_pad)

    if block_batch is None:
        block_batch = B                     # whole batch folded into the matmul M dim
    assert B % block_batch == 0
    grid = (B // block_batch,)

    flops, transc = _estimate_cost(blocks, B, T, V, Kt, Ko)
    bytes_accessed = int(x.size * 4 + (wslab.size * 2 + pslab.size * 4) * grid[0]
                         + B * V * Cend * 4)

    out = pl.pallas_call(
        _build_fused_kernel(plan, Kt, Ko),
        out_shape=jax.ShapeDtypeStruct((B, V * Cend), jnp.float32),
        grid=grid,
        in_specs=[
            pl.BlockSpec((block_batch, T, V, cin_pad), lambda i: (i, 0, 0, 0)),
            pl.BlockSpec(wslab.shape, lambda i: (0, 0)),   # one bf16 weight slab
            pl.BlockSpec(pslab.shape, lambda i: (0, 0)),   # one f32 bias/LN slab
        ],
        out_specs=pl.BlockSpec((block_batch, V * Cend), lambda i: (i, 0)),
        compiler_params=pltpu.CompilerParams(
            # Batch-block axis is independent (candidate for multi-TC sharding on v7x
            # when grid > 1; for the toy B=2 case the whole batch is one step).
            dimension_semantics=("parallel",)),
        cost_estimate=pl.CostEstimate(flops=flops, transcendentals=transc,
                                      bytes_accessed=bytes_accessed),
    )(x, wslab, pslab)

    # (B, V*Cend) lane-dense slab -> (B, Cend, V); 'measurement_forecast' squeezes the
    # (collapsed-to-1) time dimension.
    return jnp.transpose(out.reshape(B, V, Cend), (0, 2, 1))


# --------------------------------------------------------------------------------------
# pure-JAX reference (unfused parameters, f32) for correctness
# --------------------------------------------------------------------------------------
def _ref_forward(x_nchw, params, gso, Kt, Ko):
    hi = jax.lax.Precision.HIGHEST
    mm = lambda a, w: jnp.matmul(a, w, precision=hi)
    x = jnp.transpose(x_nchw, (0, 2, 3, 1))

    def tconv(x, p, K):
        Tout = x.shape[1] - K + 1
        xcol = jnp.concatenate([x[:, k:k + Tout] for k in range(K)], axis=-1)
        xres = x[:, K - 1:]
        P = mm(xcol, p["wp"]) + p["bp"]
        Q = mm(xcol, p["wq"]) + p["bq"]
        xin = mm(xres, p["A"]) + p["ab"]
        return (P + xin) * jax.nn.sigmoid(Q)

    def gconv(x, p):
        xin = mm(x, p["A"]) + p["ab"]
        gx = jnp.einsum('uv,btvc->btuc', gso, xin, precision=hi)
        return jnp.maximum(mm(gx, p["W"]) + p["wb"] + xin, 0.0)

    def ln(x, g, b, eps=1e-5):
        mu = jnp.mean(x, axis=(-2, -1), keepdims=True)
        var = jnp.mean((x - mu) ** 2, axis=(-2, -1), keepdims=True)
        return (x - mu) / jnp.sqrt(var + eps) * g + b

    for blk in params["st_blocks"]:
        x = tconv(x, blk["t1"], Kt)
        x = gconv(x, blk["gc"])
        x = tconv(x, blk["t2"], Kt)
        x = ln(x, blk["ln_g"], blk["ln_b"])
    ob = params["out"]
    x = tconv(x, ob["t"], Ko)
    x = ln(x, ob["ln_g"], ob["ln_b"])
    x = mm(jnp.maximum(mm(x, ob["w1"]) + ob["b1"], 0.0), ob["w2"]) + ob["b2"]
    return jnp.squeeze(jnp.transpose(x, (0, 3, 1, 2)), axis=2)


# --------------------------------------------------------------------------------------
if __name__ == "__main__":
    key = jax.random.PRNGKey(0)
    B, F, T, V = 2, 4, 12, 16                  # batch, features, n_his, n_vertex
    Kt = 3
    blocks = [[F], [16, 8, 16], [16, 8, 16], [32, 32], [8]]
    n_st = len(blocks) - 3
    Ko = T - n_st * 2 * (Kt - 1)               # = 4 > 1 -> OutputBlock path
    assert Ko > 1

    kx, kg, kp = jax.random.split(key, 3)
    x = jax.random.normal(kx, (B, F, T, V), jnp.float32)   # PyTorch NCHW input
    gso = make_gso(kg, V)
    params = init_params(kp, blocks, V, Kt, Ko)

    out = jax.block_until_ready(stgcn_forward(x, params, gso, Kt, Ko, blocks))

    assert out.shape == (B, blocks[-1][0], V), out.shape
    assert bool(jnp.all(jnp.isfinite(out)))

    ref = _ref_forward(x, params, gso, Kt, Ko)
    err = float(jnp.max(jnp.abs(out - ref)))
    # bf16 MXU operands (f32 accumulate, f32 gate/LN math) -> a few 1e-3 absolute.
    assert err < 5e-2, f"max abs error vs reference: {err}"

    print("KERNEL_OK")
</pallas_src>

<mosaic_0001>
module attributes {stable_mosaic.version = 11 : i64} {
  func.func @kernel(%arg0: i32, %arg1: memref<2x12x16x8xf32, #tpu.memory_space<vmem>>, %arg2: memref<352x128xbf16, #tpu.memory_space<vmem>>, %arg3: memref<184x128xf32, #tpu.memory_space<vmem>>, %arg4: memref<2x128xf32, #tpu.memory_space<vmem>>) attributes {dimension_semantics = [#tpu.dimension_semantics<parallel>], iteration_bounds = array<i64: 1>, scalar_prefetch = 0 : i64, scratch_operands = 0 : i64, tpu.core_type = #tpu.core_type<tc>, window_params = [{transform_indices = @transform_0, window_bounds = array<i64: 2, 12, 16, 8>}, {pipeline_mode = #tpu.pipeline_mode<synchronous>, transform_indices = @transform_1, window_bounds = array<i64: 352, 128>}, {pipeline_mode = #tpu.pipeline_mode<synchronous>, transform_indices = @transform_2, window_bounds = array<i64: 184, 128>}, {transform_indices = @transform_3, window_bounds = array<i64: 2, 128>}]} {
    %c0 = arith.constant 0 : index
    %c0_0 = arith.constant 0 : index
    %c0_1 = arith.constant 0 : index
    %c0_2 = arith.constant 0 : index
    %0 = vector.load %arg1[%c0, %c0_0, %c0_1, %c0_2] : memref<2x12x16x8xf32, #tpu.memory_space<vmem>>, vector<2x12x16x8xf32>
    %c0_3 = arith.constant 0 : index
    %c0_4 = arith.constant 0 : index
    %1 = vector.load %arg2[%c0_3, %c0_4] : memref<352x128xbf16, #tpu.memory_space<vmem>>, vector<16x16xbf16>
    %2 = vector.shape_cast %1 : vector<16x16xbf16> to vector<1x16x16xbf16>
    %3 = vector.shape_cast %2 : vector<1x16x16xbf16> to vector<1x16x16xbf16>
    %4 = vector.broadcast %3 : vector<1x16x16xbf16> to vector<20x16x16xbf16>
    %c16 = arith.constant 16 : index
    %c0_5 = arith.constant 0 : index
    %5 = vector.load %arg2[%c16, %c0_5] : memref<352x128xbf16, #tpu.memory_space<vmem>>, vector<24x32xbf16>
    %c0_6 = arith.constant 0 : index
    %c0_7 = arith.constant 0 : index
    %6 = vector.load %arg3[%c0_6, %c0_7] : memref<184x128xf32, #tpu.memory_space<vmem>>, vector<1x32xf32>
    %7 = vector.extract_strided_slice %0 {offsets = [0, 0, 0, 0], sizes = [2, 10, 16, 8], strides = [1, 1, 1, 1]} : vector<2x12x16x8xf32> to vector<2x10x16x8xf32>
    %8 = vector.extract_strided_slice %0 {offsets = [0, 1, 0, 0], sizes = [2, 10, 16, 8], strides = [1, 1, 1, 1]} : vector<2x12x16x8xf32> to vector<2x10x16x8xf32>
    %9 = vector.extract_strided_slice %0 {offsets = [0, 2, 0, 0], sizes = [2, 10, 16, 8], strides = [1, 1, 1, 1]} : vector<2x12x16x8xf32> to vector<2x10x16x8xf32>
    %10 = tpu.concatenate %7, %8, %9 in 3 : vector<2x10x16x8xf32>, vector<2x10x16x8xf32>, vector<2x10x16x8xf32> -> vector<2x10x16x24xf32>
    %11 = vector.shape_cast %10 : vector<2x10x16x24xf32> to vector<320x24xf32>
    %12 = arith.truncf %11 : vector<320x24xf32> to vector<320x24xbf16>
    %cst = arith.constant dense<0.000000e+00> : vector<320x32xf32>
    %13 = tpu.matmul %12, %5, %cst {dimension_numbers = #tpu.dot_dimension_numbers<[1], [0], [0], [1], [0, 0, 1, 1], [], []>} : vector<320x24xbf16>, vector<24x32xbf16>, vector<320x32xf32> -> vector<320x32xf32>
    %14 = vector.broadcast %6 : vector<1x32xf32> to vector<320x32xf32>
    %15 = arith.addf %13, %14 : vector<320x32xf32>
    %16 = vector.extract_strided_slice %15 {offsets = [0, 0], sizes = [320, 16], strides = [1, 1]} : vector<320x32xf32> to vector<320x16xf32>
    %17 = vector.extract_strided_slice %15 {offsets = [0, 16], sizes = [320, 16], strides = [1, 1]} : vector<320x32xf32> to vector<320x16xf32>
    %18 = arith.negf %17 : vector<320x16xf32>
    %19 = math.exp %18 : vector<320x16xf32>
    %cst_8 = arith.constant 1.000000e+00 : f32
    %20 = vector.broadcast %cst_8 : f32 to vector<320x16xf32>
    %21 = arith.addf %20, %19 : vector<320x16xf32>
    %22 = arith.divf %20, %21 : vector<320x16xf32>
    %23 = arith.mulf %16, %22 : vector<320x16xf32>
    %24 = vector.shape_cast %23 : vector<320x16xf32> to vector<2x10x16x16xf32>
    %c48 = arith.constant 48 : index
    %c0_9 = arith.constant 0 : index
    %25 = vector.load %arg2[%c48, %c0_9] : memref<352x128xbf16, #tpu.memory_space<vmem>>, vector<16x8xbf16>
    %c8 = arith.constant 8 : index
    %c0_10 = arith.constant 0 : index
    %26 = vector.load %arg3[%c8, %c0_10] : memref<184x128xf32, #tpu.memory_space<vmem>>, vector<1x8xf32>
    %c64 = arith.constant 64 : index
    %c0_11 = arith.constant 0 : index
    %27 = vector.load %arg2[%c64, %c0_11] : memref<352x128xbf16, #tpu.memory_space<vmem>>, vector<8x8xbf16>
    %c16_12 = arith.constant 16 : index
    %c0_13 = arith.constant 0 : index
    %28 = vector.load %arg3[%c16_12, %c0_13] : memref<184x128xf32, #tpu.memory_space<vmem>>, vector<1x8xf32>
    %29 = vector.shape_cast %24 : vector<2x10x16x16xf32> to vector<320x16xf32>
    %30 = arith.truncf %29 : vector<320x16xf32> to vector<320x16xbf16>
    %cst_14 = arith.constant dense<0.000000e+00> : vector<320x8xf32>
    %31 = tpu.matmul %30, %25, %cst_14 {dimension_numbers = #tpu.dot_dimension_numbers<[1], [0], [0], [1], [0, 0, 1, 1], [], []>} : vector<320x16xbf16>, vector<16x8xbf16>, vector<320x8xf32> -> vector<320x8xf32>
    %32 = vector.broadcast %26 : vector<1x8xf32> to vector<320x8xf32>
    %33 = arith.addf %31, %32 : vector<320x8xf32>
    %34 = vector.shape_cast %33 : vector<320x8xf32> to vector<20x16x8xf32>
    %35 = arith.truncf %34 : vector<20x16x8xf32> to vector<20x16x8xbf16>
    "tpu.trace_start"() <{level = 10 : i32, message = "muv,mvc->muc"}> : () -> ()
    %cst_15 = arith.constant dense<0.000000e+00> : vector<20x16x8xf32>
    %36 = tpu.matmul %4, %35, %cst_15 {dimension_numbers = #tpu.dot_dimension_numbers<[2], [1], [1], [2], [0, 0, 0, 1, 1, 2], [0], [0]>} : vector<20x16x16xbf16>, vector<20x16x8xbf16>, vector<20x16x8xf32> -> vector<20x16x8xf32>
    "tpu.trace_stop"() : () -> ()
    %37 = vector.shape_cast %36 : vector<20x16x8xf32> to vector<320x8xf32>
    %38 = arith.truncf %37 : vector<320x8xf32> to vector<320x8xbf16>
    %cst_16 = arith.constant dense<0.000000e+00> : vector<320x8xf32>
    %39 = tpu.matmul %38, %27, %cst_16 {dimension_numbers = #tpu.dot_dimension_numbers<[1], [0], [0], [1], [0, 0, 1, 1], [], []>} : vector<320x8xbf16>, vector<8x8xbf16>, vector<320x8xf32> -> vector<320x8xf32>
    %40 = vector.broadcast %28 : vector<1x8xf32> to vector<320x8xf32>
    %41 = arith.addf %39, %40 : vector<320x8xf32>
    %42 = arith.addf %41, %33 : vector<320x8xf32>
    %cst_17 = arith.constant 0.000000e+00 : f32
    %43 = vector.broadcast %cst_17 : f32 to vector<320x8xf32>
    %44 = arith.maximumf %42, %43 : vector<320x8xf32>
    %45 = vector.shape_cast %44 : vector<320x8xf32> to vector<2x10x16x8xf32>
    %c80 = arith.constant 80 : index
    %c0_18 = arith.constant 0 : index
    %46 = vector.load %arg2[%c80, %c0_18] : memref<352x128xbf16, #tpu.memory_space<vmem>>, vector<24x32xbf16>
    %c24 = arith.constant 24 : index
    %c0_19 = arith.constant 0 : index
    %47 = vector.load %arg3[%c24, %c0_19] : memref<184x128xf32, #tpu.memory_space<vmem>>, vector<1x32xf32>
    %48 = vector.extract_strided_slice %45 {offsets = [0, 0, 0, 0], sizes = [2, 8, 16, 8], strides = [1, 1, 1, 1]} : vector<2x10x16x8xf32> to vector<2x8x16x8xf32>
    %49 = vector.extract_strided_slice %45 {offsets = [0, 1, 0, 0], sizes = [2, 8, 16, 8], strides = [1, 1, 1, 1]} : vector<2x10x16x8xf32> to vector<2x8x16x8xf32>
    %50 = vector.extract_strided_slice %45 {offsets = [0, 2, 0, 0], sizes = [2, 8, 16, 8], strides = [1, 1, 1, 1]} : vector<2x10x16x8xf32> to vector<2x8x16x8xf32>
    %51 = tpu.concatenate %48, %49, %50 in 3 : vector<2x8x16x8xf32>, vector<2x8x16x8xf32>, vector<2x8x16x8xf32> -> vector<2x8x16x24xf32>
    %52 = vector.shape_cast %51 : vector<2x8x16x24xf32> to vector<256x24xf32>
    %53 = arith.truncf %52 : vector<256x24xf32> to vector<256x24xbf16>
    %cst_20 = arith.constant dense<0.000000e+00> : vector<256x32xf32>
    %54 = tpu.matmul %53, %46, %cst_20 {dimension_numbers = #tpu.dot_dimension_numbers<[1], [0], [0], [1], [0, 0, 1, 1], [], []>} : vector<256x24xbf16>, vector<24x32xbf16>, vector<256x32xf32> -> vector<256x32xf32>
    %55 = vector.broadcast %47 : vector<1x32xf32> to vector<256x32xf32>
    %56 = arith.addf %54, %55 : vector<256x32xf32>
    %57 = vector.extract_strided_slice %56 {offsets = [0, 0], sizes = [256, 16], strides = [1, 1]} : vector<256x32xf32> to vector<256x16xf32>
    %58 = vector.extract_strided_slice %56 {offsets = [0, 16], sizes = [256, 16], strides = [1, 1]} : vector<256x32xf32> to vector<256x16xf32>
    %59 = arith.negf %58 : vector<256x16xf32>
    %60 = math.exp %59 : vector<256x16xf32>
    %cst_21 = arith.constant 1.000000e+00 : f32
    %61 = vector.broadcast %cst_21 : f32 to vector<256x16xf32>
    %62 = arith.addf %61, %60 : vector<256x16xf32>
    %63 = arith.divf %61, %62 : vector<256x16xf32>
    %64 = arith.mulf %57, %63 : vector<256x16xf32>
    %65 = vector.shape_cast %64 : vector<256x16xf32> to vector<2x8x16x16xf32>
    %c32 = arith.constant 32 : index
    %c0_22 = arith.constant 0 : index
    %66 = vector.load %arg3[%c32, %c0_22] : memref<184x128xf32, #tpu.memory_space<vmem>>, vector<16x16xf32>
    %c48_23 = arith.constant 48 : index
    %c0_24 = arith.constant 0 : index
    %67 = vector.load %arg3[%c48_23, %c0_24] : memref<184x128xf32, #tpu.memory_space<vmem>>, vector<16x16xf32>
    %cst_25 = arith.constant dense<0.000000e+00> : vector<2x8x16xf32>
    %68 = vector.multi_reduction <add>, %65, %cst_25 [3] : vector<2x8x16x16xf32> to vector<2x8x16xf32>
    %69 = vector.shape_cast %68 : vector<2x8x16xf32> to vector<2x8x16x1xf32>
    %cst_26 = arith.constant dense<0.000000e+00> : vector<2x8x1xf32>
    %70 = vector.multi_reduction <add>, %69, %cst_26 [2] : vector<2x8x16x1xf32> to vector<2x8x1xf32>
    %71 = vector.shape_cast %70 : vector<2x8x1xf32> to vector<2x8x1x1xf32>
    %cst_27 = arith.constant 3.906250e-03 : f32
    %72 = vector.broadcast %cst_27 : f32 to vector<2x8x1x1xf32>
    %73 = arith.mulf %71, %72 : vector<2x8x1x1xf32>
    %74 = vector.broadcast %73 : vector<2x8x1x1xf32> to vector<2x8x16x16xf32>
    %75 = arith.subf %65, %74 : vector<2x8x16x16xf32>
    %76 = arith.mulf %75, %75 : vector<2x8x16x16xf32>
    %cst_28 = arith.constant dense<0.000000e+00> : vector<2x8x16xf32>
    %77 = vector.multi_reduction <add>, %76, %cst_28 [3] : vector<2x8x16x16xf32> to vector<2x8x16xf32>
    %78 = vector.shape_cast %77 : vector<2x8x16xf32> to vector<2x8x16x1xf32>
    %cst_29 = arith.constant dense<0.000000e+00> : vector<2x8x1xf32>
    %79 = vector.multi_reduction <add>, %78, %cst_29 [2] : vector<2x8x16x1xf32> to vector<2x8x1xf32>
    %80 = vector.shape_cast %79 : vector<2x8x1xf32> to vector<2x8x1x1xf32>
    %cst_30 = arith.constant 3.906250e-03 : f32
    %81 = vector.broadcast %cst_30 : f32 to vector<2x8x1x1xf32>
    %82 = arith.mulf %80, %81 : vector<2x8x1x1xf32>
    %83 = vector.broadcast %73 : vector<2x8x1x1xf32> to vector<2x8x16x16xf32>
    %84 = arith.subf %65, %83 : vector<2x8x16x16xf32>
    %cst_31 = arith.constant 9.99999974E-6 : f32
    %85 = vector.broadcast %cst_31 : f32 to vector<2x8x1x1xf32>
    %86 = arith.addf %82, %85 : vector<2x8x1x1xf32>
    %87 = math.rsqrt %86 : vector<2x8x1x1xf32>
    %88 = vector.broadcast %87 : vector<2x8x1x1xf32> to vector<2x8x16x16xf32>
    %89 = arith.mulf %84, %88 : vector<2x8x16x16xf32>
    %90 = vector.shape_cast %66 : vector<16x16xf32> to vector<1x1x16x16xf32>
    %91 = vector.broadcast %90 : vector<1x1x16x16xf32> to vector<2x8x16x16xf32>
    %92 = arith.mulf %89, %91 : vector<2x8x16x16xf32>
    %93 = vector.shape_cast %67 : vector<16x16xf32> to vector<1x1x16x16xf32>
    %94 = vector.broadcast %93 : vector<1x1x16x16xf32> to vector<2x8x16x16xf32>
    %95 = arith.addf %92, %94 : vector<2x8x16x16xf32>
    %c112 = arith.constant 112 : index
    %c0_32 = arith.constant 0 : index
    %96 = vector.load %arg2[%c112, %c0_32] : memref<352x128xbf16, #tpu.memory_space<vmem>>, vector<48x32xbf16>
    %c64_33 = arith.constant 64 : index
    %c0_34 = arith.constant 0 : index
    %97 = vector.load %arg3[%c64_33, %c0_34] : memref<184x128xf32, #tpu.memory_space<vmem>>, vector<1x32xf32>
    %98 = vector.extract_strided_slice %95 {offsets = [0, 0, 0, 0], sizes = [2, 6, 16, 16], strides = [1, 1, 1, 1]} : vector<2x8x16x16xf32> to vector<2x6x16x16xf32>
    %99 = vector.extract_strided_slice %95 {offsets = [0, 1, 0, 0], sizes = [2, 6, 16, 16], strides = [1, 1, 1, 1]} : vector<2x8x16x16xf32> to vector<2x6x16x16xf32>
    %100 = vector.extract_strided_slice %95 {offsets = [0, 2, 0, 0], sizes = [2, 6, 16, 16], strides = [1, 1, 1, 1]} : vector<2x8x16x16xf32> to vector<2x6x16x16xf32>
    %101 = tpu.concatenate %98, %99, %100 in 3 : vector<2x6x16x16xf32>, vector<2x6x16x16xf32>, vector<2x6x16x16xf32> -> vector<2x6x16x48xf32>
    %102 = vector.shape_cast %101 : vector<2x6x16x48xf32> to vector<192x48xf32>
    %103 = arith.truncf %102 : vector<192x48xf32> to vector<192x48xbf16>
    %cst_35 = arith.constant dense<0.000000e+00> : vector<192x32xf32>
    %104 = tpu.matmul %103, %96, %cst_35 {dimension_numbers = #tpu.dot_dimension_numbers<[1], [0], [0], [1], [0, 0, 1, 1], [], []>} : vector<192x48xbf16>, vector<48x32xbf16>, vector<192x32xf32> -> vector<192x32xf32>
    %105 = vector.broadcast %97 : vector<1x32xf32> to vector<192x32xf32>
    %106 = arith.addf %104, %105 : vector<192x32xf32>
    %107 = vector.extract_strided_slice %106 {offsets = [0, 0], sizes = [192, 16], strides = [1, 1]} : vector<192x32xf32> to vector<192x16xf32>
    %108 = vector.extract_strided_slice %106 {offsets = [0, 16], sizes = [192, 16], strides = [1, 1]} : vector<192x32xf32> to vector<192x16xf32>
    %109 = arith.negf %108 : vector<192x16xf32>
    %110 = math.exp %109 : vector<192x16xf32>
    %cst_36 = arith.constant 1.000000e+00 : f32
    %111 = vector.broadcast %cst_36 : f32 to vector<192x16xf32>
    %112 = arith.addf %111, %110 : vector<192x16xf32>
    %113 = arith.divf %111, %112 : vector<192x16xf32>
    %114 = arith.mulf %107, %113 : vector<192x16xf32>
    %115 = vector.shape_cast %114 : vector<192x16xf32> to vector<2x6x16x16xf32>
    %c160 = arith.constant 160 : index
    %c0_37 = arith.constant 0 : index
    %116 = vector.load %arg2[%c160, %c0_37] : memref<352x128xbf16, #tpu.memory_space<vmem>>, vector<16x8xbf16>
    %c72 = arith.constant 72 : index
    %c0_38 = arith.constant 0 : index
    %117 = vector.load %arg3[%c72, %c0_38] : memref<184x128xf32, #tpu.memory_space<vmem>>, vector<1x8xf32>
    %c176 = arith.constant 176 : index
    %c0_39 = arith.constant 0 : index
    %118 = vector.load %arg2[%c176, %c0_39] : memref<352x128xbf16, #tpu.memory_space<vmem>>, vector<8x8xbf16>
    %c80_40 = arith.constant 80 : index
    %c0_41 = arith.constant 0 : index
    %119 = vector.load %arg3[%c80_40, %c0_41] : memref<184x128xf32, #tpu.memory_space<vmem>>, vector<1x8xf32>
    %120 = vector.shape_cast %115 : vector<2x6x16x16xf32> to vector<192x16xf32>
    %121 = arith.truncf %120 : vector<192x16xf32> to vector<192x16xbf16>
    %cst_42 = arith.constant dense<0.000000e+00> : vector<192x8xf32>
    %122 = tpu.matmul %121, %116, %cst_42 {dimension_numbers = #tpu.dot_dimension_numbers<[1], [0], [0], [1], [0, 0, 1, 1], [], []>} : vector<192x16xbf16>, vector<16x8xbf16>, vector<192x8xf32> -> vector<192x8xf32>
    %123 = vector.broadcast %117 : vector<1x8xf32> to vector<192x8xf32>
    %124 = arith.addf %122, %123 : vector<192x8xf32>
    %125 = vector.shape_cast %124 : vector<192x8xf32> to vector<12x16x8xf32>
    %126 = vector.extract_strided_slice %4 {offsets = [0, 0, 0], sizes = [12, 16, 16], strides = [1, 1, 1]} : vector<20x16x16xbf16> to vector<12x16x16xbf16>
    %127 = arith.truncf %125 : vector<12x16x8xf32> to vector<12x16x8xbf16>
    "tpu.trace_start"() <{level = 10 : i32, message = "muv,mvc->muc"}> : () -> ()
    %cst_43 = arith.constant dense<0.000000e+00> : vector<12x16x8xf32>
    %128 = tpu.matmul %126, %127, %cst_43 {dimension_numbers = #tpu.dot_dimension_numbers<[2], [1], [1], [2], [0, 0, 0, 1, 1, 2], [0], [0]>} : vector<12x16x16xbf16>, vector<12x16x8xbf16>, vector<12x16x8xf32> -> vector<12x16x8xf32>
    "tpu.trace_stop"() : () -> ()
    %129 = vector.shape_cast %128 : vector<12x16x8xf32> to vector<192x8xf32>
    %130 = arith.truncf %129 : vector<192x8xf32> to vector<192x8xbf16>
    %cst_44 = arith.constant dense<0.000000e+00> : vector<192x8xf32>
    %131 = tpu.matmul %130, %118, %cst_44 {dimension_numbers = #tpu.dot_dimension_numbers<[1], [0], [0], [1], [0, 0, 1, 1], [], []>} : vector<192x8xbf16>, vector<8x8xbf16>, vector<192x8xf32> -> vector<192x8xf32>
    %132 = vector.broadcast %119 : vector<1x8xf32> to vector<192x8xf32>
    %133 = arith.addf %131, %132 : vector<192x8xf32>
    %134 = arith.addf %133, %124 : vector<192x8xf32>
    %cst_45 = arith.constant 0.000000e+00 : f32
    %135 = vector.broadcast %cst_45 : f32 to vector<192x8xf32>
    %136 = arith.maximumf %134, %135 : vector<192x8xf32>
    %137 = vector.shape_cast %136 : vector<192x8xf32> to vector<2x6x16x8xf32>
    %c192 = arith.constant 192 : index
    %c0_46 = arith.constant 0 : index
    %138 = vector.load %arg2[%c192, %c0_46] : memref<352x128xbf16, #tpu.memory_space<vmem>>, vector<24x32xbf16>
    %c88 = arith.constant 88 : index
    %c0_47 = arith.constant 0 : index
    %139 = vector.load %arg3[%c88, %c0_47] : memref<184x128xf32, #tpu.memory_space<vmem>>, vector<1x32xf32>
    %140 = vector.extract_strided_slice %137 {offsets = [0, 0, 0, 0], sizes = [2, 4, 16, 8], strides = [1, 1, 1, 1]} : vector<2x6x16x8xf32> to vector<2x4x16x8xf32>
    %141 = vector.extract_strided_slice %137 {offsets = [0, 1, 0, 0], sizes = [2, 4, 16, 8], strides = [1, 1, 1, 1]} : vector<2x6x16x8xf32> to vector<2x4x16x8xf32>
    %142 = vector.extract_strided_slice %137 {offsets = [0, 2, 0, 0], sizes = [2, 4, 16, 8], strides = [1, 1, 1, 1]} : vector<2x6x16x8xf32> to vector<2x4x16x8xf32>
    %143 = tpu.concatenate %140, %141, %142 in 3 : vector<2x4x16x8xf32>, vector<2x4x16x8xf32>, vector<2x4x16x8xf32> -> vector<2x4x16x24xf32>
    %144 = vector.shape_cast %143 : vector<2x4x16x24xf32> to vector<128x24xf32>
    %145 = arith.truncf %144 : vector<128x24xf32> to vector<128x24xbf16>
    %cst_48 = arith.constant dense<0.000000e+00> : vector<128x32xf32>
    %146 = tpu.matmul %145, %138, %cst_48 {dimension_numbers = #tpu.dot_dimension_numbers<[1], [0], [0], [1], [0, 0, 1, 1], [], []>} : vector<128x24xbf16>, vector<24x32xbf16>, vector<128x32xf32> -> vector<128x32xf32>
    %147 = vector.broadcast %139 : vector<1x32xf32> to vector<128x32xf32>
    %148 = arith.addf %146, %147 : vector<128x32xf32>
    %149 = vector.extract_strided_slice %148 {offsets = [0, 0], sizes = [128, 16], strides = [1, 1]} : vector<128x32xf32> to vector<128x16xf32>
    %150 = vector.extract_strided_slice %148 {offsets = [0, 16], sizes = [128, 16], strides = [1, 1]} : vector<128x32xf32> to vector<128x16xf32>
    %151 = arith.negf %150 : vector<128x16xf32>
    %152 = math.exp %151 : vector<128x16xf32>
    %cst_49 = arith.constant 1.000000e+00 : f32
    %153 = vector.broadcast %cst_49 : f32 to vector<128x16xf32>
    %154 = arith.addf %153, %152 : vector<128x16xf32>
    %155 = arith.divf %153, %154 : vector<128x16xf32>
    %156 = arith.mulf %149, %155 : vector<128x16xf32>
    %157 = vector.shape_cast %156 : vector<128x16xf32> to vector<2x4x16x16xf32>
    %c96 = arith.constant 96 : index
    %c0_50 = arith.constant 0 : index
    %158 = vector.load %arg3[%c96, %c0_50] : memref<184x128xf32, #tpu.memory_space<vmem>>, vector<16x16xf32>
    %c112_51 = arith.constant 112 : index
    %c0_52 = arith.constant 0 : index
    %159 = vector.load %arg3[%c112_51, %c0_52] : memref<184x128xf32, #tpu.memory_space<vmem>>, vector<16x16xf32>
    %cst_53 = arith.constant dense<0.000000e+00> : vector<2x4x16xf32>
    %160 = vector.multi_reduction <add>, %157, %cst_53 [3] : vector<2x4x16x16xf32> to vector<2x4x16xf32>
    %161 = vector.shape_cast %160 : vector<2x4x16xf32> to vector<2x4x16x1xf32>
    %cst_54 = arith.constant dense<0.000000e+00> : vector<2x4x1xf32>
    %162 = vector.multi_reduction <add>, %161, %cst_54 [2] : vector<2x4x16x1xf32> to vector<2x4x1xf32>
    %163 = vector.shape_cast %162 : vector<2x4x1xf32> to vector<2x4x1x1xf32>
    %cst_55 = arith.constant 3.906250e-03 : f32
    %164 = vector.broadcast %cst_55 : f32 to vector<2x4x1x1xf32>
    %165 = arith.mulf %163, %164 : vector<2x4x1x1xf32>
    %166 = vector.broadcast %165 : vector<2x4x1x1xf32> to vector<2x4x16x16xf32>
    %167 = arith.subf %157, %166 : vector<2x4x16x16xf32>
    %168 = arith.mulf %167, %167 : vector<2x4x16x16xf32>
    %cst_56 = arith.constant dense<0.000000e+00> : vector<2x4x16xf32>
    %169 = vector.multi_reduction <add>, %168, %cst_56 [3] : vector<2x4x16x16xf32> to vector<2x4x16xf32>
    %170 = vector.shape_cast %169 : vector<2x4x16xf32> to vector<2x4x16x1xf32>
    %cst_57 = arith.constant dense<0.000000e+00> : vector<2x4x1xf32>
    %171 = vector.multi_reduction <add>, %170, %cst_57 [2] : vector<2x4x16x1xf32> to vector<2x4x1xf32>
    %172 = vector.shape_cast %171 : vector<2x4x1xf32> to vector<2x4x1x1xf32>
    %cst_58 = arith.constant 3.906250e-03 : f32
    %173 = vector.broadcast %cst_58 : f32 to vector<2x4x1x1xf32>
    %174 = arith.mulf %172, %173 : vector<2x4x1x1xf32>
    %175 = vector.broadcast %165 : vector<2x4x1x1xf32> to vector<2x4x16x16xf32>
    %176 = arith.subf %157, %175 : vector<2x4x16x16xf32>
    %cst_59 = arith.constant 9.99999974E-6 : f32
    %177 = vector.broadcast %cst_59 : f32 to vector<2x4x1x1xf32>
    %178 = arith.addf %174, %177 : vector<2x4x1x1xf32>
    %179 = math.rsqrt %178 : vector<2x4x1x1xf32>
    %180 = vector.broadcast %179 : vector<2x4x1x1xf32> to vector<2x4x16x16xf32>
    %181 = arith.mulf %176, %180 : vector<2x4x16x16xf32>
    %182 = vector.shape_cast %158 : vector<16x16xf32> to vector<1x1x16x16xf32>
    %183 = vector.broadcast %182 : vector<1x1x16x16xf32> to vector<2x4x16x16xf32>
    %184 = arith.mulf %181, %183 : vector<2x4x16x16xf32>
    %185 = vector.shape_cast %159 : vector<16x16xf32> to vector<1x1x16x16xf32>
    %186 = vector.broadcast %185 : vector<1x1x16x16xf32> to vector<2x4x16x16xf32>
    %187 = arith.addf %184, %186 : vector<2x4x16x16xf32>
    %c224 = arith.constant 224 : index
    %c0_60 = arith.constant 0 : index
    %188 = vector.load %arg2[%c224, %c0_60] : memref<352x128xbf16, #tpu.memory_space<vmem>>, vector<64x64xbf16>
    %c128 = arith.constant 128 : index
    %c0_61 = arith.constant 0 : index
    %189 = vector.load %arg3[%c128, %c0_61] : memref<184x128xf32, #tpu.memory_space<vmem>>, vector<1x64xf32>
    %190 = vector.extract_strided_slice %187 {offsets = [0, 0, 0, 0], sizes = [2, 1, 16, 16], strides = [1, 1, 1, 1]} : vector<2x4x16x16xf32> to vector<2x1x16x16xf32>
    %191 = vector.extract_strided_slice %187 {offsets = [0, 1, 0, 0], sizes = [2, 1, 16, 16], strides = [1, 1, 1, 1]} : vector<2x4x16x16xf32> to vector<2x1x16x16xf32>
    %192 = vector.extract_strided_slice %187 {offsets = [0, 2, 0, 0], sizes = [2, 1, 16, 16], strides = [1, 1, 1, 1]} : vector<2x4x16x16xf32> to vector<2x1x16x16xf32>
    %193 = vector.extract_strided_slice %187 {offsets = [0, 3, 0, 0], sizes = [2, 1, 16, 16], strides = [1, 1, 1, 1]} : vector<2x4x16x16xf32> to vector<2x1x16x16xf32>
    %194 = tpu.concatenate %190, %191, %192, %193 in 3 : vector<2x1x16x16xf32>, vector<2x1x16x16xf32>, vector<2x1x16x16xf32>, vector<2x1x16x16xf32> -> vector<2x1x16x64xf32>
    %195 = vector.shape_cast %194 : vector<2x1x16x64xf32> to vector<32x64xf32>
    %196 = arith.truncf %195 : vector<32x64xf32> to vector<32x64xbf16>
    %cst_62 = arith.constant dense<0.000000e+00> : vector<32x64xf32>
    %197 = tpu.matmul %196, %188, %cst_62 {dimension_numbers = #tpu.dot_dimension_numbers<[1], [0], [0], [1], [0, 0, 1, 1], [], []>} : vector<32x64xbf16>, vector<64x64xbf16>, vector<32x64xf32> -> vector<32x64xf32>
    %198 = vector.broadcast %189 : vector<1x64xf32> to vector<32x64xf32>
    %199 = arith.addf %197, %198 : vector<32x64xf32>
    %200 = vector.extract_strided_slice %199 {offsets = [0, 0], sizes = [32, 32], strides = [1, 1]} : vector<32x64xf32> to vector<32x32xf32>
    %201 = vector.extract_strided_slice %199 {offsets = [0, 32], sizes = [32, 32], strides = [1, 1]} : vector<32x64xf32> to vector<32x32xf32>
    %202 = arith.negf %201 : vector<32x32xf32>
    %203 = math.exp %202 : vector<32x32xf32>
    %cst_63 = arith.constant 1.000000e+00 : f32
    %204 = vector.broadcast %cst_63 : f32 to vector<32x32xf32>
    %205 = arith.addf %204, %203 : vector<32x32xf32>
    %206 = arith.divf %204, %205 : vector<32x32xf32>
    %207 = arith.mulf %200, %206 : vector<32x32xf32>
    %208 = vector.shape_cast %207 : vector<32x32xf32> to vector<2x1x16x32xf32>
    %c136 = arith.constant 136 : index
    %c0_64 = arith.constant 0 : index
    %209 = vector.load %arg3[%c136, %c0_64] : memref<184x128xf32, #tpu.memory_space<vmem>>, vector<16x32xf32>
    %c152 = arith.constant 152 : index
    %c0_65 = arith.constant 0 : index
    %210 = vector.load %arg3[%c152, %c0_65] : memref<184x128xf32, #tpu.memory_space<vmem>>, vector<16x32xf32>
    %cst_66 = arith.constant dense<0.000000e+00> : vector<2x1x16xf32>
    %211 = vector.multi_reduction <add>, %208, %cst_66 [3] : vector<2x1x16x32xf32> to vector<2x1x16xf32>
    %212 = vector.shape_cast %211 : vector<2x1x16xf32> to vector<2x1x16x1xf32>
    %cst_67 = arith.constant dense<0.000000e+00> : vector<2x1x1xf32>
    %213 = vector.multi_reduction <add>, %212, %cst_67 [2] : vector<2x1x16x1xf32> to vector<2x1x1xf32>
    %214 = vector.shape_cast %213 : vector<2x1x1xf32> to vector<2x1x1x1xf32>
    %cst_68 = arith.constant 0.001953125 : f32
    %215 = vector.broadcast %cst_68 : f32 to vector<2x1x1x1xf32>
    %216 = arith.mulf %214, %215 : vector<2x1x1x1xf32>
    %217 = vector.broadcast %216 : vector<2x1x1x1xf32> to vector<2x1x16x32xf32>
    %218 = arith.subf %208, %217 : vector<2x1x16x32xf32>
    %219 = arith.mulf %218, %218 : vector<2x1x16x32xf32>
    %cst_69 = arith.constant dense<0.000000e+00> : vector<2x1x16xf32>
    %220 = vector.multi_reduction <add>, %219, %cst_69 [3] : vector<2x1x16x32xf32> to vector<2x1x16xf32>
    %221 = vector.shape_cast %220 : vector<2x1x16xf32> to vector<2x1x16x1xf32>
    %cst_70 = arith.constant dense<0.000000e+00> : vector<2x1x1xf32>
    %222 = vector.multi_reduction <add>, %221, %cst_70 [2] : vector<2x1x16x1xf32> to vector<2x1x1xf32>
    %223 = vector.shape_cast %222 : vector<2x1x1xf32> to vector<2x1x1x1xf32>
    %cst_71 = arith.constant 0.001953125 : f32
    %224 = vector.broadcast %cst_71 : f32 to vector<2x1x1x1xf32>
    %225 = arith.mulf %223, %224 : vector<2x1x1x1xf32>
    %226 = vector.broadcast %216 : vector<2x1x1x1xf32> to vector<2x1x16x32xf32>
    %227 = arith.subf %208, %226 : vector<2x1x16x32xf32>
    %cst_72 = arith.constant 9.99999974E-6 : f32
    %228 = vector.broadcast %cst_72 : f32 to vector<2x1x1x1xf32>
    %229 = arith.addf %225, %228 : vector<2x1x1x1xf32>
    %230 = math.rsqrt %229 : vector<2x1x1x1xf32>
    %231 = vector.broadcast %230 : vector<2x1x1x1xf32> to vector<2x1x16x32xf32>
    %232 = arith.mulf %227, %231 : vector<2x1x16x32xf32>
    %233 = vector.shape_cast %209 : vector<16x32xf32> to vector<1x1x16x32xf32>
    %234 = vector.broadcast %233 : vector<1x1x16x32xf32> to vector<2x1x16x32xf32>
    %235 = arith.mulf %232, %234 : vector<2x1x16x32xf32>
    %236 = vector.shape_cast %210 : vector<16x32xf32> to vector<1x1x16x32xf32>
    %237 = vector.broadcast %236 : vector<1x1x16x32xf32> to vector<2x1x16x32xf32>
    %238 = arith.addf %235, %237 : vector<2x1x16x32xf32>
    %239 = vector.shape_cast %238 : vector<2x1x16x32xf32> to vector<32x32xf32>
    %240 = arith.truncf %239 : vector<32x32xf32> to vector<32x32xbf16>
    %c288 = arith.constant 288 : index
    %c0_73 = arith.constant 0 : index
    %241 = vector.load %arg2[%c288, %c0_73] : memref<352x128xbf16, #tpu.memory_space<vmem>>, vector<32x32xbf16>
    %cst_74 = arith.constant dense<0.000000e+00> : vector<32x32xf32>
    %242 = tpu.matmul %240, %241, %cst_74 {dimension_numbers = #tpu.dot_dimension_numbers<[1], [0], [0], [1], [0, 0, 1, 1], [], []>} : vector<32x32xbf16>, vector<32x32xbf16>, vector<32x32xf32> -> vector<32x32xf32>
    %c168 = arith.constant 168 : index
    %c0_75 = arith.constant 0 : index
    %243 = vector.load %arg3[%c168, %c0_75] : memref<184x128xf32, #tpu.memory_space<vmem>>, vector<1x32xf32>
    %244 = vector.broadcast %243 : vector<1x32xf32> to vector<32x32xf32>
    %245 = arith.addf %242, %244 : vector<32x32xf32>
    %cst_76 = arith.constant 0.000000e+00 : f32
    %246 = vector.broadcast %cst_76 : f32 to vector<32x32xf32>
    %247 = arith.maximumf %245, %246 : vector<32x32xf32>
    %248 = arith.truncf %247 : vector<32x32xf32> to vector<32x32xbf16>
    %c320 = arith.constant 320 : index
    %c0_77 = arith.constant 0 : index
    %249 = vector.load %arg2[%c320, %c0_77] : memref<352x128xbf16, #tpu.memory_space<vmem>>, vector<32x8xbf16>
    %cst_78 = arith.constant dense<0.000000e+00> : vector<32x8xf32>
    %250 = tpu.matmul %248, %249, %cst_78 {dimension_numbers = #tpu.dot_dimension_numbers<[1], [0], [0], [1], [0, 0, 1, 1], [], []>} : vector<32x32xbf16>, vector<32x8xbf16>, vector<32x8xf32> -> vector<32x8xf32>
    %c176_79 = arith.constant 176 : index
    %c0_80 = arith.constant 0 : index
    %251 = vector.load %arg3[%c176_79, %c0_80] : memref<184x128xf32, #tpu.memory_space<vmem>>, vector<1x8xf32>
    %252 = vector.broadcast %251 : vector<1x8xf32> to vector<32x8xf32>
    %253 = arith.addf %250, %252 : vector<32x8xf32>
    %254 = vector.shape_cast %253 : vector<32x8xf32> to vector<2x16x8xf32>
    %255 = vector.extract_strided_slice %254 {offsets = [0, 0, 0], sizes = [2, 1, 8], strides = [1, 1, 1]} : vector<2x16x8xf32> to vector<2x1x8xf32>
    %256 = vector.shape_cast %255 : vector<2x1x8xf32> to vector<2x8xf32>
    %257 = vector.extract_strided_slice %254 {offsets = [0, 1, 0], sizes = [2, 1, 8], strides = [1, 1, 1]} : vector<2x16x8xf32> to vector<2x1x8xf32>
    %258 = vector.shape_cast %257 : vector<2x1x8xf32> to vector<2x8xf32>
    %259 = vector.extract_strided_slice %254 {offsets = [0, 2, 0], sizes = [2, 1, 8], strides = [1, 1, 1]} : vector<2x16x8xf32> to vector<2x1x8xf32>
    %260 = vector.shape_cast %259 : vector<2x1x8xf32> to vector<2x8xf32>
    %261 = vector.extract_strided_slice %254 {offsets = [0, 3, 0], sizes = [2, 1, 8], strides = [1, 1, 1]} : vector<2x16x8xf32> to vector<2x1x8xf32>
    %262 = vector.shape_cast %261 : vector<2x1x8xf32> to vector<2x8xf32>
    %263 = vector.extract_strided_slice %254 {offsets = [0, 4, 0], sizes = [2, 1, 8], strides = [1, 1, 1]} : vector<2x16x8xf32> to vector<2x1x8xf32>
    %264 = vector.shape_cast %263 : vector<2x1x8xf32> to vector<2x8xf32>
    %265 = vector.extract_strided_slice %254 {offsets = [0, 5, 0], sizes = [2, 1, 8], strides = [1, 1, 1]} : vector<2x16x8xf32> to vector<2x1x8xf32>
    %266 = vector.shape_cast %265 : vector<2x1x8xf32> to vector<2x8xf32>
    %267 = vector.extract_strided_slice %254 {offsets = [0, 6, 0], sizes = [2, 1, 8], strides = [1, 1, 1]} : vector<2x16x8xf32> to vector<2x1x8xf32>
    %268 = vector.shape_cast %267 : vector<2x1x8xf32> to vector<2x8xf32>
    %269 = vector.extract_strided_slice %254 {offsets = [0, 7, 0], sizes = [2, 1, 8], strides = [1, 1, 1]} : vector<2x16x8xf32> to vector<2x1x8xf32>
    %270 = vector.shape_cast %269 : vector<2x1x8xf32> to vector<2x8xf32>
    %271 = vector.extract_strided_slice %254 {offsets = [0, 8, 0], sizes = [2, 1, 8], strides = [1, 1, 1]} : vector<2x16x8xf32> to vector<2x1x8xf32>
    %272 = vector.shape_cast %271 : vector<2x1x8xf32> to vector<2x8xf32>
    %273 = vector.extract_strided_slice %254 {offsets = [0, 9, 0], sizes = [2, 1, 8], strides = [1, 1, 1]} : vector<2x16x8xf32> to vector<2x1x8xf32>
    %274 = vector.shape_cast %273 : vector<2x1x8xf32> to vector<2x8xf32>
    %275 = vector.extract_strided_slice %254 {offsets = [0, 10, 0], sizes = [2, 1, 8], strides = [1, 1, 1]} : vector<2x16x8xf32> to vector<2x1x8xf32>
    %276 = vector.shape_cast %275 : vector<2x1x8xf32> to vector<2x8xf32>
    %277 = vector.extract_strided_slice %254 {offsets = [0, 11, 0], sizes = [2, 1, 8], strides = [1, 1, 1]} : vector<2x16x8xf32> to vector<2x1x8xf32>
    %278 = vector.shape_cast %277 : vector<2x1x8xf32> to vector<2x8xf32>
    %279 = vector.extract_strided_slice %254 {offsets = [0, 12, 0], sizes = [2, 1, 8], strides = [1, 1, 1]} : vector<2x16x8xf32> to vector<2x1x8xf32>
    %280 = vector.shape_cast %279 : vector<2x1x8xf32> to vector<2x8xf32>
    %281 = vector.extract_strided_slice %254 {offsets = [0, 13, 0], sizes = [2, 1, 8], strides = [1, 1, 1]} : vector<2x16x8xf32> to vector<2x1x8xf32>
    %282 = vector.shape_cast %281 : vector<2x1x8xf32> to vector<2x8xf32>
    %283 = vector.extract_strided_slice %254 {offsets = [0, 14, 0], sizes = [2, 1, 8], strides = [1, 1, 1]} : vector<2x16x8xf32> to vector<2x1x8xf32>
    %284 = vector.shape_cast %283 : vector<2x1x8xf32> to vector<2x8xf32>
    %285 = vector.extract_strided_slice %254 {offsets = [0, 15, 0], sizes = [2, 1, 8], strides = [1, 1, 1]} : vector<2x16x8xf32> to vector<2x1x8xf32>
    %286 = vector.shape_cast %285 : vector<2x1x8xf32> to vector<2x8xf32>
    %287 = tpu.concatenate %256, %258, %260, %262, %264, %266, %268, %270, %272, %274, %276, %278, %280, %282, %284, %286 in 1 : vector<2x8xf32>, vector<2x8xf32>, vector<2x8xf32>, vector<2x8xf32>, vector<2x8xf32>, vector<2x8xf32>, vector<2x8xf32>, vector<2x8xf32>, vector<2x8xf32>, vector<2x8xf32>, vector<2x8xf32>, vector<2x8xf32>, vector<2x8xf32>, vector<2x8xf32>, vector<2x8xf32>, vector<2x8xf32> -> vector<2x128xf32>
    %c0_81 = arith.constant 0 : index
    %c0_82 = arith.constant 0 : index
    %288 = vector.load %arg4[%c0_81, %c0_82] : memref<2x128xf32, #tpu.memory_space<vmem>>, vector<2x128xf32>
    tpu.vector_store %arg4[%c0_81, %c0_82], %287 {strides = array<i32>} : memref<2x128xf32, #tpu.memory_space<vmem>>, vector<2x128xf32>,
    return
  }
  func.func @transform_0(%arg0: i32) -> (i32, i32, i32, i32) {
    %c0_i32 = arith.constant 0 : i32
    %c0_i32_0 = arith.constant 0 : i32
    %c0_i32_1 = arith.constant 0 : i32
    %c0_i32_2 = arith.constant 0 : i32
    return %arg0, %c0_i32, %c0_i32_0, %c0_i32_1 : i32, i32, i32, i32
  }
  func.func @transform_1(%arg0: i32) -> (i32, i32) {
    %c0_i32 = arith.constant 0 : i32
    %c0_i32_0 = arith.constant 0 : i32
    %c0_i32_1 = arith.constant 0 : i32
    return %c0_i32, %c0_i32_0 : i32, i32
  }
  func.func @transform_2(%arg0: i32) -> (i32, i32) {
    %c0_i32 = arith.constant 0 : i32
    %c0_i32_0 = arith.constant 0 : i32
    %c0_i32_1 = arith.constant 0 : i32
    return %c0_i32, %c0_i32_0 : i32, i32
  }
  func.func @transform_3(%arg0: i32) -> (i32, i32) {
    %c0_i32 = arith.constant 0 : i32
    %c0_i32_0 = arith.constant 0 : i32
    return %arg0, %c0_i32 : i32, i32
  }
}

</mosaic_0001>

<bundles_post_ra>
// kernel: tpu_custom_call.1
= control target key start
LH: loop header
LB: loop body
LE: loop exit
PB: predicated region body
PF: predicated region fallthrough
CT: control target
= control target key end

     0   :  { %s9366_s24 = smov 8   ;;  %s9367_s25 = smov 16   ;;  %vm530_vm0 = vcmask 1043456   ;;  %s12644_s0 = inlined_call_operand.vmem [shape: f32[2,12,16,8], index: 0, kind: input, shape index: {}]   ;;  %s12645_s1 = inlined_call_operand.vmem [shape: bf16[352,128], index: 1, kind: input, shape index: {}]   ;;  %s12646_s2 = inlined_call_operand.vmem [shape: f32[184,128], index: 2, kind: input, shape index: {}]   ;;  %s12647_s3 = inlined_call_operand.hbm [shape: f32[2,128], index: 3, kind: output, shape index: {}]  }
   0x1   :  { %v9407_v0 = vld [vmem:[%s12644_s0 + $0x10] sm:$0xff]  ;;  %v9412_v1 = vld [vmem:[%s12644_s0 + $0x18] sm:$0xff]  ;;  %v9417_v2 = vld [vmem:[%s12644_s0 + $0x20] sm:$0xff] }
   0x2   :  { %v8215_v3 = vpack.i.bf16 %v9412_v1, %v9407_v0  ;;  %v9424_v4 = vld [vmem:[%s12644_s0 + $0x28] sm:$0xff]  ;;  %v9429_v5 = vld [vmem:[%s12644_s0 + $0x30] sm:$0xff]  ;;  %v9434_v6 = vld [vmem:[%s12644_s0 + $0x38] sm:$0xff] }
   0x3   :  { %v8225_v7 = vpack.i.bf16 %v9424_v4, %v9417_v2  ;;  %v8230_v8 = vpack.i.bf16 %v9434_v6, %v9429_v5  ;;  %v9445_v9 = vld [vmem:[%s12644_s0 + $0x40] sm:$0xff]  ;;  %v9450_v10 = vld [vmem:[%s12644_s0 + $0x48] sm:$0xff]  ;;  %v9459_v12 = vld [vmem:[%s12644_s0 + $0x50] sm:$0xff] }
   0x4   :  { %8216 = vrot.lane.b32.xlu0 %v8215_v3, %s9366_s24  ;;  %v8240_v11 = vpack.i.bf16 %v9450_v10, %v9445_v9  ;;  %v9464_v13 = vld [vmem:[%s12644_s0 + $0x58] sm:$0xff]  ;;  %v9473_v15 = vld [vmem:[%s12644_s0 + $0x60] sm:$0xff]  ;;  %v9478_v16 = vld [vmem:[%s12644_s0 + $0x68] sm:$0xff] }
   0x5   :  { %8226 = vrot.lane.b32.xlu1 %v8225_v7, %s9367_s25  ;;  %v8250_v14 = vpack.i.bf16 %v9464_v13, %v9459_v12  ;;  %v8805_v17 = vld [vmem:[%s12645_s1 + $0x8] sm:$0xff]   ;;  %v8260_v18 = vpack.i.bf16 %v9478_v16, %v9473_v15  ;;  %v9490_v19 = vld [vmem:[%s12644_s0 + $0x70] sm:$0xff]  ;;  %v9495_v20 = vld [vmem:[%s12644_s0 + $0x78] sm:$0xff] }
   0x6   :  { %v8806_v21 = vld [vmem:[%s12645_s1 + $0x10] ss:$0 sps:$4 sm:$0xff]   ;;  %7706 = vmatprep.subr.bf16.mxu0 %v8805_v17  ;;  %v9505_v23 = vld [vmem:[%s12644_s0 + $0x80] sm:$0xff]  ;;  %v9510_v24 = vld [vmem:[%s12644_s0 + $0x88] sm:$0xff]  ;;  %v8270_v25 = vpack.i.bf16 %v9495_v20, %v9490_v19 }
   0x7   :  { %7707 = vmatpush3.bf16.msra.mxu0 %v8805_v17  ;;  %v532_v22 = vsel %vm530_vm0, %v8806_v21, 0  ;;  %v9520_v26 = vld [vmem:[%s12644_s0 + $0x90] sm:$0xff]  ;;  %v9525_v27 = vld [vmem:[%s12644_s0 + $0x98] sm:$0xff]  ;;  %v8280_v28 = vpack.i.bf16 %v9510_v24, %v9505_v23 }
   0x8   :  { %8221 = vrot.lane.b32.xlu0 %v8225_v7, %s9366_s24  ;;  %8192 = vmatprep.subr.msk.bf16.mxu0 %vm530_vm0, %v8806_v21  ;;  %v8290_v29 = vpack.i.bf16 %v9525_v27, %v9520_v26 }
   0x9   :  { %8231 = vrot.lane.b32.xlu1 %v8230_v8, %s9367_s25 }
   0xb   :  { %7709 = vmatpush3.bf16.msra.mxu0 %v532_v22 }
   0xc   :  { %8236 = vrot.lane.b32.xlu0 %v8230_v8, %s9366_s24 }
   0xd   :  { %8241 = vrot.lane.b32.xlu1 %v8240_v11, %s9366_s24 }
  0x10   :  { %8246 = vrot.lane.b32.xlu0 %v8240_v11, %s9367_s25 }
  0x11   :  { %8251 = vrot.lane.b32.xlu1 %v8250_v14, %s9367_s25 }
  0x14   :  { %8256 = vrot.lane.b32.xlu0 %v8250_v14, %s9366_s24 }
  0x15   :  { %8261 = vrot.lane.b32.xlu1 %v8260_v18, %s9366_s24 }
  0x18   :  { %8266 = vrot.lane.b32.xlu0 %v8260_v18, %s9367_s25 }
  0x19   :  { %8271 = vrot.lane.b32.xlu1 %v8270_v25, %s9367_s25 }
  0x1c   :  { %8276 = vrot.lane.b32.xlu0 %v8270_v25, %s9366_s24 }
  0x1d   :  { %8281 = vrot.lane.b32.xlu1 %v8280_v28, %s9366_s24 }
  0x1e   :  { %8 = vsyncpa [#allocation3], 0  ;;  %v36_v30 = vld [vmem:[%s12644_s0 + $0xa0] sm:$0xff]  ;;  %v37_v31 = vld [vmem:[%s12644_s0 + $0xa8] sm:$0xff]  ;;  %vm354_vm1 = vcmask 64512   ;;  %vm395_vm2 = vcmask 130048  }
  0x1f   :  { %v8300_v32 = vpack.i.bf16 %v37_v31, %v36_v30  ;;  %v38_v33 = vld [vmem:[%s12644_s0 + $0xb0] sm:$0xff]  ;;  %v39_v34 = vld [vmem:[%s12644_s0 + $0xb8] sm:$0xff]  ;;  %v9563_v38 = vld [vmem:[%s12644_s0 + $0xe0] sm:$0xff]  ;;  %vm469_vm3 = vcmask 195584   ;;  %s9368_s15 = smov 112   ;;  %vm9370_vm4 = vmmov 0  }
  0x20   :  { %8286 = vrot.lane.b32.xlu0 %v8280_v28, %s9367_s25  ;;  %v8310_v35 = vpack.i.bf16 %v39_v34, %v38_v33  ;;  %v9553_v36 = vld [vmem:[%s12644_s0 + $0xd0] sm:$0xff]  ;;  %v9558_v37 = vld [vmem:[%s12644_s0 + $0xd8] sm:$0xff]  ;;  %v9568_v39 = vld [vmem:[%s12644_s0 + $0xe8] sm:$0xff]  ;;  %s9371_s14 = smov 32   ;;  %vm4399_vm5 = vcmask 261120   ;;  %vm4458_vm6 = vcmask 392192  }
  0x21   :  { %8291 = vrot.lane.b32.xlu1 %v8290_v29, %s9367_s25  ;;  %v8315_v40 = vpack.i.bf16 %v9558_v37, %v9553_v36  ;;  %v8320_v41 = vpack.i.bf16 %v9568_v39, %v9563_v38  ;;  %v9579_v42 = vld [vmem:[%s12644_s0 + $0xf0] sm:$0xff]  ;;  %v9584_v43 = vld [vmem:[%s12644_s0 + $0xf8] sm:$0xff]  ;;  %v9593_v45 = vld [vmem:[%s12644_s0 + $0x100] sm:$0xff]  ;;  %s9372_s5 = smov 48   ;;  %vm6712_vm7 = vcmask 523264   ;;  %s9373_s8 = smov 96  }
  0x22   :  { %v8330_v44 = vpack.i.bf16 %v9584_v43, %v9579_v42  ;;  %v9598_v46 = vld [vmem:[%s12644_s0 + $0x108] sm:$0xff]  ;;  %v9607_v48 = vld [vmem:[%s12644_s0 + $0x110] sm:$0xff]  ;;  %v9612_v49 = vld [vmem:[%s12644_s0 + $0x118] sm:$0xff]  ;;  %vm7059_vm8 = vcmask 1041409   ;;  %s9377_s4 = smov 72   ;;  %s9378_s6 = smov 88  }
  0x23   :  { %v8340_v47 = vpack.i.bf16 %v9598_v46, %v9593_v45  ;;  %v8350_v50 = vpack.i.bf16 %v9612_v49, %v9607_v48  ;;  %v9621_v51 = vld [vmem:[%s12644_s0 + $0x120] sm:$0xff]  ;;  %v9626_v52 = vld [vmem:[%s12644_s0 + $0x128] sm:$0xff]  ;;  %v9635_v54 = vld [vmem:[%s12644_s0 + $0x130] sm:$0xff]  ;;  %s9379_s7 = smov 64   ;;  %s9380_s9 = smov 104   ;;  %vm7155_vm9 = vcmask 326656  }
  0x24   :  { %8296 = vrot.lane.b32.xlu0 %v8290_v29, %s9366_s24  ;;  %v8360_v53 = vpack.i.bf16 %v9626_v52, %v9621_v51  ;;  %v9640_v55 = vld [vmem:[%s12644_s0 + $0x138] sm:$0xff]  ;;  %v9649_v57 = vld [vmem:[%s12644_s0 + $0x140] sm:$0xff]  ;;  %v9654_v58 = vld [vmem:[%s12644_s0 + $0x148] sm:$0xff]  ;;  %s9381_s10 = smov 80   ;;  %s9382_s11 = smov 120   ;;  %vm7158_vm10 = vcmask 457728  }
  0x25   :  { %8301 = vrot.lane.b32.xlu1 %v8300_v32, %s9366_s24  ;;  %v8370_v56 = vpack.i.bf16 %v9640_v55, %v9635_v54  ;;  %v8380_v59 = vpack.i.bf16 %v9654_v58, %v9649_v57  ;;  %v9663_v60 = vld [vmem:[%s12644_s0 + $0x150] sm:$0xff]  ;;  %v9668_v61 = vld [vmem:[%s12644_s0 + $0x158] sm:$0xff]  ;;  %v60_v63 = vld [vmem:[%s12644_s0 + $0x160] sm:$0xff]  ;;  %vm7161_vm11 = vcmask 588800   ;;  %vm7163_vm12 = vcmask 654336  }
  0x26   :  { %v8390_v62 = vpack.i.bf16 %v9668_v61, %v9663_v60  ;;  %v61_v3 = vld [vmem:[%s12644_s0 + $0x168] sm:$0xff]  ;;  %v62_v8 = vld [vmem:[%s12644_s0 + $0x170] sm:$0xff]  ;;  %v63_v11 = vld [vmem:[%s12644_s0 + $0x178] sm:$0xff]  ;;  %vm7165_vm13 = vcmask 719872   ;;  %vm7167_vm14 = vcmask 785408   ;;  %vm7169_vm15 = vcmask 850944  }
  0x27   :  { %v8400_v7 = vpack.i.bf16 %v61_v3, %v60_v63  ;;  %v8410_v14 = vpack.i.bf16 %v63_v11, %v62_v8  ;;  %v16_v18 = vld [vmem:[%s12644_s0] sm:$0xff]  ;;  %v17_v21 = vld [vmem:[%s12644_s0 + $0x8] sm:$0xff] }
  0x28   :  { %8306 = vrot.lane.b32.xlu0 %v8300_v32, %s9367_s25 }
  0x29   :  { %8311 = vrot.lane.b32.xlu1 %v8310_v35, %s9367_s25 }
  0x2c   :  { %8316 = vrot.lane.b32.xlu0 %v8315_v40, %s9366_s24 }
  0x2d   :  { %8321 = vrot.lane.b32.xlu1 %v8320_v41, %s9366_s24 }
  0x30   :  { %8326 = vrot.lane.b32.xlu0 %v8320_v41, %s9367_s25 }
  0x31   :  { %8331 = vrot.lane.b32.xlu1 %v8330_v44, %s9367_s25 }
  0x34   :  { %8336 = vrot.lane.b32.xlu0 %v8330_v44, %s9366_s24 }
  0x35   :  { %8341 = vrot.lane.b32.xlu1 %v8340_v47, %s9366_s24 }
  0x38   :  { %8346 = vrot.lane.b32.xlu0 %v8340_v47, %s9367_s25 }
  0x39   :  { %8351 = vrot.lane.b32.xlu1 %v8350_v50, %s9367_s25 }
  0x3c   :  { %8356 = vrot.lane.b32.xlu0 %v8350_v50, %s9366_s24 }
  0x3d   :  { %8361 = vrot.lane.b32.xlu1 %v8360_v53, %s9366_s24 }
  0x40   :  { %8366 = vrot.lane.b32.xlu0 %v8360_v53, %s9367_s25 }
  0x41   :  { %8371 = vrot.lane.b32.xlu1 %v8370_v56, %s9367_s25 }
  0x44   :  { %8376 = vrot.lane.b32.xlu0 %v8370_v56, %s9366_s24 }
  0x45   :  { %8381 = vrot.lane.b32.xlu1 %v8380_v59, %s9366_s24 }
  0x48   :  { %8386 = vrot.lane.b32.xlu0 %v8380_v59, %s9367_s25 }
  0x49   :  { %8391 = vrot.lane.b32.xlu1 %v8390_v62, %s9367_s25 }
  0x4c   :  { %8396 = vrot.lane.b32.xlu0 %v8390_v62, %s9366_s24 }
  0x4d   :  { %8401 = vrot.lane.b32.xlu1 %v8400_v7, %s9366_s24 }
  0x50   :  { %8406 = vrot.lane.b32.xlu0 %v8400_v7, %s9367_s25 }
  0x51   :  { %8411 = vrot.lane.b32.xlu1 %v8410_v14, %s9367_s25 }
  0x76   :  { %v8217_v17 = vpop.permute.xlu0 %8216 }
  0x77   :  { %v8219_v22 = vunpack.i.h.bf16 %v8217_v17  ;;  %v8218_v25 = vunpack.i.l.bf16 %v8217_v17  ;;  %v8227_v28 = vpop.permute.xlu1 %8226 }
  0x78   :  { %v8229_v29 = vunpack.i.h.bf16 %v8227_v28  ;;  %v8228_v30 = vunpack.i.l.bf16 %v8227_v28 }
  0x79   :  { %v355_v31 = vsel %vm354_vm1, %v16_v18, %v8218_v25  ;;  %v356_v32 = vsel %vm354_vm1, %v17_v21, %v8219_v22 }
  0x7a   :  { %v8222_v33 = vpop.permute.xlu0 %8221  ;;  %v396_v34 = vsel %vm395_vm2, %v355_v31, %v8228_v30  ;;  %v397_v35 = vsel %vm395_vm2, %v356_v32, %v8229_v29 }
  0x7b   :  { %v8224_v40 = vunpack.i.h.bf16 %v8222_v33  ;;  %v8223_v41 = vunpack.i.l.bf16 %v8222_v33  ;;  %v8232_v44 = vpop.permute.xlu1 %8231  ;;  %v436_v47 = vpack.c.bf16 %v397_v35, %v396_v34 }
  0x7c   :  { %v8234_v50 = vunpack.i.h.bf16 %v8232_v44  ;;  %v8233_v53 = vunpack.i.l.bf16 %v8232_v44 }
  0x7d   :  { %v358_v56 = vsel %vm354_vm1, %v9412_v1, %v8224_v40  ;;  %v357_v59 = vsel %vm354_vm1, %v9407_v0, %v8223_v41  ;;  %7710 = vmatprep.mubr.msk.bf16.mxu0 %vm469_vm3, %v436_v47 }
  0x7e   :  { %v398_v62 = vsel %vm395_vm2, %v357_v59, %v8233_v53  ;;  %v399_v63 = vsel %vm395_vm2, %v358_v56, %v8234_v50  ;;  %v8237_v3 = vpop.permute.xlu0 %8236 }
  0x7f   :  { %v8242_v7 = vpop.permute.xlu1 %8241  ;;  %v437_v8 = vpack.c.bf16 %v399_v63, %v398_v62  ;;  %v8239_v11 = vunpack.i.h.bf16 %v8237_v3  ;;  %v8238_v14 = vunpack.i.l.bf16 %v8237_v3 }
  0x80   :  { %v8244_v17 = vunpack.i.h.bf16 %v8242_v7  ;;  %v8243_v18 = vunpack.i.l.bf16 %v8242_v7 }
  0x81   :  { %7711 = vmatmul.mubr.msk.bf16.vlgmr.msra.gmra.mrb[0].mxu0 %vm469_vm3, %v437_v8  ;;  %v360_v0 = vsel %vm354_vm1, %v9424_v4, %v8239_v11  ;;  %v359_v28 = vsel %vm354_vm1, %v9417_v2, %v8238_v14 }
  0x82   :  { %v8247_v21 = vpop.permute.xlu0 %8246  ;;  %v362_v31 = vsel %vm354_vm1, %v9434_v6, %v8244_v17  ;;  %v361_v32 = vsel %vm354_vm1, %v9429_v5, %v8243_v18 }
  0x83   :  { %v8249_v1 = vunpack.i.h.bf16 %v8247_v21  ;;  %v8248_v22 = vunpack.i.l.bf16 %v8247_v21  ;;  %v8252_v25 = vpop.permute.xlu1 %8251 }
  0x84   :  { %v8254_v29 = vunpack.i.h.bf16 %v8252_v25  ;;  %v8253_v30 = vunpack.i.l.bf16 %v8252_v25 }
  0x85   :  { %v400_v33 = vsel %vm395_vm2, %v359_v28, %v8248_v22  ;;  %v401_v34 = vsel %vm395_vm2, %v360_v0, %v8249_v1 }
  0x86   :  { %v402_v35 = vsel %vm395_vm2, %v361_v32, %v8253_v30  ;;  %v403_v40 = vsel %vm395_vm2, %v362_v31, %v8254_v29  ;;  %v8257_v4 = vpop.permute.xlu0 %8256  ;;  %v438_v41 = vpack.c.bf16 %v401_v34, %v400_v33 }
  0x87   :  { %v8262_v44 = vpop.permute.xlu1 %8261  ;;  %v439_v2 = vpack.c.bf16 %v403_v40, %v402_v35  ;;  %v8259_v47 = vunpack.i.h.bf16 %v8257_v4  ;;  %v8258_v50 = vunpack.i.l.bf16 %v8257_v4 }
  0x88   :  { %7714 = vmatprep.mubr.msk.bf16.mxu0 %vm469_vm3, %v438_v41  ;;  %v8264_v6 = vunpack.i.h.bf16 %v8262_v44  ;;  %v8263_v53 = vunpack.i.l.bf16 %v8262_v44 }
  0x89   :  { %7715 = vmatmul.mubr.msk.bf16.gmra.mrb[4].mxu0 %vm469_vm3, %v439_v2  ;;  %v364_v63 = vsel %vm354_vm1, %v9450_v10, %v8259_v47  ;;  %v363_v3 = vsel %vm354_vm1, %v9445_v9, %v8258_v50 }
  0x8a   :  { %v8267_v5 = vpop.permute.xlu0 %8266  ;;  %v366_v11 = vsel %vm354_vm1, %v9464_v13, %v8264_v6  ;;  %v365_v14 = vsel %vm354_vm1, %v9459_v12, %v8263_v53 }
  0x8b   :  { %v8269_v56 = vunpack.i.h.bf16 %v8267_v5  ;;  %v8268_v59 = vunpack.i.l.bf16 %v8267_v5  ;;  %v8272_v62 = vpop.permute.xlu1 %8271 }
  0x8c   :  { %v8274_v7 = vunpack.i.h.bf16 %v8272_v62  ;;  %v8273_v8 = vunpack.i.l.bf16 %v8272_v62 }
  0x8d   :  { %v404_v17 = vsel %vm395_vm2, %v363_v3, %v8268_v59  ;;  %v405_v18 = vsel %vm395_vm2, %v364_v63, %v8269_v56 }
  0x8e   :  { %v406_v21 = vsel %vm395_vm2, %v365_v14, %v8273_v8  ;;  %v407_v1 = vsel %vm395_vm2, %v366_v11, %v8274_v7  ;;  %v8277_v10 = vpop.permute.xlu0 %8276  ;;  %v440_v22 = vpack.c.bf16 %v405_v18, %v404_v17 }
  0x8f   :  { %v8279_v25 = vunpack.i.h.bf16 %v8277_v10  ;;  %v8278_v9 = vunpack.i.l.bf16 %v8277_v10  ;;  %v8282_v0 = vpop.permute.xlu1 %8281  ;;  %v441_v28 = vpack.c.bf16 %v407_v1, %v406_v21 }
  0x90   :  { %v8284_v29 = vunpack.i.h.bf16 %v8282_v0  ;;  %v8283_v30 = vunpack.i.l.bf16 %v8282_v0  ;;  %7718 = vmatprep.mubr.msk.bf16.mxu0 %vm469_vm3, %v440_v22 }
  0x91   :  { %7719 = vmatmul.mubr.msk.bf16.gmra.mrb[8].mxu0 %vm469_vm3, %v441_v28  ;;  %v368_v12 = vsel %vm354_vm1, %v9478_v16, %v8279_v25  ;;  %v367_v13 = vsel %vm354_vm1, %v9473_v15, %v8278_v9 }
  0x92   :  { %v8287_v31 = vpop.permute.xlu0 %8286  ;;  %v370_v32 = vsel %vm354_vm1, %v9495_v20, %v8284_v29  ;;  %v369_v33 = vsel %vm354_vm1, %v9490_v19, %v8283_v30 }
  0x93   :  { %v8289_v34 = vunpack.i.h.bf16 %v8287_v31  ;;  %v8288_v35 = vunpack.i.l.bf16 %v8287_v31  ;;  %v8292_v40 = vpop.permute.xlu1 %8291 }
  0x94   :  { %v8294_v4 = vunpack.i.h.bf16 %v8292_v40  ;;  %v8293_v41 = vunpack.i.l.bf16 %v8292_v40 }
  0x95   :  { %v408_v44 = vsel %vm395_vm2, %v367_v13, %v8288_v35  ;;  %v409_v2 = vsel %vm395_vm2, %v368_v12, %v8289_v34 }
  0x96   :  { %v410_v16 = vsel %vm395_vm2, %v369_v33, %v8293_v41  ;;  %v411_v15 = vsel %vm395_vm2, %v370_v32, %v8294_v4  ;;  %v8297_v47 = vpop.permute.xlu0 %8296  ;;  %v442_v50 = vpack.c.bf16 %v409_v2, %v408_v44 }
  0x97   :  { %v8299_v6 = vunpack.i.h.bf16 %v8297_v47  ;;  %v8298_v20 = vunpack.i.l.bf16 %v8297_v47  ;;  %v8302_v53 = vpop.permute.xlu1 %8301  ;;  %v443_v5 = vpack.c.bf16 %v411_v15, %v410_v16 }
  0x98   :  { %v8304_v19 = vunpack.i.h.bf16 %v8302_v53  ;;  %v8303_v56 = vunpack.i.l.bf16 %v8302_v53  ;;  %7722 = vmatprep.mubr.msk.bf16.mxu0 %vm469_vm3, %v442_v50 }
  0x99   :  { %7723 = vmatmul.mubr.msk.bf16.gmra.mrb[12].mxu0 %vm469_vm3, %v443_v5  ;;  %v372_v59 = vsel %vm354_vm1, %v9510_v24, %v8299_v6  ;;  %v371_v62 = vsel %vm354_vm1, %v9505_v23, %v8298_v20 }
  0x9a   :  { %v8307_v63 = vpop.permute.xlu0 %8306  ;;  %v374_v3 = vsel %vm354_vm1, %v9525_v27, %v8304_v19  ;;  %v373_v7 = vsel %vm354_vm1, %v9520_v26, %v8303_v56  ;;  %v40_v27 = vld [vmem:[%s12644_s0 + $0xc0] sm:$0xff]  ;;  %v41_v26 = vld [vmem:[%s12644_s0 + $0xc8] sm:$0xff] }
  0x9b   :  { %v8309_v8 = vunpack.i.h.bf16 %v8307_v63  ;;  %v8308_v11 = vunpack.i.l.bf16 %v8307_v63  ;;  %v8312_v14 = vpop.permute.xlu1 %8311 }
  0x9c   :  { %v8314_v17 = vunpack.i.h.bf16 %v8312_v14  ;;  %v8313_v18 = vunpack.i.l.bf16 %v8312_v14 }
  0x9d   :  { %v412_v21 = vsel %vm395_vm2, %v371_v62, %v8308_v11  ;;  %v413_v1 = vsel %vm395_vm2, %v372_v59, %v8309_v8 }
  0x9e   :  { %v414_v24 = vsel %vm395_vm2, %v373_v7, %v8313_v18  ;;  %v415_v23 = vsel %vm395_vm2, %v374_v3, %v8314_v17  ;;  %v8317_v10 = vpop.permute.xlu0 %8316  ;;  %v444_v22 = vpack.c.bf16 %v413_v1, %v412_v21 }
  0x9f   :  { %v8319_v25 = vunpack.i.h.bf16 %v8317_v10  ;;  %v8318_v9 = vunpack.i.l.bf16 %v8317_v10  ;;  %v8322_v0 = vpop.permute.xlu1 %8321  ;;  %v445_v28 = vpack.c.bf16 %v415_v23, %v414_v24 }
  0xa0   :  { %v8324_v29 = vunpack.i.h.bf16 %v8322_v0  ;;  %v8323_v30 = vunpack.i.l.bf16 %v8322_v0  ;;  %7726 = vmatprep.mubr.msk.bf16.mxu0 %vm469_vm3, %v444_v22 }
  0xa1   :  { %7727 = vmatmul.mubr.msk.bf16.gmra.mrb[16].mxu0 %vm469_vm3, %v445_v28  ;;  %v376_v12 = vsel %vm354_vm1, %v41_v26, %v8319_v25  ;;  %v375_v13 = vsel %vm354_vm1, %v40_v27, %v8318_v9 }
  0xa2   :  { %v8327_v31 = vpop.permute.xlu0 %8326  ;;  %v378_v32 = vsel %vm354_vm1, %v9558_v37, %v8324_v29  ;;  %v377_v33 = vsel %vm354_vm1, %v9553_v36, %v8323_v30 }
  0xa3   :  { %v8329_v34 = vunpack.i.h.bf16 %v8327_v31  ;;  %v8328_v35 = vunpack.i.l.bf16 %v8327_v31  ;;  %v8332_v40 = vpop.permute.xlu1 %8331 }
  0xa4   :  { %v8334_v4 = vunpack.i.h.bf16 %v8332_v40  ;;  %v8333_v41 = vunpack.i.l.bf16 %v8332_v40 }
  0xa5   :  { %v416_v44 = vsel %vm395_vm2, %v375_v13, %v8328_v35  ;;  %v417_v2 = vsel %vm395_vm2, %v376_v12, %v8329_v34 }
  0xa6   :  { %v418_v16 = vsel %vm395_vm2, %v377_v33, %v8333_v41  ;;  %v419_v15 = vsel %vm395_vm2, %v378_v32, %v8334_v4  ;;  %v8337_v47 = vpop.permute.xlu0 %8336  ;;  %v446_v50 = vpack.c.bf16 %v417_v2, %v416_v44 }
  0xa7   :  { %v8339_v6 = vunpack.i.h.bf16 %v8337_v47  ;;  %v8338_v37 = vunpack.i.l.bf16 %v8337_v47  ;;  %v8342_v20 = vpop.permute.xlu1 %8341  ;;  %v447_v53 = vpack.c.bf16 %v419_v15, %v418_v16 }
  0xa8   :  { %v8344_v36 = vunpack.i.h.bf16 %v8342_v20  ;;  %v8343_v5 = vunpack.i.l.bf16 %v8342_v20  ;;  %7730 = vmatprep.mubr.msk.bf16.mxu0 %vm469_vm3, %v446_v50 }
  0xa9   :  { %7731 = vmatmul.mubr.msk.bf16.gmra.mrb[20].mxu0 %vm469_vm3, %v447_v53  ;;  %v380_v19 = vsel %vm354_vm1, %v9568_v39, %v8339_v6  ;;  %v379_v56 = vsel %vm354_vm1, %v9563_v38, %v8338_v37 }
  0xaa   :  { %v8347_v59 = vpop.permute.xlu0 %8346  ;;  %v382_v62 = vsel %vm354_vm1, %v9584_v43, %v8344_v36  ;;  %v381_v63 = vsel %vm354_vm1, %v9579_v42, %v8343_v5 }
  0xab   :  { %v8349_v3 = vunpack.i.h.bf16 %v8347_v59  ;;  %v8348_v7 = vunpack.i.l.bf16 %v8347_v59  ;;  %v8352_v8 = vpop.permute.xlu1 %8351 }
  0xac   :  { %v8354_v11 = vunpack.i.h.bf16 %v8352_v8  ;;  %v8353_v14 = vunpack.i.l.bf16 %v8352_v8 }
  0xad   :  { %v420_v17 = vsel %vm395_vm2, %v379_v56, %v8348_v7  ;;  %v421_v18 = vsel %vm395_vm2, %v380_v19, %v8349_v3 }
  0xae   :  { %v422_v39 = vsel %vm395_vm2, %v381_v63, %v8353_v14  ;;  %v423_v38 = vsel %vm395_vm2, %v382_v62, %v8354_v11  ;;  %v8357_v21 = vpop.permute.xlu0 %8356  ;;  %v448_v1 = vpack.c.bf16 %v421_v18, %v420_v17 }
  0xaf   :  { %v8359_v24 = vunpack.i.h.bf16 %v8357_v21  ;;  %v8358_v43 = vunpack.i.l.bf16 %v8357_v21  ;;  %v8362_v23 = vpop.permute.xlu1 %8361  ;;  %v449_v10 = vpack.c.bf16 %v423_v38, %v422_v39 }
  0xb0   :  { %v8364_v42 = vunpack.i.h.bf16 %v8362_v23  ;;  %v8363_v22 = vunpack.i.l.bf16 %v8362_v23  ;;  %7734 = vmatprep.mubr.msk.bf16.mxu0 %vm469_vm3, %v448_v1 }
  0xb1   :  { %7735 = vmatmul.mubr.msk.bf16.gmra.mrb[24].mxu0 %vm469_vm3, %v449_v10  ;;  %v384_v27 = vsel %vm354_vm1, %v9598_v46, %v8359_v24  ;;  %v383_v26 = vsel %vm354_vm1, %v9593_v45, %v8358_v43 }
  0xb2   :  { %v8367_v25 = vpop.permute.xlu0 %8366  ;;  %v386_v9 = vsel %vm354_vm1, %v9612_v49, %v8364_v42  ;;  %v385_v0 = vsel %vm354_vm1, %v9607_v48, %v8363_v22 }
  0xb3   :  { %v8369_v28 = vunpack.i.h.bf16 %v8367_v25  ;;  %v8368_v29 = vunpack.i.l.bf16 %v8367_v25  ;;  %v8372_v30 = vpop.permute.xlu1 %8371 }
  0xb4   :  { %v8374_v12 = vunpack.i.h.bf16 %v8372_v30  ;;  %v8373_v13 = vunpack.i.l.bf16 %v8372_v30 }
  0xb5   :  { %v424_v31 = vsel %vm395_vm2, %v383_v26, %v8368_v29  ;;  %v425_v32 = vsel %vm395_vm2, %v384_v27, %v8369_v28 }
  0xb6   :  { %v426_v46 = vsel %vm395_vm2, %v385_v0, %v8373_v13  ;;  %v427_v45 = vsel %vm395_vm2, %v386_v9, %v8374_v12  ;;  %v8377_v33 = vpop.permute.xlu0 %8376  ;;  %v450_v34 = vpack.c.bf16 %v425_v32, %v424_v31 }
  0xb7   :  { %v8379_v35 = vunpack.i.h.bf16 %v8377_v33  ;;  %v8378_v49 = vunpack.i.l.bf16 %v8377_v33  ;;  %v8382_v40 = vpop.permute.xlu1 %8381  ;;  %v451_v4 = vpack.c.bf16 %v427_v45, %v426_v46 }
  0xb8   :  { %v8384_v48 = vunpack.i.h.bf16 %v8382_v40  ;;  %v8383_v41 = vunpack.i.l.bf16 %v8382_v40  ;;  %7738 = vmatprep.mubr.msk.bf16.mxu0 %vm469_vm3, %v450_v34 }
  0xb9   :  { %7739 = vmatmul.mubr.msk.bf16.gmra.mrb[28].mxu0 %vm469_vm3, %v451_v4  ;;  %v388_v44 = vsel %vm354_vm1, %v9626_v52, %v8379_v35  ;;  %v387_v2 = vsel %vm354_vm1, %v9621_v51, %v8378_v49 }
  0xba   :  { %v8387_v16 = vpop.permute.xlu0 %8386  ;;  %v390_v15 = vsel %vm354_vm1, %v9640_v55, %v8384_v48  ;;  %v389_v47 = vsel %vm354_vm1, %v9635_v54, %v8383_v41 }
  0xbb   :  { %v8389_v50 = vunpack.i.h.bf16 %v8387_v16  ;;  %v8388_v6 = vunpack.i.l.bf16 %v8387_v16  ;;  %v8392_v37 = vpop.permute.xlu1 %8391 }
  0xbc   :  { %v8394_v20 = vunpack.i.h.bf16 %v8392_v37  ;;  %v8393_v53 = vunpack.i.l.bf16 %v8392_v37 }
  0xbd   :  { %v428_v36 = vsel %vm395_vm2, %v387_v2, %v8388_v6  ;;  %v429_v5 = vsel %vm395_vm2, %v388_v44, %v8389_v50 }
  0xbe   :  { %v430_v52 = vsel %vm395_vm2, %v389_v47, %v8393_v53  ;;  %v431_v51 = vsel %vm395_vm2, %v390_v15, %v8394_v20  ;;  %v8397_v19 = vpop.permute.xlu0 %8396  ;;  %v452_v56 = vpack.c.bf16 %v429_v5, %v428_v36 }
  0xbf   :  { %v8399_v59 = vunpack.i.h.bf16 %v8397_v19  ;;  %v8398_v55 = vunpack.i.l.bf16 %v8397_v19  ;;  %v8402_v62 = vpop.permute.xlu1 %8401  ;;  %v453_v63 = vpack.c.bf16 %v431_v51, %v430_v52 }
  0xc0   :  { %v8404_v54 = vunpack.i.h.bf16 %v8402_v62  ;;  %v8403_v3 = vunpack.i.l.bf16 %v8402_v62  ;;  %7742 = vmatprep.mubr.msk.bf16.mxu0 %vm469_vm3, %v452_v56 }
  0xc1   :  { %7743 = vmatmul.mubr.msk.bf16.gmra.mrb[32].mxu0 %vm469_vm3, %v453_v63  ;;  %v392_v7 = vsel %vm354_vm1, %v9654_v58, %v8399_v59  ;;  %v391_v8 = vsel %vm354_vm1, %v9649_v57, %v8398_v55 }
  0xc2   :  { %v8407_v11 = vpop.permute.xlu0 %8406  ;;  %v394_v14 = vsel %vm354_vm1, %v9668_v61, %v8404_v54  ;;  %v393_v17 = vsel %vm354_vm1, %v9663_v60, %v8403_v3  ;;  %v9843_v60 = vld [vmem:[%s12646_s2] ss:$0 sm:$0xff] }
  0xc3   :  { %v8409_v18 = vunpack.i.h.bf16 %v8407_v11  ;;  %v8408_v39 = vunpack.i.l.bf16 %v8407_v11  ;;  %v8412_v38 = vpop.permute.xlu1 %8411 }
  0xc4   :  { %v8414_v21 = vunpack.i.h.bf16 %v8412_v38  ;;  %v8413_v1 = vunpack.i.l.bf16 %v8412_v38 }
  0xc5   :  { %v432_v24 = vsel %vm395_vm2, %v391_v8, %v8408_v39  ;;  %v433_v43 = vsel %vm395_vm2, %v392_v7, %v8409_v18  ;;  %v8807_v18 = vld [vmem:[%s12645_s1 + $0x18] sm:$0xff]  }
  0xc6   :  { %v434_v58 = vsel %vm395_vm2, %v393_v17, %v8413_v1  ;;  %v435_v57 = vsel %vm395_vm2, %v394_v14, %v8414_v21  ;;  %v454_v23 = vpack.c.bf16 %v433_v43, %v432_v24  ;;  %7750 = vmatprep.subr.bf16.mxu1 %v8807_v18 }
  0xc7   :  { %v455_v10 = vpack.c.bf16 %v435_v57, %v434_v58  ;;  %7751 = vmatpush3.bf16.msra.mxu1 %v8807_v18 }
  0xc8   :  { %7746 = vmatprep.mubr.msk.bf16.mxu0 %vm469_vm3, %v454_v23 }
  0xc9   :  { %7747 = vmatmul.mubr.msk.bf16.gmra.mrb[36].mxu0 %vm469_vm3, %v455_v10 }
 0x154   :  { %v7712_v61 = vpop.f32.mrb[0].mxu0 }
 0x155   :  { %v9846_v42 = vadd.f32 %v7712_v61, %v9843_v60  ;;  %v568_v22 = vpop.f32.mrb[1].mxu0 }
 0x156   :  { %v9849_v27 = vadd.f32 %v9843_v60, %v568_v22  ;;  %v7713_v26 = vpop.f32.mrb[2].mxu0 }
 0x157   :  { %v7215_v25 = vmul.f32 -1.442695, %v9846_v42  ;;  %v9853_v9 = vadd.f32 %v7713_v26, %v9843_v60  ;;  %v571_v0 = vpop.f32.mrb[3].mxu0 }
 0x158   :  { %v7213_v28 = vmul.f32 -1.442695, %v9849_v27  ;;  %v9857_v29 = vadd.f32 %v9843_v60, %v571_v0 }
 0x159   :  { %8825 = vpow2.f32 %v7215_v25  ;;  %v7216_v30 = vmul.f32 -1.442695, %v9853_v9 }
 0x15a   :  { %8827 = vpow2.f32 %v7213_v28  ;;  %v7214_v12 = vmul.f32 -1.442695, %v9857_v29 }
 0x15b   :  { %8829 = vpow2.f32 %v7216_v30 }
 0x15c   :  { %8831 = vpow2.f32 %v7214_v12  ;;  %v7716_v13 = vpop.f32.mrb[4].mxu0 }
 0x15d   :  { %v9862_v31 = vadd.f32 %v7716_v13, %v9843_v60  ;;  %v584_v32 = vpop.f32.mrb[5].mxu0 }
 0x15e   :  { %v9865_v46 = vadd.f32 %v9843_v60, %v584_v32  ;;  %v7717_v45 = vpop.f32.mrb[6].mxu0 }
 0x15f   :  { %v7219_v33 = vmul.f32 -1.442695, %v9862_v31  ;;  %v9869_v34 = vadd.f32 %v7717_v45, %v9843_v60  ;;  %v587_v35 = vpop.f32.mrb[7].mxu0 }
 0x160   :  { %v7217_v49 = vmul.f32 -1.442695, %v9865_v46  ;;  %v9873_v40 = vadd.f32 %v9843_v60, %v587_v35 }
 0x161   :  { %8833 = vpow2.f32 %v7219_v33  ;;  %v7220_v4 = vmul.f32 -1.442695, %v9869_v34 }
 0x162   :  { %8835 = vpow2.f32 %v7217_v49  ;;  %v7218_v48 = vmul.f32 -1.442695, %v9873_v40 }
 0x163   :  { %v8826_v41 = vpop.eup %8825  ;;  %8837 = vpow2.f32 %v7220_v4 }
 0x164   :  { %v8828_v44 = vpop.eup %8827  ;;  %v849_v2 = vadd.f32 1.0, %v8826_v41  ;;  %8839 = vpow2.f32 %v7218_v48  ;;  %v7720_v16 = vpop.f32.mrb[8].mxu0 }
 0x165   :  { %v8830_v15 = vpop.eup %8829  ;;  %v847_v47 = vadd.f32 1.0, %v8828_v44  ;;  %v9878_v50 = vadd.f32 %v7720_v16, %v9843_v60  ;;  %v600_v6 = vpop.f32.mrb[9].mxu0 }
 0x166   :  { %v8832_v37 = vpop.eup %8831  ;;  %8841 = vrcp.f32 %v849_v2  ;;  %v850_v20 = vadd.f32 1.0, %v8830_v15  ;;  %v9881_v53 = vadd.f32 %v9843_v60, %v600_v6  ;;  %v7721_v36 = vpop.f32.mrb[10].mxu0 }
 0x167   :  { %8843 = vrcp.f32 %v847_v47  ;;  %v848_v5 = vadd.f32 1.0, %v8832_v37  ;;  %v7223_v52 = vmul.f32 -1.442695, %v9878_v50  ;;  %v9885_v51 = vadd.f32 %v7721_v36, %v9843_v60  ;;  %v603_v19 = vpop.f32.mrb[11].mxu0 }
 0x168   :  { %8845 = vrcp.f32 %v850_v20  ;;  %v7221_v56 = vmul.f32 -1.442695, %v9881_v53  ;;  %v9889_v59 = vadd.f32 %v9843_v60, %v603_v19 }
 0x169   :  { %8847 = vrcp.f32 %v848_v5  ;;  %v7224_v55 = vmul.f32 -1.442695, %v9885_v51 }
 0x16a   :  { %8849 = vpow2.f32 %v7223_v52  ;;  %v7222_v62 = vmul.f32 -1.442695, %v9889_v59 }
 0x16b   :  { %v8834_v63 = vpop.eup %8833  ;;  %8851 = vpow2.f32 %v7221_v56 }
 0x16c   :  { %v8836_v54 = vpop.eup %8835  ;;  %v853_v3 = vadd.f32 1.0, %v8834_v63  ;;  %8853 = vpow2.f32 %v7224_v55  ;;  %v7724_v7 = vpop.f32.mrb[12].mxu0 }
 0x16d   :  { %v8838_v8 = vpop.eup %8837  ;;  %v851_v11 = vadd.f32 1.0, %v8836_v54  ;;  %8855 = vpow2.f32 %v7222_v62  ;;  %v9894_v14 = vadd.f32 %v7724_v7, %v9843_v60  ;;  %v616_v17 = vpop.f32.mrb[13].mxu0 }
 0x16e   :  { %v8840_v39 = vpop.eup %8839  ;;  %8857 = vrcp.f32 %v853_v3  ;;  %v854_v38 = vadd.f32 1.0, %v8838_v8  ;;  %v9900_v21 = vadd.f32 %v9843_v60, %v616_v17  ;;  %v7725_v1 = vpop.f32.mrb[14].mxu0 }
 0x16f   :  { %8859 = vrcp.f32 %v851_v11  ;;  %v852_v24 = vadd.f32 1.0, %v8840_v39  ;;  %v7227_v43 = vmul.f32 -1.442695, %v9894_v14  ;;  %v9904_v58 = vadd.f32 %v7725_v1, %v9843_v60  ;;  %v619_v57 = vpop.f32.mrb[15].mxu0 }
 0x170   :  { %v8842_v23 = vpop.eup %8841  ;;  %8861 = vrcp.f32 %v854_v38  ;;  %v7225_v10 = vmul.f32 -1.442695, %v9900_v21  ;;  %v9908_v61 = vadd.f32 %v9843_v60, %v619_v57 }
 0x171   :  { %v8844_v22 = vpop.eup %8843  ;;  %8863 = vrcp.f32 %v852_v24  ;;  %v7228_v26 = vmul.f32 -1.442695, %v9904_v58 }
 0x172   :  { %v8846_v25 = vpop.eup %8845  ;;  %8865 = vpow2.f32 %v7227_v43  ;;  %v7226_v0 = vmul.f32 -1.442695, %v9908_v61  ;;  %1007 = vrot.lane.b32.xlu0 %v8844_v22, %s9368_s15 }
 0x173   :  { %v8848_v28 = vpop.eup %8847  ;;  %8867 = vpow2.f32 %v7225_v10 }
 0x174   :  { %v8850_v30 = vpop.eup %8849  ;;  %8869 = vpow2.f32 %v7228_v26  ;;  %v7728_v12 = vpop.f32.mrb[16].mxu0  ;;  %1009 = vrot.lane.b32.xlu1 %v8848_v28, %s9368_s15 }
 0x175   :  { %v8852_v13 = vpop.eup %8851  ;;  %v857_v32 = vadd.f32 1.0, %v8850_v30  ;;  %8871 = vpow2.f32 %v7226_v0  ;;  %v9915_v45 = vadd.f32 %v7728_v12, %v9843_v60  ;;  %v632_v33 = vpop.f32.mrb[17].mxu0 }
 0x176   :  { %v8854_v35 = vpop.eup %8853  ;;  %v855_v49 = vadd.f32 1.0, %v8852_v13  ;;  %v9918_v4 = vadd.f32 %v9843_v60, %v632_v33  ;;  %v7729_v48 = vpop.f32.mrb[18].mxu0  ;;  %1011 = vrot.lane.b32.xlu0 %v8842_v23, %s9368_s15 }
 0x177   :  { %v8856_v41 = vpop.eup %8855  ;;  %8873 = vrcp.f32 %v857_v32  ;;  %v858_v44 = vadd.f32 1.0, %v8854_v35  ;;  %v7231_v2 = vmul.f32 -1.442695, %v9915_v45  ;;  %v9923_v16 = vadd.f32 %v7729_v48, %v9843_v60  ;;  %v635_v15 = vpop.f32.mrb[19].mxu0 }
 0x178   :  { %v8858_v47 = vpop.eup %8857  ;;  %8875 = vrcp.f32 %v855_v49  ;;  %v856_v6 = vadd.f32 1.0, %v8856_v41  ;;  %v7229_v37 = vmul.f32 -1.442695, %v9918_v4  ;;  %v9927_v20 = vadd.f32 %v9843_v60, %v635_v15  ;;  %1013 = vrot.lane.b32.xlu1 %v8846_v25, %s9368_s15 }
 0x179   :  { %v8860_v36 = vpop.eup %8859  ;;  %8877 = vrcp.f32 %v858_v44  ;;  %v7232_v5 = vmul.f32 -1.442695, %v9923_v16 }
 0x17a   :  { %v8862_v52 = vpop.eup %8861  ;;  %8879 = vrcp.f32 %v856_v6  ;;  %v7230_v19 = vmul.f32 -1.442695, %v9927_v20  ;;  %1015 = vrot.lane.b32.xlu0 %v8860_v36, %s9368_s15 }
 0x17b   :  { %v8864_v56 = vpop.eup %8863  ;;  %8881 = vpow2.f32 %v7231_v2 }
 0x17c   :  { %v8866_v55 = vpop.eup %8865  ;;  %8883 = vpow2.f32 %v7229_v37  ;;  %v7732_v62 = vpop.f32.mrb[20].mxu0  ;;  %1017 = vrot.lane.b32.xlu1 %v8864_v56, %s9368_s15 }
 0x17d   :  { %v8868_v63 = vpop.eup %8867  ;;  %v861_v54 = vadd.f32 1.0, %v8866_v55  ;;  %8885 = vpow2.f32 %v7232_v5  ;;  %v9935_v3 = vadd.f32 %v7732_v62, %v9843_v60  ;;  %v648_v7 = vpop.f32.mrb[21].mxu0 }
 0x17e   :  { %v8870_v8 = vpop.eup %8869  ;;  %v859_v11 = vadd.f32 1.0, %v8868_v63  ;;  %8887 = vpow2.f32 %v7230_v19  ;;  %v9938_v17 = vadd.f32 %v9843_v60, %v648_v7  ;;  %v7733_v18 = vpop.f32.mrb[22].mxu0  ;;  %1019 = vrot.lane.b32.xlu0 %v8858_v47, %s9368_s15 }
 0x17f   :  { %v8872_v39 = vpop.eup %8871  ;;  %8889 = vrcp.f32 %v861_v54  ;;  %v862_v38 = vadd.f32 1.0, %v8870_v8  ;;  %v7235_v1 = vmul.f32 -1.442695, %v9935_v3  ;;  %v9943_v24 = vadd.f32 %v7733_v18, %v9843_v60  ;;  %v651_v43 = vpop.f32.mrb[23].mxu0 }
 0x180   :  { %8891 = vrcp.f32 %v859_v11  ;;  %v860_v57 = vadd.f32 1.0, %v8872_v39  ;;  %v7233_v23 = vmul.f32 -1.442695, %v9938_v17  ;;  %v9947_v10 = vadd.f32 %v9843_v60, %v651_v43  ;;  %1021 = vrot.lane.b32.xlu1 %v8862_v52, %s9368_s15 }
 0x181   :  { %v8874_v22 = vpop.eup %8873  ;;  %8893 = vrcp.f32 %v862_v38  ;;  %v7236_v26 = vmul.f32 -1.442695, %v9943_v24 }
 0x182   :  { %v8876_v25 = vpop.eup %8875  ;;  %8895 = vrcp.f32 %v860_v57  ;;  %v7234_v0 = vmul.f32 -1.442695, %v9947_v10 }
 0x183   :  { %v8878_v28 = vpop.eup %8877  ;;  %8897 = vpow2.f32 %v7235_v1  ;;  %1023 = vrot.lane.b32.xlu0 %v8876_v25, %s9368_s15 }
 0x184   :  { %v8880_v30 = vpop.eup %8879  ;;  %8899 = vpow2.f32 %v7233_v23  ;;  %v7736_v12 = vpop.f32.mrb[24].mxu0 }
 0x185   :  { %v8882_v13 = vpop.eup %8881  ;;  %8901 = vpow2.f32 %v7236_v26  ;;  %v9954_v32 = vadd.f32 %v7736_v12, %v9843_v60  ;;  %1025 = vrot.lane.b32.xlu1 %v8880_v30, %s9368_s15  ;;  %v664_v33 = vpop.f32.mrb[25].mxu0 }
 0x186   :  { %v8884_v35 = vpop.eup %8883  ;;  %v865_v49 = vadd.f32 1.0, %v8882_v13  ;;  %8903 = vpow2.f32 %v7234_v0  ;;  %v9958_v48 = vadd.f32 %v9843_v60, %v664_v33  ;;  %v7737_v41 = vpop.f32.mrb[26].mxu0 }
 0x187   :  { %v8886_v44 = vpop.eup %8885  ;;  %v863_v2 = vadd.f32 1.0, %v8884_v35  ;;  %v9961_v15 = vadd.f32 %v7737_v41, %v9843_v60  ;;  %1027 = vrot.lane.b32.xlu0 %v8874_v22, %s9368_s15  ;;  %v667_v47 = vpop.f32.mrb[27].mxu0  ;;  %v7239_v36 = vmul.f32 -1.442695, %v9954_v32 }
 0x188   :  { %v8888_v6 = vpop.eup %8887  ;;  %8905 = vrcp.f32 %v865_v49  ;;  %v866_v37 = vadd.f32 1.0, %v8886_v44  ;;  %v9966_v5 = vadd.f32 %v9843_v60, %v667_v47  ;;  %v7237_v56 = vmul.f32 -1.442695, %v9958_v48 }
 0x189   :  { %v8890_v52 = vpop.eup %8889  ;;  %8907 = vrcp.f32 %v863_v2  ;;  %v864_v19 = vadd.f32 1.0, %v8888_v6  ;;  %1029 = vrot.lane.b32.xlu1 %v8878_v28, %s9368_s15  ;;  %v7240_v62 = vmul.f32 -1.442695, %v9961_v15 }
 0x18a   :  { %v8892_v55 = vpop.eup %8891  ;;  %8909 = vrcp.f32 %v866_v37  ;;  %v7238_v54 = vmul.f32 -1.442695, %v9966_v5 }
 0x18b   :  { %v8894_v63 = vpop.eup %8893  ;;  %8911 = vrcp.f32 %v864_v19  ;;  %1031 = vrot.lane.b32.xlu0 %v8892_v55, %s9368_s15 }
 0x18c   :  { %v8896_v7 = vpop.eup %8895  ;;  %8913 = vpow2.f32 %v7239_v36  ;;  %v7740_v8 = vpop.f32.mrb[28].mxu0 }
 0x18d   :  { %v8898_v11 = vpop.eup %8897  ;;  %8915 = vpow2.f32 %v7237_v56  ;;  %v9974_v18 = vadd.f32 %v7740_v8, %v9843_v60  ;;  %1033 = vrot.lane.b32.xlu1 %v8896_v7, %s9368_s15  ;;  %v680_v39 = vpop.f32.mrb[29].mxu0 }
 0x18e   :  { %v8900_v38 = vpop.eup %8899  ;;  %v869_v1 = vadd.f32 1.0, %v8898_v11  ;;  %8917 = vpow2.f32 %v7240_v62  ;;  %v9978_v43 = vadd.f32 %v9843_v60, %v680_v39  ;;  %v7741_v57 = vpop.f32.mrb[30].mxu0 }
 0x18f   :  { %v8902_v23 = vpop.eup %8901  ;;  %v867_v22 = vadd.f32 1.0, %v8900_v38  ;;  %8919 = vpow2.f32 %v7238_v54  ;;  %v9981_v26 = vadd.f32 %v7741_v57, %v9843_v60  ;;  %1035 = vrot.lane.b32.xlu0 %v8890_v52, %s9368_s15  ;;  %v683_v25 = vpop.f32.mrb[31].mxu0  ;;  %v7243_v30 = vmul.f32 -1.442695, %v9974_v18 }
 0x190   :  { %v8904_v0 = vpop.eup %8903  ;;  %8921 = vrcp.f32 %v869_v1  ;;  %v870_v28 = vadd.f32 1.0, %v8902_v23  ;;  %v9986_v12 = vadd.f32 %v9843_v60, %v683_v25  ;;  %v7241_v33 = vmul.f32 -1.442695, %v9978_v43 }
 0x191   :  { %8923 = vrcp.f32 %v867_v22  ;;  %v868_v13 = vadd.f32 1.0, %v8904_v0  ;;  %1037 = vrot.lane.b32.xlu1 %v8894_v63, %s9368_s15  ;;  %v7244_v49 = vmul.f32 -1.442695, %v9981_v26 }
 0x192   :  { %v8906_v35 = vpop.eup %8905  ;;  %8925 = vrcp.f32 %v870_v28  ;;  %v7242_v44 = vmul.f32 -1.442695, %v9986_v12 }
 0x193   :  { %v8908_v41 = vpop.eup %8907  ;;  %8927 = vrcp.f32 %v868_v13 }
 0x194   :  { %v8910_v2 = vpop.eup %8909  ;;  %8929 = vpow2.f32 %v7243_v30  ;;  %1039 = vrot.lane.b32.xlu0 %v8908_v41, %s9368_s15  ;;  %v7744_v47 = vpop.f32.mrb[32].mxu0 }
 0x195   :  { %v8912_v6 = vpop.eup %8911  ;;  %8931 = vpow2.f32 %v7241_v33  ;;  %v9994_v37 = vadd.f32 %v7744_v47, %v9843_v60  ;;  %v696_v36 = vpop.f32.mrb[33].mxu0 }
 0x196   :  { %v8914_v52 = vpop.eup %8913  ;;  %8933 = vpow2.f32 %v7244_v49  ;;  %1041 = vrot.lane.b32.xlu1 %v8912_v6, %s9368_s15  ;;  %v9998_v19 = vadd.f32 %v9843_v60, %v696_v36  ;;  %v7745_v56 = vpop.f32.mrb[34].mxu0 }
 0x197   :  { %v8916_v55 = vpop.eup %8915  ;;  %v873_v62 = vadd.f32 1.0, %v8914_v52  ;;  %8935 = vpow2.f32 %v7242_v44  ;;  %v10001_v63 = vadd.f32 %v7745_v56, %v9843_v60  ;;  %v699_v54 = vpop.f32.mrb[35].mxu0  ;;  %v7247_v1 = vmul.f32 -1.442695, %v9994_v37 }
 0x198   :  { %v8918_v7 = vpop.eup %8917  ;;  %v871_v8 = vadd.f32 1.0, %v8916_v55  ;;  %1043 = vrot.lane.b32.xlu0 %v8906_v35, %s9368_s15  ;;  %v10005_v11 = vadd.f32 %v9843_v60, %v699_v54  ;;  %v7245_v22 = vmul.f32 -1.442695, %v9998_v19 }
 0x199   :  { %v8920_v39 = vpop.eup %8919  ;;  %8937 = vrcp.f32 %v873_v62  ;;  %v874_v38 = vadd.f32 1.0, %v8918_v7  ;;  %v7248_v0 = vmul.f32 -1.442695, %v10001_v63 }
 0x19a   :  { %v8922_v57 = vpop.eup %8921  ;;  %8939 = vrcp.f32 %v871_v8  ;;  %v872_v23 = vadd.f32 1.0, %v8920_v39  ;;  %1045 = vrot.lane.b32.xlu1 %v8910_v2, %s9368_s15  ;;  %v7246_v30 = vmul.f32 -1.442695, %v10005_v11 }
 0x19b   :  { %v8924_v25 = vpop.eup %8923  ;;  %8941 = vrcp.f32 %v874_v38 }
 0x19c   :  { %v8926_v28 = vpop.eup %8925  ;;  %8943 = vrcp.f32 %v872_v23  ;;  %1047 = vrot.lane.b32.xlu0 %v8924_v25, %s9368_s15  ;;  %v7748_v13 = vpop.f32.mrb[36].mxu0 }
 0x19d   :  { %v8928_v33 = vpop.eup %8927  ;;  %8945 = vpow2.f32 %v7247_v1  ;;  %v10014_v35 = vadd.f32 %v7748_v13, %v9843_v60  ;;  %v712_v49 = vpop.f32.mrb[37].mxu0 }
 0x19e   :  { %v8930_v41 = vpop.eup %8929  ;;  %8947 = vpow2.f32 %v7245_v22  ;;  %1049 = vrot.lane.b32.xlu1 %v8928_v33, %s9368_s15  ;;  %v10018_v44 = vadd.f32 %v9843_v60, %v712_v49  ;;  %v7749_v2 = vpop.f32.mrb[38].mxu0 }
 0x19f   :  { %v8932_v47 = vpop.eup %8931  ;;  %v877_v6 = vadd.f32 1.0, %v8930_v41  ;;  %8949 = vpow2.f32 %v7248_v0  ;;  %v10021_v36 = vadd.f32 %v7749_v2, %v9843_v60  ;;  %v715_v52 = vpop.f32.mrb[39].mxu0  ;;  %v7251_v8 = vmul.f32 -1.442695, %v10014_v35 }
 0x1a0   :  { %v8934_v56 = vpop.eup %8933  ;;  %v875_v55 = vadd.f32 1.0, %v8932_v47  ;;  %8951 = vpow2.f32 %v7246_v30  ;;  %1051 = vrot.lane.b32.xlu0 %v8922_v57, %s9368_s15  ;;  %v10025_v62 = vadd.f32 %v9843_v60, %v715_v52  ;;  %v7249_v38 = vmul.f32 -1.442695, %v10018_v44 }
 0x1a1   :  { %v8936_v54 = vpop.eup %8935  ;;  %8953 = vrcp.f32 %v877_v6  ;;  %v878_v7 = vadd.f32 1.0, %v8934_v56  ;;  %v7252_v23 = vmul.f32 -1.442695, %v10021_v36 }
 0x1a2   :  { %8955 = vrcp.f32 %v875_v55  ;;  %v876_v39 = vadd.f32 1.0, %v8936_v54  ;;  %1053 = vrot.lane.b32.xlu1 %v8926_v28, %s9368_s15  ;;  %v7250_v60 = vmul.f32 -1.442695, %v10025_v62 }
 0x1a3   :  { %v8938_v1 = vpop.eup %8937  ;;  %8957 = vrcp.f32 %v878_v7 }
 0x1a4   :  { %v8940_v22 = vpop.eup %8939  ;;  %8959 = vrcp.f32 %v876_v39 }
 0x1a5   :  { %v8942_v57 = vpop.eup %8941  ;;  %8961 = vpow2.f32 %v7251_v8  ;;  %1055 = vrot.lane.b32.xlu0 %v8940_v22, %s9368_s15 }
 0x1a6   :  { %v8944_v25 = vpop.eup %8943  ;;  %8963 = vpow2.f32 %v7249_v38 }
 0x1a7   :  { %v8946_v0 = vpop.eup %8945  ;;  %8965 = vpow2.f32 %v7252_v23  ;;  %1057 = vrot.lane.b32.xlu1 %v8944_v25, %s9368_s15 }
 0x1a8   :  { %v8948_v30 = vpop.eup %8947  ;;  %v881_v28 = vadd.f32 1.0, %v8946_v0  ;;  %8967 = vpow2.f32 %v7250_v60 }
 0x1a9   :  { %v8950_v13 = vpop.eup %8949  ;;  %v879_v33 = vadd.f32 1.0, %v8948_v30  ;;  %1059 = vrot.lane.b32.xlu0 %v8938_v1, %s9368_s15 }
 0x1aa   :  { %v8952_v49 = vpop.eup %8951  ;;  %v882_v2 = vadd.f32 1.0, %v8950_v13 }
 0x1ab   :  { %v8954_v41 = vpop.eup %8953  ;;  %8969 = vrcp.f32 %v879_v33  ;;  %v880_v47 = vadd.f32 1.0, %v8952_v49  ;;  %1061 = vrot.lane.b32.xlu1 %v8942_v57, %s9368_s15 }
 0x1ac   :  { %v8956_v6 = vpop.eup %8955  ;;  %8971 = vrcp.f32 %v881_v28 }
 0x1ad   :  { %v8958_v52 = vpop.eup %8957  ;;  %8973 = vrcp.f32 %v880_v47  ;;  %1063 = vrot.lane.b32.xlu0 %v8956_v6, %s9368_s15 }
 0x1ae   :  { %v8960_v56 = vpop.eup %8959  ;;  %8975 = vrcp.f32 %v882_v2 }
 0x1af   :  { %v8962_v55 = vpop.eup %8961  ;;  %1065 = vrot.lane.b32.xlu1 %v8960_v56, %s9368_s15 }
 0x1b0   :  { %v8964_v54 = vpop.eup %8963  ;;  %v885_v7 = vadd.f32 1.0, %v8962_v55 }
 0x1b1   :  { %v8966_v8 = vpop.eup %8965  ;;  %v883_v39 = vadd.f32 1.0, %v8964_v54  ;;  %1067 = vrot.lane.b32.xlu0 %v8954_v41, %s9368_s15 }
 0x1b2   :  { %v8968_v38 = vpop.eup %8967  ;;  %v886_v1 = vadd.f32 1.0, %v8966_v8 }
 0x1b3   :  { %8977 = vrcp.f32 %v883_v39  ;;  %v884_v23 = vadd.f32 1.0, %v8968_v38  ;;  %1069 = vrot.lane.b32.xlu1 %v8958_v52, %s9368_s15 }
 0x1b4   :  { %8979 = vrcp.f32 %v885_v7 }
 0x1b5   :  { %v8970_v22 = vpop.eup %8969  ;;  %8981 = vrcp.f32 %v884_v23 }
 0x1b6   :  { %v8972_v60 = vpop.eup %8971  ;;  %1071 = vrot.lane.b32.xlu0 %v8970_v22, %s9368_s15  ;;  %8983 = vrcp.f32 %v886_v1 }
 0x1b7   :  { %v8974_v57 = vpop.eup %8973 }
 0x1b8   :  { %1073 = vrot.lane.b32.xlu1 %v8974_v57, %s9368_s15  ;;  %v8976_v25 = vpop.eup %8975 }
 0x1ba   :  { %1075 = vrot.lane.b32.xlu0 %v8972_v60, %s9368_s15 }
 0x1bc   :  { %1077 = vrot.lane.b32.xlu1 %v8976_v25, %s9368_s15 }
 0x1bd   :  { %v8978_v0 = vpop.eup %8977 }
 0x1be   :  { %v8980_v30 = vpop.eup %8979  ;;  %1079 = vrot.lane.b32.xlu0 %v8978_v0, %s9368_s15 }
 0x1bf   :  { %v8982_v28 = vpop.eup %8981 }
 0x1c0   :  { %1081 = vrot.lane.b32.xlu1 %v8982_v28, %s9368_s15  ;;  %v8984_v13 = vpop.eup %8983 }
 0x1c2   :  { %1083 = vrot.lane.b32.xlu0 %v8980_v30, %s9368_s15 }
 0x1c4   :  { %1085 = vrot.lane.b32.xlu1 %v8984_v13, %s9368_s15 }
 0x1e4   :  { %v1008_v33 = vpop.permute.xlu0 %1007 }
 0x1e5   :  { %v1127_v41 = vmul.f32 %v1008_v33, %v9849_v27 }
 0x1e6   :  { %v1010_v49 = vpop.permute.xlu1 %1009 }
 0x1e7   :  { %v1128_v2 = vmul.f32 %v1010_v49, %v9857_v29 }
 0x1e8   :  { %v1012_v47 = vpop.permute.xlu0 %1011 }
 0x1e9   :  { %v1172_v6 = vpack.c.bf16 %v1128_v2, %v1127_v41  ;;  %v1129_v56 = vmul.f32 %v1012_v47, %v9846_v42 }
 0x1ea   :  { %v1014_v52 = vpop.permute.xlu1 %1013 }
 0x1eb   :  { %v1130_v55 = vmul.f32 %v1014_v52, %v9853_v9  ;;  %7752 = vmatprep.mubr.msk.bf16.mxu1 %vm395_vm2, %v1172_v6 }
 0x1ec   :  { %v1016_v54 = vpop.permute.xlu0 %1015 }
 0x1ed   :  { %v1173_v7 = vpack.c.bf16 %v1130_v55, %v1129_v56  ;;  %v1131_v39 = vmul.f32 %v1016_v54, %v9865_v46 }
 0x1ee   :  { %v1018_v8 = vpop.permute.xlu1 %1017 }
 0x1ef   :  { %v1132_v38 = vmul.f32 %v1018_v8, %v9873_v40  ;;  %7753 = vmatmul.mubr.msk.bf16.vlgmr.msra.gmra.mrb[0].mxu1 %vm395_vm2, %v1173_v7 }
 0x1f0   :  { %v1020_v27 = vpop.permute.xlu0 %1019 }
 0x1f1   :  { %v1174_v29 = vpack.c.bf16 %v1132_v38, %v1131_v39  ;;  %v1133_v23 = vmul.f32 %v1020_v27, %v9862_v31 }
 0x1f2   :  { %v1022_v1 = vpop.permute.xlu1 %1021 }
 0x1f3   :  { %v1134_v42 = vmul.f32 %v1022_v1, %v9869_v34  ;;  %7756 = vmatprep.mubr.msk.bf16.mxu1 %vm395_vm2, %v1174_v29 }
 0x1f5   :  { %v1175_v9 = vpack.c.bf16 %v1134_v42, %v1133_v23  ;;  %v1024_v22 = vpop.permute.xlu0 %1023 }
 0x1f6   :  { %v1135_v46 = vmul.f32 %v1024_v22, %v9881_v53 }
 0x1f7   :  { %v1026_v60 = vpop.permute.xlu1 %1025  ;;  %7757 = vmatmul.mubr.msk.bf16.gmra.mrb[4].mxu1 %vm395_vm2, %v1175_v9 }
 0x1f8   :  { %v1136_v40 = vmul.f32 %v1026_v60, %v9889_v59 }
 0x1f9   :  { %v1028_v57 = vpop.permute.xlu0 %1027 }
 0x1fa   :  { %v1176_v25 = vpack.c.bf16 %v1136_v40, %v1135_v46  ;;  %v1137_v30 = vmul.f32 %v1028_v57, %v9878_v50 }
 0x1fb   :  { %v1030_v0 = vpop.permute.xlu1 %1029 }
 0x1fc   :  { %v1138_v31 = vmul.f32 %v1030_v0, %v9885_v51  ;;  %7760 = vmatprep.mubr.msk.bf16.mxu1 %vm395_vm2, %v1176_v25 }
 0x1fd   :  { %v1032_v34 = vpop.permute.xlu0 %1031 }
 0x1fe   :  { %v1177_v28 = vpack.c.bf16 %v1138_v31, %v1137_v30  ;;  %v1139_v33 = vmul.f32 %v1032_v34, %v9900_v21 }
 0x1ff   :  { %v1034_v13 = vpop.permute.xlu1 %1033 }
 0x200   :  { %v1140_v49 = vmul.f32 %v1034_v13, %v9908_v61  ;;  %7761 = vmatmul.mubr.msk.bf16.gmra.mrb[8].mxu1 %vm395_vm2, %v1177_v28 }
 0x201   :  { %v1036_v53 = vpop.permute.xlu0 %1035 }
 0x202   :  { %v1178_v59 = vpack.c.bf16 %v1140_v49, %v1139_v33  ;;  %v1141_v2 = vmul.f32 %v1036_v53, %v9894_v14 }
 0x203   :  { %v1038_v41 = vpop.permute.xlu1 %1037 }
 0x204   :  { %v1142_v50 = vmul.f32 %v1038_v41, %v9904_v58  ;;  %7764 = vmatprep.mubr.msk.bf16.mxu1 %vm395_vm2, %v1178_v59 }
 0x206   :  { %v1179_v51 = vpack.c.bf16 %v1142_v50, %v1141_v2  ;;  %v1040_v47 = vpop.permute.xlu0 %1039 }
 0x207   :  { %v1143_v21 = vmul.f32 %v1040_v47, %v9918_v4  ;;  %v12648_v47 = vmov 0.0  }
 0x208   :  { %v1042_v6 = vpop.permute.xlu1 %1041  ;;  %7765 = vmatmul.mubr.msk.bf16.gmra.mrb[12].mxu1 %vm395_vm2, %v1179_v51  ;;  %7798 = vmatprep.subr.bf16.mxu0 %v12648_v47 }
 0x209   :  { %v1144_v61 = vmul.f32 %v1042_v6, %v9927_v20  ;;  %7792 = vmatprep.subr.bf16.mxu1 %v12648_v47  ;;  %7800 = vmatprep.mubr.msk.bf16.mxu0 %vm9370_vm4, %v12648_v47 }
 0x20a   :  { %v1044_v52 = vpop.permute.xlu0 %1043 }
 0x20b   :  { %v1180_v56 = vpack.c.bf16 %v1144_v61, %v1143_v21  ;;  %v1145_v54 = vmul.f32 %v1044_v52, %v9915_v45 }
 0x20c   :  { %v1046_v55 = vpop.permute.xlu1 %1045 }
 0x20d   :  { %v1146_v14 = vmul.f32 %v1046_v55, %v9923_v16  ;;  %7768 = vmatprep.mubr.msk.bf16.mxu1 %vm395_vm2, %v1180_v56 }
 0x20e   :  { %v1048_v58 = vpop.permute.xlu0 %1047 }
 0x20f   :  { %v1181_v7 = vpack.c.bf16 %v1146_v14, %v1145_v54  ;;  %v1147_v39 = vmul.f32 %v1048_v58, %v9938_v17  ;;  %v10138_v14 = vld [vmem:[%s12645_s1] sm:$0xff]  }
 0x210   :  { %v1050_v8 = vpop.permute.xlu1 %1049 }
 0x211   :  { %v1148_v38 = vmul.f32 %v1050_v8, %v9947_v10  ;;  %7769 = vmatmul.mubr.msk.bf16.gmra.mrb[16].mxu1 %vm395_vm2, %v1181_v7 }
 0x212   :  { %v1052_v4 = vpop.permute.xlu0 %1051 }
 0x213   :  { %v1182_v20 = vpack.c.bf16 %v1148_v38, %v1147_v39  ;;  %v1149_v29 = vmul.f32 %v1052_v4, %v9935_v3 }
 0x214   :  { %v1054_v27 = vpop.permute.xlu1 %1053 }
 0x215   :  { %v1150_v45 = vmul.f32 %v1054_v27, %v9943_v24  ;;  %7772 = vmatprep.mubr.msk.bf16.mxu1 %vm395_vm2, %v1182_v20 }
 0x217   :  { %v1183_v16 = vpack.c.bf16 %v1150_v45, %v1149_v29  ;;  %v1056_v1 = vpop.permute.xlu0 %1055 }
 0x218   :  { %v1151_v17 = vmul.f32 %v1056_v1, %v9958_v48 }
 0x219   :  { %v1058_v23 = vpop.permute.xlu1 %1057  ;;  %7773 = vmatmul.mubr.msk.bf16.gmra.mrb[20].mxu1 %vm395_vm2, %v1183_v16 }
 0x21a   :  { %v1152_v10 = vmul.f32 %v1058_v23, %v9966_v5 }
 0x21b   :  { %v1060_v42 = vpop.permute.xlu0 %1059 }
 0x21c   :  { %v1184_v9 = vpack.c.bf16 %v1152_v10, %v1151_v17  ;;  %v1153_v60 = vmul.f32 %v1060_v42, %v9954_v32 }
 0x21d   :  { %v1062_v22 = vpop.permute.xlu1 %1061 }
 0x21e   :  { %v1154_v3 = vmul.f32 %v1062_v22, %v9961_v15  ;;  %7776 = vmatprep.mubr.msk.bf16.mxu1 %vm395_vm2, %v1184_v9 }
 0x21f   :  { %v1064_v24 = vpop.permute.xlu0 %1063 }
 0x220   :  { %v1185_v46 = vpack.c.bf16 %v1154_v3, %v1153_v60  ;;  %v1155_v57 = vmul.f32 %v1064_v24, %v9978_v43 }
 0x221   :  { %v1066_v40 = vpop.permute.xlu1 %1065 }
 0x222   :  { %v1156_v25 = vmul.f32 %v1066_v40, %v9986_v12  ;;  %7777 = vmatmul.mubr.msk.bf16.gmra.mrb[24].mxu1 %vm395_vm2, %v1185_v46 }
 0x223   :  { %v1068_v48 = vpop.permute.xlu0 %1067 }
 0x224   :  { %v1186_v5 = vpack.c.bf16 %v1156_v25, %v1155_v57  ;;  %v1157_v30 = vmul.f32 %v1068_v48, %v9974_v18 }
 0x225   :  { %v1070_v0 = vpop.permute.xlu1 %1069 }
 0x226   :  { %v1158_v32 = vmul.f32 %v1070_v0, %v9981_v26  ;;  %7780 = vmatprep.mubr.msk.bf16.mxu1 %vm395_vm2, %v1186_v5 }
 0x228   :  { %v1187_v15 = vpack.c.bf16 %v1158_v32, %v1157_v30  ;;  %v1072_v31 = vpop.permute.xlu0 %1071 }
 0x229   :  { %v1159_v43 = vmul.f32 %v1072_v31, %v9998_v19 }
 0x22a   :  { %v1074_v34 = vpop.permute.xlu1 %1073  ;;  %7781 = vmatmul.mubr.msk.bf16.gmra.mrb[28].mxu1 %vm395_vm2, %v1187_v15 }
 0x22b   :  { %v1160_v12 = vmul.f32 %v1074_v34, %v10005_v11 }
 0x22c   :  { %v1076_v28 = vpop.permute.xlu0 %1075 }
 0x22d   :  { %v1188_v13 = vpack.c.bf16 %v1160_v12, %v1159_v43  ;;  %v1161_v49 = vmul.f32 %v1076_v28, %v9994_v37 }
 0x22e   :  { %v1078_v33 = vpop.permute.xlu1 %1077 }
 0x22f   :  { %v1162_v18 = vmul.f32 %v1078_v33, %v10001_v63  ;;  %7784 = vmatprep.mubr.msk.bf16.mxu1 %vm395_vm2, %v1188_v13 }
 0x230   :  { %v1080_v26 = vpop.permute.xlu0 %1079 }
 0x231   :  { %v1189_v53 = vpack.c.bf16 %v1162_v18, %v1161_v49  ;;  %v1163_v41 = vmul.f32 %v1080_v26, %v10018_v44  ;;  %v10117_v44 = vld [vmem:[%s12646_s2 + $0x8] ss:$0 sm:$0xff] }
 0x232   :  { %v1082_v59 = vpop.permute.xlu1 %1081 }
 0x233   :  { %v1164_v2 = vmul.f32 %v1082_v59, %v10025_v62  ;;  %7785 = vmatmul.mubr.msk.bf16.gmra.mrb[32].mxu1 %vm395_vm2, %v1189_v53 }
 0x234   :  { %v1084_v19 = vpop.permute.xlu0 %1083 }
 0x235   :  { %v1190_v11 = vpack.c.bf16 %v1164_v2, %v1163_v41  ;;  %v1165_v51 = vmul.f32 %v1084_v19, %v10014_v35 }
 0x236   :  { %v1086_v50 = vpop.permute.xlu1 %1085 }
 0x237   :  { %v1166_v37 = vmul.f32 %v1086_v50, %v10021_v36  ;;  %7788 = vmatprep.mubr.msk.bf16.mxu1 %vm395_vm2, %v1190_v11 }
 0x239   :  { %v1191_v63 = vpack.c.bf16 %v1166_v37, %v1165_v51 }
 0x23b   :  { %7789 = vmatmul.mubr.msk.bf16.gmra.mrb[36].mxu1 %vm395_vm2, %v1191_v63 }
 0x23c   :  { %7794 = vmatprep.mubr.msk.bf16.mxu1 %vm9370_vm4, %v12648_v47 }
 0x2c2   :  { %v7754_v35 = vpop.f32.mrb[0].mxu1 }
 0x2c3   :  { %v1296_v36 = vpop.f32.mrb[1].mxu1  ;;  %v10120_v6 = vadd.f32 %v7754_v35, %v10117_v44 }
 0x2c4   :  { %v7755_v62 = vpop.f32.mrb[2].mxu1  ;;  %v10126_v52 = vadd.f32 %v10117_v44, %v1296_v36 }
 0x2c5   :  { %v10123_v21 = vadd.f32 %v7755_v62, %v10117_v44  ;;  %v1299_v61 = vpop.f32.mrb[3].mxu1 }
 0x2c6   :  { %v10129_v56 = vadd.f32 %v10117_v44, %v1299_v61 }
 0x2c7   :  { %v1456_v55 = vpack.c.bf16 %v10123_v21, %v10120_v6 }
 0x2c8   :  { %v1455_v54 = vpack.c.bf16 %v10129_v56, %v10126_v52 }
 0x2c9   :  { %7799 = vmatpush3.bf16.msra.mxu0 %v1456_v55 }
 0x2ca   :  { %v7758_v58 = vpop.f32.mrb[4].mxu1  ;;  %7793 = vmatpush3.bf16.msra.mxu1 %v1455_v54  ;;  %7810 = vmatprep.subr.bf16.mxu0 %v12648_v47 }
 0x2cb   :  { %v1312_v7 = vpop.f32.mrb[5].mxu1  ;;  %7804 = vmatprep.subr.bf16.mxu1 %v12648_v47  ;;  %v10145_v39 = vadd.f32 %v7758_v58, %v10117_v44 }
 0x2cc   :  { %v7759_v8 = vpop.f32.mrb[6].mxu1  ;;  %7801 = vmatmul.mubr.msk.bf16.vlgmr.msra.gmra.mrb[40].mxu0 %vm395_vm2, %v10138_v14  ;;  %v10155_v20 = vadd.f32 %v10117_v44, %v1312_v7 }
 0x2cd   :  { %v10148_v38 = vadd.f32 %v7759_v8, %v10117_v44  ;;  %v1315_v4 = vpop.f32.mrb[7].mxu1  ;;  %7795 = vmatmul.mubr.msk.bf16.vlgmr.msra.gmra.mrb[40].mxu1 %vm395_vm2, %v10138_v14  ;;  %7812 = vmatprep.mubr.msk.bf16.mxu0 %vm9370_vm4, %v12648_v47 }
 0x2ce   :  { %v10158_v27 = vadd.f32 %v10117_v44, %v1315_v4  ;;  %7806 = vmatprep.mubr.msk.bf16.mxu1 %vm9370_vm4, %v12648_v47 }
 0x2cf   :  { %v1458_v29 = vpack.c.bf16 %v10148_v38, %v10145_v39 }
 0x2d0   :  { %v1457_v45 = vpack.c.bf16 %v10158_v27, %v10155_v20 }
 0x2d1   :  { %7811 = vmatpush3.bf16.msra.mxu0 %v1458_v29 }
 0x2d2   :  { %7805 = vmatpush3.bf16.msra.mxu1 %v1457_v45  ;;  %7822 = vmatprep.subr.bf16.mxu0 %v12648_v47 }
 0x2d3   :  { %v7762_v16 = vpop.f32.mrb[8].mxu1  ;;  %7816 = vmatprep.subr.bf16.mxu1 %v12648_v47 }
 0x2d4   :  { %v1328_v1 = vpop.f32.mrb[9].mxu1  ;;  %7813 = vmatmul.mubr.msk.bf16.vlgmr.msra.gmra.mrb[44].mxu0 %vm395_vm2, %v10138_v14  ;;  %v10175_v17 = vadd.f32 %v7762_v16, %v10117_v44 }
 0x2d5   :  { %v7763_v23 = vpop.f32.mrb[10].mxu1  ;;  %7807 = vmatmul.mubr.msk.bf16.vlgmr.msra.gmra.mrb[44].mxu1 %vm395_vm2, %v10138_v14  ;;  %7824 = vmatprep.mubr.msk.bf16.mxu0 %vm9370_vm4, %v12648_v47  ;;  %v10183_v9 = vadd.f32 %v10117_v44, %v1328_v1 }
 0x2d6   :  { %v10178_v10 = vadd.f32 %v7763_v23, %v10117_v44  ;;  %v1331_v42 = vpop.f32.mrb[11].mxu1  ;;  %7818 = vmatprep.mubr.msk.bf16.mxu1 %vm9370_vm4, %v12648_v47 }
 0x2d7   :  { %v10186_v22 = vadd.f32 %v10117_v44, %v1331_v42 }
 0x2d8   :  { %v1460_v60 = vpack.c.bf16 %v10178_v10, %v10175_v17 }
 0x2d9   :  { %v1459_v3 = vpack.c.bf16 %v10186_v22, %v10183_v9 }
 0x2da   :  { %7823 = vmatpush3.bf16.msra.mxu0 %v1460_v60 }
 0x2db   :  { %v7766_v24 = vpop.f32.mrb[12].mxu1  ;;  %7817 = vmatpush3.bf16.msra.mxu1 %v1459_v3  ;;  %7834 = vmatprep.subr.bf16.mxu0 %v12648_v47 }
 0x2dc   :  { %v1344_v46 = vpop.f32.mrb[13].mxu1  ;;  %7828 = vmatprep.subr.bf16.mxu1 %v12648_v47  ;;  %v10197_v57 = vadd.f32 %v7766_v24, %v10117_v44 }
 0x2dd   :  { %v7767_v40 = vpop.f32.mrb[14].mxu1  ;;  %7825 = vmatmul.mubr.msk.bf16.vlgmr.msra.gmra.mrb[48].mxu0 %vm395_vm2, %v10138_v14  ;;  %v10207_v5 = vadd.f32 %v10117_v44, %v1344_v46 }
 0x2de   :  { %v10200_v25 = vadd.f32 %v7767_v40, %v10117_v44  ;;  %v1347_v48 = vpop.f32.mrb[15].mxu1  ;;  %7819 = vmatmul.mubr.msk.bf16.vlgmr.msra.gmra.mrb[48].mxu1 %vm395_vm2, %v10138_v14  ;;  %7836 = vmatprep.mubr.msk.bf16.mxu0 %vm9370_vm4, %v12648_v47 }
 0x2df   :  { %v10210_v0 = vadd.f32 %v10117_v44, %v1347_v48  ;;  %7830 = vmatprep.mubr.msk.bf16.mxu1 %vm9370_vm4, %v12648_v47 }
 0x2e0   :  { %v1462_v30 = vpack.c.bf16 %v10200_v25, %v10197_v57 }
 0x2e1   :  { %v1461_v32 = vpack.c.bf16 %v10210_v0, %v10207_v5 }
 0x2e2   :  { %7835 = vmatpush3.bf16.msra.mxu0 %v1462_v30 }
 0x2e3   :  { %7829 = vmatpush3.bf16.msra.mxu1 %v1461_v32  ;;  %7846 = vmatprep.subr.bf16.mxu0 %v12648_v47 }
 0x2e4   :  { %v7770_v15 = vpop.f32.mrb[16].mxu1  ;;  %7840 = vmatprep.subr.bf16.mxu1 %v12648_v47 }
 0x2e5   :  { %v1360_v31 = vpop.f32.mrb[17].mxu1  ;;  %7837 = vmatmul.mubr.msk.bf16.vlgmr.msra.gmra.mrb[52].mxu0 %vm395_vm2, %v10138_v14  ;;  %v10227_v43 = vadd.f32 %v7770_v15, %v10117_v44 }
 0x2e6   :  { %v7771_v34 = vpop.f32.mrb[18].mxu1  ;;  %7831 = vmatmul.mubr.msk.bf16.vlgmr.msra.gmra.mrb[52].mxu1 %vm395_vm2, %v10138_v14  ;;  %7848 = vmatprep.mubr.msk.bf16.mxu0 %vm9370_vm4, %v12648_v47  ;;  %v10235_v13 = vadd.f32 %v10117_v44, %v1360_v31 }
 0x2e7   :  { %v10230_v12 = vadd.f32 %v7771_v34, %v10117_v44  ;;  %v1363_v28 = vpop.f32.mrb[19].mxu1  ;;  %7842 = vmatprep.mubr.msk.bf16.mxu1 %vm9370_vm4, %v12648_v47 }
 0x2e8   :  { %v10238_v33 = vadd.f32 %v10117_v44, %v1363_v28 }
 0x2e9   :  { %v1464_v49 = vpack.c.bf16 %v10230_v12, %v10227_v43 }
 0x2ea   :  { %v1463_v18 = vpack.c.bf16 %v10238_v33, %v10235_v13 }
 0x2eb   :  { %7847 = vmatpush3.bf16.msra.mxu0 %v1464_v49 }
 0x2ec   :  { %v7774_v26 = vpop.f32.mrb[20].mxu1  ;;  %7841 = vmatpush3.bf16.msra.mxu1 %v1463_v18  ;;  %7858 = vmatprep.subr.bf16.mxu0 %v12648_v47 }
 0x2ed   :  { %v1376_v53 = vpop.f32.mrb[21].mxu1  ;;  %7852 = vmatprep.subr.bf16.mxu1 %v12648_v47  ;;  %v10249_v41 = vadd.f32 %v7774_v26, %v10117_v44 }
 0x2ee   :  { %v7775_v59 = vpop.f32.mrb[22].mxu1  ;;  %7849 = vmatmul.mubr.msk.bf16.vlgmr.msra.gmra.mrb[56].mxu0 %vm395_vm2, %v10138_v14  ;;  %v10259_v11 = vadd.f32 %v10117_v44, %v1376_v53 }
 0x2ef   :  { %v10252_v2 = vadd.f32 %v7775_v59, %v10117_v44  ;;  %v1379_v19 = vpop.f32.mrb[23].mxu1  ;;  %7843 = vmatmul.mubr.msk.bf16.vlgmr.msra.gmra.mrb[56].mxu1 %vm395_vm2, %v10138_v14  ;;  %7860 = vmatprep.mubr.msk.bf16.mxu0 %vm9370_vm4, %v12648_v47 }
 0x2f0   :  { %v10262_v50 = vadd.f32 %v10117_v44, %v1379_v19  ;;  %7854 = vmatprep.mubr.msk.bf16.mxu1 %vm9370_vm4, %v12648_v47 }
 0x2f1   :  { %v1466_v51 = vpack.c.bf16 %v10252_v2, %v10249_v41 }
 0x2f2   :  { %v1465_v37 = vpack.c.bf16 %v10262_v50, %v10259_v11 }
 0x2f3   :  { %7859 = vmatpush3.bf16.msra.mxu0 %v1466_v51 }
 0x2f4   :  { %7853 = vmatpush3.bf16.msra.mxu1 %v1465_v37  ;;  %7870 = vmatprep.subr.bf16.mxu0 %v12648_v47 }
 0x2f5   :  { %v7778_v63 = vpop.f32.mrb[24].mxu1  ;;  %7864 = vmatprep.subr.bf16.mxu1 %v12648_v47 }
 0x2f6   :  { %v1392_v35 = vpop.f32.mrb[25].mxu1  ;;  %7861 = vmatmul.mubr.msk.bf16.vlgmr.msra.gmra.mrb[60].mxu0 %vm395_vm2, %v10138_v14  ;;  %v10279_v62 = vadd.f32 %v7778_v63, %v10117_v44 }
 0x2f7   :  { %v7779_v36 = vpop.f32.mrb[26].mxu1  ;;  %7855 = vmatmul.mubr.msk.bf16.vlgmr.msra.gmra.mrb[60].mxu1 %vm395_vm2, %v10138_v14  ;;  %7872 = vmatprep.mubr.msk.bf16.mxu0 %vm9370_vm4, %v12648_v47  ;;  %v10287_v54 = vadd.f32 %v10117_v44, %v1392_v35 }
 0x2f8   :  { %v10282_v61 = vadd.f32 %v7779_v36, %v10117_v44  ;;  %v1395_v55 = vpop.f32.mrb[27].mxu1  ;;  %7866 = vmatprep.mubr.msk.bf16.mxu1 %vm9370_vm4, %v12648_v47 }
 0x2f9   :  { %v10290_v58 = vadd.f32 %v10117_v44, %v1395_v55 }
 0x2fa   :  { %v1468_v7 = vpack.c.bf16 %v10282_v61, %v10279_v62 }
 0x2fb   :  { %v1467_v8 = vpack.c.bf16 %v10290_v58, %v10287_v54 }
 0x2fc   :  { %7871 = vmatpush3.bf16.msra.mxu0 %v1468_v7 }
 0x2fd   :  { %v7782_v4 = vpop.f32.mrb[28].mxu1  ;;  %7865 = vmatpush3.bf16.msra.mxu1 %v1467_v8  ;;  %7882 = vmatprep.subr.bf16.mxu0 %v12648_v47 }
 0x2fe   :  { %v1408_v29 = vpop.f32.mrb[29].mxu1  ;;  %7876 = vmatprep.subr.bf16.mxu1 %v12648_v47  ;;  %v10301_v16 = vadd.f32 %v7782_v4, %v10117_v44 }
 0x2ff   :  { %v7783_v45 = vpop.f32.mrb[30].mxu1  ;;  %7873 = vmatmul.mubr.msk.bf16.vlgmr.msra.gmra.mrb[64].mxu0 %vm395_vm2, %v10138_v14  ;;  %v10311_v42 = vadd.f32 %v10117_v44, %v1408_v29 }
 0x300   :  { %v10304_v1 = vadd.f32 %v7783_v45, %v10117_v44  ;;  %v1411_v23 = vpop.f32.mrb[31].mxu1  ;;  %7867 = vmatmul.mubr.msk.bf16.vlgmr.msra.gmra.mrb[64].mxu1 %vm395_vm2, %v10138_v14  ;;  %7884 = vmatprep.mubr.msk.bf16.mxu0 %vm9370_vm4, %v12648_v47 }
 0x301   :  { %v10314_v60 = vadd.f32 %v10117_v44, %v1411_v23  ;;  %7878 = vmatprep.mubr.msk.bf16.mxu1 %vm9370_vm4, %v12648_v47 }
 0x302   :  { %v1470_v3 = vpack.c.bf16 %v10304_v1, %v10301_v16 }
 0x303   :  { %v1469_v24 = vpack.c.bf16 %v10314_v60, %v10311_v42 }
 0x304   :  { %7883 = vmatpush3.bf16.msra.mxu0 %v1470_v3 }
 0x305   :  { %7877 = vmatpush3.bf16.msra.mxu1 %v1469_v24  ;;  %7894 = vmatprep.subr.bf16.mxu0 %v12648_v47 }
 0x306   :  { %v7786_v46 = vpop.f32.mrb[32].mxu1  ;;  %7888 = vmatprep.subr.bf16.mxu1 %v12648_v47 }
 0x307   :  { %v1424_v40 = vpop.f32.mrb[33].mxu1  ;;  %7885 = vmatmul.mubr.msk.bf16.vlgmr.msra.gmra.mrb[68].mxu0 %vm395_vm2, %v10138_v14  ;;  %v10331_v30 = vadd.f32 %v7786_v46, %v10117_v44 }
 0x308   :  { %v7787_v48 = vpop.f32.mrb[34].mxu1  ;;  %7879 = vmatmul.mubr.msk.bf16.vlgmr.msra.gmra.mrb[68].mxu1 %vm395_vm2, %v10138_v14  ;;  %7896 = vmatprep.mubr.msk.bf16.mxu0 %vm9370_vm4, %v12648_v47  ;;  %v10339_v31 = vadd.f32 %v10117_v44, %v1424_v40 }
 0x309   :  { %v10334_v32 = vadd.f32 %v7787_v48, %v10117_v44  ;;  %v1427_v15 = vpop.f32.mrb[35].mxu1  ;;  %7890 = vmatprep.mubr.msk.bf16.mxu1 %vm9370_vm4, %v12648_v47 }
 0x30a   :  { %v10342_v34 = vadd.f32 %v10117_v44, %v1427_v15 }
 0x30b   :  { %v1472_v28 = vpack.c.bf16 %v10334_v32, %v10331_v30 }
 0x30c   :  { %v1471_v49 = vpack.c.bf16 %v10342_v34, %v10339_v31 }
 0x30d   :  { %7895 = vmatpush3.bf16.msra.mxu0 %v1472_v28 }
 0x30e   :  { %v7790_v18 = vpop.f32.mrb[36].mxu1  ;;  %7889 = vmatpush3.bf16.msra.mxu1 %v1471_v49  ;;  %7906 = vmatprep.subr.bf16.mxu0 %v12648_v47 }
 0x30f   :  { %v1440_v26 = vpop.f32.mrb[37].mxu1  ;;  %7900 = vmatprep.subr.bf16.mxu1 %v12648_v47  ;;  %v10353_v59 = vadd.f32 %v7790_v18, %v10117_v44 }
 0x310   :  { %v7791_v53 = vpop.f32.mrb[38].mxu1  ;;  %7897 = vmatmul.mubr.msk.bf16.vlgmr.msra.gmra.mrb[72].mxu0 %vm395_vm2, %v10138_v14  ;;  %v10363_v37 = vadd.f32 %v10117_v44, %v1440_v26 }
 0x311   :  { %v10356_v19 = vadd.f32 %v7791_v53, %v10117_v44  ;;  %v1443_v51 = vpop.f32.mrb[39].mxu1  ;;  %7891 = vmatmul.mubr.msk.bf16.vlgmr.msra.gmra.mrb[72].mxu1 %vm395_vm2, %v10138_v14  ;;  %7908 = vmatprep.mubr.msk.bf16.mxu0 %vm9370_vm4, %v12648_v47 }
 0x312   :  { %v10366_v63 = vadd.f32 %v10117_v44, %v1443_v51  ;;  %7902 = vmatprep.mubr.msk.bf16.mxu1 %vm9370_vm4, %v12648_v47  ;;  %v1170_v44 = vld [vmem:[%s12645_s1 + $0x20] sm:$0xf] }
 0x313   :  { %v1474_v35 = vpack.c.bf16 %v10356_v19, %v10353_v59  ;;  %v2388_v55 = vsel %vm530_vm0, %v1170_v44, 0 }
 0x314   :  { %v1473_v36 = vpack.c.bf16 %v10366_v63, %v10363_v37 }
 0x315   :  { %7907 = vmatpush3.bf16.msra.mxu0 %v1474_v35 }
 0x316   :  { %7901 = vmatpush3.bf16.msra.mxu1 %v1473_v36 }
 0x317   :  { %8193 = vmatprep.subr.msk.bf16.mxu1 %vm530_vm0, %v1170_v44 }
 0x318   :  { %7909 = vmatmul.mubr.msk.bf16.vlgmr.msra.gmra.mrb[76].mxu0 %vm395_vm2, %v10138_v14 }
 0x319   :  { %7903 = vmatmul.mubr.msk.bf16.vlgmr.msra.gmra.mrb[76].mxu1 %vm395_vm2, %v10138_v14 }
 0x31a   :  { %7913 = vmatpush3.bf16.msra.mxu1 %v2388_v55 }
 0x39f   :  { %v1558_v7 = vpop.f32.mrb[40].mxu0 }
 0x3a0   :  { %v1517_v8 = vpop.f32.mrb[40].mxu1  ;;  %v7802_v4 = vpop.f32.mrb[41].mxu0 }
 0x3a1   :  { %v7796_v29 = vpop.f32.mrb[41].mxu1  ;;  %v1561_v45 = vpop.f32.mrb[42].mxu0 }
 0x3a2   :  { %v1520_v23 = vpop.f32.mrb[42].mxu1  ;;  %v2304_v3 = vpack.c.bf16 %v1561_v45, %v1558_v7  ;;  %v7803_v24 = vpop.f32.mrb[43].mxu0 }
 0x3a3   :  { %v2303_v46 = vpack.c.bf16 %v1520_v23, %v1517_v8  ;;  %v7797_v40 = vpop.f32.mrb[43].mxu1 }
 0x3a5   :  { %7914 = vmatprep.mubr.msk.bf16.mxu1 %vm354_vm1, %v2303_v46 }
 0x3a6   :  { %7915 = vmatmul.mubr.msk.bf16.vlgmr.msra.gmra.mrb[80].mxu1 %vm354_vm1, %v2304_v3 }
 0x3a7   :  { %v1640_v14 = vpop.f32.mrb[44].mxu0 }
 0x3a8   :  { %v1599_v48 = vpop.f32.mrb[44].mxu1  ;;  %v7814_v15 = vpop.f32.mrb[45].mxu0 }
 0x3a9   :  { %v7808_v28 = vpop.f32.mrb[45].mxu1  ;;  %v1643_v49 = vpop.f32.mrb[46].mxu0 }
 0x3aa   :  { %v1602_v18 = vpop.f32.mrb[46].mxu1  ;;  %v2306_v26 = vpack.c.bf16 %v1643_v49, %v1640_v14  ;;  %v7815_v53 = vpop.f32.mrb[47].mxu0 }
 0x3ab   :  { %v2305_v51 = vpack.c.bf16 %v1602_v18, %v1599_v48  ;;  %v7809_v35 = vpop.f32.mrb[47].mxu1 }
 0x3ad   :  { %7918 = vmatprep.mubr.msk.bf16.mxu1 %vm354_vm1, %v2305_v51 }
 0x3ae   :  { %7919 = vmatmul.mubr.msk.bf16.gmra.mrb[84].mxu1 %vm354_vm1, %v2306_v26 }
 0x3b0   :  { %v1722_v36 = vpop.f32.mrb[48].mxu0 }
 0x3b1   :  { %v1681_v44 = vpop.f32.mrb[48].mxu1  ;;  %v7826_v55 = vpop.f32.mrb[49].mxu0 }
 0x3b2   :  { %v7820_v7 = vpop.f32.mrb[49].mxu1  ;;  %v1725_v8 = vpop.f32.mrb[50].mxu0 }
 0x3b3   :  { %v1684_v4 = vpop.f32.mrb[50].mxu1  ;;  %v2308_v29 = vpack.c.bf16 %v1725_v8, %v1722_v36  ;;  %v7827_v45 = vpop.f32.mrb[51].mxu0 }
 0x3b4   :  { %v2307_v23 = vpack.c.bf16 %v1684_v4, %v1681_v44  ;;  %v7821_v3 = vpop.f32.mrb[51].mxu1 }
 0x3b6   :  { %7922 = vmatprep.mubr.msk.bf16.mxu1 %vm354_vm1, %v2307_v23 }
 0x3b7   :  { %7923 = vmatmul.mubr.msk.bf16.gmra.mrb[88].mxu1 %vm354_vm1, %v2308_v29 }
 0x3b8   :  { %v1804_v24 = vpop.f32.mrb[52].mxu0 }
 0x3b9   :  { %v1763_v46 = vpop.f32.mrb[52].mxu1  ;;  %v7838_v40 = vpop.f32.mrb[53].mxu0 }
 0x3ba   :  { %v7832_v14 = vpop.f32.mrb[53].mxu1  ;;  %v1807_v48 = vpop.f32.mrb[54].mxu0 }
 0x3bb   :  { %v1766_v15 = vpop.f32.mrb[54].mxu1  ;;  %v2310_v28 = vpack.c.bf16 %v1807_v48, %v1804_v24  ;;  %v7839_v49 = vpop.f32.mrb[55].mxu0 }
 0x3bc   :  { %v2309_v18 = vpack.c.bf16 %v1766_v15, %v1763_v46  ;;  %v7833_v26 = vpop.f32.mrb[55].mxu1 }
 0x3be   :  { %7926 = vmatprep.mubr.msk.bf16.mxu1 %vm354_vm1, %v2309_v18 }
 0x3bf   :  { %7927 = vmatmul.mubr.msk.bf16.gmra.mrb[92].mxu1 %vm354_vm1, %v2310_v28 }
 0x3c1   :  { %v1886_v53 = vpop.f32.mrb[56].mxu0 }
 0x3c2   :  { %v1845_v51 = vpop.f32.mrb[56].mxu1  ;;  %v7850_v35 = vpop.f32.mrb[57].mxu0 }
 0x3c3   :  { %v7844_v36 = vpop.f32.mrb[57].mxu1  ;;  %v1889_v44 = vpop.f32.mrb[58].mxu0 }
 0x3c4   :  { %v1848_v55 = vpop.f32.mrb[58].mxu1  ;;  %v2312_v7 = vpack.c.bf16 %v1889_v44, %v1886_v53  ;;  %v7851_v8 = vpop.f32.mrb[59].mxu0 }
 0x3c5   :  { %v2311_v4 = vpack.c.bf16 %v1848_v55, %v1845_v51  ;;  %v7845_v29 = vpop.f32.mrb[59].mxu1 }
 0x3c7   :  { %7930 = vmatprep.mubr.msk.bf16.mxu1 %vm354_vm1, %v2311_v4 }
 0x3c8   :  { %7931 = vmatmul.mubr.msk.bf16.gmra.mrb[96].mxu1 %vm354_vm1, %v2312_v7 }
 0x3c9   :  { %v1968_v45 = vpop.f32.mrb[60].mxu0 }
 0x3ca   :  { %v1927_v23 = vpop.f32.mrb[60].mxu1  ;;  %v7862_v3 = vpop.f32.mrb[61].mxu0 }
 0x3cb   :  { %v7856_v24 = vpop.f32.mrb[61].mxu1  ;;  %v1971_v46 = vpop.f32.mrb[62].mxu0 }
 0x3cc   :  { %v1930_v40 = vpop.f32.mrb[62].mxu1  ;;  %v2314_v14 = vpack.c.bf16 %v1971_v46, %v1968_v45  ;;  %v7863_v48 = vpop.f32.mrb[63].mxu0 }
 0x3cd   :  { %v2313_v15 = vpack.c.bf16 %v1930_v40, %v1927_v23  ;;  %v7857_v28 = vpop.f32.mrb[63].mxu1 }
 0x3cf   :  { %7934 = vmatprep.mubr.msk.bf16.mxu1 %vm354_vm1, %v2313_v15 }
 0x3d0   :  { %7935 = vmatmul.mubr.msk.bf16.gmra.mrb[100].mxu1 %vm354_vm1, %v2314_v14 }
 0x3d2   :  { %v2050_v49 = vpop.f32.mrb[64].mxu0 }
 0x3d3   :  { %v2009_v18 = vpop.f32.mrb[64].mxu1  ;;  %v7874_v26 = vpop.f32.mrb[65].mxu0 }
 0x3d4   :  { %v7868_v53 = vpop.f32.mrb[65].mxu1  ;;  %v2053_v51 = vpop.f32.mrb[66].mxu0 }
 0x3d5   :  { %v2012_v35 = vpop.f32.mrb[66].mxu1  ;;  %v2316_v36 = vpack.c.bf16 %v2053_v51, %v2050_v49  ;;  %v7875_v44 = vpop.f32.mrb[67].mxu0 }
 0x3d6   :  { %v2315_v55 = vpack.c.bf16 %v2012_v35, %v2009_v18  ;;  %v7869_v7 = vpop.f32.mrb[67].mxu1 }
 0x3d8   :  { %7938 = vmatprep.mubr.msk.bf16.mxu1 %vm354_vm1, %v2315_v55 }
 0x3d9   :  { %7939 = vmatmul.mubr.msk.bf16.gmra.mrb[104].mxu1 %vm354_vm1, %v2316_v36 }
 0x3da   :  { %v2132_v8 = vpop.f32.mrb[68].mxu0 }
 0x3db   :  { %v2091_v4 = vpop.f32.mrb[68].mxu1  ;;  %v7886_v29 = vpop.f32.mrb[69].mxu0 }
 0x3dc   :  { %v7880_v45 = vpop.f32.mrb[69].mxu1  ;;  %v2135_v23 = vpop.f32.mrb[70].mxu0 }
 0x3dd   :  { %v2094_v3 = vpop.f32.mrb[70].mxu1  ;;  %v2318_v24 = vpack.c.bf16 %v2135_v23, %v2132_v8  ;;  %v7887_v46 = vpop.f32.mrb[71].mxu0 }
 0x3de   :  { %v2317_v40 = vpack.c.bf16 %v2094_v3, %v2091_v4  ;;  %v7881_v14 = vpop.f32.mrb[71].mxu1  ;;  %v10406_v46 = vld [vmem:[%s12646_s2 + $0x10] ss:$0 sm:$0xff] }
 0x3e0   :  { %7942 = vmatprep.mubr.msk.bf16.mxu1 %vm354_vm1, %v2317_v40 }
 0x3e1   :  { %7943 = vmatmul.mubr.msk.bf16.gmra.mrb[108].mxu1 %vm354_vm1, %v2318_v24 }
 0x3e3   :  { %v2214_v48 = vpop.f32.mrb[72].mxu0 }
 0x3e4   :  { %v2173_v15 = vpop.f32.mrb[72].mxu1  ;;  %v7898_v28 = vpop.f32.mrb[73].mxu0 }
 0x3e5   :  { %v7892_v49 = vpop.f32.mrb[73].mxu1  ;;  %v2217_v18 = vpop.f32.mrb[74].mxu0 }
 0x3e6   :  { %v2176_v26 = vpop.f32.mrb[74].mxu1  ;;  %v2320_v53 = vpack.c.bf16 %v2217_v18, %v2214_v48  ;;  %v7899_v51 = vpop.f32.mrb[75].mxu0 }
 0x3e7   :  { %v2319_v35 = vpack.c.bf16 %v2176_v26, %v2173_v15  ;;  %v7893_v36 = vpop.f32.mrb[75].mxu1 }
 0x3e9   :  { %7946 = vmatprep.mubr.msk.bf16.mxu1 %vm354_vm1, %v2319_v35 }
 0x3ea   :  { %7947 = vmatmul.mubr.msk.bf16.gmra.mrb[112].mxu1 %vm354_vm1, %v2320_v53 }
 0x3eb   :  { %v2296_v44 = vpop.f32.mrb[76].mxu0 }
 0x3ec   :  { %v2255_v55 = vpop.f32.mrb[76].mxu1  ;;  %v7910_v7 = vpop.f32.mrb[77].mxu0 }
 0x3ed   :  { %v7904_v8 = vpop.f32.mrb[77].mxu1  ;;  %v2299_v4 = vpop.f32.mrb[78].mxu0 }
 0x3ee   :  { %v2258_v29 = vpop.f32.mrb[78].mxu1  ;;  %v2322_v45 = vpack.c.bf16 %v2299_v4, %v2296_v44  ;;  %v7911_v23 = vpop.f32.mrb[79].mxu0 }
 0x3ef   :  { %v2321_v3 = vpack.c.bf16 %v2258_v29, %v2255_v55  ;;  %v7905_v24 = vpop.f32.mrb[79].mxu1 }
 0x3f0   :  { %v8810_v24 = vld [vmem:[%s12645_s1 + $0x30] ss:$0 sps:$4 sm:$0xff]  }
 0x3f1   :  { %7950 = vmatprep.mubr.msk.bf16.mxu1 %vm354_vm1, %v2321_v3 }
 0x3f2   :  { %7951 = vmatmul.mubr.msk.bf16.gmra.mrb[116].mxu1 %vm354_vm1, %v2322_v45 }
 0x479   :  { %v7916_v40 = vpop.f32.mrb[80].mxu1 }
 0x47a   :  { %v2433_v14 = vadd.f32 %v7916_v40, %v10406_v46  ;;  %v10409_v48 = vpop.f32.mrb[81].mxu1 }
 0x47b   :  { %v7917_v15 = vpop.f32.mrb[82].mxu1 }
 0x47c   :  { %v10412_v28 = vadd.f32 %v2433_v14, %v10120_v6  ;;  %v2436_v49 = vadd.f32 %v7917_v15, %v10406_v46  ;;  %v10415_v18 = vpop.f32.mrb[83].mxu1  ;;  %v8809_v6 = vld [vmem:[%s12645_s1 + $0x28] sm:$0xff]   ;;  %v3037_v15 = vsel %vm530_vm0, %v8810_v24, 0 }
 0x47d   :  { %7954 = vmatprep.subr.bf16.mxu0 %v8809_v6 }
 0x47e   :  { %v10418_v26 = vadd.f32 %v2436_v49, %v10123_v21  ;;  %v2625_v53 = vmax.f32 %v10412_v28, 0.0  ;;  %7955 = vmatpush3.bf16.msra.mxu0 %v8809_v6 }
 0x47f   :  { %8194 = vmatprep.subr.msk.bf16.mxu0 %vm530_vm0, %v8810_v24 }
 0x480   :  { %v2626_v51 = vmax.f32 %v10418_v26, 0.0 }
 0x481   :  { %v7920_v35 = vpop.f32.mrb[84].mxu1 }
 0x482   :  { %v2440_v36 = vpop.f32.mrb[85].mxu1  ;;  %v8415_v44 = vpack.i.bf16 %v2626_v51, %v2625_v53  ;;  %v2449_v4 = vadd.f32 %v7920_v35, %v10406_v46  ;;  %7957 = vmatpush3.bf16.msra.mxu0 %v3037_v15 }
 0x483   :  { %v2441_v55 = vadd.f32 %v10406_v46, %v2440_v36  ;;  %v7921_v7 = vpop.f32.mrb[86].mxu1 }
 0x484   :  { %v2452_v21 = vadd.f32 %v7921_v7, %v10406_v46  ;;  %8416 = vrot.lane.b32.xlu0 %v8415_v44, %s9366_s24  ;;  %v2443_v8 = vpop.f32.mrb[87].mxu1  ;;  %v10447_v40 = vadd.f32 %v2449_v4, %v10145_v39 }
 0x485   :  { %v10434_v29 = vadd.f32 %v2441_v55, %v10155_v20  ;;  %v2444_v45 = vadd.f32 %v10406_v46, %v2443_v8 }
 0x486   :  { %v10438_v23 = vadd.f32 %v2452_v21, %v10148_v38  ;;  %v2629_v44 = vmax.f32 %v10447_v40, 0.0 }
 0x487   :  { %v10441_v3 = vadd.f32 %v2444_v45, %v10158_v27  ;;  %v2627_v14 = vmax.f32 %v10434_v29, 0.0 }
 0x488   :  { %v2630_v27 = vmax.f32 %v10438_v23, 0.0 }
 0x489   :  { %v2628_v20 = vmax.f32 %v10441_v3, 0.0 }
 0x48a   :  { %v7924_v38 = vpop.f32.mrb[88].mxu1  ;;  %v8435_v4 = vpack.i.bf16 %v2630_v27, %v2629_v44 }
 0x48b   :  { %v2456_v49 = vpop.f32.mrb[89].mxu1  ;;  %v8430_v35 = vpack.i.bf16 %v2628_v20, %v2627_v14  ;;  %v2465_v7 = vadd.f32 %v7924_v38, %v10406_v46 }
 0x48c   :  { %v2457_v39 = vadd.f32 %v10406_v46, %v2456_v49  ;;  %v7925_v36 = vpop.f32.mrb[90].mxu1 }
 0x48d   :  { %v2468_v6 = vadd.f32 %v7925_v36, %v10406_v46  ;;  %v2459_v55 = vpop.f32.mrb[91].mxu1  ;;  %8431 = vrot.lane.b32.xlu0 %v8430_v35, %s9367_s25  ;;  %8421 = vrot.lane.b32.xlu1 %v8430_v35, %s9366_s24 }
 0x48e   :  { %v10465_v21 = vadd.f32 %v2457_v39, %v10183_v9  ;;  %v2460_v8 = vadd.f32 %v10406_v46, %v2459_v55  ;;  %v10481_v9 = vadd.f32 %v2465_v7, %v10175_v17 }
 0x48f   :  { %v10473_v45 = vadd.f32 %v2468_v6, %v10178_v10 }
 0x490   :  { %v10476_v24 = vadd.f32 %v2460_v8, %v10186_v22  ;;  %v12652_v15 = vmax.f32 %v10465_v21, 0.0  ;;  %v12650_v55 = vmax.f32 %v10481_v9, 0.0  ;;  %v12669_v40 = vmax.f32 %v10465_v21, 0.0 }
 0x491   :  { %8436 = vrot.lane.b32.xlu0 %v8435_v4, %s9366_s24  ;;  %8426 = vrot.lane.b32.xlu1 %v8435_v4, %s9367_s25  ;;  %v12651_v39 = vmax.f32 %v10473_v45, 0.0  ;;  %v12671_v21 = vmax.f32 %v10481_v9, 0.0 }
 0x492   :  { %v12655_v38 = vmax.f32 %v10476_v24, 0.0  ;;  %v7928_v49 = vpop.f32.mrb[92].mxu1  ;;  %v12668_v23 = vmax.f32 %v10476_v24, 0.0  ;;  %v12670_v24 = vmax.f32 %v10473_v45, 0.0 }
 0x493   :  { %v2472_v35 = vpop.f32.mrb[93].mxu1  ;;  %v2481_v7 = vadd.f32 %v7928_v49, %v10406_v46  ;;  %v8455_v49 = vpack.i.bf16 %v12651_v39, %v12650_v55 }
 0x494   :  { %v2473_v10 = vadd.f32 %v10406_v46, %v2472_v35  ;;  %v7929_v36 = vpop.f32.mrb[94].mxu1  ;;  %v8450_v22 = vpack.i.bf16 %v12655_v38, %v12652_v15 }
 0x495   :  { %v2484_v6 = vadd.f32 %v7929_v36, %v10406_v46  ;;  %v2475_v17 = vpop.f32.mrb[95].mxu1 }
 0x496   :  { %v10495_v8 = vadd.f32 %v2473_v10, %v10207_v5  ;;  %v2476_v4 = vadd.f32 %v10406_v46, %v2475_v17  ;;  %8451 = vrot.lane.b32.xlu0 %v8450_v22, %s9367_s25  ;;  %8441 = vrot.lane.b32.xlu1 %v8450_v22, %s9366_s24  ;;  %v10511_v5 = vadd.f32 %v2481_v7, %v10197_v57 }
 0x497   :  { %v10501_v35 = vadd.f32 %v2484_v6, %v10200_v25 }
 0x498   :  { %v10504_v47 = vadd.f32 %v2476_v4, %v10210_v0  ;;  %v12653_v10 = vmax.f32 %v10495_v8, 0.0  ;;  %v12656_v4 = vmax.f32 %v10511_v5, 0.0 }
 0x499   :  { %v2638_v0 = vmax.f32 %v10501_v35, 0.0 }
 0x49a   :  { %v12654_v36 = vmax.f32 %v10504_v47, 0.0  ;;  %8456 = vrot.lane.b32.xlu0 %v8455_v49, %s9366_s24  ;;  %8446 = vrot.lane.b32.xlu1 %v8455_v49, %s9367_s25  ;;  %v12672_v45 = vmax.f32 %v10504_v47, 0.0 }
 0x49b   :  { %v7932_v25 = vpop.f32.mrb[96].mxu1 }
 0x49c   :  { %v2497_v22 = vadd.f32 %v7932_v25, %v10406_v46  ;;  %v2488_v6 = vpop.f32.mrb[97].mxu1  ;;  %v8470_v57 = vpack.i.bf16 %v12654_v36, %v12653_v10 }
 0x49d   :  { %v2489_v17 = vadd.f32 %v10406_v46, %v2488_v6  ;;  %v7933_v7 = vpop.f32.mrb[98].mxu1  ;;  %v8475_v6 = vpack.i.bf16 %v2638_v0, %v12656_v4 }
 0x49e   :  { %v2601_v55 = vadd.f32 %v2497_v22, %v10227_v43  ;;  %v2500_v49 = vadd.f32 %v7933_v7, %v10406_v46  ;;  %v2491_v39 = vpop.f32.mrb[99].mxu1  ;;  %8471 = vrot.lane.b32.xlu0 %v8470_v57, %s9367_s25  ;;  %8461 = vrot.lane.b32.xlu1 %v8470_v57, %s9366_s24 }
 0x49f   :  { %v2599_v25 = vadd.f32 %v2489_v17, %v10235_v13  ;;  %v2492_v15 = vadd.f32 %v10406_v46, %v2491_v39 }
 0x4a0   :  { %v2602_v10 = vadd.f32 %v2500_v49, %v10230_v12  ;;  %v2641_v22 = vmax.f32 %v2601_v55, 0.0 }
 0x4a1   :  { %v2600_v43 = vadd.f32 %v2492_v15, %v10238_v33  ;;  %v2639_v57 = vmax.f32 %v2599_v25, 0.0 }
 0x4a2   :  { %v2642_v7 = vmax.f32 %v2602_v10, 0.0  ;;  %8476 = vrot.lane.b32.xlu0 %v8475_v6, %s9366_s24  ;;  %8466 = vrot.lane.b32.xlu1 %v8475_v6, %s9367_s25 }
 0x4a3   :  { %v2640_v36 = vmax.f32 %v2600_v43, 0.0  ;;  %v7936_v13 = vpop.f32.mrb[100].mxu1 }
 0x4a4   :  { %v2513_v39 = vadd.f32 %v7936_v13, %v10406_v46  ;;  %v10540_v17 = vpop.f32.mrb[101].mxu1  ;;  %v8485_v12 = vpack.i.bf16 %v2642_v7, %v2641_v22 }
 0x4a5   :  { %v7937_v49 = vpop.f32.mrb[102].mxu1  ;;  %v8490_v38 = vpack.i.bf16 %v2640_v36, %v2639_v57 }
 0x4a6   :  { %v10543_v4 = vadd.f32 %v2513_v39, %v10249_v41  ;;  %v2516_v33 = vadd.f32 %v7937_v49, %v10406_v46  ;;  %v10546_v15 = vpop.f32.mrb[103].mxu1 }
 0x4a7   :  { %8491 = vrot.lane.b32.xlu0 %v8490_v38, %s9367_s25  ;;  %8481 = vrot.lane.b32.xlu1 %v8490_v38, %s9366_s24 }
 0x4a8   :  { %v10551_v55 = vadd.f32 %v2516_v33, %v10252_v2  ;;  %v12665_v10 = vmax.f32 %v10543_v4, 0.0 }
 0x4aa   :  { %v2646_v25 = vmax.f32 %v10551_v55, 0.0 }
 0x4ab   :  { %8486 = vrot.lane.b32.xlu1 %v8485_v12, %s9367_s25 }
 0x4ac   :  { %v7940_v36 = vpop.f32.mrb[104].mxu1  ;;  %v8495_v41 = vpack.i.bf16 %v2646_v25, %v12665_v10 }
 0x4ad   :  { %v2520_v6 = vpop.f32.mrb[105].mxu1  ;;  %v2529_v7 = vadd.f32 %v7940_v36, %v10406_v46 }
 0x4ae   :  { %v2521_v43 = vadd.f32 %v10406_v46, %v2520_v6  ;;  %v7941_v22 = vpop.f32.mrb[106].mxu1  ;;  %8496 = vrot.lane.b32.xlu0 %v8495_v41, %s9366_s24 }
 0x4af   :  { %v2532_v2 = vadd.f32 %v7941_v22, %v10406_v46  ;;  %v2523_v38 = vpop.f32.mrb[107].mxu1  ;;  %v10575_v49 = vadd.f32 %v2529_v7, %v10279_v62 }
 0x4b0   :  { %v10565_v57 = vadd.f32 %v2521_v43, %v10287_v54  ;;  %v2524_v13 = vadd.f32 %v10406_v46, %v2523_v38 }
 0x4b1   :  { %v10569_v39 = vadd.f32 %v2532_v2, %v10282_v61  ;;  %v12658_v2 = vmax.f32 %v10575_v49, 0.0 }
 0x4b2   :  { %v10572_v12 = vadd.f32 %v2524_v13, %v10290_v58  ;;  %v12657_v33 = vmax.f32 %v10565_v57, 0.0 }
 0x4b3   :  { %v12659_v54 = vmax.f32 %v10569_v39, 0.0 }
 0x4b4   :  { %v12660_v41 = vmax.f32 %v10572_v12, 0.0  ;;  %v7944_v6 = vpop.f32.mrb[108].mxu1  ;;  %v12676_v55 = vmax.f32 %v10572_v12, 0.0  ;;  %v12678_v12 = vmax.f32 %v10569_v39, 0.0 }
 0x4b5   :  { %v2536_v36 = vpop.f32.mrb[109].mxu1  ;;  %v2545_v38 = vadd.f32 %v7944_v6, %v10406_v46  ;;  %v8515_v6 = vpack.i.bf16 %v12659_v54, %v12658_v2 }
 0x4b6   :  { %v2537_v43 = vadd.f32 %v10406_v46, %v2536_v36  ;;  %v7945_v22 = vpop.f32.mrb[110].mxu1  ;;  %v8510_v61 = vpack.i.bf16 %v12660_v41, %v12657_v33 }
 0x4b7   :  { %v2548_v58 = vadd.f32 %v7945_v22, %v10406_v46  ;;  %v2539_v62 = vpop.f32.mrb[111].mxu1 }
 0x4b8   :  { %v10589_v7 = vadd.f32 %v2537_v43, %v10311_v42  ;;  %v2540_v13 = vadd.f32 %v10406_v46, %v2539_v62  ;;  %8511 = vrot.lane.b32.xlu0 %v8510_v61, %s9367_s25  ;;  %8501 = vrot.lane.b32.xlu1 %v8510_v61, %s9366_s24  ;;  %v10605_v42 = vadd.f32 %v2545_v38, %v10301_v16 }
 0x4b9   :  { %v10595_v36 = vadd.f32 %v2548_v58, %v10304_v1 }
 0x4ba   :  { %v10598_v33 = vadd.f32 %v2540_v13, %v10314_v60  ;;  %v12661_v43 = vmax.f32 %v10589_v7, 0.0  ;;  %v12662_v38 = vmax.f32 %v10605_v42, 0.0 }
 0x4bb   :  { %v12663_v60 = vmax.f32 %v10595_v36, 0.0 }
 0x4bc   :  { %v12664_v22 = vmax.f32 %v10598_v33, 0.0  ;;  %8516 = vrot.lane.b32.xlu0 %v8515_v6, %s9366_s24  ;;  %8506 = vrot.lane.b32.xlu1 %v8515_v6, %s9367_s25  ;;  %v12680_v39 = vmax.f32 %v10598_v33, 0.0 }
 0x4bd   :  { %v7948_v1 = vpop.f32.mrb[112].mxu1 }
 0x4be   :  { %v2552_v61 = vpop.f32.mrb[113].mxu1  ;;  %v8530_v58 = vpack.i.bf16 %v12664_v22, %v12661_v43  ;;  %v2561_v6 = vadd.f32 %v7948_v1, %v10406_v46 }
 0x4bf   :  { %v2553_v16 = vadd.f32 %v10406_v46, %v2552_v61  ;;  %v7949_v62 = vpop.f32.mrb[114].mxu1  ;;  %v8535_v61 = vpack.i.bf16 %v12663_v60, %v12662_v38 }
 0x4c0   :  { %v2564_v13 = vadd.f32 %v7949_v62, %v10406_v46  ;;  %v2555_v2 = vpop.f32.mrb[115].mxu1  ;;  %8531 = vrot.lane.b32.xlu0 %v8530_v58, %s9367_s25  ;;  %8521 = vrot.lane.b32.xlu1 %v8530_v58, %s9366_s24 }
 0x4c1   :  { %v10623_v54 = vadd.f32 %v2553_v16, %v10339_v31  ;;  %v2556_v41 = vadd.f32 %v10406_v46, %v2555_v2  ;;  %v10639_v31 = vadd.f32 %v2561_v6, %v10331_v30 }
 0x4c2   :  { %v10631_v43 = vadd.f32 %v2564_v13, %v10334_v32 }
 0x4c3   :  { %v10634_v62 = vadd.f32 %v2556_v41, %v10342_v34  ;;  %v12666_v2 = vmax.f32 %v10623_v54, 0.0  ;;  %v2657_v60 = vmax.f32 %v10639_v31, 0.0 }
 0x4c4   :  { %8536 = vrot.lane.b32.xlu0 %v8535_v61, %s9366_s24  ;;  %8526 = vrot.lane.b32.xlu1 %v8535_v61, %s9367_s25  ;;  %v2658_v32 = vmax.f32 %v10631_v43, 0.0 }
 0x4c5   :  { %v12667_v1 = vmax.f32 %v10634_v62, 0.0  ;;  %v7952_v58 = vpop.f32.mrb[116].mxu1 }
 0x4c6   :  { %v2577_v16 = vadd.f32 %v7952_v58, %v10406_v46  ;;  %v2568_v38 = vpop.f32.mrb[117].mxu1 }
 0x4c7   :  { %v2569_v34 = vadd.f32 %v10406_v46, %v2568_v38  ;;  %v7953_v41 = vpop.f32.mrb[118].mxu1  ;;  %v8550_v13 = vpack.i.bf16 %v12667_v1, %v12666_v2 }
 0x4c8   :  { %v2621_v30 = vadd.f32 %v2577_v16, %v10353_v59  ;;  %v2580_v6 = vadd.f32 %v7953_v41, %v10406_v46  ;;  %v2571_v61 = vpop.f32.mrb[119].mxu1  ;;  %v8555_v59 = vpack.i.bf16 %v2658_v32, %v2657_v60 }
 0x4c9   :  { %v2619_v58 = vadd.f32 %v2569_v34, %v10363_v37  ;;  %v2572_v22 = vadd.f32 %v10406_v46, %v2571_v61  ;;  %8551 = vrot.lane.b32.xlu0 %v8550_v13, %s9367_s25  ;;  %8541 = vrot.lane.b32.xlu1 %v8550_v13, %s9366_s24 }
 0x4ca   :  { %v2622_v38 = vadd.f32 %v2580_v6, %v10356_v19  ;;  %v2661_v16 = vmax.f32 %v2621_v30, 0.0  ;;  %v2425_v19 = vadd.f32 %v10406_v46, %v10409_v48 }
 0x4cb   :  { %v2620_v10 = vadd.f32 %v2572_v22, %v10366_v63  ;;  %v2659_v2 = vmax.f32 %v2619_v58, 0.0  ;;  %v2428_v63 = vadd.f32 %v10406_v46, %v10415_v18 }
 0x4cc   :  { %v2662_v41 = vmax.f32 %v2622_v38, 0.0 }
 0x4cd   :  { %v2660_v1 = vmax.f32 %v2620_v10, 0.0  ;;  %8556 = vrot.lane.b32.xlu0 %v8555_v59, %s9366_s24  ;;  %8546 = vrot.lane.b32.xlu1 %v8555_v59, %s9367_s25  ;;  %v2583_v10 = vadd.f32 %v2425_v19, %v10126_v52  ;;  %v2584_v13 = vadd.f32 %v2428_v63, %v10129_v56 }
 0x4ce   :  { %v8570_v37 = vpack.i.bf16 %v2662_v41, %v2661_v16 }
 0x4cf   :  { %v8565_v34 = vpack.i.bf16 %v2660_v1, %v2659_v2  ;;  %v2623_v2 = vmax.f32 %v2583_v10, 0.0  ;;  %v2624_v1 = vmax.f32 %v2584_v13, 0.0 }
 0x4d1   :  { %8566 = vrot.lane.b32.xlu0 %v8565_v34, %s9367_s25  ;;  %8561 = vrot.lane.b32.xlu1 %v8565_v34, %s9366_s24 }
 0x4d5   :  { %8571 = vrot.lane.b32.xlu1 %v8570_v37, %s9367_s25 }
 0x4f6   :  { %v8417_v22 = vpop.permute.xlu0 %8416 }
 0x4f7   :  { %v8419_v30 = vunpack.i.h.bf16 %v8417_v22  ;;  %v8418_v6 = vunpack.i.l.bf16 %v8417_v22 }
 0x4f9   :  { %v2895_v16 = vsel %vm354_vm1, %v2623_v2, %v8418_v6  ;;  %v2896_v48 = vsel %vm354_vm1, %v2624_v1, %v8419_v30 }
 0x4ff   :  { %v8432_v61 = vpop.permute.xlu0 %8431  ;;  %v8422_v58 = vpop.permute.xlu1 %8421 }
 0x500   :  { %v8434_v38 = vunpack.i.h.bf16 %v8432_v61  ;;  %v8433_v59 = vunpack.i.l.bf16 %v8432_v61  ;;  %v8424_v41 = vunpack.i.h.bf16 %v8422_v58  ;;  %v8423_v37 = vunpack.i.l.bf16 %v8422_v58 }
 0x502   :  { %v2927_v18 = vsel %vm395_vm2, %v2895_v16, %v8433_v59  ;;  %v2928_v52 = vsel %vm395_vm2, %v2896_v48, %v8434_v38  ;;  %v2898_v10 = vsel %vm354_vm1, %v2626_v51, %v8424_v41  ;;  %v2897_v13 = vsel %vm354_vm1, %v2625_v53, %v8423_v37 }
 0x503   :  { %v8437_v34 = vpop.permute.xlu0 %8436  ;;  %v8427_v56 = vpop.permute.xlu1 %8426  ;;  %v2959_v19 = vpack.c.bf16 %v2928_v52, %v2927_v18 }
 0x504   :  { %v8429_v63 = vunpack.i.h.bf16 %v8427_v56  ;;  %v8428_v22 = vunpack.i.l.bf16 %v8427_v56  ;;  %v8439_v30 = vunpack.i.h.bf16 %v8437_v34  ;;  %v8438_v6 = vunpack.i.l.bf16 %v8437_v34 }
 0x505   :  { %7958 = vmatprep.mubr.msk.bf16.mxu0 %vm469_vm3, %v2959_v19 }
 0x506   :  { %v2929_v2 = vsel %vm395_vm2, %v2897_v13, %v8428_v22  ;;  %v2930_v1 = vsel %vm395_vm2, %v2898_v10, %v8429_v63  ;;  %v2900_v28 = vsel %vm354_vm1, %v2628_v20, %v8439_v30  ;;  %v2899_v26 = vsel %vm354_vm1, %v2627_v14, %v8438_v6 }
 0x507   :  { %v2960_v61 = vpack.c.bf16 %v2930_v1, %v2929_v2 }
 0x508   :  { %v8452_v58 = vpop.permute.xlu0 %8451  ;;  %v8442_v38 = vpop.permute.xlu1 %8441 }
 0x509   :  { %v8454_v59 = vunpack.i.h.bf16 %v8452_v58  ;;  %v8453_v16 = vunpack.i.l.bf16 %v8452_v58  ;;  %7959 = vmatmul.mubr.msk.bf16.vlgmr.msra.gmra.mrb[80].mxu0 %vm469_vm3, %v2960_v61  ;;  %v8444_v53 = vunpack.i.h.bf16 %v8442_v38  ;;  %v8443_v51 = vunpack.i.l.bf16 %v8442_v38 }
 0x50b   :  { %v2931_v48 = vsel %vm395_vm2, %v2899_v26, %v8453_v16  ;;  %v2932_v41 = vsel %vm395_vm2, %v2900_v28, %v8454_v59  ;;  %v2902_v3 = vsel %vm354_vm1, %v2630_v27, %v8444_v53  ;;  %v2901_v29 = vsel %vm354_vm1, %v2629_v44, %v8443_v51 }
 0x50c   :  { %v8457_v37 = vpop.permute.xlu0 %8456  ;;  %v8447_v18 = vpop.permute.xlu1 %8446  ;;  %v2961_v52 = vpack.c.bf16 %v2932_v41, %v2931_v48 }
 0x50d   :  { %v8449_v34 = vunpack.i.h.bf16 %v8447_v18  ;;  %v8448_v56 = vunpack.i.l.bf16 %v8447_v18  ;;  %v8459_v14 = vunpack.i.h.bf16 %v8457_v37  ;;  %v8458_v20 = vunpack.i.l.bf16 %v8457_v37 }
 0x50e   :  { %7962 = vmatprep.mubr.msk.bf16.mxu0 %vm469_vm3, %v2961_v52 }
 0x50f   :  { %v2933_v19 = vsel %vm395_vm2, %v2901_v29, %v8448_v56  ;;  %v2934_v63 = vsel %vm395_vm2, %v2902_v3, %v8449_v34  ;;  %v2904_v27 = vsel %vm354_vm1, %v12668_v23, %v8459_v14  ;;  %v2903_v44 = vsel %vm354_vm1, %v12669_v40, %v8458_v20 }
 0x510   :  { %v8472_v22 = vpop.permute.xlu0 %8471  ;;  %v8462_v10 = vpop.permute.xlu1 %8461  ;;  %v2962_v13 = vpack.c.bf16 %v2934_v63, %v2933_v19  ;;  %v12673_v14 = vmax.f32 %v10495_v8, 0.0 }
 0x511   :  { %v8474_v30 = vunpack.i.h.bf16 %v8472_v22  ;;  %v8473_v6 = vunpack.i.l.bf16 %v8472_v22  ;;  %v8464_v2 = vunpack.i.h.bf16 %v8462_v10  ;;  %v8463_v1 = vunpack.i.l.bf16 %v8462_v10 }
 0x512   :  { %7963 = vmatmul.mubr.msk.bf16.gmra.mrb[84].mxu0 %vm469_vm3, %v2962_v13 }
 0x513   :  { %v2935_v61 = vsel %vm395_vm2, %v2903_v44, %v8473_v6  ;;  %v2936_v58 = vsel %vm395_vm2, %v2904_v27, %v8474_v30  ;;  %v2906_v53 = vsel %vm354_vm1, %v12670_v24, %v8464_v2  ;;  %v2905_v51 = vsel %vm354_vm1, %v12671_v21, %v8463_v1 }
 0x514   :  { %v8477_v38 = vpop.permute.xlu0 %8476  ;;  %v8467_v59 = vpop.permute.xlu1 %8466  ;;  %v2963_v16 = vpack.c.bf16 %v2936_v58, %v2935_v61  ;;  %v12674_v27 = vmax.f32 %v10511_v5, 0.0  ;;  %v2505_v1 = vadd.f32 %v10406_v46, %v10540_v17  ;;  %v2508_v61 = vadd.f32 %v10406_v46, %v10546_v15 }
 0x515   :  { %v8469_v28 = vunpack.i.h.bf16 %v8467_v59  ;;  %v8468_v26 = vunpack.i.l.bf16 %v8467_v59  ;;  %v8479_v48 = vunpack.i.h.bf16 %v8477_v38  ;;  %v8478_v41 = vunpack.i.l.bf16 %v8477_v38 }
 0x516   :  { %7966 = vmatprep.mubr.msk.bf16.mxu0 %vm469_vm3, %v2963_v16  ;;  %v2603_v5 = vadd.f32 %v2505_v1, %v10259_v11 }
 0x517   :  { %v2937_v37 = vsel %vm395_vm2, %v2905_v51, %v8468_v26  ;;  %v2938_v18 = vsel %vm395_vm2, %v2906_v53, %v8469_v28  ;;  %v2908_v9 = vsel %vm354_vm1, %v12672_v45, %v8479_v48  ;;  %v2907_v20 = vsel %vm354_vm1, %v12673_v14, %v8478_v41 }
 0x518   :  { %v2964_v52 = vpack.c.bf16 %v2938_v18, %v2937_v37  ;;  %v2643_v59 = vmax.f32 %v2603_v5, 0.0 }
 0x519   :  { %v8492_v34 = vpop.permute.xlu0 %8491  ;;  %v8482_v56 = vpop.permute.xlu1 %8481 }
 0x51a   :  { %v8494_v3 = vunpack.i.h.bf16 %v8492_v34  ;;  %v8493_v29 = vunpack.i.l.bf16 %v8492_v34  ;;  %7967 = vmatmul.mubr.msk.bf16.gmra.mrb[88].mxu0 %vm469_vm3, %v2964_v52  ;;  %v8484_v19 = vunpack.i.h.bf16 %v8482_v56  ;;  %v8483_v63 = vunpack.i.l.bf16 %v8482_v56 }
 0x51b   :  { %v12675_v34 = vmax.f32 %v10543_v4, 0.0  ;;  %v12677_v4 = vmax.f32 %v10565_v57, 0.0  ;;  %v12679_v57 = vmax.f32 %v10575_v49, 0.0 }
 0x51c   :  { %v2939_v22 = vsel %vm395_vm2, %v2907_v20, %v8493_v29  ;;  %v2940_v10 = vsel %vm395_vm2, %v2908_v9, %v8494_v3  ;;  %v2910_v47 = vsel %vm354_vm1, %v2638_v0, %v8484_v19  ;;  %v2909_v8 = vsel %vm354_vm1, %v12674_v27, %v8483_v63 }
 0x51d   :  { %v8487_v13 = vpop.permute.xlu1 %8486  ;;  %v2965_v30 = vpack.c.bf16 %v2940_v10, %v2939_v22  ;;  %v2604_v0 = vadd.f32 %v2508_v61, %v10262_v50 }
 0x51e   :  { %v8489_v6 = vunpack.i.h.bf16 %v8487_v13  ;;  %v8488_v23 = vunpack.i.l.bf16 %v8487_v13 }
 0x51f   :  { %7970 = vmatprep.mubr.msk.bf16.mxu0 %vm469_vm3, %v2965_v30  ;;  %v2644_v16 = vmax.f32 %v2604_v0, 0.0 }
 0x520   :  { %v2941_v40 = vsel %vm395_vm2, %v2909_v8, %v8488_v23  ;;  %v2942_v44 = vsel %vm395_vm2, %v2910_v47, %v8489_v6  ;;  %v8497_v35 = vpop.permute.xlu0 %8496 }
 0x521   :  { %v2966_v2 = vpack.c.bf16 %v2942_v44, %v2941_v40  ;;  %v8499_v58 = vunpack.i.h.bf16 %v8497_v35  ;;  %v8498_v38 = vunpack.i.l.bf16 %v8497_v35 }
 0x523   :  { %7971 = vmatmul.mubr.msk.bf16.gmra.mrb[92].mxu0 %vm469_vm3, %v2966_v2  ;;  %v2912_v17 = vsel %vm354_vm1, %v2644_v16, %v8499_v58  ;;  %v2911_v21 = vsel %vm354_vm1, %v2643_v59, %v8498_v38 }
 0x52a   :  { %v8512_v28 = vpop.permute.xlu0 %8511  ;;  %v8502_v26 = vpop.permute.xlu1 %8501 }
 0x52b   :  { %v8514_v24 = vunpack.i.h.bf16 %v8512_v28  ;;  %v8513_v53 = vunpack.i.l.bf16 %v8512_v28  ;;  %v8504_v46 = vunpack.i.h.bf16 %v8502_v26  ;;  %v8503_v15 = vunpack.i.l.bf16 %v8502_v26 }
 0x52c   :  { %v12681_v26 = vmax.f32 %v10589_v7, 0.0 }
 0x52d   :  { %v2943_v51 = vsel %vm395_vm2, %v2911_v21, %v8513_v53  ;;  %v2944_v11 = vsel %vm395_vm2, %v2912_v17, %v8514_v24  ;;  %v2914_v52 = vsel %vm354_vm1, %v2646_v25, %v8504_v46  ;;  %v2913_v56 = vsel %vm354_vm1, %v12675_v34, %v8503_v15 }
 0x52e   :  { %v8517_v48 = vpop.permute.xlu0 %8516  ;;  %v8507_v50 = vpop.permute.xlu1 %8506  ;;  %v2967_v41 = vpack.c.bf16 %v2944_v11, %v2943_v51 }
 0x52f   :  { %v8509_v37 = vunpack.i.h.bf16 %v8507_v50  ;;  %v8508_v18 = vunpack.i.l.bf16 %v8507_v50  ;;  %v8519_v3 = vunpack.i.h.bf16 %v8517_v48  ;;  %v8518_v29 = vunpack.i.l.bf16 %v8517_v48 }
 0x530   :  { %7974 = vmatprep.mubr.msk.bf16.mxu0 %vm469_vm3, %v2967_v41  ;;  %v12682_v41 = vmax.f32 %v10595_v36, 0.0  ;;  %v12684_v36 = vmax.f32 %v10634_v62, 0.0 }
 0x531   :  { %v2945_v45 = vsel %vm395_vm2, %v2913_v56, %v8508_v18  ;;  %v2946_v9 = vsel %vm395_vm2, %v2914_v52, %v8509_v37  ;;  %v2916_v25 = vsel %vm354_vm1, %v12676_v55, %v8519_v3  ;;  %v2915_v10 = vsel %vm354_vm1, %v12677_v4, %v8518_v29 }
 0x532   :  { %v8532_v14 = vpop.permute.xlu0 %8531  ;;  %v8522_v20 = vpop.permute.xlu1 %8521  ;;  %v2968_v19 = vpack.c.bf16 %v2946_v9, %v2945_v45  ;;  %v12683_v37 = vmax.f32 %v10605_v42, 0.0  ;;  %v12685_v42 = vmax.f32 %v10623_v54, 0.0 }
 0x533   :  { %v8534_v63 = vunpack.i.h.bf16 %v8532_v14  ;;  %v8533_v22 = vunpack.i.l.bf16 %v8532_v14  ;;  %v8524_v13 = vunpack.i.h.bf16 %v8522_v20  ;;  %v8523_v30 = vunpack.i.l.bf16 %v8522_v20 }
 0x534   :  { %7975 = vmatmul.mubr.msk.bf16.gmra.mrb[96].mxu0 %vm469_vm3, %v2968_v19 }
 0x535   :  { %v2947_v6 = vsel %vm395_vm2, %v2915_v10, %v8533_v22  ;;  %v2948_v23 = vsel %vm395_vm2, %v2916_v25, %v8534_v63  ;;  %v2918_v2 = vsel %vm354_vm1, %v12678_v12, %v8524_v13  ;;  %v2917_v1 = vsel %vm354_vm1, %v12679_v57, %v8523_v30 }
 0x536   :  { %v8537_v47 = vpop.permute.xlu0 %8536  ;;  %v8527_v27 = vpop.permute.xlu1 %8526  ;;  %v2969_v8 = vpack.c.bf16 %v2948_v23, %v2947_v6 }
 0x537   :  { %v8529_v40 = vunpack.i.h.bf16 %v8527_v27  ;;  %v8528_v44 = vunpack.i.l.bf16 %v8527_v27  ;;  %v8539_v61 = vunpack.i.h.bf16 %v8537_v47  ;;  %v8538_v35 = vunpack.i.l.bf16 %v8537_v47  ;;  %v10819_v27 = vld [vmem:[%s12646_s2 + $0x18] ss:$0 sm:$0xff] }
 0x538   :  { %7978 = vmatprep.mubr.msk.bf16.mxu0 %vm469_vm3, %v2969_v8 }
 0x539   :  { %v2949_v5 = vsel %vm395_vm2, %v2917_v1, %v8528_v44  ;;  %v2950_v0 = vsel %vm395_vm2, %v2918_v2, %v8529_v40  ;;  %v2920_v49 = vsel %vm354_vm1, %v12680_v39, %v8539_v61  ;;  %v2919_v24 = vsel %vm354_vm1, %v12681_v26, %v8538_v35 }
 0x53a   :  { %v2970_v58 = vpack.c.bf16 %v2950_v0, %v2949_v5 }
 0x53b   :  { %v8552_v38 = vpop.permute.xlu0 %8551  ;;  %v8542_v59 = vpop.permute.xlu1 %8541 }
 0x53c   :  { %v8554_v16 = vunpack.i.h.bf16 %v8552_v38  ;;  %v8553_v28 = vunpack.i.l.bf16 %v8552_v38  ;;  %7979 = vmatmul.mubr.msk.bf16.gmra.mrb[100].mxu0 %vm469_vm3, %v2970_v58  ;;  %v8544_v53 = vunpack.i.h.bf16 %v8542_v59  ;;  %v8543_v17 = vunpack.i.l.bf16 %v8542_v59 }
 0x53e   :  { %v2951_v21 = vsel %vm395_vm2, %v2919_v24, %v8553_v28  ;;  %v2952_v46 = vsel %vm395_vm2, %v2920_v49, %v8554_v16  ;;  %v2922_v33 = vsel %vm354_vm1, %v12682_v41, %v8544_v53  ;;  %v2921_v7 = vsel %vm354_vm1, %v12683_v37, %v8543_v17 }
 0x53f   :  { %v8557_v15 = vpop.permute.xlu0 %8556  ;;  %v8547_v51 = vpop.permute.xlu1 %8546  ;;  %v2971_v11 = vpack.c.bf16 %v2952_v46, %v2951_v21 }
 0x540   :  { %v8549_v48 = vunpack.i.h.bf16 %v8547_v51  ;;  %v8548_v50 = vunpack.i.l.bf16 %v8547_v51  ;;  %v8559_v18 = vunpack.i.h.bf16 %v8557_v15  ;;  %v8558_v52 = vunpack.i.l.bf16 %v8557_v15 }
 0x541   :  { %7982 = vmatprep.mubr.msk.bf16.mxu0 %vm469_vm3, %v2971_v11 }
 0x542   :  { %v2953_v34 = vsel %vm395_vm2, %v2921_v7, %v8548_v50  ;;  %v2954_v56 = vsel %vm395_vm2, %v2922_v33, %v8549_v48  ;;  %v2924_v20 = vsel %vm354_vm1, %v12684_v36, %v8559_v18  ;;  %v2923_v19 = vsel %vm354_vm1, %v12685_v42, %v8558_v52 }
 0x543   :  { %v8567_v3 = vpop.permute.xlu0 %8566  ;;  %v8562_v29 = vpop.permute.xlu1 %8561  ;;  %v2972_v45 = vpack.c.bf16 %v2954_v56, %v2953_v34 }
 0x544   :  { %v8569_v9 = vunpack.i.h.bf16 %v8567_v3  ;;  %v8568_v14 = vunpack.i.l.bf16 %v8567_v3  ;;  %v8564_v63 = vunpack.i.h.bf16 %v8562_v29  ;;  %v8563_v22 = vunpack.i.l.bf16 %v8562_v29 }
 0x545   :  { %7983 = vmatmul.mubr.msk.bf16.gmra.mrb[104].mxu0 %vm469_vm3, %v2972_v45 }
 0x546   :  { %v2955_v55 = vsel %vm395_vm2, %v2923_v19, %v8568_v14  ;;  %v2956_v25 = vsel %vm395_vm2, %v2924_v20, %v8569_v9  ;;  %v2926_v62 = vsel %vm354_vm1, %v2658_v32, %v8564_v63  ;;  %v2925_v54 = vsel %vm354_vm1, %v2657_v60, %v8563_v22 }
 0x547   :  { %v8572_v4 = vpop.permute.xlu1 %8571  ;;  %v2973_v10 = vpack.c.bf16 %v2956_v25, %v2955_v55 }
 0x548   :  { %v8574_v13 = vunpack.i.h.bf16 %v8572_v4  ;;  %v8573_v30 = vunpack.i.l.bf16 %v8572_v4 }
 0x549   :  { %7986 = vmatprep.mubr.msk.bf16.mxu0 %vm469_vm3, %v2973_v10 }
 0x54a   :  { %v2957_v6 = vsel %vm395_vm2, %v2925_v54, %v8573_v30  ;;  %v2958_v23 = vsel %vm395_vm2, %v2926_v62, %v8574_v13 }
 0x54b   :  { %v2974_v47 = vpack.c.bf16 %v2958_v23, %v2957_v6 }
 0x54d   :  { %7987 = vmatmul.mubr.msk.bf16.gmra.mrb[108].mxu0 %vm469_vm3, %v2974_v47 }
 0x5dc   :  { %v7960_v43 = vpop.f32.mrb[80].mxu0 }
 0x5dd   :  { %v10822_v32 = vadd.f32 %v7960_v43, %v10819_v27  ;;  %v3073_v31 = vpop.f32.mrb[81].mxu0 }
 0x5de   :  { %v10825_v60 = vadd.f32 %v10819_v27, %v3073_v31  ;;  %v7961_v8 = vpop.f32.mrb[82].mxu0 }
 0x5df   :  { %v7338_v40 = vmul.f32 -1.442695, %v10822_v32  ;;  %v10829_v44 = vadd.f32 %v7961_v8, %v10819_v27  ;;  %v3076_v12 = vpop.f32.mrb[83].mxu0 }
 0x5e0   :  { %v7336_v2 = vmul.f32 -1.442695, %v10825_v60  ;;  %v10833_v57 = vadd.f32 %v10819_v27, %v3076_v12 }
 0x5e1   :  { %8985 = vpow2.f32 %v7338_v40  ;;  %v7339_v1 = vmul.f32 -1.442695, %v10829_v44 }
 0x5e2   :  { %8987 = vpow2.f32 %v7336_v2  ;;  %v7337_v61 = vmul.f32 -1.442695, %v10833_v57 }
 0x5e3   :  { %8989 = vpow2.f32 %v7339_v1 }
 0x5e4   :  { %8991 = vpow2.f32 %v7337_v61 }
 0x5e5   :  { %v7964_v35 = vpop.f32.mrb[84].mxu0 }
 0x5e6   :  { %v10838_v5 = vadd.f32 %v7964_v35, %v10819_v27  ;;  %v3089_v0 = vpop.f32.mrb[85].mxu0 }
 0x5e7   :  { %v10841_v58 = vadd.f32 %v10819_v27, %v3089_v0  ;;  %v7965_v38 = vpop.f32.mrb[86].mxu0 }
 0x5e8   :  { %v7342_v59 = vmul.f32 -1.442695, %v10838_v5  ;;  %v10845_v16 = vadd.f32 %v7965_v38, %v10819_v27  ;;  %v3092_v28 = vpop.f32.mrb[87].mxu0 }
 0x5e9   :  { %v7340_v39 = vmul.f32 -1.442695, %v10841_v58  ;;  %v10849_v49 = vadd.f32 %v10819_v27, %v3092_v28 }
 0x5ea   :  { %8993 = vpow2.f32 %v7342_v59  ;;  %v7343_v26 = vmul.f32 -1.442695, %v10845_v16 }
 0x5eb   :  { %v8986_v24 = vpop.eup %8985  ;;  %8995 = vpow2.f32 %v7340_v39  ;;  %v7341_v53 = vmul.f32 -1.442695, %v10849_v49 }
 0x5ec   :  { %v8988_v17 = vpop.eup %8987  ;;  %v3298_v21 = vadd.f32 1.0, %v8986_v24  ;;  %8997 = vpow2.f32 %v7343_v26 }
 0x5ed   :  { %v8990_v46 = vpop.eup %8989  ;;  %v3296_v15 = vadd.f32 1.0, %v8988_v17  ;;  %8999 = vpow2.f32 %v7341_v53  ;;  %v7968_v51 = vpop.f32.mrb[88].mxu0 }
 0x5ee   :  { %v8992_v11 = vpop.eup %8991  ;;  %9001 = vrcp.f32 %v3298_v21  ;;  %v3299_v48 = vadd.f32 1.0, %v8990_v46  ;;  %v10854_v50 = vadd.f32 %v7968_v51, %v10819_v27  ;;  %v3105_v41 = vpop.f32.mrb[89].mxu0 }
 0x5ef   :  { %9003 = vrcp.f32 %v3296_v15  ;;  %v3297_v33 = vadd.f32 1.0, %v8992_v11  ;;  %v10857_v37 = vadd.f32 %v10819_v27, %v3105_v41  ;;  %v7969_v7 = vpop.f32.mrb[90].mxu0 }
 0x5f0   :  { %9005 = vrcp.f32 %v3299_v48  ;;  %v7346_v18 = vmul.f32 -1.442695, %v10854_v50  ;;  %v10861_v52 = vadd.f32 %v7969_v7, %v10819_v27  ;;  %v3108_v34 = vpop.f32.mrb[91].mxu0 }
 0x5f1   :  { %9007 = vrcp.f32 %v3297_v33  ;;  %v7344_v56 = vmul.f32 -1.442695, %v10857_v37  ;;  %v10865_v3 = vadd.f32 %v10819_v27, %v3108_v34 }
 0x5f2   :  { %9009 = vpow2.f32 %v7346_v18  ;;  %v7347_v29 = vmul.f32 -1.442695, %v10861_v52 }
 0x5f3   :  { %9011 = vpow2.f32 %v7344_v56  ;;  %v7345_v45 = vmul.f32 -1.442695, %v10865_v3 }
 0x5f4   :  { %v8994_v9 = vpop.eup %8993  ;;  %9013 = vpow2.f32 %v7347_v29 }
 0x5f5   :  { %v8996_v14 = vpop.eup %8995  ;;  %v3302_v36 = vadd.f32 1.0, %v8994_v9  ;;  %9015 = vpow2.f32 %v7345_v45 }
 0x5f6   :  { %v8998_v20 = vpop.eup %8997  ;;  %v3300_v42 = vadd.f32 1.0, %v8996_v14  ;;  %v7972_v19 = vpop.f32.mrb[92].mxu0 }
 0x5f7   :  { %v9000_v63 = vpop.eup %8999  ;;  %9017 = vrcp.f32 %v3302_v36  ;;  %v3303_v22 = vadd.f32 1.0, %v8998_v20  ;;  %v10870_v55 = vadd.f32 %v7972_v19, %v10819_v27  ;;  %v3121_v25 = vpop.f32.mrb[93].mxu0 }
 0x5f8   :  { %v9002_v4 = vpop.eup %9001  ;;  %9019 = vrcp.f32 %v3300_v42  ;;  %v3301_v10 = vadd.f32 1.0, %v9000_v63  ;;  %v10873_v13 = vadd.f32 %v10819_v27, %v3121_v25  ;;  %v7973_v30 = vpop.f32.mrb[94].mxu0 }
 0x5f9   :  { %v9004_v62 = vpop.eup %9003  ;;  %9021 = vrcp.f32 %v3303_v22  ;;  %v7350_v54 = vmul.f32 -1.442695, %v10870_v55  ;;  %v10877_v6 = vadd.f32 %v7973_v30, %v10819_v27  ;;  %v3124_v23 = vpop.f32.mrb[95].mxu0  ;;  %3428 = vrot.lane.b32.xlu0 %v9002_v4, %s9368_s15 }
 0x5fa   :  { %v9006_v47 = vpop.eup %9005  ;;  %9023 = vrcp.f32 %v3301_v10  ;;  %v7348_v43 = vmul.f32 -1.442695, %v10873_v13  ;;  %v10882_v31 = vadd.f32 %v10819_v27, %v3124_v23 }
 0x5fb   :  { %v9008_v8 = vpop.eup %9007  ;;  %9025 = vpow2.f32 %v7350_v54  ;;  %v7351_v40 = vmul.f32 -1.442695, %v10877_v6  ;;  %3430 = vrot.lane.b32.xlu1 %v9006_v47, %s9368_s15 }
 0x5fc   :  { %v9010_v12 = vpop.eup %9009  ;;  %9027 = vpow2.f32 %v7348_v43  ;;  %v7349_v2 = vmul.f32 -1.442695, %v10882_v31 }
 0x5fd   :  { %v9012_v1 = vpop.eup %9011  ;;  %v3306_v61 = vadd.f32 1.0, %v9010_v12  ;;  %9029 = vpow2.f32 %v7351_v40  ;;  %3424 = vrot.lane.b32.xlu0 %v9004_v62, %s9368_s15 }
 0x5fe   :  { %v9014_v35 = vpop.eup %9013  ;;  %9031 = vpow2.f32 %v7349_v2  ;;  %v3304_v38 = vadd.f32 1.0, %v9012_v1 }
 0x5ff   :  { %v9016_v0 = vpop.eup %9015  ;;  %9033 = vrcp.f32 %v3306_v61  ;;  %v3307_v59 = vadd.f32 1.0, %v9014_v35  ;;  %3426 = vrot.lane.b32.xlu1 %v9008_v8, %s9368_s15 }
 0x600   :  { %v3305_v39 = vadd.f32 1.0, %v9016_v0 }
 0x601   :  { %v9018_v28 = vpop.eup %9017  ;;  %9035 = vrcp.f32 %v3307_v59 }
 0x602   :  { %v9020_v26 = vpop.eup %9019  ;;  %3436 = vrot.lane.b32.xlu0 %v9018_v28, %s9368_s15  ;;  %9037 = vrcp.f32 %v3304_v38 }
 0x603   :  { %v9022_v24 = vpop.eup %9021  ;;  %9039 = vrcp.f32 %v3305_v39 }
 0x604   :  { %v9024_v53 = vpop.eup %9023  ;;  %3438 = vrot.lane.b32.xlu1 %v9022_v24, %s9368_s15 }
 0x605   :  { %v9026_v17 = vpop.eup %9025 }
 0x606   :  { %v9028_v21 = vpop.eup %9027  ;;  %v3310_v46 = vadd.f32 1.0, %v9026_v17  ;;  %3432 = vrot.lane.b32.xlu0 %v9020_v26, %s9368_s15 }
 0x607   :  { %v9030_v15 = vpop.eup %9029  ;;  %v3308_v51 = vadd.f32 1.0, %v9028_v21  ;;  %v7976_v11 = vpop.f32.mrb[96].mxu0 }
 0x608   :  { %v9032_v48 = vpop.eup %9031  ;;  %9041 = vrcp.f32 %v3310_v46  ;;  %v3311_v41 = vadd.f32 1.0, %v9030_v15  ;;  %v10893_v33 = vadd.f32 %v7976_v11, %v10819_v27  ;;  %v10895_v7 = vpop.f32.mrb[97].mxu0  ;;  %3434 = vrot.lane.b32.xlu1 %v9024_v53, %s9368_s15 }
 0x609   :  { %v9034_v18 = vpop.eup %9033  ;;  %v3309_v34 = vadd.f32 1.0, %v9032_v48  ;;  %v7977_v56 = vpop.f32.mrb[98].mxu0 }
 0x60a   :  { %9043 = vrcp.f32 %v3311_v41  ;;  %v7354_v29 = vmul.f32 -1.442695, %v10893_v33  ;;  %v10900_v45 = vadd.f32 %v7977_v56, %v10819_v27  ;;  %v10902_v9 = vpop.f32.mrb[99].mxu0  ;;  %3444 = vrot.lane.b32.xlu0 %v9034_v18, %s9368_s15 }
 0x60b   :  { %v9036_v14 = vpop.eup %9035  ;;  %9045 = vrcp.f32 %v3308_v51 }
 0x60c   :  { %9047 = vpow2.f32 %v7354_v29  ;;  %v7355_v36 = vmul.f32 -1.442695, %v10900_v45  ;;  %3446 = vrot.lane.b32.xlu1 %v9036_v14, %s9368_s15  ;;  %v9038_v20 = vpop.eup %9037 }
 0x60d   :  { %9049 = vrcp.f32 %v3309_v34  ;;  %v9040_v42 = vpop.eup %9039 }
 0x60e   :  { %9051 = vpow2.f32 %v7355_v36  ;;  %3440 = vrot.lane.b32.xlu0 %v9038_v20, %s9368_s15 }
 0x60f   :  { %v7980_v19 = vpop.f32.mrb[100].mxu0 }
 0x610   :  { %v10909_v63 = vadd.f32 %v7980_v19, %v10819_v27  ;;  %v3153_v22 = vpop.f32.mrb[101].mxu0  ;;  %3442 = vrot.lane.b32.xlu1 %v9040_v42, %s9368_s15 }
 0x611   :  { %v10913_v25 = vadd.f32 %v10819_v27, %v3153_v22  ;;  %v7981_v4 = vpop.f32.mrb[102].mxu0 }
 0x612   :  { %v9042_v10 = vpop.eup %9041  ;;  %v7358_v30 = vmul.f32 -1.442695, %v10909_v63  ;;  %v10917_v62 = vadd.f32 %v7981_v4, %v10819_v27  ;;  %v3156_v54 = vpop.f32.mrb[103].mxu0 }
 0x613   :  { %v7356_v23 = vmul.f32 -1.442695, %v10913_v25  ;;  %v10921_v47 = vadd.f32 %v10819_v27, %v3156_v54  ;;  %3452 = vrot.lane.b32.xlu0 %v9042_v10, %s9368_s15 }
 0x614   :  { %v9044_v43 = vpop.eup %9043  ;;  %9053 = vpow2.f32 %v7358_v30  ;;  %v7359_v8 = vmul.f32 -1.442695, %v10917_v62 }
 0x615   :  { %v9046_v40 = vpop.eup %9045  ;;  %9055 = vpow2.f32 %v7356_v23  ;;  %v7357_v12 = vmul.f32 -1.442695, %v10921_v47  ;;  %3454 = vrot.lane.b32.xlu1 %v9044_v43, %s9368_s15 }
 0x616   :  { %v9048_v2 = vpop.eup %9047  ;;  %9057 = vpow2.f32 %v7359_v8 }
 0x617   :  { %v9050_v1 = vpop.eup %9049  ;;  %v3314_v61 = vadd.f32 1.0, %v9048_v2  ;;  %9059 = vpow2.f32 %v7357_v12  ;;  %3448 = vrot.lane.b32.xlu0 %v9046_v40, %s9368_s15 }
 0x618   :  { %v9052_v35 = vpop.eup %9051  ;;  %v7984_v0 = vpop.f32.mrb[104].mxu0 }
 0x619   :  { %9061 = vrcp.f32 %v3314_v61  ;;  %v3315_v38 = vadd.f32 1.0, %v9052_v35  ;;  %v10929_v59 = vadd.f32 %v7984_v0, %v10819_v27  ;;  %v3169_v28 = vpop.f32.mrb[105].mxu0  ;;  %3450 = vrot.lane.b32.xlu1 %v9050_v1, %s9368_s15 }
 0x61a   :  { %v10933_v39 = vadd.f32 %v10819_v27, %v3169_v28  ;;  %v7985_v26 = vpop.f32.mrb[106].mxu0 }
 0x61b   :  { %9063 = vrcp.f32 %v3315_v38  ;;  %v7362_v24 = vmul.f32 -1.442695, %v10929_v59  ;;  %v10937_v53 = vadd.f32 %v7985_v26, %v10819_v27  ;;  %v3172_v17 = vpop.f32.mrb[107].mxu0 }
 0x61c   :  { %v7360_v21 = vmul.f32 -1.442695, %v10933_v39  ;;  %v10941_v46 = vadd.f32 %v10819_v27, %v3172_v17 }
 0x61d   :  { %9065 = vpow2.f32 %v7362_v24  ;;  %v7363_v15 = vmul.f32 -1.442695, %v10937_v53 }
 0x61e   :  { %v9054_v51 = vpop.eup %9053  ;;  %9067 = vpow2.f32 %v7360_v21  ;;  %v7361_v11 = vmul.f32 -1.442695, %v10941_v46 }
 0x61f   :  { %v9056_v48 = vpop.eup %9055  ;;  %v3318_v41 = vadd.f32 1.0, %v9054_v51  ;;  %9069 = vpow2.f32 %v7363_v15 }
 0x620   :  { %v9058_v18 = vpop.eup %9057  ;;  %v3316_v34 = vadd.f32 1.0, %v9056_v48  ;;  %9071 = vpow2.f32 %v7361_v11  ;;  %v7988_v56 = vpop.f32.mrb[108].mxu0 }
 0x621   :  { %v9060_v29 = vpop.eup %9059  ;;  %9073 = vrcp.f32 %v3318_v41  ;;  %v3319_v14 = vadd.f32 1.0, %v9058_v18  ;;  %v10946_v36 = vadd.f32 %v7988_v56, %v10819_v27  ;;  %v3185_v20 = vpop.f32.mrb[109].mxu0 }
 0x622   :  { %9075 = vrcp.f32 %v3316_v34  ;;  %v3317_v42 = vadd.f32 1.0, %v9060_v29  ;;  %v10949_v19 = vadd.f32 %v10819_v27, %v3185_v20  ;;  %v7989_v22 = vpop.f32.mrb[110].mxu0 }
 0x623   :  { %v9062_v4 = vpop.eup %9061  ;;  %9077 = vrcp.f32 %v3319_v14  ;;  %v7366_v10 = vmul.f32 -1.442695, %v10946_v36  ;;  %v10953_v30 = vadd.f32 %v7989_v22, %v10819_v27  ;;  %v3188_v54 = vpop.f32.mrb[111].mxu0 }
 0x624   :  { %9079 = vrcp.f32 %v3317_v42  ;;  %v7364_v23 = vmul.f32 -1.442695, %v10949_v19  ;;  %v10957_v43 = vadd.f32 %v10819_v27, %v3188_v54  ;;  %3460 = vrot.lane.b32.xlu0 %v9062_v4, %s9368_s15 }
 0x625   :  { %v9064_v8 = vpop.eup %9063  ;;  %9081 = vpow2.f32 %v7366_v10  ;;  %v7367_v40 = vmul.f32 -1.442695, %v10953_v30 }
 0x626   :  { %9083 = vpow2.f32 %v7364_v23  ;;  %v7365_v12 = vmul.f32 -1.442695, %v10957_v43  ;;  %3462 = vrot.lane.b32.xlu1 %v9064_v8, %s9368_s15  ;;  %v10977_v8 = vadd.f32 %v10819_v27, %v10895_v7 }
 0x627   :  { %v9066_v2 = vpop.eup %9065  ;;  %9085 = vpow2.f32 %v7367_v40 }
 0x628   :  { %v9068_v1 = vpop.eup %9067  ;;  %v3322_v61 = vadd.f32 1.0, %v9066_v2  ;;  %9087 = vpow2.f32 %v7365_v12  ;;  %v7352_v40 = vmul.f32 -1.442695, %v10977_v8 }
 0x629   :  { %v9070_v35 = vpop.eup %9069  ;;  %v3320_v38 = vadd.f32 1.0, %v9068_v1 }
 0x62a   :  { %v9072_v0 = vpop.eup %9071  ;;  %9089 = vrcp.f32 %v3322_v61  ;;  %v3323_v28 = vadd.f32 1.0, %v9070_v35 }
 0x62b   :  { %v9074_v26 = vpop.eup %9073  ;;  %v3321_v17 = vadd.f32 1.0, %v9072_v0 }
 0x62c   :  { %v9076_v24 = vpop.eup %9075  ;;  %9091 = vrcp.f32 %v3323_v28  ;;  %3468 = vrot.lane.b32.xlu0 %v9074_v26, %s9368_s15 }
 0x62d   :  { %v9078_v21 = vpop.eup %9077  ;;  %9093 = vrcp.f32 %v3320_v38 }
 0x62e   :  { %v9080_v15 = vpop.eup %9079  ;;  %3470 = vrot.lane.b32.xlu1 %v9078_v21, %s9368_s15  ;;  %9095 = vrcp.f32 %v3321_v17 }
 0x62f   :  { %v9082_v51 = vpop.eup %9081 }
 0x630   :  { %v9084_v11 = vpop.eup %9083  ;;  %v3326_v48 = vadd.f32 1.0, %v9082_v51  ;;  %3464 = vrot.lane.b32.xlu0 %v9076_v24, %s9368_s15 }
 0x631   :  { %v9086_v41 = vpop.eup %9085  ;;  %v3324_v34 = vadd.f32 1.0, %v9084_v11 }
 0x632   :  { %v9088_v18 = vpop.eup %9087  ;;  %9097 = vrcp.f32 %v3326_v48  ;;  %v3327_v56 = vadd.f32 1.0, %v9086_v41  ;;  %3466 = vrot.lane.b32.xlu1 %v9080_v15, %s9368_s15 }
 0x633   :  { %v3325_v14 = vadd.f32 1.0, %v9088_v18 }
 0x634   :  { %v9090_v29 = vpop.eup %9089  ;;  %9099 = vrcp.f32 %v3327_v56 }
 0x635   :  { %3476 = vrot.lane.b32.xlu0 %v9090_v29, %s9368_s15  ;;  %9101 = vrcp.f32 %v3324_v34 }
 0x636   :  { %v9092_v20 = vpop.eup %9091  ;;  %9103 = vrcp.f32 %v3325_v14 }
 0x637   :  { %3478 = vrot.lane.b32.xlu1 %v9092_v20, %s9368_s15  ;;  %v9094_v42 = vpop.eup %9093  ;;  %9105 = vpow2.f32 %v7352_v40 }
 0x638   :  { %v9096_v22 = vpop.eup %9095 }
 0x639   :  { %3472 = vrot.lane.b32.xlu0 %v9094_v42, %s9368_s15 }
 0x63b   :  { %3474 = vrot.lane.b32.xlu1 %v9096_v22, %s9368_s15 }
 0x63c   :  { %v9098_v4 = vpop.eup %9097 }
 0x63d   :  { %3484 = vrot.lane.b32.xlu0 %v9098_v4, %s9368_s15 }
 0x63e   :  { %v9100_v10 = vpop.eup %9099 }
 0x63f   :  { %3486 = vrot.lane.b32.xlu1 %v9100_v10, %s9368_s15  ;;  %v9102_v54 = vpop.eup %9101 }
 0x640   :  { %v9104_v23 = vpop.eup %9103 }
 0x641   :  { %3480 = vrot.lane.b32.xlu0 %v9102_v54, %s9368_s15  ;;  %v9106_v24 = vpop.eup %9105 }
 0x642   :  { %v3312_v11 = vadd.f32 1.0, %v9106_v24 }
 0x643   :  { %3482 = vrot.lane.b32.xlu1 %v9104_v23, %s9368_s15 }
 0x66b   :  { %v3429_v12 = vpop.permute.xlu0 %3428 }
 0x66c   :  { %v10981_v2 = vmul.f32 %v3429_v12, %v10822_v32  ;;  %v10996_v32 = vadd.f32 %v10819_v27, %v10902_v9 }
 0x66d   :  { %v3431_v1 = vpop.permute.xlu1 %3430 }
 0x66e   :  { %v10984_v61 = vmul.f32 %v3431_v1, %v10829_v44  ;;  %v3562_v35 = vsel %vm395_vm2, %v10981_v2, 0.0  ;;  %v7353_v15 = vmul.f32 -1.442695, %v10996_v32 }
 0x66f   :  { %3563 = vadd.xlane.f32.xlu0 %v3562_v35  ;;  %v10988_v0 = vpop.permute.xlu0 %3424 }
 0x670   :  { %v3565_v7 = vsel %vm395_vm2, %v10984_v61, 0.0  ;;  %9107 = vpow2.f32 %v7353_v15 }
 0x671   :  { %3566 = vadd.xlane.f32.xlu1 %v3565_v7  ;;  %v10992_v38 = vpop.permute.xlu1 %3426  ;;  %9109 = vrcp.f32 %v3312_v11 }
 0x674   :  { %v3437_v28 = vpop.permute.xlu0 %3436 }
 0x675   :  { %v10999_v44 = vmul.f32 %v3437_v28, %v10838_v5 }
 0x676   :  { %v3439_v26 = vpop.permute.xlu1 %3438 }
 0x677   :  { %v3574_v17 = vsel %vm395_vm2, %v10999_v44, 0.0  ;;  %v11008_v48 = vmul.f32 %v3439_v26, %v10845_v16 }
 0x678   :  { %3575 = vadd.xlane.f32.xlu1 %v3574_v17  ;;  %v3433_v21 = vpop.permute.xlu0 %3432 }
 0x679   :  { %v11005_v51 = vmul.f32 %v3433_v21, %v10841_v58  ;;  %v3577_v41 = vsel %vm395_vm2, %v11008_v48, 0.0 }
 0x67a   :  { %v3435_v5 = vpop.permute.xlu1 %3434  ;;  %v9108_v16 = vpop.eup %9107 }
 0x67b   :  { %v3568_v27 = vsel %vm395_vm2, %v11005_v51, 0.0  ;;  %v11013_v9 = vmul.f32 %v3435_v5, %v10849_v49  ;;  %v9110_v18 = vpop.eup %9109  ;;  %v3313_v34 = vadd.f32 1.0, %v9108_v16 }
 0x67c   :  { %3569 = vadd.xlane.f32.xlu0 %v3568_v27  ;;  %v3445_v56 = vpop.permute.xlu0 %3444 }
 0x67d   :  { %v3571_v58 = vsel %vm395_vm2, %v11013_v9, 0.0  ;;  %9111 = vrcp.f32 %v3313_v34  ;;  %v11022_v10 = vmul.f32 %v3445_v56, %v10854_v50 }
 0x67e   :  { %v3447_v49 = vpop.permute.xlu1 %3446 }
 0x67f   :  { %v3586_v12 = vsel %vm395_vm2, %v11022_v10, 0.0  ;;  %v11035_v26 = vmul.f32 %v3447_v49, %v10861_v52 }
 0x680   :  { %3578 = vadd.xlane.f32.xlu0 %v3577_v41  ;;  %v3441_v29 = vpop.permute.xlu0 %3440 }
 0x681   :  { %v11025_v40 = vmul.f32 %v3441_v29, %v10857_v37  ;;  %v3589_v11 = vsel %vm395_vm2, %v11035_v26, 0.0 }
 0x682   :  { %v3443_v42 = vpop.permute.xlu1 %3442 }
 0x683   :  { %v3580_v7 = vsel %vm395_vm2, %v11025_v40, 0.0 }
 0x684   :  { %3572 = vadd.xlane.f32.xlu0 %v3571_v58 }
 0x685   :  { %v3453_v20 = vpop.permute.xlu0 %3452 }
 0x686   :  { %v11030_v35 = vmul.f32 %v3453_v20, %v10870_v55  ;;  %v11043_v55 = vmul.f32 %v3443_v42, %v10865_v3 }
 0x687   :  { %v9112_v14 = vpop.eup %9111  ;;  %v3455_v54 = vpop.permute.xlu1 %3454 }
 0x688   :  { %v3598_v24 = vsel %vm395_vm2, %v11030_v35, 0.0  ;;  %v3583_v3 = vsel %vm395_vm2, %v11043_v55, 0.0 }
 0x689   :  { %3456 = vrot.lane.b32.xlu1 %v9110_v18, %s9368_s15  ;;  %v3449_v22 = vpop.permute.xlu0 %3448 }
 0x68a   :  { %v11038_v37 = vmul.f32 %v3449_v22, %v10873_v13  ;;  %v11053_v13 = vmul.f32 %v3455_v54, %v10877_v6 }
 0x68b   :  { %v3451_v1 = vpop.permute.xlu1 %3450 }
 0x68c   :  { %v3592_v52 = vsel %vm395_vm2, %v11038_v37, 0.0  ;;  %v11063_v58 = vmul.f32 %v3451_v1, %v10882_v31  ;;  %v3601_v6 = vsel %vm395_vm2, %v11053_v13, 0.0  ;;  %v11114_v1 = vmul.f32 %v10988_v0, %v10825_v60 }
 0x68e   :  { %v3595_v31 = vsel %vm395_vm2, %v11063_v58, 0.0  ;;  %v3556_v60 = vsel %vm395_vm2, %v11114_v1, 0.0 }
 0x696   :  { %v3461_v4 = vpop.permute.xlu0 %3460 }
 0x697   :  { %v11046_v15 = vmul.f32 %v3461_v4, %v10893_v33 }
 0x698   :  { %v3463_v50 = vpop.permute.xlu1 %3462 }
 0x699   :  { %v3610_v33 = vsel %vm395_vm2, %v11046_v15, 0.0  ;;  %v11073_v56 = vmul.f32 %v3463_v50, %v10900_v45 }
 0x69a   :  { %3458 = vrot.lane.b32.xlu0 %v9112_v14, %s9368_s15 }
 0x69b   :  { %v3613_v45 = vsel %vm395_vm2, %v11073_v56, 0.0 }
 0x69e   :  { %v3469_v23 = vpop.permute.xlu0 %3468 }
 0x69f   :  { %v11066_v16 = vmul.f32 %v3469_v23, %v10909_v63 }
 0x6a0   :  { %v3471_v17 = vpop.permute.xlu1 %3470 }
 0x6a1   :  { %v3622_v63 = vsel %vm395_vm2, %v11066_v16, 0.0  ;;  %v11093_v22 = vmul.f32 %v3471_v17, %v10917_v62  ;;  %v11137_v17 = vmul.f32 %v10992_v38, %v10833_v57 }
 0x6a2   :  { %v3465_v28 = vpop.permute.xlu0 %3464 }
 0x6a3   :  { %v11056_v27 = vmul.f32 %v3465_v28, %v10913_v25  ;;  %v3625_v62 = vsel %vm395_vm2, %v11093_v22, 0.0 }
 0x6a4   :  { %v3467_v5 = vpop.permute.xlu1 %3466 }
 0x6a5   :  { %v3616_v25 = vsel %vm395_vm2, %v11056_v27, 0.0  ;;  %v11083_v14 = vmul.f32 %v3467_v5, %v10921_v47 }
 0x6a7   :  { %v3477_v21 = vpop.permute.xlu0 %3476  ;;  %v3619_v47 = vsel %vm395_vm2, %v11083_v14, 0.0 }
 0x6a8   :  { %v11086_v49 = vmul.f32 %v3477_v21, %v10929_v59  ;;  %v3559_v21 = vsel %vm395_vm2, %v11137_v17, 0.0 }
 0x6a9   :  { %v3479_v18 = vpop.permute.xlu1 %3478 }
 0x6aa   :  { %v3634_v59 = vsel %vm395_vm2, %v11086_v49, 0.0 }
 0x6ab   :  { %v3473_v41 = vpop.permute.xlu0 %3472 }
 0x6ac   :  { %v11076_v29 = vmul.f32 %v3473_v41, %v10933_v39 }
 0x6ad   :  { %3587 = vadd.xlane.f32.xlu1 %v3586_v12  ;;  %v3475_v20 = vpop.permute.xlu1 %3474 }
 0x6ae   :  { %v3628_v39 = vsel %vm395_vm2, %v11076_v29, 0.0  ;;  %v11103_v23 = vmul.f32 %v3475_v20, %v10941_v46 }
 0x6af   :  { %v3485_v34 = vpop.permute.xlu0 %3484 }
 0x6b0   :  { %v11106_v12 = vmul.f32 %v3485_v34, %v10946_v36  ;;  %v3631_v46 = vsel %vm395_vm2, %v11103_v23, 0.0 }
 0x6b1   :  { %3581 = vadd.xlane.f32.xlu1 %v3580_v7  ;;  %v3487_v54 = vpop.permute.xlu1 %3486  ;;  %v11117_v7 = vmul.f32 %v3479_v18, %v10937_v53 }
 0x6b2   :  { %v3646_v36 = vsel %vm395_vm2, %v11106_v12, 0.0  ;;  %v11131_v53 = vmul.f32 %v3487_v54, %v10953_v30 }
 0x6b3   :  { %v3481_v42 = vpop.permute.xlu0 %3480 }
 0x6b4   :  { %v11096_v4 = vmul.f32 %v3481_v42, %v10949_v19 }
 0x6b5   :  { %3599 = vadd.xlane.f32.xlu1 %v3598_v24  ;;  %v3483_v28 = vpop.permute.xlu1 %3482  ;;  %v3637_v24 = vsel %vm395_vm2, %v11117_v7, 0.0 }
 0x6b6   :  { %v3640_v19 = vsel %vm395_vm2, %v11096_v4, 0.0  ;;  %v11124_v50 = vmul.f32 %v3483_v28, %v10957_v43  ;;  %v3649_v43 = vsel %vm395_vm2, %v11131_v53, 0.0 }
 0x6b8   :  { %v3643_v0 = vsel %vm395_vm2, %v11124_v50, 0.0 }
 0x6b9   :  { %3590 = vadd.xlane.f32.xlu0 %v3589_v11  ;;  %3593 = vadd.xlane.f32.xlu1 %v3592_v52 }
 0x6bd   :  { %3584 = vadd.xlane.f32.xlu0 %v3583_v3  ;;  %3611 = vadd.xlane.f32.xlu1 %v3610_v33 }
 0x6c1   :  { %3602 = vadd.xlane.f32.xlu0 %v3601_v6  ;;  %3617 = vadd.xlane.f32.xlu1 %v3616_v25 }
 0x6c5   :  { %3596 = vadd.xlane.f32.xlu0 %v3595_v31  ;;  %3623 = vadd.xlane.f32.xlu1 %v3622_v63 }
 0x6c9   :  { %3614 = vadd.xlane.f32.xlu0 %v3613_v45  ;;  %3629 = vadd.xlane.f32.xlu1 %v3628_v39 }
 0x6cd   :  { %3620 = vadd.xlane.f32.xlu0 %v3619_v47  ;;  %3635 = vadd.xlane.f32.xlu1 %v3634_v59 }
 0x6d1   :  { %3626 = vadd.xlane.f32.xlu0 %v3625_v62  ;;  %3641 = vadd.xlane.f32.xlu1 %v3640_v19 }
 0x6d5   :  { %3632 = vadd.xlane.f32.xlu0 %v3631_v46  ;;  %3647 = vadd.xlane.f32.xlu1 %v3646_v36 }
 0x6d9   :  { %3638 = vadd.xlane.f32.xlu0 %v3637_v24  ;;  %3557 = vadd.xlane.f32.xlu1 %v3556_v60 }
 0x6dd   :  { %3644 = vadd.xlane.f32.xlu0 %v3643_v0 }
 0x6e1   :  { %3650 = vadd.xlane.f32.xlu0 %v3649_v43 }
 0x6e5   :  { %3560 = vadd.xlane.f32.xlu0 %v3559_v21 }
 0x6fc   :  { %v3564_v11 = vpop.xlane.xlu0 %3563 }
 0x6fe   :  { %v3567_v52 = vpop.xlane.xlu1 %3566 }
 0x6ff   :  { %v3659_v30 = vadd.f32 %v3567_v52, %v3564_v11 }
 0x701   :  { %v3660_v3 = vrot.slane %v3659_v30, 4 }
 0x703   :  { %v3661_v33 = vadd.f32 %v3660_v3, %v3659_v30 }
 0x705   :  { %v3662_v5 = vrot.slane %v3661_v33, 2  ;;  %v3576_v41 = vpop.xlane.xlu1 %3575 }
 0x707   :  { %v3663_v6 = vadd.f32 %v3662_v5, %v3661_v33 }
 0x709   :  { %v3664_v25 = vrot.slane %v3663_v6, 1  ;;  %v3457_v18 = vpop.permute.xlu1 %3456  ;;  %v3570_v57 = vpop.xlane.xlu0 %3569 }
 0x70a   :  { %v11144_v38 = vmul.f32 %v3457_v18, %v10977_v8 }
 0x70b   :  { %v3665_v34 = vadd.f32 %v3664_v25, %v3663_v6 }
 0x70c   :  { %v3604_v31 = vsel %vm395_vm2, %v11144_v38, 0.0 }
 0x70d   :  { %3605 = vadd.xlane.f32.xlu1 %v3604_v31  ;;  %v3579_v63 = vpop.xlane.xlu0 %3578  ;;  %v3765_v45 = vmul.f32 0.00390625, %v3665_v34 }
 0x70e   :  { %v3673_v39 = vadd.f32 %v3579_v63, %v3576_v41 }
 0x70f   :  { %v11149_v20 = vsub.f32 %v10981_v2, %v3765_v45  ;;  %v11155_v36 = vsub.f32 %v10984_v61, %v3765_v45 }
 0x710   :  { %v3674_v42 = vrot.slane %v3673_v39, 4 }
 0x711   :  { %v3573_v47 = vpop.xlane.xlu0 %3572  ;;  %v3814_v59 = vmul.f32 %v11149_v20, %v11149_v20  ;;  %v3815_v11 = vmul.f32 %v11155_v36, %v11155_v36 }
 0x712   :  { %v3675_v54 = vadd.f32 %v3674_v42, %v3673_v39  ;;  %v3666_v62 = vadd.f32 %v3573_v47, %v3570_v57 }
 0x713   :  { %v3850_v8 = vsel %vm395_vm2, %v3814_v59, 0.0  ;;  %v3853_v61 = vsel %vm395_vm2, %v3815_v11, 0.0 }
 0x714   :  { %v3676_v19 = vrot.slane %v3675_v54, 2  ;;  %v3667_v46 = vrot.slane %v3666_v62, 4  ;;  %3851 = vadd.xlane.f32.xlu1 %v3850_v8 }
 0x715   :  { %v3459_v28 = vpop.permute.xlu0 %3458 }
 0x716   :  { %v3677_v24 = vadd.f32 %v3676_v19, %v3675_v54  ;;  %v3668_v60 = vadd.f32 %v3667_v46, %v3666_v62  ;;  %v11158_v2 = vmul.f32 %v3459_v28, %v10996_v32 }
 0x718   :  { %v3678_v0 = vrot.slane %v3677_v24, 1  ;;  %v3669_v43 = vrot.slane %v3668_v60, 2  ;;  %v3607_v21 = vsel %vm395_vm2, %v11158_v2, 0.0 }
 0x719   :  { %3608 = vadd.xlane.f32.xlu0 %v3607_v21 }
 0x71a   :  { %v3679_v52 = vadd.f32 %v3678_v0, %v3677_v24  ;;  %v3670_v30 = vadd.f32 %v3669_v43, %v3668_v60 }
 0x71c   :  { %v3671_v3 = vrot.slane %v3670_v30, 1  ;;  %v3767_v5 = vmul.f32 0.00390625, %v3679_v52 }
 0x71d   :  { %3854 = vadd.xlane.f32.xlu0 %v3853_v61 }
 0x71e   :  { %v3672_v33 = vadd.f32 %v3671_v3, %v3670_v30  ;;  %v11172_v25 = vsub.f32 %v10999_v44, %v3767_v5  ;;  %v11175_v18 = vsub.f32 %v11008_v48, %v3767_v5 }
 0x720   :  { %v3766_v41 = vmul.f32 0.00390625, %v3672_v33  ;;  %v3819_v44 = vmul.f32 %v11175_v18, %v11175_v18 }
 0x722   :  { %v11166_v32 = vsub.f32 %v11005_v51, %v3766_v41  ;;  %v11169_v6 = vsub.f32 %v11013_v9, %v3766_v41  ;;  %v3818_v9 = vmul.f32 %v11172_v25, %v11172_v25  ;;  %v3865_v63 = vsel %vm395_vm2, %v3819_v44, 0.0 }
 0x724   :  { %v3816_v57 = vmul.f32 %v11166_v32, %v11166_v32  ;;  %v3817_v34 = vmul.f32 %v11169_v6, %v11169_v6  ;;  %v3862_v48 = vsel %vm395_vm2, %v3818_v9, 0.0 }
 0x726   :  { %v3856_v31 = vsel %vm395_vm2, %v3816_v57, 0.0  ;;  %v3859_v51 = vsel %vm395_vm2, %v3817_v34, 0.0 }
 0x727   :  { %3857 = vadd.xlane.f32.xlu1 %v3856_v31  ;;  %3860 = vadd.xlane.f32.xlu0 %v3859_v51 }
 0x72b   :  { %3863 = vadd.xlane.f32.xlu1 %v3862_v48  ;;  %3866 = vadd.xlane.f32.xlu0 %v3865_v63 }
 0x73a   :  { %v3588_v45 = vpop.xlane.xlu1 %3587 }
 0x73e   :  { %v3582_v39 = vpop.xlane.xlu1 %3581 }
 0x742   :  { %v3600_v42 = vpop.xlane.xlu1 %3599 }
 0x746   :  { %v3594_v47 = vpop.xlane.xlu1 %3593  ;;  %v3591_v59 = vpop.xlane.xlu0 %3590 }
 0x747   :  { %v3687_v54 = vadd.f32 %v3591_v59, %v3588_v45 }
 0x749   :  { %v3688_v62 = vrot.slane %v3687_v54, 4 }
 0x74a   :  { %v3612_v8 = vpop.xlane.xlu1 %3611  ;;  %v3585_v19 = vpop.xlane.xlu0 %3584 }
 0x74b   :  { %v3689_v46 = vadd.f32 %v3688_v62, %v3687_v54  ;;  %v3680_v28 = vadd.f32 %v3585_v19, %v3582_v39 }
 0x74d   :  { %v3690_v24 = vrot.slane %v3689_v46, 2  ;;  %v3681_v60 = vrot.slane %v3680_v28, 4 }
 0x74e   :  { %v3618_v0 = vpop.xlane.xlu1 %3617  ;;  %v3603_v43 = vpop.xlane.xlu0 %3602 }
 0x74f   :  { %v3691_v21 = vadd.f32 %v3690_v24, %v3689_v46  ;;  %v3682_v11 = vadd.f32 %v3681_v60, %v3680_v28  ;;  %v3701_v52 = vadd.f32 %v3603_v43, %v3600_v42 }
 0x751   :  { %v3692_v30 = vrot.slane %v3691_v21, 1  ;;  %v3683_v3 = vrot.slane %v3682_v11, 2  ;;  %v3702_v61 = vrot.slane %v3701_v52, 4 }
 0x752   :  { %v3597_v33 = vpop.xlane.xlu0 %3596  ;;  %v3624_v31 = vpop.xlane.xlu1 %3623 }
 0x753   :  { %v3693_v5 = vadd.f32 %v3692_v30, %v3691_v21  ;;  %v3684_v41 = vadd.f32 %v3683_v3, %v3682_v11  ;;  %v3703_v57 = vadd.f32 %v3702_v61, %v3701_v52  ;;  %v3694_v34 = vadd.f32 %v3597_v33, %v3594_v47 }
 0x755   :  { %v3685_v51 = vrot.slane %v3684_v41, 1  ;;  %v3704_v9 = vrot.slane %v3703_v57, 2  ;;  %v3695_v44 = vrot.slane %v3694_v34, 4  ;;  %v3769_v48 = vmul.f32 0.00390625, %v3693_v5 }
 0x756   :  { %v3615_v63 = vpop.xlane.xlu0 %3614  ;;  %v3630_v24 = vpop.xlane.xlu1 %3629 }
 0x757   :  { %v3686_v45 = vadd.f32 %v3685_v51, %v3684_v41  ;;  %v3705_v39 = vadd.f32 %v3704_v9, %v3703_v57  ;;  %v3696_v59 = vadd.f32 %v3695_v44, %v3694_v34  ;;  %v3715_v54 = vadd.f32 %v3615_v63, %v3612_v8 }
 0x758   :  { %v11190_v42 = vsub.f32 %v11035_v26, %v3769_v48  ;;  %v11193_v62 = vsub.f32 %v11022_v10, %v3769_v48 }
 0x759   :  { %v3706_v19 = vrot.slane %v3705_v39, 1  ;;  %v3697_v46 = vrot.slane %v3696_v59, 2  ;;  %v3716_v28 = vrot.slane %v3715_v54, 4  ;;  %v3768_v47 = vmul.f32 0.00390625, %v3686_v45 }
 0x75a   :  { %v3621_v60 = vpop.xlane.xlu0 %3620  ;;  %v3823_v43 = vmul.f32 %v11190_v42, %v11190_v42  ;;  %v3822_v21 = vmul.f32 %v11193_v62, %v11193_v62  ;;  %v3636_v63 = vpop.xlane.xlu1 %3635 }
 0x75b   :  { %v3707_v11 = vadd.f32 %v3706_v19, %v3705_v39  ;;  %v3698_v8 = vadd.f32 %v3697_v46, %v3696_v59  ;;  %v3717_v52 = vadd.f32 %v3716_v28, %v3715_v54  ;;  %v3722_v26 = vadd.f32 %v3621_v60, %v3618_v0 }
 0x75c   :  { %v3877_v30 = vsel %vm395_vm2, %v3823_v43, 0.0  ;;  %v3874_v10 = vsel %vm395_vm2, %v3822_v21, 0.0  ;;  %v11202_v3 = vsub.f32 %v11043_v55, %v3768_v47  ;;  %v11205_v61 = vsub.f32 %v11025_v40, %v3768_v47 }
 0x75d   :  { %v3699_v33 = vrot.slane %v3698_v8, 1  ;;  %v3718_v5 = vrot.slane %v3717_v52, 2  ;;  %v3723_v41 = vrot.slane %v3722_v26, 4  ;;  %3878 = vadd.xlane.f32.xlu0 %v3877_v30  ;;  %3875 = vadd.xlane.f32.xlu1 %v3874_v10  ;;  %v3771_v57 = vmul.f32 0.00390625, %v3707_v11 }
 0x75e   :  { %v3627_v34 = vpop.xlane.xlu0 %3626  ;;  %v3821_v0 = vmul.f32 %v11202_v3, %v11202_v3  ;;  %v3820_v51 = vmul.f32 %v11205_v61, %v11205_v61 }
 0x75f   :  { %v3700_v9 = vadd.f32 %v3699_v33, %v3698_v8  ;;  %v3719_v44 = vadd.f32 %v3718_v5, %v3717_v52  ;;  %v3724_v55 = vadd.f32 %v3723_v41, %v3722_v26  ;;  %v3729_v48 = vadd.f32 %v3627_v34, %v3624_v31  ;;  %v3642_v41 = vpop.xlane.xlu1 %3641 }
 0x760   :  { %v3871_v40 = vsel %vm395_vm2, %v3821_v0, 0.0  ;;  %v3868_v45 = vsel %vm395_vm2, %v3820_v51, 0.0  ;;  %v11214_v39 = vsub.f32 %v11053_v13, %v3771_v57  ;;  %v11217_v59 = vsub.f32 %v11030_v35, %v3771_v57 }
 0x761   :  { %v3720_v54 = vrot.slane %v3719_v44, 1  ;;  %v3725_v19 = vrot.slane %v3724_v55, 2  ;;  %v3730_v46 = vrot.slane %v3729_v48, 4  ;;  %3872 = vadd.xlane.f32.xlu0 %v3871_v40  ;;  %3869 = vadd.xlane.f32.xlu1 %v3868_v45  ;;  %v3770_v28 = vmul.f32 0.00390625, %v3700_v9 }
 0x762   :  { %v3633_v47 = vpop.xlane.xlu0 %3632  ;;  %v3827_v31 = vmul.f32 %v11214_v39, %v11214_v39  ;;  %v3826_v60 = vmul.f32 %v11217_v59, %v11217_v59 }
 0x763   :  { %v3721_v43 = vadd.f32 %v3720_v54, %v3719_v44  ;;  %v3726_v21 = vadd.f32 %v3725_v19, %v3724_v55  ;;  %v3731_v13 = vadd.f32 %v3730_v46, %v3729_v48  ;;  %v3736_v11 = vadd.f32 %v3633_v47, %v3630_v24 }
 0x764   :  { %v3889_v35 = vsel %vm395_vm2, %v3827_v31, 0.0  ;;  %v3886_v8 = vsel %vm395_vm2, %v3826_v60, 0.0  ;;  %v11226_v52 = vsub.f32 %v11063_v58, %v3770_v28  ;;  %v11229_v26 = vsub.f32 %v11038_v37, %v3770_v28 }
 0x765   :  { %v3727_v30 = vrot.slane %v3726_v21, 1  ;;  %v3732_v10 = vrot.slane %v3731_v13, 2  ;;  %v3737_v33 = vrot.slane %v3736_v11, 4  ;;  %3890 = vadd.xlane.f32.xlu0 %v3889_v35  ;;  %3887 = vadd.xlane.f32.xlu1 %v3886_v8  ;;  %v3773_v5 = vmul.f32 0.00390625, %v3721_v43  ;;  %v3648_v43 = vpop.xlane.xlu1 %3647 }
 0x766   :  { %v3639_v57 = vpop.xlane.xlu0 %3638  ;;  %v3825_v24 = vmul.f32 %v11226_v52, %v11226_v52  ;;  %v3824_v34 = vmul.f32 %v11229_v26, %v11229_v26 }
 0x767   :  { %v3728_v0 = vadd.f32 %v3727_v30, %v3726_v21  ;;  %v3733_v58 = vadd.f32 %v3732_v10, %v3731_v13  ;;  %v3738_v51 = vadd.f32 %v3737_v33, %v3736_v11  ;;  %v3743_v9 = vadd.f32 %v3639_v57, %v3636_v63 }
 0x768   :  { %v3883_v37 = vsel %vm395_vm2, %v3825_v24, 0.0  ;;  %v3880_v44 = vsel %vm395_vm2, %v3824_v34, 0.0  ;;  %v11238_v55 = vsub.f32 %v11073_v56, %v3773_v5  ;;  %v11241_v48 = vsub.f32 %v11046_v15, %v3773_v5 }
 0x769   :  { %v3734_v40 = vrot.slane %v3733_v58, 1  ;;  %v3739_v45 = vrot.slane %v3738_v51, 2  ;;  %v3744_v54 = vrot.slane %v3743_v9, 4  ;;  %3884 = vadd.xlane.f32.xlu0 %v3883_v37  ;;  %3881 = vadd.xlane.f32.xlu1 %v3880_v44  ;;  %v3774_v19 = vmul.f32 0.00390625, %v3728_v0 }
 0x76a   :  { %v3645_v46 = vpop.xlane.xlu0 %3644  ;;  %v3831_v63 = vmul.f32 %v11238_v55, %v11238_v55  ;;  %v3830_v28 = vmul.f32 %v11241_v48, %v11241_v48 }
 0x76b   :  { %v3735_v47 = vadd.f32 %v3734_v40, %v3733_v58  ;;  %v3740_v31 = vadd.f32 %v3739_v45, %v3738_v51  ;;  %v3745_v56 = vadd.f32 %v3744_v54, %v3743_v9  ;;  %v3750_v60 = vadd.f32 %v3645_v46, %v3642_v41  ;;  %v3558_v45 = vpop.xlane.xlu1 %3557 }
 0x76c   :  { %v3901_v15 = vsel %vm395_vm2, %v3831_v63, 0.0  ;;  %v3898_v21 = vsel %vm395_vm2, %v3830_v28, 0.0  ;;  %v11250_v13 = vsub.f32 %v11083_v14, %v3774_v19  ;;  %v11253_v11 = vsub.f32 %v11056_v27, %v3774_v19 }
 0x76d   :  { %v3741_v35 = vrot.slane %v3740_v31, 1  ;;  %v3746_v8 = vrot.slane %v3745_v56, 2  ;;  %v3751_v30 = vrot.slane %v3750_v60, 4  ;;  %3902 = vadd.xlane.f32.xlu0 %v3901_v15  ;;  %3899 = vadd.xlane.f32.xlu1 %v3898_v21  ;;  %v3775_v10 = vmul.f32 0.00390625, %v3735_v47 }
 0x76e   :  { %v3651_v33 = vpop.xlane.xlu0 %3650  ;;  %v3833_v5 = vmul.f32 %v11250_v13, %v11250_v13  ;;  %v3832_v41 = vmul.f32 %v11253_v11, %v11253_v11 }
 0x76f   :  { %v3742_v57 = vadd.f32 %v3741_v35, %v3740_v31  ;;  %v3747_v24 = vadd.f32 %v3746_v8, %v3745_v56  ;;  %v3752_v14 = vadd.f32 %v3751_v30, %v3750_v60  ;;  %v3757_v34 = vadd.f32 %v3651_v33, %v3648_v43 }
 0x770   :  { %v3907_v27 = vsel %vm395_vm2, %v3833_v5, 0.0  ;;  %v3904_v0 = vsel %vm395_vm2, %v3832_v41, 0.0  ;;  %v11262_v58 = vsub.f32 %v11093_v22, %v3775_v10  ;;  %v11265_v51 = vsub.f32 %v11066_v16, %v3775_v10 }
 0x771   :  { %v3748_v9 = vrot.slane %v3747_v24, 1  ;;  %v3753_v37 = vrot.slane %v3752_v14, 2  ;;  %v3758_v44 = vrot.slane %v3757_v34, 4  ;;  %3908 = vadd.xlane.f32.xlu0 %v3907_v27  ;;  %3905 = vadd.xlane.f32.xlu1 %v3904_v0  ;;  %v3776_v40 = vmul.f32 0.00390625, %v3742_v57 }
 0x772   :  { %v3561_v54 = vpop.xlane.xlu0 %3560  ;;  %v3835_v19 = vmul.f32 %v11262_v58, %v11262_v58  ;;  %v3834_v46 = vmul.f32 %v11265_v51, %v11265_v51 }
 0x773   :  { %v3749_v63 = vadd.f32 %v3748_v9, %v3747_v24  ;;  %v3754_v22 = vadd.f32 %v3753_v37, %v3752_v14  ;;  %v3759_v28 = vadd.f32 %v3758_v44, %v3757_v34  ;;  %v3652_v47 = vadd.f32 %v3561_v54, %v3558_v45 }
 0x774   :  { %v3913_v16 = vsel %vm395_vm2, %v3835_v19, 0.0  ;;  %v3910_v31 = vsel %vm395_vm2, %v3834_v46, 0.0  ;;  %v11274_v56 = vsub.f32 %v11103_v23, %v3776_v40  ;;  %v11277_v60 = vsub.f32 %v11076_v29, %v3776_v40 }
 0x775   :  { %v3755_v43 = vrot.slane %v3754_v22, 1  ;;  %v3760_v15 = vrot.slane %v3759_v28, 2  ;;  %v3653_v21 = vrot.slane %v3652_v47, 4  ;;  %3914 = vadd.xlane.f32.xlu0 %v3913_v16  ;;  %3911 = vadd.xlane.f32.xlu1 %v3910_v31  ;;  %v3777_v35 = vmul.f32 0.00390625, %v3749_v63 }
 0x776   :  { %v3837_v8 = vmul.f32 %v11274_v56, %v11274_v56  ;;  %v3836_v30 = vmul.f32 %v11277_v60, %v11277_v60 }
 0x777   :  { %v3756_v10 = vadd.f32 %v3755_v43, %v3754_v22  ;;  %v3761_v33 = vadd.f32 %v3760_v15, %v3759_v28  ;;  %v3654_v5 = vadd.f32 %v3653_v21, %v3652_v47  ;;  %v11284_v23 = vsub.f32 %v11117_v7, %v3777_v35 }
 0x778   :  { %v3919_v29 = vsel %vm395_vm2, %v3837_v8, 0.0  ;;  %v3916_v41 = vsel %vm395_vm2, %v3836_v30, 0.0  ;;  %v11289_v57 = vsub.f32 %v11086_v49, %v3777_v35 }
 0x779   :  { %v3762_v24 = vrot.slane %v3761_v33, 1  ;;  %v3655_v14 = vrot.slane %v3654_v5, 2  ;;  %3920 = vadd.xlane.f32.xlu0 %v3919_v29  ;;  %3917 = vadd.xlane.f32.xlu1 %v3916_v41  ;;  %v3839_v34 = vmul.f32 %v11284_v23, %v11284_v23  ;;  %v3778_v27 = vmul.f32 0.00390625, %v3756_v10 }
 0x77a   :  { %v3838_v0 = vmul.f32 %v11289_v57, %v11289_v57 }
 0x77b   :  { %v3763_v7 = vadd.f32 %v3762_v24, %v3761_v33  ;;  %v3656_v9 = vadd.f32 %v3655_v14, %v3654_v5  ;;  %v3925_v37 = vsel %vm395_vm2, %v3839_v34, 0.0  ;;  %v11297_v44 = vsub.f32 %v11124_v50, %v3778_v27 }
 0x77c   :  { %v3922_v49 = vsel %vm395_vm2, %v3838_v0, 0.0  ;;  %v11301_v40 = vsub.f32 %v11096_v4, %v3778_v27 }
 0x77d   :  { %v3657_v45 = vrot.slane %v3656_v9, 1  ;;  %3926 = vadd.xlane.f32.xlu0 %v3925_v37  ;;  %3923 = vadd.xlane.f32.xlu1 %v3922_v49  ;;  %v3841_v54 = vmul.f32 %v11297_v44, %v11297_v44  ;;  %v3779_v19 = vmul.f32 0.00390625, %v3763_v7 }
 0x77e   :  { %v3840_v46 = vmul.f32 %v11301_v40, %v11301_v40 }
 0x77f   :  { %v3658_v63 = vadd.f32 %v3657_v45, %v3656_v9  ;;  %v3931_v22 = vsel %vm395_vm2, %v3841_v54, 0.0  ;;  %v11309_v50 = vsub.f32 %v11131_v53, %v3779_v19  ;;  %v11312_v28 = vsub.f32 %v11106_v12, %v3779_v19 }
 0x780   :  { %v3928_v4 = vsel %vm395_vm2, %v3840_v46, 0.0 }
 0x781   :  { %3932 = vadd.xlane.f32.xlu0 %v3931_v22  ;;  %3929 = vadd.xlane.f32.xlu1 %v3928_v4  ;;  %v3843_v47 = vmul.f32 %v11309_v50, %v11309_v50  ;;  %v3842_v16 = vmul.f32 %v11312_v28, %v11312_v28  ;;  %v3764_v31 = vmul.f32 0.00390625, %v3658_v63 }
 0x783   :  { %v3937_v43 = vsel %vm395_vm2, %v3843_v47, 0.0  ;;  %v3934_v15 = vsel %vm395_vm2, %v3842_v16, 0.0  ;;  %v11322_v53 = vsub.f32 %v11137_v17, %v3764_v31  ;;  %v11325_v12 = vsub.f32 %v11114_v1, %v3764_v31 }
 0x785   :  { %3938 = vadd.xlane.f32.xlu0 %v3937_v43  ;;  %3935 = vadd.xlane.f32.xlu1 %v3934_v15  ;;  %v3813_v21 = vmul.f32 %v11322_v53, %v11322_v53  ;;  %v3812_v35 = vmul.f32 %v11325_v12, %v11325_v12 }
 0x787   :  { %v3847_v8 = vsel %vm395_vm2, %v3813_v21, 0.0  ;;  %v3844_v30 = vsel %vm395_vm2, %v3812_v35, 0.0 }
 0x789   :  { %3848 = vadd.xlane.f32.xlu0 %v3847_v8  ;;  %3845 = vadd.xlane.f32.xlu1 %v3844_v30 }
 0x79a   :  { %v3606_v10 = vpop.xlane.xlu1 %3605 }
 0x7a1   :  { %v3852_v1 = vpop.xlane.xlu1 %3851 }
 0x7a6   :  { %v3609_v17 = vpop.xlane.xlu0 %3608 }
 0x7a7   :  { %v3708_v33 = vadd.f32 %v3609_v17, %v3606_v10 }
 0x7a9   :  { %v3709_v5 = vrot.slane %v3708_v33, 4 }
 0x7aa   :  { %v3855_v29 = vpop.xlane.xlu0 %3854 }
 0x7ab   :  { %v3710_v41 = vadd.f32 %v3709_v5, %v3708_v33  ;;  %v3947_v24 = vadd.f32 %v3855_v29, %v3852_v1 }
 0x7ad   :  { %v3711_v14 = vrot.slane %v3710_v41, 2  ;;  %v3948_v34 = vrot.slane %v3947_v24, 4 }
 0x7af   :  { %v3712_v27 = vadd.f32 %v3711_v14, %v3710_v41  ;;  %v3949_v0 = vadd.f32 %v3948_v34, %v3947_v24 }
 0x7b1   :  { %v3713_v7 = vrot.slane %v3712_v27, 1  ;;  %v3950_v9 = vrot.slane %v3949_v0, 2 }
 0x7b3   :  { %v3714_v37 = vadd.f32 %v3713_v7, %v3712_v27  ;;  %v3951_v49 = vadd.f32 %v3950_v9, %v3949_v0 }
 0x7b4   :  { %v3858_v45 = vpop.xlane.xlu1 %3857  ;;  %v3861_v54 = vpop.xlane.xlu0 %3860 }
 0x7b5   :  { %v3952_v19 = vrot.slane %v3951_v49, 1  ;;  %v3954_v46 = vadd.f32 %v3861_v54, %v3858_v45  ;;  %v3772_v63 = vmul.f32 0.00390625, %v3714_v37  ;;  %v11353_v45 = vld [vmem:[%s12646_s2 + $0x28] sm:$0xff] }
 0x7b7   :  { %v3953_v22 = vadd.f32 %v3952_v19, %v3951_v49  ;;  %v3955_v4 = vrot.slane %v3954_v46, 4  ;;  %v11334_v47 = vsub.f32 %v11158_v2, %v3772_v63  ;;  %v11337_v16 = vsub.f32 %v11144_v38, %v3772_v63  ;;  %v11348_v49 = vld [vmem:[%s12646_s2 + $0x20] sm:$0xff]  ;;  %v11360_v63 = vld [vmem:[%s12646_s2 + $0x30] sm:$0xff] }
 0x7b8   :  { %v3864_v31 = vpop.xlane.xlu1 %3863  ;;  %v3867_v43 = vpop.xlane.xlu0 %3866 }
 0x7b9   :  { %v4053_v15 = vmul.f32 0.00390625, %v3953_v22  ;;  %v3956_v21 = vadd.f32 %v3955_v4, %v3954_v46  ;;  %v3961_v35 = vadd.f32 %v3867_v43, %v3864_v31  ;;  %v3829_v8 = vmul.f32 %v11334_v47, %v11334_v47  ;;  %v11365_v22 = vld [vmem:[%s12646_s2 + $0x38] sm:$0xff] }
 0x7ba   :  { %v3828_v30 = vmul.f32 %v11337_v16, %v11337_v16 }
 0x7bb   :  { %v4069_v10 = vadd.f32 1e-05, %v4053_v15  ;;  %v3957_v17 = vrot.slane %v3956_v21, 2  ;;  %v3962_v33 = vrot.slane %v3961_v35, 4  ;;  %v3895_v2 = vsel %vm395_vm2, %v3829_v8, 0.0 }
 0x7bc   :  { %3896 = vadd.xlane.f32.xlu0 %v3895_v2  ;;  %v3892_v38 = vsel %vm395_vm2, %v3828_v30, 0.0 }
 0x7bd   :  { %9113 = vrsqrt.f32 %v4069_v10  ;;  %v3958_v5 = vadd.f32 %v3957_v17, %v3956_v21  ;;  %v3963_v1 = vadd.f32 %v3962_v33, %v3961_v35  ;;  %3893 = vadd.xlane.f32.xlu1 %v3892_v38 }
 0x7bf   :  { %v3959_v29 = vrot.slane %v3958_v5, 1  ;;  %v3964_v41 = vrot.slane %v3963_v1, 2 }
 0x7c1   :  { %v3960_v24 = vadd.f32 %v3959_v29, %v3958_v5  ;;  %v3965_v14 = vadd.f32 %v3964_v41, %v3963_v1  ;;  %v8811_v1 = vld [vmem:[%s12645_s1 + $0x38] sm:$0xff]   ;;  %v8812_v41 = vld [vmem:[%s12645_s1 + $0x40] sm:$0xff]  }
 0x7c2   :  { %7990 = vmatprep.subr.bf16.mxu0 %v8811_v1 }
 0x7c3   :  { %v4054_v34 = vmul.f32 0.00390625, %v3960_v24  ;;  %v3966_v27 = vrot.slane %v3965_v14, 1  ;;  %7991 = vmatpush3.bf16.msra.mxu0 %v8811_v1  ;;  %v8813_v24 = vld [vmem:[%s12645_s1 + $0x48] sm:$0xff]  }
 0x7c4   :  { %7992 = vmatprep.subr.bf16.mxu0 %v8812_v41 }
 0x7c5   :  { %v4070_v0 = vadd.f32 1e-05, %v4054_v34  ;;  %v3967_v7 = vadd.f32 %v3966_v27, %v3965_v14  ;;  %v12686_v14 = vmov 0.0  }
 0x7c7   :  { %v9114_v9 = vpop.eup %9113  ;;  %9115 = vrsqrt.f32 %v4070_v0  ;;  %v4055_v37 = vmul.f32 0.00390625, %v3967_v7  ;;  %7993 = vmatpush3.bf16.msra.mxu0 %v8812_v41 }
 0x7c8   :  { %v4102_v54 = vmul.f32 %v9114_v9, %v11149_v20  ;;  %v4103_v19 = vmul.f32 %v9114_v9, %v11155_v36  ;;  %7994 = vmatprep.subr.bf16.mxu0 %v8813_v24 }
 0x7c9   :  { %v4071_v46 = vadd.f32 1e-05, %v4055_v37 }
 0x7ca   :  { %v4134_v4 = vmul.f32 %v4102_v54, %v11348_v49  ;;  %v4135_v31 = vmul.f32 %v4103_v19, %v11353_v45 }
 0x7cb   :  { %9117 = vrsqrt.f32 %v4071_v46  ;;  %7995 = vmatpush3.bf16.msra.mxu0 %v8813_v24 }
 0x7cc   :  { %v11370_v20 = vadd.f32 %v4134_v4, %v11360_v63  ;;  %v11373_v36 = vadd.f32 %v4135_v31, %v11365_v22  ;;  %8046 = vmatprep.subr.bf16.mxu0 %v12686_v14 }
 0x7ce   :  { %v8575_v43 = vpack.i.bf16 %v11373_v36, %v11370_v20 }
 0x7d0   :  { %8576 = vrot.lane.b32.xlu1 %v8575_v43, %s9367_s25 }
 0x7d1   :  { %v9116_v15 = vpop.eup %9115 }
 0x7d2   :  { %v4104_v21 = vmul.f32 %v9116_v15, %v11166_v32  ;;  %v4105_v35 = vmul.f32 %v9116_v15, %v11169_v6 }
 0x7d4   :  { %v4136_v8 = vmul.f32 %v4104_v21, %v11348_v49  ;;  %v4137_v30 = vmul.f32 %v4105_v35, %v11353_v45 }
 0x7d5   :  { %v9118_v10 = vpop.eup %9117 }
 0x7d6   :  { %v11383_v17 = vadd.f32 %v4136_v8, %v11360_v63  ;;  %v11386_v33 = vadd.f32 %v4137_v30, %v11365_v22  ;;  %v4106_v2 = vmul.f32 %v9118_v10, %v11172_v25  ;;  %v4107_v38 = vmul.f32 %v9118_v10, %v11175_v18 }
 0x7d8   :  { %v8585_v32 = vpack.i.bf16 %v11386_v33, %v11383_v17  ;;  %v4138_v6 = vmul.f32 %v4106_v2, %v11348_v49  ;;  %v4139_v5 = vmul.f32 %v4107_v38, %v11353_v45 }
 0x7da   :  { %8586 = vrot.lane.b32.xlu1 %v8585_v32, %s9371_s14  ;;  %8581 = vrot.lane.b32.xlu0 %v8585_v32, %s9367_s25  ;;  %v11400_v25 = vadd.f32 %v4138_v6, %v11360_v63  ;;  %v11403_v18 = vadd.f32 %v4139_v5, %v11365_v22 }
 0x7dc   :  { %v8595_v29 = vpack.i.bf16 %v11403_v18, %v11400_v25 }
 0x7de   :  { %8596 = vrot.lane.b32.xlu0 %v8595_v29, %s9367_s25  ;;  %8591 = vrot.lane.b32.xlu1 %v8595_v29, %s9371_s14 }
 0x7ea   :  { %v3876_v34 = vpop.xlane.xlu1 %3875  ;;  %v3879_v27 = vpop.xlane.xlu0 %3878 }
 0x7eb   :  { %v3975_v0 = vadd.f32 %v3879_v27, %v3876_v34 }
 0x7ed   :  { %v3976_v7 = vrot.slane %v3975_v0, 4 }
 0x7ee   :  { %v3870_v9 = vpop.xlane.xlu1 %3869  ;;  %v3873_v37 = vpop.xlane.xlu0 %3872 }
 0x7ef   :  { %v3977_v54 = vadd.f32 %v3976_v7, %v3975_v0  ;;  %v3968_v19 = vadd.f32 %v3873_v37, %v3870_v9 }
 0x7f1   :  { %v3978_v46 = vrot.slane %v3977_v54, 2  ;;  %v3969_v4 = vrot.slane %v3968_v19, 4 }
 0x7f2   :  { %v3888_v31 = vpop.xlane.xlu1 %3887  ;;  %v3891_v43 = vpop.xlane.xlu0 %3890 }
 0x7f3   :  { %v3979_v15 = vadd.f32 %v3978_v46, %v3977_v54  ;;  %v3970_v21 = vadd.f32 %v3969_v4, %v3968_v19  ;;  %v3989_v35 = vadd.f32 %v3891_v43, %v3888_v31 }
 0x7f5   :  { %v3980_v8 = vrot.slane %v3979_v15, 1  ;;  %v3971_v30 = vrot.slane %v3970_v21, 2  ;;  %v3990_v10 = vrot.slane %v3989_v35, 4 }
 0x7f6   :  { %v3882_v2 = vpop.xlane.xlu1 %3881  ;;  %v3885_v38 = vpop.xlane.xlu0 %3884 }
 0x7f7   :  { %v3981_v32 = vadd.f32 %v3980_v8, %v3979_v15  ;;  %v3972_v6 = vadd.f32 %v3971_v30, %v3970_v21  ;;  %v3991_v5 = vadd.f32 %v3990_v10, %v3989_v35  ;;  %v3982_v1 = vadd.f32 %v3885_v38, %v3882_v2 }
 0x7f9   :  { %v4057_v29 = vmul.f32 0.00390625, %v3981_v32  ;;  %v3973_v41 = vrot.slane %v3972_v6, 1  ;;  %v3992_v24 = vrot.slane %v3991_v5, 2  ;;  %v3983_v34 = vrot.slane %v3982_v1, 4 }
 0x7fa   :  { %v3900_v27 = vpop.xlane.xlu1 %3899  ;;  %v3903_v0 = vpop.xlane.xlu0 %3902 }
 0x7fb   :  { %v4073_v7 = vadd.f32 1e-05, %v4057_v29  ;;  %v3974_v9 = vadd.f32 %v3973_v41, %v3972_v6  ;;  %v3993_v37 = vadd.f32 %v3992_v24, %v3991_v5  ;;  %v3984_v54 = vadd.f32 %v3983_v34, %v3982_v1 }
 0x7fc   :  { %v4003_v19 = vadd.f32 %v3903_v0, %v3900_v27 }
 0x7fd   :  { %9119 = vrsqrt.f32 %v4073_v7  ;;  %v4056_v46 = vmul.f32 0.00390625, %v3974_v9  ;;  %v3994_v4 = vrot.slane %v3993_v37, 1  ;;  %v3985_v31 = vrot.slane %v3984_v54, 2 }
 0x7fe   :  { %v4004_v43 = vrot.slane %v4003_v19, 4  ;;  %v3906_v15 = vpop.xlane.xlu1 %3905  ;;  %v3909_v21 = vpop.xlane.xlu0 %3908 }
 0x7ff   :  { %v4072_v35 = vadd.f32 1e-05, %v4056_v46  ;;  %v3995_v8 = vadd.f32 %v3994_v4, %v3993_v37  ;;  %v3986_v30 = vadd.f32 %v3985_v31, %v3984_v54  ;;  %v4010_v10 = vadd.f32 %v3909_v21, %v3906_v15 }
 0x800   :  { %v4005_v2 = vadd.f32 %v4004_v43, %v4003_v19 }
 0x801   :  { %9121 = vrsqrt.f32 %v4072_v35  ;;  %v4059_v38 = vmul.f32 0.00390625, %v3995_v8  ;;  %v3987_v32 = vrot.slane %v3986_v30, 1  ;;  %v4011_v29 = vrot.slane %v4010_v10, 4 }
 0x802   :  { %v4006_v6 = vrot.slane %v4005_v2, 2  ;;  %v3912_v5 = vpop.xlane.xlu1 %3911  ;;  %v3915_v1 = vpop.xlane.xlu0 %3914 }
 0x803   :  { %v3988_v41 = vadd.f32 %v3987_v32, %v3986_v30  ;;  %v4012_v24 = vadd.f32 %v4011_v29, %v4010_v10  ;;  %v4017_v34 = vadd.f32 %v3915_v1, %v3912_v5  ;;  %v4075_v27 = vadd.f32 1e-05, %v4059_v38 }
 0x804   :  { %v4007_v0 = vadd.f32 %v4006_v6, %v4005_v2 }
 0x805   :  { %v4058_v7 = vmul.f32 0.00390625, %v3988_v41  ;;  %v4013_v9 = vrot.slane %v4012_v24, 2  ;;  %v4018_v14 = vrot.slane %v4017_v34, 4  ;;  %9123 = vrsqrt.f32 %v4075_v27 }
 0x806   :  { %v4008_v46 = vrot.slane %v4007_v0, 1  ;;  %v3918_v37 = vpop.xlane.xlu1 %3917  ;;  %v3921_v54 = vpop.xlane.xlu0 %3920 }
 0x807   :  { %v9120_v4 = vpop.eup %9119  ;;  %v4074_v19 = vadd.f32 1e-05, %v4058_v7  ;;  %v4014_v31 = vadd.f32 %v4013_v9, %v4012_v24  ;;  %v4019_v43 = vadd.f32 %v4018_v14, %v4017_v34  ;;  %v4024_v15 = vadd.f32 %v3921_v54, %v3918_v37 }
 0x808   :  { %v4009_v21 = vadd.f32 %v4008_v46, %v4007_v0  ;;  %v4110_v35 = vmul.f32 %v9120_v4, %v11193_v62  ;;  %v4111_v8 = vmul.f32 %v9120_v4, %v11190_v42 }
 0x809   :  { %9125 = vrsqrt.f32 %v4074_v19  ;;  %v4015_v30 = vrot.slane %v4014_v31, 1  ;;  %v4020_v10 = vrot.slane %v4019_v43, 2  ;;  %v4025_v2 = vrot.slane %v4024_v15, 4 }
 0x80a   :  { %v4061_v38 = vmul.f32 0.00390625, %v4009_v21  ;;  %v3924_v32 = vpop.xlane.xlu1 %3923  ;;  %v3927_v29 = vpop.xlane.xlu0 %3926  ;;  %v4142_v6 = vmul.f32 %v4110_v35, %v11348_v49  ;;  %v4143_v5 = vmul.f32 %v4111_v8, %v11353_v45 }
 0x80b   :  { %v9122_v1 = vpop.eup %9121  ;;  %v4016_v14 = vadd.f32 %v4015_v30, %v4014_v31  ;;  %v4021_v41 = vadd.f32 %v4020_v10, %v4019_v43  ;;  %v4026_v24 = vadd.f32 %v4025_v2, %v4024_v15  ;;  %v4031_v34 = vadd.f32 %v3927_v29, %v3924_v32 }
 0x80c   :  { %v4077_v27 = vadd.f32 1e-05, %v4061_v38  ;;  %v4108_v62 = vmul.f32 %v9122_v1, %v11205_v61  ;;  %v4109_v42 = vmul.f32 %v9122_v1, %v11202_v3  ;;  %v11423_v0 = vadd.f32 %v4142_v6, %v11360_v63 }
 0x80d   :  { %v4062_v7 = vmul.f32 0.00390625, %v4016_v14  ;;  %v4022_v9 = vrot.slane %v4021_v41, 1  ;;  %v4027_v46 = vrot.slane %v4026_v24, 2  ;;  %v4032_v37 = vrot.slane %v4031_v34, 4 }
 0x80e   :  { %9127 = vrsqrt.f32 %v4077_v27  ;;  %v3930_v54 = vpop.xlane.xlu1 %3929  ;;  %v3933_v4 = vpop.xlane.xlu0 %3932  ;;  %v4140_v19 = vmul.f32 %v4108_v62, %v11348_v49  ;;  %v4141_v31 = vmul.f32 %v4109_v42, %v11353_v45  ;;  %v11428_v43 = vadd.f32 %v4143_v5, %v11365_v22 }
 0x80f   :  { %v4078_v61 = vadd.f32 1e-05, %v4062_v7  ;;  %v4023_v15 = vadd.f32 %v4022_v9, %v4021_v41  ;;  %v4028_v3 = vadd.f32 %v4027_v46, %v4026_v24  ;;  %v4033_v21 = vadd.f32 %v4032_v37, %v4031_v34  ;;  %v9124_v29 = vpop.eup %9123 }
 0x810   :  { %v4038_v35 = vadd.f32 %v3933_v4, %v3930_v54  ;;  %v11431_v8 = vadd.f32 %v4140_v19, %v11360_v63  ;;  %v11434_v30 = vadd.f32 %v4141_v31, %v11365_v22  ;;  %v8615_v10 = vpack.i.bf16 %v11428_v43, %v11423_v0 }
 0x811   :  { %9129 = vrsqrt.f32 %v4078_v61  ;;  %v4063_v2 = vmul.f32 0.00390625, %v4023_v15  ;;  %v4029_v38 = vrot.slane %v4028_v3, 1  ;;  %v4034_v32 = vrot.slane %v4033_v21, 2 }
 0x812   :  { %v4039_v6 = vrot.slane %v4038_v35, 4  ;;  %v3936_v5 = vpop.xlane.xlu1 %3935  ;;  %v3939_v1 = vpop.xlane.xlu0 %3938  ;;  %v8610_v14 = vpack.i.bf16 %v11434_v30, %v11431_v8 }
 0x813   :  { %v9126_v41 = vpop.eup %9125  ;;  %v4079_v24 = vadd.f32 1e-05, %v4063_v2  ;;  %v4030_v34 = vadd.f32 %v4029_v38, %v4028_v3  ;;  %v4035_v27 = vadd.f32 %v4034_v32, %v4033_v21  ;;  %v4045_v62 = vadd.f32 %v3939_v1, %v3936_v5 }
 0x814   :  { %v4040_v42 = vadd.f32 %v4039_v6, %v4038_v35  ;;  %8611 = vrot.lane.b32.xlu0 %v8610_v14, %s9371_s14  ;;  %8601 = vrot.lane.b32.xlu1 %v8610_v14, %s9367_s25  ;;  %v4112_v7 = vmul.f32 %v9126_v41, %v11229_v26  ;;  %v4113_v9 = vmul.f32 %v9126_v41, %v11226_v52 }
 0x815   :  { %9131 = vrsqrt.f32 %v4079_v24  ;;  %v4064_v46 = vmul.f32 0.00390625, %v4030_v34  ;;  %v4036_v37 = vrot.slane %v4035_v27, 1  ;;  %v4046_v54 = vrot.slane %v4045_v62, 4 }
 0x816   :  { %v4041_v4 = vrot.slane %v4040_v42, 2  ;;  %v3846_v19 = vpop.xlane.xlu1 %3845  ;;  %v3849_v31 = vpop.xlane.xlu0 %3848  ;;  %v4144_v61 = vmul.f32 %v4112_v7, %v11348_v49  ;;  %v4145_v15 = vmul.f32 %v4113_v9, %v11353_v45  ;;  %v4114_v3 = vmul.f32 %v9124_v29, %v11217_v59 }
 0x817   :  { %v4080_v21 = vadd.f32 1e-05, %v4064_v46  ;;  %v4037_v35 = vadd.f32 %v4036_v37, %v4035_v27  ;;  %v4047_v2 = vadd.f32 %v4046_v54, %v4045_v62  ;;  %v3940_v38 = vadd.f32 %v3849_v31, %v3846_v19 }
 0x818   :  { %v9128_v26 = vpop.eup %9127  ;;  %v4042_v32 = vadd.f32 %v4041_v4, %v4040_v42  ;;  %8616 = vrot.lane.b32.xlu0 %v8615_v10, %s9367_s25  ;;  %8606 = vrot.lane.b32.xlu1 %v8615_v10, %s9371_s14  ;;  %v4176_v52 = vadd.f32 %v4144_v61, %v11360_v63  ;;  %v4177_v6 = vadd.f32 %v4145_v15, %v11365_v22 }
 0x819   :  { %9133 = vrsqrt.f32 %v4080_v21  ;;  %v4065_v5 = vmul.f32 0.00390625, %v4037_v35  ;;  %v4048_v1 = vrot.slane %v4047_v2, 2  ;;  %v4115_v59 = vmul.f32 %v9124_v29, %v11214_v39 }
 0x81a   :  { %v4043_v14 = vrot.slane %v4042_v32, 1  ;;  %v8630_v41 = vpack.i.bf16 %v4177_v6, %v4176_v52  ;;  %v3941_v62 = vrot.slane %v3940_v38, 4  ;;  %v4146_v42 = vmul.f32 %v4114_v3, %v11348_v49 }
 0x81b   :  { %v9130_v24 = vpop.eup %9129  ;;  %v4081_v34 = vadd.f32 1e-05, %v4065_v5  ;;  %v4049_v27 = vadd.f32 %v4048_v1, %v4047_v2  ;;  %v4147_v10 = vmul.f32 %v4115_v59, %v11353_v45  ;;  %v4118_v9 = vmul.f32 %v9128_v26, %v11241_v48 }
 0x81c   :  { %v4044_v7 = vadd.f32 %v4043_v14, %v4042_v32  ;;  %8631 = vrot.lane.b32.xlu0 %v8630_v41, %s9371_s14  ;;  %8621 = vrot.lane.b32.xlu1 %v8630_v41, %s9367_s25  ;;  %v4178_v37 = vadd.f32 %v4146_v42, %v11360_v63  ;;  %v4119_v54 = vmul.f32 %v9128_v26, %v11238_v55 }
 0x81d   :  { %9135 = vrsqrt.f32 %v4081_v34  ;;  %v4050_v46 = vrot.slane %v4049_v27, 1  ;;  %v4179_v29 = vadd.f32 %v4147_v10, %v11365_v22  ;;  %v4150_v4 = vmul.f32 %v4118_v9, %v11348_v49 }
 0x81e   :  { %v4066_v39 = vmul.f32 0.00390625, %v4044_v7  ;;  %v3942_v61 = vadd.f32 %v3941_v62, %v3940_v38  ;;  %v4120_v15 = vmul.f32 %v9130_v24, %v11253_v11  ;;  %v4121_v3 = vmul.f32 %v9130_v24, %v11250_v13 }
 0x81f   :  { %v9132_v19 = vpop.eup %9131  ;;  %v4051_v31 = vadd.f32 %v4050_v46, %v4049_v27  ;;  %v8625_v48 = vpack.i.bf16 %v4179_v29, %v4178_v37  ;;  %v4151_v35 = vmul.f32 %v4119_v54, %v11353_v45  ;;  %v11465_v2 = vadd.f32 %v4150_v4, %v11360_v63 }
 0x820   :  { %v4082_v21 = vadd.f32 1e-05, %v4066_v39  ;;  %v4152_v52 = vmul.f32 %v4120_v15, %v11348_v49  ;;  %v4153_v55 = vmul.f32 %v4121_v3, %v11353_v45  ;;  %v4122_v13 = vmul.f32 %v9132_v19, %v11265_v51 }
 0x821   :  { %v4067_v32 = vmul.f32 0.00390625, %v4051_v31  ;;  %8626 = vrot.lane.b32.xlu1 %v8625_v48, %s9371_s14  ;;  %v11471_v38 = vadd.f32 %v4151_v35, %v11365_v22  ;;  %v4123_v11 = vmul.f32 %v9132_v19, %v11262_v58  ;;  %v3943_v5 = vrot.slane %v3942_v61, 2 }
 0x822   :  { %9137 = vrsqrt.f32 %v4082_v21  ;;  %v11476_v1 = vadd.f32 %v4152_v52, %v11360_v63  ;;  %v11479_v14 = vadd.f32 %v4153_v55, %v11365_v22  ;;  %v4154_v59 = vmul.f32 %v4122_v13, %v11348_v49 }
 0x823   :  { %v9134_v26 = vpop.eup %9133  ;;  %v4083_v6 = vadd.f32 1e-05, %v4067_v32  ;;  %v8635_v41 = vpack.i.bf16 %v11471_v38, %v11465_v2  ;;  %v4155_v24 = vmul.f32 %v4123_v11, %v11353_v45 }
 0x824   :  { %v4124_v51 = vmul.f32 %v9134_v26, %v11277_v60  ;;  %v8650_v58 = vpack.i.bf16 %v11479_v14, %v11476_v1  ;;  %v11490_v34 = vadd.f32 %v4154_v59, %v11360_v63  ;;  %v4125_v62 = vmul.f32 %v9134_v26, %v11274_v56 }
 0x825   :  { %9139 = vrsqrt.f32 %v4083_v6  ;;  %8636 = vrot.lane.b32.xlu0 %v8635_v41, %s9367_s25  ;;  %v11493_v27 = vadd.f32 %v4155_v24, %v11365_v22  ;;  %v3944_v60 = vadd.f32 %v3943_v5, %v3942_v61 }
 0x826   :  { %v4156_v42 = vmul.f32 %v4124_v51, %v11348_v49  ;;  %8641 = vrot.lane.b32.xlu1 %v8650_v58, %s9367_s25  ;;  %v4157_v9 = vmul.f32 %v4125_v62, %v11353_v45 }
 0x827   :  { %v9136_v7 = vpop.eup %9135  ;;  %v8645_v10 = vpack.i.bf16 %v11493_v27, %v11490_v34  ;;  %v3945_v19 = vrot.slane %v3944_v60, 1 }
 0x828   :  { %v11502_v46 = vadd.f32 %v4156_v42, %v11360_v63  ;;  %v4126_v37 = vmul.f32 %v9136_v7, %v11289_v57  ;;  %v4127_v39 = vmul.f32 %v9136_v7, %v11284_v23  ;;  %v11508_v56 = vadd.f32 %v4157_v9, %v11365_v22 }
 0x829   :  { %8651 = vrot.lane.b32.xlu0 %v8650_v58, %s9371_s14  ;;  %v3946_v55 = vadd.f32 %v3945_v19, %v3944_v60 }
 0x82a   :  { %8646 = vrot.lane.b32.xlu1 %v8645_v10, %s9371_s14  ;;  %v4158_v29 = vmul.f32 %v4126_v37, %v11348_v49  ;;  %v4159_v54 = vmul.f32 %v4127_v39, %v11353_v45  ;;  %v8660_v31 = vpack.i.bf16 %v11508_v56, %v11502_v46 }
 0x82b   :  { %v4052_v5 = vmul.f32 0.00390625, %v3946_v55 }
 0x82c   :  { %v9138_v4 = vpop.eup %9137  ;;  %v11516_v57 = vadd.f32 %v4158_v29, %v11360_v63  ;;  %v11519_v23 = vadd.f32 %v4159_v54, %v11365_v22 }
 0x82d   :  { %v4128_v61 = vmul.f32 %v9138_v4, %v11301_v40  ;;  %v4129_v15 = vmul.f32 %v9138_v4, %v11297_v44  ;;  %8656 = vrot.lane.b32.xlu0 %v8645_v10, %s9367_s25  ;;  %v4068_v41 = vadd.f32 1e-05, %v4052_v5 }
 0x82e   :  { %8661 = vrot.lane.b32.xlu1 %v8660_v31, %s9367_s25  ;;  %v8665_v21 = vpack.i.bf16 %v11519_v23, %v11516_v57 }
 0x82f   :  { %v9140_v3 = vpop.eup %9139  ;;  %v4160_v48 = vmul.f32 %v4128_v61, %v11348_v49  ;;  %v4161_v35 = vmul.f32 %v4129_v15, %v11353_v45  ;;  %9141 = vrsqrt.f32 %v4068_v41 }
 0x830   :  { %v4130_v32 = vmul.f32 %v9140_v3, %v11312_v28  ;;  %v4131_v52 = vmul.f32 %v9140_v3, %v11309_v50 }
 0x831   :  { %v4192_v40 = vadd.f32 %v4160_v48, %v11360_v63  ;;  %v4193_v44 = vadd.f32 %v4161_v35, %v11365_v22  ;;  %8671 = vrot.lane.b32.xlu0 %v8660_v31, %s9371_s14 }
 0x832   :  { %v4162_v13 = vmul.f32 %v4130_v32, %v11348_v49  ;;  %v4163_v11 = vmul.f32 %v4131_v52, %v11353_v45  ;;  %8666 = vrot.lane.b32.xlu1 %v8665_v21, %s9371_s14 }
 0x833   :  { %v8680_v26 = vpack.i.bf16 %v4193_v44, %v4192_v40 }
 0x834   :  { %v4194_v6 = vadd.f32 %v4162_v13, %v11360_v63  ;;  %v4195_v28 = vadd.f32 %v4163_v11, %v11365_v22 }
 0x835   :  { %8676 = vrot.lane.b32.xlu0 %v8665_v21, %s9367_s25 }
 0x836   :  { %8681 = vrot.lane.b32.xlu1 %v8680_v26, %s9367_s25  ;;  %v8690_v50 = vpack.i.bf16 %v4195_v28, %v4194_v6 }
 0x839   :  { %8686 = vrot.lane.b32.xlu0 %v8680_v26, %s9371_s14  ;;  %v9142_v59 = vpop.eup %9141 }
 0x83a   :  { %8691 = vrot.lane.b32.xlu1 %v8690_v50, %s9371_s14  ;;  %v4100_v51 = vmul.f32 %v9142_v59, %v11325_v12  ;;  %v4101_v58 = vmul.f32 %v9142_v59, %v11322_v53 }
 0x83c   :  { %v4132_v7 = vmul.f32 %v4100_v51, %v11348_v49  ;;  %v4133_v60 = vmul.f32 %v4101_v58, %v11353_v45 }
 0x83e   :  { %v4164_v39 = vadd.f32 %v4132_v7, %v11360_v63  ;;  %v4165_v29 = vadd.f32 %v4133_v60, %v11365_v22 }
 0x849   :  { %v3897_v62 = vpop.xlane.xlu0 %3896 }
 0x84a   :  { %v3894_v24 = vpop.xlane.xlu1 %3893 }
 0x84b   :  { %v3996_v11 = vadd.f32 %v3897_v62, %v3894_v24 }
 0x84d   :  { %v8582_v37 = vpop.permute.xlu0 %8581  ;;  %v3997_v26 = vrot.slane %v3996_v11, 4 }
 0x84e   :  { %v8577_v42 = vpop.permute.xlu1 %8576  ;;  %v8584_v31 = vunpack.i.h.bf16 %v8582_v37  ;;  %v8583_v61 = vunpack.i.l.bf16 %v8582_v37 }
 0x84f   :  { %v8579_v10 = vunpack.i.h.bf16 %v8577_v42  ;;  %v8578_v9 = vunpack.i.l.bf16 %v8577_v42  ;;  %v3998_v6 = vadd.f32 %v3997_v26, %v3996_v11 }
 0x850   :  { %v4378_v52 = vsel %vm395_vm2, %v11373_v36, %v8584_v31  ;;  %v4377_v55 = vsel %vm395_vm2, %v11370_v20, %v8583_v61 }
 0x851   :  { %v4375_v12 = vsel %vm395_vm2, %v4164_v39, %v8578_v9  ;;  %v4376_v53 = vsel %vm395_vm2, %v4165_v29, %v8579_v10  ;;  %v3999_v28 = vrot.slane %v3998_v6, 2  ;;  %v8597_v59 = vpop.permute.xlu0 %8596 }
 0x852   :  { %v8587_v54 = vpop.permute.xlu1 %8586  ;;  %v8599_v20 = vunpack.i.h.bf16 %v8597_v59  ;;  %v8598_v58 = vunpack.i.l.bf16 %v8597_v59 }
 0x853   :  { %v8589_v4 = vunpack.i.h.bf16 %v8587_v54  ;;  %v8588_v19 = vunpack.i.l.bf16 %v8587_v54  ;;  %v4000_v5 = vadd.f32 %v3999_v28, %v3998_v6 }
 0x854   :  { %v4380_v9 = vsel %vm395_vm2, %v11386_v33, %v8599_v20  ;;  %v4379_v24 = vsel %vm395_vm2, %v11383_v17, %v8598_v58 }
 0x855   :  { %v4400_v15 = vsel %vm4399_vm5, %v4375_v12, %v8588_v19  ;;  %v4401_v3 = vsel %vm4399_vm5, %v4376_v53, %v8589_v4  ;;  %v4001_v50 = vrot.slane %v4000_v5, 1 }
 0x856   :  { %v8592_v21 = vpop.permute.xlu1 %8591  ;;  %v4424_v48 = vpack.c.bf16 %v4401_v3, %v4400_v15 }
 0x857   :  { %v8594_v35 = vunpack.i.h.bf16 %v8592_v21  ;;  %v8593_v32 = vunpack.i.l.bf16 %v8592_v21  ;;  %v4002_v41 = vadd.f32 %v4001_v50, %v4000_v5 }
 0x858   :  { %7996 = vmatprep.mubr.msk.bf16.mxu0 %vm4458_vm6, %v4424_v48 }
 0x859   :  { %v4402_v40 = vsel %vm4399_vm5, %v4377_v55, %v8593_v32  ;;  %v4403_v44 = vsel %vm4399_vm5, %v4378_v52, %v8594_v35  ;;  %v4060_v36 = vmul.f32 0.00390625, %v4002_v41 }
 0x85a   :  { %v4425_v13 = vpack.c.bf16 %v4403_v44, %v4402_v40 }
 0x85b   :  { %v4076_v51 = vadd.f32 1e-05, %v4060_v36 }
 0x85c   :  { %7997 = vmatmul.mubr.msk.bf16.vlgmr.msra.gmra.mrb[112].mxu0 %vm4458_vm6, %v4425_v13 }
 0x85d   :  { %9143 = vrsqrt.f32 %v4076_v51 }
 0x886   :  { %v8602_v42 = vpop.permute.xlu1 %8601  ;;  %v8612_v7 = vpop.permute.xlu0 %8611 }
 0x887   :  { %v8614_v60 = vunpack.i.h.bf16 %v8612_v7  ;;  %v8613_v10 = vunpack.i.l.bf16 %v8612_v7  ;;  %v8604_v62 = vunpack.i.h.bf16 %v8602_v42  ;;  %v8603_v37 = vunpack.i.l.bf16 %v8602_v42 }
 0x889   :  { %v4404_v39 = vsel %vm4399_vm5, %v4379_v24, %v8613_v10  ;;  %v4405_v29 = vsel %vm4399_vm5, %v4380_v9, %v8614_v60  ;;  %v4382_v31 = vsel %vm395_vm2, %v11403_v18, %v8604_v62  ;;  %v4381_v33 = vsel %vm395_vm2, %v11400_v25, %v8603_v37  ;;  %v9144_v25 = vpop.eup %9143 }
 0x88a   :  { %v8607_v54 = vpop.permute.xlu1 %8606  ;;  %v8617_v4 = vpop.permute.xlu0 %8616  ;;  %v4426_v19 = vpack.c.bf16 %v4405_v29, %v4404_v39  ;;  %v4116_v28 = vmul.f32 %v9144_v25, %v11337_v16  ;;  %v4117_v5 = vmul.f32 %v9144_v25, %v11334_v47 }
 0x88b   :  { %v8609_v12 = vunpack.i.h.bf16 %v8607_v54  ;;  %v8608_v53 = vunpack.i.l.bf16 %v8607_v54  ;;  %v8619_v61 = vunpack.i.h.bf16 %v8617_v4  ;;  %v8618_v15 = vunpack.i.l.bf16 %v8617_v4 }
 0x88c   :  { %8000 = vmatprep.mubr.msk.bf16.mxu0 %vm4458_vm6, %v4426_v19  ;;  %v4148_v51 = vmul.f32 %v4116_v28, %v11348_v49  ;;  %v4149_v16 = vmul.f32 %v4117_v5, %v11353_v45 }
 0x88d   :  { %v4406_v17 = vsel %vm4399_vm5, %v4381_v33, %v8608_v53  ;;  %v4407_v3 = vsel %vm4399_vm5, %v4382_v31, %v8609_v12  ;;  %v4384_v55 = vsel %vm395_vm2, %v11434_v30, %v8619_v61  ;;  %v4383_v18 = vsel %vm395_vm2, %v11431_v8, %v8618_v15 }
 0x88e   :  { %v8622_v21 = vpop.permute.xlu1 %8621  ;;  %v8632_v48 = vpop.permute.xlu0 %8631  ;;  %v4427_v35 = vpack.c.bf16 %v4407_v3, %v4406_v17  ;;  %v4180_v10 = vadd.f32 %v4148_v51, %v11360_v63 }
 0x88f   :  { %v8634_v32 = vunpack.i.h.bf16 %v8632_v48  ;;  %v8633_v52 = vunpack.i.l.bf16 %v8632_v48  ;;  %v8624_v13 = vunpack.i.h.bf16 %v8622_v21  ;;  %v8623_v11 = vunpack.i.l.bf16 %v8622_v21 }
 0x890   :  { %8001 = vmatmul.mubr.msk.bf16.gmra.mrb[116].mxu0 %vm4458_vm6, %v4427_v35 }
 0x891   :  { %v4408_v40 = vsel %vm4399_vm5, %v4383_v18, %v8633_v52  ;;  %v4409_v44 = vsel %vm4399_vm5, %v4384_v55, %v8634_v32  ;;  %v4386_v8 = vsel %vm395_vm2, %v11428_v43, %v8624_v13  ;;  %v4385_v41 = vsel %vm395_vm2, %v11423_v0, %v8623_v11 }
 0x892   :  { %v4428_v26 = vpack.c.bf16 %v4409_v44, %v4408_v40  ;;  %v4181_v0 = vadd.f32 %v4149_v16, %v11365_v22 }
 0x893   :  { %v8627_v6 = vpop.permute.xlu1 %8626 }
 0x894   :  { %8004 = vmatprep.mubr.msk.bf16.mxu0 %vm4458_vm6, %v4428_v26  ;;  %v8629_v30 = vunpack.i.h.bf16 %v8627_v6  ;;  %v8628_v50 = vunpack.i.l.bf16 %v8627_v6 }
 0x896   :  { %v4410_v36 = vsel %vm4399_vm5, %v4385_v41, %v8628_v50  ;;  %v4411_v59 = vsel %vm4399_vm5, %v4386_v8, %v8629_v30 }
 0x897   :  { %v8637_v20 = vpop.permute.xlu0 %8636  ;;  %v4429_v47 = vpack.c.bf16 %v4411_v59, %v4410_v36 }
 0x898   :  { %v8642_v58 = vpop.permute.xlu1 %8641  ;;  %v8639_v42 = vunpack.i.h.bf16 %v8637_v20  ;;  %v8638_v7 = vunpack.i.l.bf16 %v8637_v20 }
 0x899   :  { %8005 = vmatmul.mubr.msk.bf16.gmra.mrb[120].mxu0 %vm4458_vm6, %v4429_v47  ;;  %v8644_v60 = vunpack.i.h.bf16 %v8642_v58  ;;  %v8643_v43 = vunpack.i.l.bf16 %v8642_v58 }
 0x89a   :  { %v4388_v49 = vsel %vm395_vm2, %v4181_v0, %v8639_v42  ;;  %v4387_v45 = vsel %vm395_vm2, %v4180_v10, %v8638_v7 }
 0x89b   :  { %v8652_v9 = vpop.permute.xlu0 %8651  ;;  %v4390_v54 = vsel %vm395_vm2, %v11471_v38, %v8644_v60  ;;  %v4389_v4 = vsel %vm395_vm2, %v11465_v2, %v8643_v43 }
 0x89c   :  { %v8654_v24 = vunpack.i.h.bf16 %v8652_v9  ;;  %v8653_v62 = vunpack.i.l.bf16 %v8652_v9  ;;  %v8647_v37 = vpop.permute.xlu1 %8646 }
 0x89d   :  { %v8649_v39 = vunpack.i.h.bf16 %v8647_v37  ;;  %v8648_v29 = vunpack.i.l.bf16 %v8647_v37 }
 0x89e   :  { %v4412_v63 = vsel %vm4399_vm5, %v4387_v45, %v8653_v62  ;;  %v4413_v22 = vsel %vm4399_vm5, %v4388_v49, %v8654_v24 }
 0x89f   :  { %v4415_v19 = vsel %vm4399_vm5, %v4390_v54, %v8649_v39  ;;  %v4414_v12 = vsel %vm4399_vm5, %v4389_v4, %v8648_v29  ;;  %v8657_v53 = vpop.permute.xlu0 %8656  ;;  %v4430_v31 = vpack.c.bf16 %v4413_v22, %v4412_v63 }
 0x8a0   :  { %v8662_v33 = vpop.permute.xlu1 %8661  ;;  %v4431_v61 = vpack.c.bf16 %v4415_v19, %v4414_v12  ;;  %v8659_v15 = vunpack.i.h.bf16 %v8657_v53  ;;  %v8658_v17 = vunpack.i.l.bf16 %v8657_v53 }
 0x8a1   :  { %8008 = vmatprep.mubr.msk.bf16.mxu0 %vm4458_vm6, %v4430_v31  ;;  %v8664_v38 = vunpack.i.h.bf16 %v8662_v33  ;;  %v8663_v3 = vunpack.i.l.bf16 %v8662_v33 }
 0x8a2   :  { %8009 = vmatmul.mubr.msk.bf16.gmra.mrb[124].mxu0 %vm4458_vm6, %v4431_v61  ;;  %v4392_v32 = vsel %vm395_vm2, %v11479_v14, %v8659_v15  ;;  %v4391_v52 = vsel %vm395_vm2, %v11476_v1, %v8658_v17  ;;  %v8814_v15 = vld [vmem:[%s12645_s1 + $0x50] sm:$0xff]  }
 0x8a3   :  { %v8672_v2 = vpop.permute.xlu0 %8671  ;;  %v4394_v25 = vsel %vm395_vm2, %v11493_v27, %v8664_v38  ;;  %v4393_v40 = vsel %vm395_vm2, %v11490_v34, %v8663_v3  ;;  %8020 = vmatprep.subr.bf16.mxu1 %v8814_v15 }
 0x8a4   :  { %v8674_v21 = vunpack.i.h.bf16 %v8672_v2  ;;  %v8673_v48 = vunpack.i.l.bf16 %v8672_v2  ;;  %v8667_v35 = vpop.permute.xlu1 %8666  ;;  %8021 = vmatpush3.bf16.msra.mxu1 %v8814_v15 }
 0x8a5   :  { %v8669_v55 = vunpack.i.h.bf16 %v8667_v35  ;;  %v8668_v18 = vunpack.i.l.bf16 %v8667_v35 }
 0x8a6   :  { %v4416_v44 = vsel %vm4399_vm5, %v4391_v52, %v8673_v48  ;;  %v4417_v13 = vsel %vm4399_vm5, %v4392_v32, %v8674_v21 }
 0x8a7   :  { %v4419_v11 = vsel %vm4399_vm5, %v4394_v25, %v8669_v55  ;;  %v4418_v26 = vsel %vm4399_vm5, %v4393_v40, %v8668_v18  ;;  %v8677_v14 = vpop.permute.xlu0 %8676  ;;  %v4432_v6 = vpack.c.bf16 %v4417_v13, %v4416_v44 }
 0x8a8   :  { %v8682_v28 = vpop.permute.xlu1 %8681  ;;  %v4433_v1 = vpack.c.bf16 %v4419_v11, %v4418_v26  ;;  %v8679_v5 = vunpack.i.h.bf16 %v8677_v14  ;;  %v8678_v30 = vunpack.i.l.bf16 %v8677_v14 }
 0x8a9   :  { %8012 = vmatprep.mubr.msk.bf16.mxu0 %vm4458_vm6, %v4432_v6  ;;  %v8684_v27 = vunpack.i.h.bf16 %v8682_v28  ;;  %v8683_v50 = vunpack.i.l.bf16 %v8682_v28 }
 0x8aa   :  { %8013 = vmatmul.mubr.msk.bf16.gmra.mrb[128].mxu0 %vm4458_vm6, %v4433_v1  ;;  %v4396_v59 = vsel %vm395_vm2, %v11508_v56, %v8679_v5  ;;  %v4395_v51 = vsel %vm395_vm2, %v11502_v46, %v8678_v30  ;;  %v12687_v46 = vmov 0.0  }
 0x8ab   :  { %v8687_v34 = vpop.permute.xlu0 %8686  ;;  %v4398_v47 = vsel %vm395_vm2, %v11519_v23, %v8684_v27  ;;  %v4397_v58 = vsel %vm395_vm2, %v11516_v57, %v8683_v50  ;;  %v11640_v57 = vld [vmem:[%s12646_s2 + $0x40] ss:$0 sm:$0xff]  ;;  %8058 = vmatprep.subr.bf16.mxu1 %v12687_v46 }
 0x8ac   :  { %v8689_v8 = vunpack.i.h.bf16 %v8687_v34  ;;  %v8688_v41 = vunpack.i.l.bf16 %v8687_v34  ;;  %v8692_v36 = vpop.permute.xlu1 %8691 }
 0x8ad   :  { %v8694_v16 = vunpack.i.h.bf16 %v8692_v36  ;;  %v8693_v20 = vunpack.i.l.bf16 %v8692_v36 }
 0x8ae   :  { %v4420_v42 = vsel %vm4399_vm5, %v4395_v51, %v8688_v41  ;;  %v4421_v7 = vsel %vm4399_vm5, %v4396_v59, %v8689_v8 }
 0x8af   :  { %v4423_v60 = vsel %vm4399_vm5, %v4398_v47, %v8694_v16  ;;  %v4422_v43 = vsel %vm4399_vm5, %v4397_v58, %v8693_v20  ;;  %v4434_v56 = vpack.c.bf16 %v4421_v7, %v4420_v42 }
 0x8b0   :  { %v4435_v10 = vpack.c.bf16 %v4423_v60, %v4422_v43 }
 0x8b1   :  { %8016 = vmatprep.mubr.msk.bf16.mxu0 %vm4458_vm6, %v4434_v56 }
 0x8b2   :  { %8017 = vmatmul.mubr.msk.bf16.gmra.mrb[132].mxu0 %vm4458_vm6, %v4435_v10 }
 0x8b3   :  { %8048 = vmatprep.mubr.msk.bf16.mxu0 %vm9370_vm4, %v12687_v46 }
 0x92f   :  { %v7998_v23 = vpop.f32.mrb[112].mxu0 }
 0x930   :  { %v11643_v0 = vadd.f32 %v7998_v23, %v11640_v57  ;;  %v4529_v9 = vpop.f32.mrb[113].mxu0 }
 0x931   :  { %v11646_v24 = vadd.f32 %v11640_v57, %v4529_v9  ;;  %v7999_v62 = vpop.f32.mrb[114].mxu0 }
 0x932   :  { %v7386_v37 = vmul.f32 -1.442695, %v11643_v0  ;;  %v11650_v49 = vadd.f32 %v7999_v62, %v11640_v57  ;;  %v4532_v45 = vpop.f32.mrb[115].mxu0 }
 0x933   :  { %v7384_v39 = vmul.f32 -1.442695, %v11646_v24  ;;  %v11654_v29 = vadd.f32 %v11640_v57, %v4532_v45 }
 0x934   :  { %9145 = vpow2.f32 %v7386_v37  ;;  %v7387_v54 = vmul.f32 -1.442695, %v11650_v49 }
 0x935   :  { %9147 = vpow2.f32 %v7384_v39  ;;  %v7385_v4 = vmul.f32 -1.442695, %v11654_v29 }
 0x936   :  { %9149 = vpow2.f32 %v7387_v54 }
 0x937   :  { %9151 = vpow2.f32 %v7385_v4 }
 0x93e   :  { %v9146_v63 = vpop.eup %9145 }
 0x93f   :  { %v9148_v22 = vpop.eup %9147  ;;  %v4698_v31 = vadd.f32 1.0, %v9146_v63 }
 0x940   :  { %v9150_v19 = vpop.eup %9149  ;;  %v4696_v12 = vadd.f32 1.0, %v9148_v22 }
 0x941   :  { %v9152_v53 = vpop.eup %9151  ;;  %v4699_v61 = vadd.f32 1.0, %v9150_v19 }
 0x942   :  { %9153 = vrcp.f32 %v4696_v12  ;;  %v4697_v33 = vadd.f32 1.0, %v9152_v53 }
 0x944   :  { %9155 = vrcp.f32 %v4697_v33 }
 0x945   :  { %9157 = vrcp.f32 %v4698_v31 }
 0x946   :  { %9159 = vrcp.f32 %v4699_v61 }
 0x94c   :  { %v9154_v17 = vpop.eup %9153 }
 0x94d   :  { %4792 = vrot.lane.b32.xlu0 %v9154_v17, %s9368_s15 }
 0x94e   :  { %v9156_v38 = vpop.eup %9155 }
 0x94f   :  { %4794 = vrot.lane.b32.xlu1 %v9156_v38, %s9368_s15  ;;  %v9158_v3 = vpop.eup %9157 }
 0x950   :  { %v9160_v2 = vpop.eup %9159 }
 0x951   :  { %4796 = vrot.lane.b32.xlu0 %v9158_v3, %s9368_s15 }
 0x953   :  { %4798 = vrot.lane.b32.xlu1 %v9160_v2, %s9368_s15 }
 0x963   :  { %v8002_v21 = vpop.f32.mrb[116].mxu0 }
 0x964   :  { %v11667_v48 = vadd.f32 %v8002_v21, %v11640_v57  ;;  %v4545_v35 = vpop.f32.mrb[117].mxu0 }
 0x965   :  { %v11670_v32 = vadd.f32 %v11640_v57, %v4545_v35  ;;  %v8003_v52 = vpop.f32.mrb[118].mxu0 }
 0x966   :  { %v7390_v55 = vmul.f32 -1.442695, %v11667_v48  ;;  %v11674_v18 = vadd.f32 %v8003_v52, %v11640_v57  ;;  %v4548_v25 = vpop.f32.mrb[119].mxu0 }
 0x967   :  { %v7388_v40 = vmul.f32 -1.442695, %v11670_v32  ;;  %v11678_v44 = vadd.f32 %v11640_v57, %v4548_v25 }
 0x968   :  { %9161 = vpow2.f32 %v7390_v55  ;;  %v7391_v13 = vmul.f32 -1.442695, %v11674_v18 }
 0x969   :  { %9163 = vpow2.f32 %v7388_v40  ;;  %v7389_v11 = vmul.f32 -1.442695, %v11678_v44 }
 0x96a   :  { %9165 = vpow2.f32 %v7391_v13 }
 0x96b   :  { %9167 = vpow2.f32 %v7389_v11 }
 0x96c   :  { %v8006_v26 = vpop.f32.mrb[120].mxu0 }
 0x96d   :  { %v11683_v14 = vadd.f32 %v8006_v26, %v11640_v57  ;;  %v4561_v6 = vpop.f32.mrb[121].mxu0 }
 0x96e   :  { %v11686_v28 = vadd.f32 %v11640_v57, %v4561_v6  ;;  %v8007_v1 = vpop.f32.mrb[122].mxu0 }
 0x96f   :  { %v7394_v5 = vmul.f32 -1.442695, %v11683_v14  ;;  %v11690_v30 = vadd.f32 %v8007_v1, %v11640_v57  ;;  %v4564_v27 = vpop.f32.mrb[123].mxu0 }
 0x970   :  { %v7392_v50 = vmul.f32 -1.442695, %v11686_v28  ;;  %v11694_v34 = vadd.f32 %v11640_v57, %v4564_v27 }
 0x971   :  { %9169 = vpow2.f32 %v7394_v5  ;;  %v7395_v41 = vmul.f32 -1.442695, %v11690_v30 }
 0x972   :  { %v9162_v8 = vpop.eup %9161  ;;  %9171 = vpow2.f32 %v7392_v50  ;;  %v7393_v47 = vmul.f32 -1.442695, %v11694_v34 }
 0x973   :  { %v9164_v36 = vpop.eup %9163  ;;  %v4702_v59 = vadd.f32 1.0, %v9162_v8  ;;  %9173 = vpow2.f32 %v7395_v41 }
 0x974   :  { %v9166_v51 = vpop.eup %9165  ;;  %v4700_v16 = vadd.f32 1.0, %v9164_v36 }
 0x975   :  { %v9168_v20 = vpop.eup %9167  ;;  %v4703_v58 = vadd.f32 1.0, %v9166_v51  ;;  %v8010_v7 = vpop.f32.mrb[124].mxu0 }
 0x976   :  { %9175 = vrcp.f32 %v4700_v16  ;;  %v4701_v42 = vadd.f32 1.0, %v9168_v20  ;;  %v11699_v60 = vadd.f32 %v8010_v7, %v11640_v57  ;;  %v4577_v43 = vpop.f32.mrb[125].mxu0 }
 0x977   :  { %9177 = vrcp.f32 %v4702_v59  ;;  %v11702_v56 = vadd.f32 %v11640_v57, %v4577_v43  ;;  %v8011_v10 = vpop.f32.mrb[126].mxu0 }
 0x978   :  { %9179 = vrcp.f32 %v4701_v42  ;;  %v7398_v23 = vmul.f32 -1.442695, %v11699_v60  ;;  %v11706_v9 = vadd.f32 %v8011_v10, %v11640_v57  ;;  %v4580_v62 = vpop.f32.mrb[127].mxu0 }
 0x979   :  { %9181 = vpow2.f32 %v7393_v47  ;;  %v7396_v37 = vmul.f32 -1.442695, %v11702_v56  ;;  %v11710_v45 = vadd.f32 %v11640_v57, %v4580_v62 }
 0x97a   :  { %9183 = vrcp.f32 %v4703_v58  ;;  %v7399_v63 = vmul.f32 -1.442695, %v11706_v9 }
 0x97b   :  { %9185 = vpow2.f32 %v7398_v23  ;;  %v9170_v39 = vpop.eup %9169  ;;  %v7397_v54 = vmul.f32 -1.442695, %v11710_v45 }
 0x97c   :  { %9187 = vpow2.f32 %v7396_v37  ;;  %v9172_v4 = vpop.eup %9171  ;;  %v4706_v19 = vadd.f32 1.0, %v9170_v39 }
 0x97d   :  { %v9174_v22 = vpop.eup %9173  ;;  %v4704_v12 = vadd.f32 1.0, %v9172_v4  ;;  %9189 = vpow2.f32 %v7397_v54  ;;  %v8014_v53 = vpop.f32.mrb[128].mxu0 }
 0x97e   :  { %v11715_v31 = vadd.f32 %v8014_v53, %v11640_v57  ;;  %v4593_v33 = vpop.f32.mrb[129].mxu0  ;;  %v4707_v3 = vadd.f32 1.0, %v9174_v22 }
 0x97f   :  { %9191 = vrcp.f32 %v4704_v12  ;;  %v11718_v15 = vadd.f32 %v11640_v57, %v4593_v33  ;;  %v8015_v17 = vpop.f32.mrb[130].mxu0 }
 0x980   :  { %v9176_v61 = vpop.eup %9175  ;;  %9193 = vpow2.f32 %v7399_v63  ;;  %v7402_v2 = vmul.f32 -1.442695, %v11715_v31  ;;  %v11722_v21 = vadd.f32 %v8015_v17, %v11640_v57  ;;  %v4596_v35 = vpop.f32.mrb[131].mxu0 }
 0x981   :  { %v9178_v38 = vpop.eup %9177  ;;  %4800 = vrot.lane.b32.xlu0 %v9176_v61, %s9368_s15  ;;  %9195 = vrcp.f32 %v4706_v19  ;;  %v7400_v55 = vmul.f32 -1.442695, %v11718_v15  ;;  %v11727_v25 = vadd.f32 %v11640_v57, %v4596_v35 }
 0x982   :  { %v9180_v52 = vpop.eup %9179  ;;  %9197 = vpow2.f32 %v7402_v2  ;;  %v7403_v26 = vmul.f32 -1.442695, %v11722_v21 }
 0x983   :  { %v9182_v40 = vpop.eup %9181  ;;  %4802 = vrot.lane.b32.xlu1 %v9180_v52, %s9368_s15  ;;  %9199 = vpow2.f32 %v7400_v55  ;;  %v7401_v6 = vmul.f32 -1.442695, %v11727_v25 }
 0x984   :  { %v9184_v13 = vpop.eup %9183  ;;  %v4705_v11 = vadd.f32 1.0, %v9182_v40  ;;  %9201 = vrcp.f32 %v4707_v3 }
 0x985   :  { %v9186_v1 = vpop.eup %9185  ;;  %4804 = vrot.lane.b32.xlu0 %v9178_v38, %s9368_s15  ;;  %v8018_v50 = vpop.f32.mrb[132].mxu0 }
 0x986   :  { %v9188_v5 = vpop.eup %9187  ;;  %9203 = vrcp.f32 %v4705_v11  ;;  %v4710_v27 = vadd.f32 1.0, %v9186_v1  ;;  %v11734_v41 = vadd.f32 %v8018_v50, %v11640_v57  ;;  %v4609_v36 = vpop.f32.mrb[133].mxu0 }
 0x987   :  { %v4708_v8 = vadd.f32 1.0, %v9188_v5  ;;  %9205 = vpow2.f32 %v7401_v6  ;;  %4806 = vrot.lane.b32.xlu1 %v9184_v13, %s9368_s15  ;;  %v9190_v59 = vpop.eup %9189  ;;  %v11738_v51 = vadd.f32 %v11640_v57, %v4609_v36  ;;  %v8019_v16 = vpop.f32.mrb[134].mxu0 }
 0x988   :  { %9207 = vpow2.f32 %v7403_v26  ;;  %v4709_v20 = vadd.f32 1.0, %v9190_v59  ;;  %v7406_v47 = vmul.f32 -1.442695, %v11734_v41  ;;  %v11742_v58 = vadd.f32 %v8019_v16, %v11640_v57  ;;  %v4612_v42 = vpop.f32.mrb[135].mxu0 }
 0x989   :  { %9209 = vrcp.f32 %v4708_v8  ;;  %v9192_v7 = vpop.eup %9191  ;;  %v7404_v43 = vmul.f32 -1.442695, %v11738_v51  ;;  %v11746_v10 = vadd.f32 %v11640_v57, %v4612_v42 }
 0x98a   :  { %9211 = vrcp.f32 %v4710_v27  ;;  %v9194_v23 = vpop.eup %9193  ;;  %4808 = vrot.lane.b32.xlu0 %v9192_v7, %s9368_s15  ;;  %v7407_v37 = vmul.f32 -1.442695, %v11742_v58 }
 0x98b   :  { %9213 = vrcp.f32 %v4709_v20  ;;  %v9196_v62 = vpop.eup %9195  ;;  %v7405_v39 = vmul.f32 -1.442695, %v11746_v10  ;;  %v4711_v63 = vadd.f32 1.0, %v9194_v23 }
 0x98c   :  { %9215 = vpow2.f32 %v7406_v47  ;;  %v9198_v54 = vpop.eup %9197 }
 0x98d   :  { %9217 = vpow2.f32 %v7404_v43  ;;  %v9200_v4 = vpop.eup %9199  ;;  %v4714_v53 = vadd.f32 1.0, %v9198_v54 }
 0x98e   :  { %v9202_v22 = vpop.eup %9201  ;;  %v4712_v19 = vadd.f32 1.0, %v9200_v4  ;;  %9219 = vpow2.f32 %v7405_v39  ;;  %4812 = vrot.lane.b32.xlu0 %v9196_v62, %s9368_s15 }
 0x98f   :  { %9221 = vpow2.f32 %v7407_v37 }
 0x990   :  { %v9204_v57 = vpop.eup %9203  ;;  %9223 = vrcp.f32 %v4712_v19 }
 0x991   :  { %v9206_v12 = vpop.eup %9205  ;;  %4810 = vrot.lane.b32.xlu1 %v9204_v57, %s9368_s15  ;;  %9225 = vrcp.f32 %v4711_v63 }
 0x992   :  { %v9208_v33 = vpop.eup %9207  ;;  %v4713_v61 = vadd.f32 1.0, %v9206_v12 }
 0x993   :  { %v9210_v17 = vpop.eup %9209  ;;  %v4715_v2 = vadd.f32 1.0, %v9208_v33 }
 0x994   :  { %v9212_v38 = vpop.eup %9211  ;;  %9227 = vrcp.f32 %v4713_v61  ;;  %4816 = vrot.lane.b32.xlu0 %v9210_v17, %s9368_s15 }
 0x995   :  { %v9214_v3 = vpop.eup %9213  ;;  %9229 = vrcp.f32 %v4714_v53  ;;  %4814 = vrot.lane.b32.xlu1 %v9202_v22, %s9368_s15 }
 0x996   :  { %v9216_v35 = vpop.eup %9215  ;;  %9231 = vrcp.f32 %v4715_v2 }
 0x997   :  { %v9218_v52 = vpop.eup %9217  ;;  %v4718_v11 = vadd.f32 1.0, %v9216_v35 }
 0x998   :  { %v4716_v55 = vadd.f32 1.0, %v9218_v52  ;;  %4820 = vrot.lane.b32.xlu0 %v9212_v38, %s9368_s15  ;;  %v9220_v40 = vpop.eup %9219 }
 0x999   :  { %4818 = vrot.lane.b32.xlu1 %v9214_v3, %s9368_s15  ;;  %v9222_v13 = vpop.eup %9221  ;;  %v4717_v26 = vadd.f32 1.0, %v9220_v40 }
 0x99a   :  { %9233 = vrcp.f32 %v4716_v55  ;;  %v9224_v6 = vpop.eup %9223  ;;  %v4719_v27 = vadd.f32 1.0, %v9222_v13 }
 0x99b   :  { %v9226_v1 = vpop.eup %9225  ;;  %9235 = vrcp.f32 %v4717_v26 }
 0x99c   :  { %4824 = vrot.lane.b32.xlu0 %v9224_v6, %s9368_s15  ;;  %9237 = vrcp.f32 %v4718_v11 }
 0x99d   :  { %4822 = vrot.lane.b32.xlu1 %v9226_v1, %s9368_s15  ;;  %9239 = vrcp.f32 %v4719_v27 }
 0x99e   :  { %v9228_v5 = vpop.eup %9227 }
 0x99f   :  { %v9230_v50 = vpop.eup %9229 }
 0x9a0   :  { %4828 = vrot.lane.b32.xlu0 %v9230_v50, %s9368_s15  ;;  %v9232_v8 = vpop.eup %9231 }
 0x9a1   :  { %4826 = vrot.lane.b32.xlu1 %v9228_v5, %s9368_s15 }
 0x9a4   :  { %v9234_v36 = vpop.eup %9233 }
 0x9a5   :  { %4830 = vrot.lane.b32.xlu1 %v9232_v8, %s9368_s15  ;;  %4832 = vrot.lane.b32.xlu0 %v9234_v36, %s9368_s15  ;;  %v9236_v59 = vpop.eup %9235 }
 0x9a6   :  { %v9238_v16 = vpop.eup %9237 }
 0x9a7   :  { %v9240_v20 = vpop.eup %9239 }
 0x9a9   :  { %4834 = vrot.lane.b32.xlu1 %v9236_v59, %s9368_s15  ;;  %4836 = vrot.lane.b32.xlu0 %v9238_v16, %s9368_s15 }
 0x9ad   :  { %4838 = vrot.lane.b32.xlu1 %v9240_v20, %s9368_s15 }
 0x9bf   :  { %v4793_v47 = vpop.permute.xlu0 %4792 }
 0x9c0   :  { %v4864_v7 = vmul.f32 %v4793_v47, %v11646_v24 }
 0x9c1   :  { %v4795_v42 = vpop.permute.xlu1 %4794 }
 0x9c2   :  { %v4865_v43 = vmul.f32 %v4795_v42, %v11654_v29 }
 0x9c3   :  { %v4797_v23 = vpop.permute.xlu0 %4796 }
 0x9c4   :  { %v4893_v62 = vpack.c.bf16 %v4865_v43, %v4864_v7  ;;  %v4866_v39 = vmul.f32 %v4797_v23, %v11643_v0 }
 0x9c5   :  { %v4799_v37 = vpop.permute.xlu1 %4798 }
 0x9c6   :  { %v4867_v54 = vmul.f32 %v4799_v37, %v11650_v49  ;;  %8022 = vmatprep.mubr.msk.bf16.mxu1 %vm395_vm2, %v4893_v62 }
 0x9c8   :  { %v4894_v4 = vpack.c.bf16 %v4867_v54, %v4866_v39  ;;  %v11829_v54 = vld [vmem:[%s12645_s1] sm:$0xff]  }
 0x9ca   :  { %8023 = vmatmul.mubr.msk.bf16.vlgmr.msra.gmra.mrb[120].mxu1 %vm395_vm2, %v4894_v4 }
 0x9f3   :  { %v4801_v63 = vpop.permute.xlu0 %4800 }
 0x9f4   :  { %v4868_v19 = vmul.f32 %v4801_v63, %v11670_v32 }
 0x9f5   :  { %v4803_v22 = vpop.permute.xlu1 %4802 }
 0x9f6   :  { %v4869_v24 = vmul.f32 %v4803_v22, %v11678_v44 }
 0x9f7   :  { %v4805_v57 = vpop.permute.xlu0 %4804 }
 0x9f8   :  { %v4895_v29 = vpack.c.bf16 %v4869_v24, %v4868_v19  ;;  %v4870_v53 = vmul.f32 %v4805_v57, %v11667_v48 }
 0x9f9   :  { %v4807_v12 = vpop.permute.xlu1 %4806 }
 0x9fa   :  { %v4871_v0 = vmul.f32 %v4807_v12, %v11674_v18  ;;  %8026 = vmatprep.mubr.msk.bf16.mxu1 %vm395_vm2, %v4895_v29 }
 0x9fc   :  { %v4896_v49 = vpack.c.bf16 %v4871_v0, %v4870_v53  ;;  %v4809_v33 = vpop.permute.xlu0 %4808 }
 0x9fd   :  { %v4872_v38 = vmul.f32 %v4809_v33, %v11686_v28 }
 0x9fe   :  { %8027 = vmatmul.mubr.msk.bf16.gmra.mrb[124].mxu1 %vm395_vm2, %v4896_v49 }
 0xa00   :  { %v4813_v61 = vpop.permute.xlu0 %4812 }
 0xa01   :  { %v4874_v35 = vmul.f32 %v4813_v61, %v11683_v14 }
 0xa03   :  { %v4811_v17 = vpop.permute.xlu1 %4810 }
 0xa04   :  { %v4873_v32 = vmul.f32 %v4811_v17, %v11694_v34 }
 0xa06   :  { %v4897_v44 = vpack.c.bf16 %v4873_v32, %v4872_v38  ;;  %v4817_v3 = vpop.permute.xlu0 %4816 }
 0xa07   :  { %v4815_v2 = vpop.permute.xlu1 %4814  ;;  %v4876_v40 = vmul.f32 %v4817_v3, %v11702_v56 }
 0xa08   :  { %v4875_v48 = vmul.f32 %v4815_v2, %v11690_v30  ;;  %8030 = vmatprep.mubr.msk.bf16.mxu1 %vm395_vm2, %v4897_v44 }
 0xa0a   :  { %v4898_v18 = vpack.c.bf16 %v4875_v48, %v4874_v35  ;;  %v4821_v52 = vpop.permute.xlu0 %4820 }
 0xa0b   :  { %v4819_v55 = vpop.permute.xlu1 %4818  ;;  %v4878_v26 = vmul.f32 %v4821_v52, %v11699_v60 }
 0xa0c   :  { %v4877_v13 = vmul.f32 %v4819_v55, %v11710_v45  ;;  %8031 = vmatmul.mubr.msk.bf16.gmra.mrb[128].mxu1 %vm395_vm2, %v4898_v18 }
 0xa0e   :  { %v4899_v28 = vpack.c.bf16 %v4877_v13, %v4876_v40  ;;  %v4825_v34 = vpop.permute.xlu0 %4824 }
 0xa0f   :  { %v4823_v11 = vpop.permute.xlu1 %4822  ;;  %v4880_v5 = vmul.f32 %v4825_v34, %v11718_v15 }
 0xa10   :  { %v4879_v14 = vmul.f32 %v4823_v11, %v11706_v9  ;;  %8034 = vmatprep.mubr.msk.bf16.mxu1 %vm395_vm2, %v4899_v28 }
 0xa12   :  { %v4900_v30 = vpack.c.bf16 %v4879_v14, %v4878_v26  ;;  %v4829_v6 = vpop.permute.xlu0 %4828 }
 0xa13   :  { %v4827_v1 = vpop.permute.xlu1 %4826  ;;  %v4882_v8 = vmul.f32 %v4829_v6, %v11715_v31 }
 0xa14   :  { %v4881_v56 = vmul.f32 %v4827_v1, %v11727_v25  ;;  %8035 = vmatmul.mubr.msk.bf16.gmra.mrb[132].mxu1 %vm395_vm2, %v4900_v30 }
 0xa16   :  { %v4901_v45 = vpack.c.bf16 %v4881_v56, %v4880_v5 }
 0xa17   :  { %v4831_v27 = vpop.permute.xlu1 %4830  ;;  %v4833_v50 = vpop.permute.xlu0 %4832 }
 0xa18   :  { %v4883_v60 = vmul.f32 %v4831_v27, %v11722_v21  ;;  %8038 = vmatprep.mubr.msk.bf16.mxu1 %vm395_vm2, %v4901_v45  ;;  %v4884_v59 = vmul.f32 %v4833_v50, %v11738_v51  ;;  %v11807_v51 = vld [vmem:[%s12646_s2 + $0x48] ss:$0 sm:$0xff] }
 0xa1a   :  { %v4902_v9 = vpack.c.bf16 %v4883_v60, %v4882_v8 }
 0xa1b   :  { %v4835_v36 = vpop.permute.xlu1 %4834  ;;  %v4837_v15 = vpop.permute.xlu0 %4836 }
 0xa1c   :  { %v4885_v16 = vmul.f32 %v4835_v36, %v11746_v10  ;;  %8039 = vmatmul.mubr.msk.bf16.gmra.mrb[136].mxu1 %vm395_vm2, %v4902_v9  ;;  %v4886_v47 = vmul.f32 %v4837_v15, %v11734_v41 }
 0xa1e   :  { %v4903_v25 = vpack.c.bf16 %v4885_v16, %v4884_v59 }
 0xa1f   :  { %v4839_v20 = vpop.permute.xlu1 %4838 }
 0xa20   :  { %v4887_v42 = vmul.f32 %v4839_v20, %v11742_v58  ;;  %8042 = vmatprep.mubr.msk.bf16.mxu1 %vm395_vm2, %v4903_v25 }
 0xa22   :  { %v4904_v31 = vpack.c.bf16 %v4887_v42, %v4886_v47 }
 0xa24   :  { %8043 = vmatmul.mubr.msk.bf16.gmra.mrb[140].mxu1 %vm395_vm2, %v4904_v31  ;;  %v4891_v31 = vld [vmem:[%s12645_s1 + $0x58] sm:$0xf] }
 0xa25   :  { %8060 = vmatprep.mubr.msk.bf16.mxu1 %vm9370_vm4, %v12687_v46 }
 0xa9d   :  { %v8024_v21 = vpop.f32.mrb[120].mxu1 }
 0xa9e   :  { %v4985_v10 = vpop.f32.mrb[121].mxu1  ;;  %v11821_v37 = vadd.f32 %v8024_v21, %v11807_v51 }
 0xa9f   :  { %v8025_v7 = vpop.f32.mrb[122].mxu1  ;;  %v11810_v41 = vadd.f32 %v11807_v51, %v4985_v10 }
 0xaa0   :  { %v4988_v43 = vpop.f32.mrb[123].mxu1  ;;  %v11816_v23 = vadd.f32 %v8025_v7, %v11807_v51 }
 0xaa1   :  { %v11813_v58 = vadd.f32 %v11807_v51, %v4988_v43 }
 0xaa2   :  { %v5081_v39 = vpack.c.bf16 %v11816_v23, %v11821_v37 }
 0xaa3   :  { %v5080_v62 = vpack.c.bf16 %v11813_v58, %v11810_v41 }
 0xaa5   :  { %8047 = vmatpush3.bf16.msra.mxu0 %v5080_v62 }
 0xaa6   :  { %8052 = vmatprep.subr.bf16.mxu0 %v12687_v46 }
 0xaa8   :  { %8049 = vmatmul.mubr.msk.bf16.vlgmr.msra.gmra.mrb[136].mxu0 %vm395_vm2, %v11829_v54 }
 0xaa9   :  { %8053 = vmatpush3.bf16.msra.mxu0 %v5081_v39  ;;  %8054 = vmatprep.mubr.msk.bf16.mxu0 %vm9370_vm4, %v12687_v46 }
 0xaaa   :  { %8064 = vmatprep.subr.bf16.mxu0 %v12687_v46 }
 0xab0   :  { %8055 = vmatmul.mubr.msk.bf16.vlgmr.msra.gmra.mrb[140].mxu0 %vm395_vm2, %v11829_v54 }
 0xab1   :  { %8066 = vmatprep.mubr.msk.bf16.mxu0 %vm9370_vm4, %v12687_v46 }
 0xad1   :  { %v8028_v4 = vpop.f32.mrb[124].mxu1 }
 0xad2   :  { %v5001_v63 = vpop.f32.mrb[125].mxu1  ;;  %v11841_v19 = vadd.f32 %v8028_v4, %v11807_v51 }
 0xad3   :  { %v8029_v22 = vpop.f32.mrb[126].mxu1  ;;  %v11847_v29 = vadd.f32 %v11807_v51, %v5001_v63 }
 0xad4   :  { %v11844_v24 = vadd.f32 %v8029_v22, %v11807_v51  ;;  %v5004_v57 = vpop.f32.mrb[127].mxu1 }
 0xad5   :  { %v11850_v12 = vadd.f32 %v11807_v51, %v5004_v57 }
 0xad6   :  { %v5083_v53 = vpack.c.bf16 %v11844_v24, %v11841_v19 }
 0xad7   :  { %v5082_v0 = vpack.c.bf16 %v11850_v12, %v11847_v29 }
 0xad8   :  { %8065 = vmatpush3.bf16.msra.mxu0 %v5083_v53 }
 0xad9   :  { %8059 = vmatpush3.bf16.msra.mxu1 %v5082_v0  ;;  %8076 = vmatprep.subr.bf16.mxu0 %v12687_v46 }
 0xada   :  { %8070 = vmatprep.subr.bf16.mxu1 %v12687_v46 }
 0xadb   :  { %8067 = vmatmul.mubr.msk.bf16.vlgmr.msra.gmra.mrb[144].mxu0 %vm395_vm2, %v11829_v54 }
 0xadc   :  { %8061 = vmatmul.mubr.msk.bf16.vlgmr.msra.gmra.mrb[144].mxu1 %vm395_vm2, %v11829_v54  ;;  %8078 = vmatprep.mubr.msk.bf16.mxu0 %vm9370_vm4, %v12687_v46 }
 0xadd   :  { %8072 = vmatprep.mubr.msk.bf16.mxu1 %vm9370_vm4, %v12687_v46 }
 0xadf   :  { %v8032_v49 = vpop.f32.mrb[128].mxu1 }
 0xae0   :  { %v5017_v33 = vpop.f32.mrb[129].mxu1  ;;  %v11867_v17 = vadd.f32 %v8032_v49, %v11807_v51 }
 0xae1   :  { %v8033_v61 = vpop.f32.mrb[130].mxu1  ;;  %v11873_v44 = vadd.f32 %v11807_v51, %v5017_v33 }
 0xae2   :  { %v11870_v38 = vadd.f32 %v8033_v61, %v11807_v51  ;;  %v5020_v32 = vpop.f32.mrb[131].mxu1 }
 0xae3   :  { %v11876_v3 = vadd.f32 %v11807_v51, %v5020_v32 }
 0xae4   :  { %v5085_v2 = vpack.c.bf16 %v11870_v38, %v11867_v17 }
 0xae5   :  { %v5084_v35 = vpack.c.bf16 %v11876_v3, %v11873_v44 }
 0xae6   :  { %8077 = vmatpush3.bf16.msra.mxu0 %v5085_v2 }
 0xae7   :  { %v8036_v48 = vpop.f32.mrb[132].mxu1  ;;  %8071 = vmatpush3.bf16.msra.mxu1 %v5084_v35  ;;  %8088 = vmatprep.subr.bf16.mxu0 %v12687_v46 }
 0xae8   :  { %v5033_v18 = vpop.f32.mrb[133].mxu1  ;;  %8082 = vmatprep.subr.bf16.mxu1 %v12687_v46  ;;  %v11887_v55 = vadd.f32 %v8036_v48, %v11807_v51 }
 0xae9   :  { %v8037_v52 = vpop.f32.mrb[134].mxu1  ;;  %8079 = vmatmul.mubr.msk.bf16.vlgmr.msra.gmra.mrb[148].mxu0 %vm395_vm2, %v11829_v54  ;;  %v11897_v28 = vadd.f32 %v11807_v51, %v5033_v18 }
 0xaea   :  { %v11890_v40 = vadd.f32 %v8037_v52, %v11807_v51  ;;  %v5036_v13 = vpop.f32.mrb[135].mxu1  ;;  %8073 = vmatmul.mubr.msk.bf16.vlgmr.msra.gmra.mrb[148].mxu1 %vm395_vm2, %v11829_v54  ;;  %8090 = vmatprep.mubr.msk.bf16.mxu0 %vm9370_vm4, %v12687_v46 }
 0xaeb   :  { %v11900_v34 = vadd.f32 %v11807_v51, %v5036_v13  ;;  %8084 = vmatprep.mubr.msk.bf16.mxu1 %vm9370_vm4, %v12687_v46 }
 0xaec   :  { %v5087_v11 = vpack.c.bf16 %v11890_v40, %v11887_v55 }
 0xaed   :  { %v5086_v26 = vpack.c.bf16 %v11900_v34, %v11897_v28 }
 0xaee   :  { %8089 = vmatpush3.bf16.msra.mxu0 %v5087_v11 }
 0xaef   :  { %v8040_v14 = vpop.f32.mrb[136].mxu1  ;;  %8083 = vmatpush3.bf16.msra.mxu1 %v5086_v26  ;;  %8100 = vmatprep.subr.bf16.mxu0 %v12687_v46 }
 0xaf0   :  { %v5049_v30 = vpop.f32.mrb[137].mxu1  ;;  %8094 = vmatprep.subr.bf16.mxu1 %v12687_v46  ;;  %v11913_v1 = vadd.f32 %v8040_v14, %v11807_v51 }
 0xaf1   :  { %v8041_v6 = vpop.f32.mrb[138].mxu1  ;;  %8091 = vmatmul.mubr.msk.bf16.vlgmr.msra.gmra.mrb[152].mxu0 %vm395_vm2, %v11829_v54  ;;  %v11923_v45 = vadd.f32 %v11807_v51, %v5049_v30 }
 0xaf2   :  { %v11916_v5 = vadd.f32 %v8041_v6, %v11807_v51  ;;  %v5052_v56 = vpop.f32.mrb[139].mxu1  ;;  %8085 = vmatmul.mubr.msk.bf16.vlgmr.msra.gmra.mrb[152].mxu1 %vm395_vm2, %v11829_v54  ;;  %8102 = vmatprep.mubr.msk.bf16.mxu0 %vm9370_vm4, %v12687_v46 }
 0xaf3   :  { %v11926_v27 = vadd.f32 %v11807_v51, %v5052_v56  ;;  %8096 = vmatprep.mubr.msk.bf16.mxu1 %vm9370_vm4, %v12687_v46 }
 0xaf4   :  { %v5089_v50 = vpack.c.bf16 %v11916_v5, %v11913_v1 }
 0xaf5   :  { %v5088_v8 = vpack.c.bf16 %v11926_v27, %v11923_v45 }
 0xaf6   :  { %8101 = vmatpush3.bf16.msra.mxu0 %v5089_v50 }
 0xaf7   :  { %v8044_v60 = vpop.f32.mrb[140].mxu1  ;;  %8095 = vmatpush3.bf16.msra.mxu1 %v5088_v8  ;;  %8112 = vmatprep.subr.bf16.mxu0 %v12687_v46 }
 0xaf8   :  { %v5065_v9 = vpop.f32.mrb[141].mxu1  ;;  %8106 = vmatprep.subr.bf16.mxu1 %v12687_v46  ;;  %v11939_v59 = vadd.f32 %v8044_v60, %v11807_v51 }
 0xaf9   :  { %v8045_v36 = vpop.f32.mrb[142].mxu1  ;;  %8103 = vmatmul.mubr.msk.bf16.vlgmr.msra.gmra.mrb[156].mxu0 %vm395_vm2, %v11829_v54  ;;  %v11949_v25 = vadd.f32 %v11807_v51, %v5065_v9 }
 0xafa   :  { %v11942_v16 = vadd.f32 %v8045_v36, %v11807_v51  ;;  %v5068_v15 = vpop.f32.mrb[143].mxu1  ;;  %8097 = vmatmul.mubr.msk.bf16.vlgmr.msra.gmra.mrb[156].mxu1 %vm395_vm2, %v11829_v54  ;;  %8114 = vmatprep.mubr.msk.bf16.mxu0 %vm9370_vm4, %v12687_v46 }
 0xafb   :  { %v11952_v20 = vadd.f32 %v11807_v51, %v5068_v15  ;;  %8108 = vmatprep.mubr.msk.bf16.mxu1 %vm9370_vm4, %v12687_v46  ;;  %v5637_v46 = vsel %vm530_vm0, %v4891_v31, 0 }
 0xafc   :  { %v5091_v47 = vpack.c.bf16 %v11942_v16, %v11939_v59 }
 0xafd   :  { %v5090_v42 = vpack.c.bf16 %v11952_v20, %v11949_v25 }
 0xafe   :  { %8113 = vmatpush3.bf16.msra.mxu0 %v5091_v47 }
 0xaff   :  { %8107 = vmatpush3.bf16.msra.mxu1 %v5090_v42 }
 0xb00   :  { %8195 = vmatprep.subr.msk.bf16.mxu1 %vm530_vm0, %v4891_v31 }
 0xb01   :  { %8115 = vmatmul.mubr.msk.bf16.vlgmr.msra.gmra.mrb[160].mxu0 %vm395_vm2, %v11829_v54 }
 0xb02   :  { %8109 = vmatmul.mubr.msk.bf16.vlgmr.msra.gmra.mrb[160].mxu1 %vm395_vm2, %v11829_v54 }
 0xb03   :  { %8119 = vmatpush3.bf16.msra.mxu1 %v5637_v46 }
 0xb7b   :  { %v5126_v21 = vpop.f32.mrb[136].mxu0 }
 0xb7c   :  { %v8050_v51 = vpop.f32.mrb[137].mxu0 }
 0xb7d   :  { %v5129_v10 = vpop.f32.mrb[138].mxu0 }
 0xb7e   :  { %v5584_v7 = vpack.c.bf16 %v5129_v10, %v5126_v21  ;;  %v8051_v43 = vpop.f32.mrb[139].mxu0 }
 0xb80   :  { %8120 = vmatprep.mubr.msk.bf16.mxu1 %vm354_vm1, %v5584_v7 }
 0xb83   :  { %v5167_v62 = vpop.f32.mrb[140].mxu0 }
 0xb84   :  { %v8056_v39 = vpop.f32.mrb[141].mxu0 }
 0xb85   :  { %v5170_v4 = vpop.f32.mrb[142].mxu0 }
 0xb86   :  { %v5585_v54 = vpack.c.bf16 %v5170_v4, %v5167_v62  ;;  %v8057_v63 = vpop.f32.mrb[143].mxu0 }
 0xb88   :  { %8121 = vmatmul.mubr.msk.bf16.vlgmr.msra.gmra.mrb[164].mxu1 %vm354_vm1, %v5585_v54 }
 0xbae   :  { %v5249_v22 = vpop.f32.mrb[144].mxu0 }
 0xbaf   :  { %v5208_v57 = vpop.f32.mrb[144].mxu1  ;;  %v8068_v53 = vpop.f32.mrb[145].mxu0 }
 0xbb0   :  { %v8062_v0 = vpop.f32.mrb[145].mxu1  ;;  %v5252_v49 = vpop.f32.mrb[146].mxu0 }
 0xbb1   :  { %v5211_v33 = vpop.f32.mrb[146].mxu1  ;;  %v5587_v61 = vpack.c.bf16 %v5252_v49, %v5249_v22  ;;  %v8069_v32 = vpop.f32.mrb[147].mxu0 }
 0xbb2   :  { %v5586_v2 = vpack.c.bf16 %v5211_v33, %v5208_v57  ;;  %v8063_v35 = vpop.f32.mrb[147].mxu1 }
 0xbb4   :  { %8124 = vmatprep.mubr.msk.bf16.mxu1 %vm354_vm1, %v5586_v2 }
 0xbb5   :  { %8125 = vmatmul.mubr.msk.bf16.gmra.mrb[168].mxu1 %vm354_vm1, %v5587_v61 }
 0xbbc   :  { %v5331_v48 = vpop.f32.mrb[148].mxu0 }
 0xbbd   :  { %v5290_v18 = vpop.f32.mrb[148].mxu1  ;;  %v8080_v52 = vpop.f32.mrb[149].mxu0 }
 0xbbe   :  { %v8074_v13 = vpop.f32.mrb[149].mxu1  ;;  %v5334_v11 = vpop.f32.mrb[150].mxu0 }
 0xbbf   :  { %v5293_v26 = vpop.f32.mrb[150].mxu1  ;;  %v5589_v14 = vpack.c.bf16 %v5334_v11, %v5331_v48  ;;  %v8081_v30 = vpop.f32.mrb[151].mxu0  ;;  %v11984_v48 = vld [vmem:[%s12646_s2 + $0x50] ss:$0 sm:$0xff] }
 0xbc0   :  { %v5588_v6 = vpack.c.bf16 %v5293_v26, %v5290_v18  ;;  %v8075_v56 = vpop.f32.mrb[151].mxu1 }
 0xbc2   :  { %8128 = vmatprep.mubr.msk.bf16.mxu1 %vm354_vm1, %v5588_v6 }
 0xbc3   :  { %8129 = vmatmul.mubr.msk.bf16.gmra.mrb[172].mxu1 %vm354_vm1, %v5589_v14 }
 0xbc4   :  { %v5413_v50 = vpop.f32.mrb[152].mxu0 }
 0xbc5   :  { %v5372_v8 = vpop.f32.mrb[152].mxu1  ;;  %v8092_v60 = vpop.f32.mrb[153].mxu0 }
 0xbc6   :  { %v8086_v9 = vpop.f32.mrb[153].mxu1  ;;  %v5416_v36 = vpop.f32.mrb[154].mxu0 }
 0xbc7   :  { %v5375_v15 = vpop.f32.mrb[154].mxu1  ;;  %v5591_v47 = vpack.c.bf16 %v5416_v36, %v5413_v50  ;;  %v8093_v42 = vpop.f32.mrb[155].mxu0 }
 0xbc8   :  { %v5590_v31 = vpack.c.bf16 %v5375_v15, %v5372_v8  ;;  %v8087_v46 = vpop.f32.mrb[155].mxu1 }
 0xbca   :  { %8132 = vmatprep.mubr.msk.bf16.mxu1 %vm354_vm1, %v5590_v31 }
 0xbcb   :  { %8133 = vmatmul.mubr.msk.bf16.gmra.mrb[176].mxu1 %vm354_vm1, %v5591_v47 }
 0xbcc   :  { %v5495_v21 = vpop.f32.mrb[156].mxu0 }
 0xbcd   :  { %v5454_v51 = vpop.f32.mrb[156].mxu1  ;;  %v8104_v10 = vpop.f32.mrb[157].mxu0 }
 0xbce   :  { %v8098_v7 = vpop.f32.mrb[157].mxu1  ;;  %v5498_v43 = vpop.f32.mrb[158].mxu0  ;;  %v8816_v10 = vld [vmem:[%s12645_s1 + $0x68] ss:$0 sps:$4 sm:$0xff]  }
 0xbcf   :  { %v5457_v62 = vpop.f32.mrb[158].mxu1  ;;  %v5593_v39 = vpack.c.bf16 %v5498_v43, %v5495_v21  ;;  %v8105_v4 = vpop.f32.mrb[159].mxu0 }
 0xbd0   :  { %v5592_v54 = vpack.c.bf16 %v5457_v62, %v5454_v51  ;;  %v8099_v63 = vpop.f32.mrb[159].mxu1  ;;  %v6014_v62 = vsel %vm530_vm0, %v8816_v10, 0 }
 0xbd2   :  { %8136 = vmatprep.mubr.msk.bf16.mxu1 %vm354_vm1, %v5592_v54 }
 0xbd3   :  { %8137 = vmatmul.mubr.msk.bf16.gmra.mrb[180].mxu1 %vm354_vm1, %v5593_v39 }
 0xbd4   :  { %v5577_v22 = vpop.f32.mrb[160].mxu0 }
 0xbd5   :  { %v5536_v57 = vpop.f32.mrb[160].mxu1  ;;  %v8116_v53 = vpop.f32.mrb[161].mxu0 }
 0xbd6   :  { %v8110_v0 = vpop.f32.mrb[161].mxu1  ;;  %v5580_v49 = vpop.f32.mrb[162].mxu0 }
 0xbd7   :  { %v5539_v33 = vpop.f32.mrb[162].mxu1  ;;  %v5595_v61 = vpack.c.bf16 %v5580_v49, %v5577_v22  ;;  %v8117_v32 = vpop.f32.mrb[163].mxu0 }
 0xbd8   :  { %v5594_v2 = vpack.c.bf16 %v5539_v33, %v5536_v57  ;;  %v8111_v35 = vpop.f32.mrb[163].mxu1 }
 0xbda   :  { %8140 = vmatprep.mubr.msk.bf16.mxu1 %vm354_vm1, %v5594_v2 }
 0xbdb   :  { %8141 = vmatmul.mubr.msk.bf16.gmra.mrb[184].mxu1 %vm354_vm1, %v5595_v61 }
 0xc5b   :  { %v8122_v18 = vpop.f32.mrb[164].mxu1 }
 0xc5c   :  { %v5682_v52 = vadd.f32 %v8122_v18, %v11984_v48  ;;  %v11987_v13 = vpop.f32.mrb[165].mxu1 }
 0xc5d   :  { %v8123_v11 = vpop.f32.mrb[166].mxu1 }
 0xc5e   :  { %v11990_v26 = vadd.f32 %v5682_v52, %v11821_v37  ;;  %v5685_v14 = vadd.f32 %v8123_v11, %v11984_v48  ;;  %v11993_v30 = vpop.f32.mrb[167].mxu1 }
 0xc60   :  { %v11996_v6 = vadd.f32 %v5685_v14, %v11816_v23  ;;  %v5794_v56 = vmax.f32 %v11990_v26, 0.0  ;;  %v8815_v23 = vld [vmem:[%s12645_s1 + $0x60] sm:$0xff]  }
 0xc61   :  { %8144 = vmatprep.subr.bf16.mxu0 %v8815_v23 }
 0xc62   :  { %v5795_v50 = vmax.f32 %v11996_v6, 0.0  ;;  %8145 = vmatpush3.bf16.msra.mxu0 %v8815_v23 }
 0xc63   :  { %8196 = vmatprep.subr.msk.bf16.mxu0 %vm530_vm0, %v8816_v10  ;;  %vm7171_vm0 = vcmask 916480  }
 0xc64   :  { %v8695_v8 = vpack.i.bf16 %v5795_v50, %v5794_v56 }
 0xc66   :  { %8696 = vrot.lane.b32.xlu0 %v8695_v8, %s9366_s24  ;;  %8147 = vmatpush3.bf16.msra.mxu0 %v6014_v62 }
 0xc88   :  { %v8126_v37 = vpop.f32.mrb[168].mxu1 }
 0xc89   :  { %v5689_v60 = vpop.f32.mrb[169].mxu1  ;;  %v5698_v42 = vadd.f32 %v8126_v37, %v11984_v48 }
 0xc8a   :  { %v5690_v9 = vadd.f32 %v11984_v48, %v5689_v60  ;;  %v8127_v36 = vpop.f32.mrb[170].mxu1 }
 0xc8b   :  { %v5701_v15 = vadd.f32 %v8127_v36, %v11984_v48  ;;  %v5692_v47 = vpop.f32.mrb[171].mxu1  ;;  %v12025_v7 = vadd.f32 %v5698_v42, %v11841_v19 }
 0xc8c   :  { %v12012_v31 = vadd.f32 %v5690_v9, %v11847_v29  ;;  %v5693_v46 = vadd.f32 %v11984_v48, %v5692_v47 }
 0xc8d   :  { %v12016_v21 = vadd.f32 %v5701_v15, %v11844_v24  ;;  %v5798_v39 = vmax.f32 %v12025_v7, 0.0 }
 0xc8e   :  { %v12019_v51 = vadd.f32 %v5693_v46, %v11850_v12  ;;  %v5796_v29 = vmax.f32 %v12012_v31, 0.0 }
 0xc8f   :  { %v5799_v24 = vmax.f32 %v12016_v21, 0.0 }
 0xc90   :  { %v5797_v43 = vmax.f32 %v12019_v51, 0.0 }
 0xc91   :  { %v8715_v4 = vpack.i.bf16 %v5799_v24, %v5798_v39 }
 0xc92   :  { %v8710_v12 = vpack.i.bf16 %v5797_v43, %v5796_v29 }
 0xc94   :  { %8711 = vrot.lane.b32.xlu0 %v8710_v12, %s9367_s25  ;;  %8701 = vrot.lane.b32.xlu1 %v8710_v12, %s9366_s24 }
 0xc96   :  { %v8130_v19 = vpop.f32.mrb[172].mxu1 }
 0xc97   :  { %v5714_v54 = vadd.f32 %v8130_v19, %v11984_v48  ;;  %v5705_v63 = vpop.f32.mrb[173].mxu1 }
 0xc98   :  { %v5706_v22 = vadd.f32 %v11984_v48, %v5705_v63  ;;  %v8131_v57 = vpop.f32.mrb[174].mxu1  ;;  %8716 = vrot.lane.b32.xlu0 %v8715_v4, %s9366_s24  ;;  %8706 = vrot.lane.b32.xlu1 %v8715_v4, %s9367_s25 }
 0xc99   :  { %v5778_v53 = vadd.f32 %v5714_v54, %v11867_v17  ;;  %v5717_v0 = vadd.f32 %v8131_v57, %v11984_v48  ;;  %v5708_v49 = vpop.f32.mrb[175].mxu1 }
 0xc9a   :  { %v5776_v33 = vadd.f32 %v5706_v22, %v11873_v44  ;;  %v5709_v61 = vadd.f32 %v11984_v48, %v5708_v49 }
 0xc9b   :  { %v5779_v32 = vadd.f32 %v5717_v0, %v11870_v38  ;;  %v5802_v35 = vmax.f32 %v5778_v53, 0.0 }
 0xc9c   :  { %v5777_v2 = vadd.f32 %v5709_v61, %v11876_v3  ;;  %v5800_v52 = vmax.f32 %v5776_v33, 0.0 }
 0xc9d   :  { %v5803_v18 = vmax.f32 %v5779_v32, 0.0 }
 0xc9e   :  { %v5801_v11 = vmax.f32 %v5777_v2, 0.0  ;;  %v8134_v14 = vpop.f32.mrb[176].mxu1 }
 0xc9f   :  { %v8725_v8 = vpack.i.bf16 %v5803_v18, %v5802_v35  ;;  %v5730_v37 = vadd.f32 %v8134_v14, %v11984_v48  ;;  %v12054_v17 = vpop.f32.mrb[177].mxu1 }
 0xca0   :  { %v8730_v60 = vpack.i.bf16 %v5801_v11, %v5800_v52  ;;  %v8135_v9 = vpop.f32.mrb[178].mxu1 }
 0xca1   :  { %v12057_v44 = vadd.f32 %v5730_v37, %v11887_v55  ;;  %v5733_v36 = vadd.f32 %v8135_v9, %v11984_v48  ;;  %v12060_v38 = vpop.f32.mrb[179].mxu1 }
 0xca2   :  { %8731 = vrot.lane.b32.xlu0 %v8730_v60, %s9367_s25  ;;  %8721 = vrot.lane.b32.xlu1 %v8730_v60, %s9366_s24 }
 0xca3   :  { %v12065_v3 = vadd.f32 %v5733_v36, %v11890_v40  ;;  %v5806_v23 = vmax.f32 %v12057_v44, 0.0 }
 0xca5   :  { %v5807_v15 = vmax.f32 %v12065_v3, 0.0 }
 0xca6   :  { %v8138_v47 = vpop.f32.mrb[180].mxu1  ;;  %8726 = vrot.lane.b32.xlu1 %v8725_v8, %s9367_s25 }
 0xca7   :  { %v8735_v55 = vpack.i.bf16 %v5807_v15, %v5806_v23  ;;  %v5737_v42 = vpop.f32.mrb[181].mxu1  ;;  %v5746_v12 = vadd.f32 %v8138_v47, %v11984_v48 }
 0xca8   :  { %v5738_v46 = vadd.f32 %v11984_v48, %v5737_v42  ;;  %v8139_v10 = vpop.f32.mrb[182].mxu1 }
 0xca9   :  { %v5749_v62 = vadd.f32 %v8139_v10, %v11984_v48  ;;  %v5740_v40 = vpop.f32.mrb[183].mxu1  ;;  %8736 = vrot.lane.b32.xlu0 %v8735_v55, %s9366_s24  ;;  %v12089_v22 = vadd.f32 %v5746_v12, %v11913_v1 }
 0xcaa   :  { %v12079_v19 = vadd.f32 %v5738_v46, %v11923_v45  ;;  %v5741_v4 = vadd.f32 %v11984_v48, %v5740_v40 }
 0xcab   :  { %v12083_v54 = vadd.f32 %v5749_v62, %v11916_v5  ;;  %v5810_v35 = vmax.f32 %v12089_v22, 0.0 }
 0xcac   :  { %v12086_v63 = vadd.f32 %v5741_v4, %v11926_v27  ;;  %v5808_v57 = vmax.f32 %v12079_v19, 0.0 }
 0xcad   :  { %v5811_v33 = vmax.f32 %v12083_v54, 0.0 }
 0xcae   :  { %v5809_v53 = vmax.f32 %v12086_v63, 0.0  ;;  %v8142_v0 = vpop.f32.mrb[184].mxu1 }
 0xcaf   :  { %v5762_v49 = vadd.f32 %v8142_v0, %v11984_v48  ;;  %v5753_v45 = vpop.f32.mrb[185].mxu1 }
 0xcb0   :  { %v5754_v61 = vadd.f32 %v11984_v48, %v5753_v45  ;;  %v8143_v5 = vpop.f32.mrb[186].mxu1  ;;  %v8750_v27 = vpack.i.bf16 %v5809_v53, %v5808_v57 }
 0xcb1   :  { %v5790_v1 = vadd.f32 %v5762_v49, %v11939_v59  ;;  %v5765_v32 = vadd.f32 %v8143_v5, %v11984_v48  ;;  %v5756_v2 = vpop.f32.mrb[187].mxu1  ;;  %v8755_v59 = vpack.i.bf16 %v5811_v33, %v5810_v35 }
 0xcb2   :  { %v5788_v18 = vadd.f32 %v5754_v61, %v11949_v25  ;;  %v5757_v52 = vadd.f32 %v11984_v48, %v5756_v2  ;;  %8751 = vrot.lane.b32.xlu0 %v8750_v27, %s9367_s25  ;;  %8741 = vrot.lane.b32.xlu1 %v8750_v27, %s9366_s24 }
 0xcb3   :  { %v5791_v11 = vadd.f32 %v5765_v32, %v11942_v16  ;;  %v5814_v8 = vmax.f32 %v5790_v1, 0.0  ;;  %v5674_v16 = vadd.f32 %v11984_v48, %v11987_v13 }
 0xcb4   :  { %v5789_v14 = vadd.f32 %v5757_v52, %v11952_v20  ;;  %v5812_v60 = vmax.f32 %v5788_v18, 0.0  ;;  %v5677_v20 = vadd.f32 %v11984_v48, %v11993_v30 }
 0xcb5   :  { %v5815_v37 = vmax.f32 %v5791_v11, 0.0  ;;  %v5768_v55 = vadd.f32 %v5674_v16, %v11810_v41 }
 0xcb6   :  { %v5813_v9 = vmax.f32 %v5789_v14, 0.0  ;;  %8756 = vrot.lane.b32.xlu0 %v8755_v59, %s9366_s24  ;;  %8746 = vrot.lane.b32.xlu1 %v8755_v59, %s9367_s25  ;;  %v5769_v42 = vadd.f32 %v5677_v20, %v11813_v58 }
 0xcb7   :  { %v8770_v25 = vpack.i.bf16 %v5815_v37, %v5814_v8  ;;  %v5792_v62 = vmax.f32 %v5768_v55, 0.0 }
 0xcb8   :  { %v8765_v36 = vpack.i.bf16 %v5813_v9, %v5812_v60  ;;  %v5793_v40 = vmax.f32 %v5769_v42, 0.0 }
 0xcba   :  { %8766 = vrot.lane.b32.xlu0 %v8765_v36, %s9367_s25  ;;  %8761 = vrot.lane.b32.xlu1 %v8765_v36, %s9366_s24 }
 0xcbe   :  { %8771 = vrot.lane.b32.xlu1 %v8770_v25, %s9367_s25 }
 0xcd8   :  { %v8697_v47 = vpop.permute.xlu0 %8696 }
 0xcd9   :  { %v8699_v46 = vunpack.i.h.bf16 %v8697_v47  ;;  %v8698_v10 = vunpack.i.l.bf16 %v8697_v47 }
 0xcdb   :  { %v5936_v45 = vsel %vm354_vm1, %v5792_v62, %v8698_v10  ;;  %v5937_v13 = vsel %vm354_vm1, %v5793_v40, %v8699_v46  ;;  %v5722_v10 = vadd.f32 %v11984_v48, %v12054_v17  ;;  %v5725_v62 = vadd.f32 %v11984_v48, %v12060_v38 }
 0xcdd   :  { %v5780_v7 = vadd.f32 %v5722_v10, %v11897_v28 }
 0xd06   :  { %v8712_v12 = vpop.permute.xlu0 %8711  ;;  %v8702_v4 = vpop.permute.xlu1 %8701 }
 0xd07   :  { %v8714_v0 = vunpack.i.h.bf16 %v8712_v12  ;;  %v8713_v49 = vunpack.i.l.bf16 %v8712_v12  ;;  %v8704_v61 = vunpack.i.h.bf16 %v8702_v4  ;;  %v8703_v5 = vunpack.i.l.bf16 %v8702_v4 }
 0xd08   :  { %v5804_v4 = vmax.f32 %v5780_v7, 0.0 }
 0xd09   :  { %v5952_v30 = vsel %vm395_vm2, %v5936_v45, %v8713_v49  ;;  %v5953_v41 = vsel %vm395_vm2, %v5937_v13, %v8714_v0  ;;  %v5939_v2 = vsel %vm354_vm1, %v5795_v50, %v8704_v61  ;;  %v5938_v18 = vsel %vm354_vm1, %v5794_v56, %v8703_v5 }
 0xd0a   :  { %v5968_v27 = vpack.c.bf16 %v5953_v41, %v5952_v30  ;;  %v8707_v58 = vpop.permute.xlu1 %8706  ;;  %v8717_v14 = vpop.permute.xlu0 %8716 }
 0xd0b   :  { %v8709_v1 = vunpack.i.h.bf16 %v8707_v58  ;;  %v8708_v32 = vunpack.i.l.bf16 %v8707_v58  ;;  %v8719_v8 = vunpack.i.h.bf16 %v8717_v14  ;;  %v8718_v37 = vunpack.i.l.bf16 %v8717_v14 }
 0xd0c   :  { %8148 = vmatprep.mubr.msk.bf16.mxu0 %vm469_vm3, %v5968_v27 }
 0xd0d   :  { %v5954_v52 = vsel %vm395_vm2, %v5938_v18, %v8708_v32  ;;  %v5955_v11 = vsel %vm395_vm2, %v5939_v2, %v8709_v1  ;;  %v5941_v26 = vsel %vm354_vm1, %v5797_v43, %v8719_v8  ;;  %v5940_v56 = vsel %vm354_vm1, %v5796_v29, %v8718_v37 }
 0xd0e   :  { %v5969_v59 = vpack.c.bf16 %v5955_v11, %v5954_v52 }
 0xd10   :  { %8149 = vmatmul.mubr.msk.bf16.vlgmr.msra.gmra.mrb[164].mxu0 %vm469_vm3, %v5969_v59 }
 0xd14   :  { %v8732_v60 = vpop.permute.xlu0 %8731  ;;  %v8722_v6 = vpop.permute.xlu1 %8721 }
 0xd15   :  { %v8734_v9 = vunpack.i.h.bf16 %v8732_v60  ;;  %v8733_v50 = vunpack.i.l.bf16 %v8732_v60  ;;  %v8724_v25 = vunpack.i.h.bf16 %v8722_v6  ;;  %v8723_v36 = vunpack.i.l.bf16 %v8722_v6 }
 0xd17   :  { %v5956_v16 = vsel %vm395_vm2, %v5940_v56, %v8733_v50  ;;  %v5957_v20 = vsel %vm395_vm2, %v5941_v26, %v8734_v9  ;;  %v5943_v51 = vsel %vm354_vm1, %v5799_v24, %v8724_v25  ;;  %v5942_v31 = vsel %vm354_vm1, %v5798_v39, %v8723_v36 }
 0xd18   :  { %v5970_v47 = vpack.c.bf16 %v5957_v20, %v5956_v16  ;;  %v8727_v55 = vpop.permute.xlu1 %8726  ;;  %v5781_v24 = vadd.f32 %v5725_v62, %v11900_v34  ;;  %v12197_v20 = vld [vmem:[%s12646_s2 + $0x58] ss:$0 sm:$0xff] }
 0xd19   :  { %v8729_v42 = vunpack.i.h.bf16 %v8727_v55  ;;  %v8728_v46 = vunpack.i.l.bf16 %v8727_v55 }
 0xd1a   :  { %8152 = vmatprep.mubr.msk.bf16.mxu0 %vm469_vm3, %v5970_v47  ;;  %v5805_v0 = vmax.f32 %v5781_v24, 0.0 }
 0xd1b   :  { %v5958_v29 = vsel %vm395_vm2, %v5942_v31, %v8728_v46  ;;  %v5959_v43 = vsel %vm395_vm2, %v5943_v51, %v8729_v42  ;;  %v8737_v21 = vpop.permute.xlu0 %8736 }
 0xd1c   :  { %v5971_v40 = vpack.c.bf16 %v5959_v43, %v5958_v29  ;;  %v8739_v39 = vunpack.i.h.bf16 %v8737_v21  ;;  %v8738_v12 = vunpack.i.l.bf16 %v8737_v21 }
 0xd1e   :  { %8153 = vmatmul.mubr.msk.bf16.gmra.mrb[168].mxu0 %vm469_vm3, %v5971_v40  ;;  %v5945_v17 = vsel %vm354_vm1, %v5805_v0, %v8739_v39  ;;  %v5944_v48 = vsel %vm354_vm1, %v5804_v4, %v8738_v12 }
 0xd24   :  { %v8752_v49 = vpop.permute.xlu0 %8751  ;;  %v8742_v45 = vpop.permute.xlu1 %8741 }
 0xd25   :  { %v8754_v13 = vunpack.i.h.bf16 %v8752_v49  ;;  %v8753_v61 = vunpack.i.l.bf16 %v8752_v49  ;;  %v8744_v38 = vunpack.i.h.bf16 %v8742_v45  ;;  %v8743_v5 = vunpack.i.l.bf16 %v8742_v45 }
 0xd27   :  { %v5960_v30 = vsel %vm395_vm2, %v5944_v48, %v8753_v61  ;;  %v5961_v28 = vsel %vm395_vm2, %v5945_v17, %v8754_v13  ;;  %v5947_v32 = vsel %vm354_vm1, %v5807_v15, %v8744_v38  ;;  %v5946_v2 = vsel %vm354_vm1, %v5806_v23, %v8743_v5 }
 0xd28   :  { %v5972_v41 = vpack.c.bf16 %v5961_v28, %v5960_v30  ;;  %v8757_v34 = vpop.permute.xlu0 %8756  ;;  %v8747_v27 = vpop.permute.xlu1 %8746 }
 0xd29   :  { %v8749_v58 = vunpack.i.h.bf16 %v8747_v27  ;;  %v8748_v1 = vunpack.i.l.bf16 %v8747_v27  ;;  %v8759_v18 = vunpack.i.h.bf16 %v8757_v34  ;;  %v8758_v52 = vunpack.i.l.bf16 %v8757_v34 }
 0xd2a   :  { %8156 = vmatprep.mubr.msk.bf16.mxu0 %vm469_vm3, %v5972_v41 }
 0xd2b   :  { %v5962_v11 = vsel %vm395_vm2, %v5946_v2, %v8748_v1  ;;  %v5963_v14 = vsel %vm395_vm2, %v5947_v32, %v8749_v58  ;;  %v5949_v3 = vsel %vm354_vm1, %v5809_v53, %v8759_v18  ;;  %v5948_v44 = vsel %vm354_vm1, %v5808_v57, %v8758_v52 }
 0xd2c   :  { %v5973_v59 = vpack.c.bf16 %v5963_v14, %v5962_v11  ;;  %v8767_v8 = vpop.permute.xlu0 %8766  ;;  %v8762_v37 = vpop.permute.xlu1 %8761 }
 0xd2d   :  { %v8769_v60 = vunpack.i.h.bf16 %v8767_v8  ;;  %v8768_v6 = vunpack.i.l.bf16 %v8767_v8  ;;  %v8764_v23 = vunpack.i.h.bf16 %v8762_v37  ;;  %v8763_v15 = vunpack.i.l.bf16 %v8762_v37 }
 0xd2e   :  { %8157 = vmatmul.mubr.msk.bf16.gmra.mrb[172].mxu0 %vm469_vm3, %v5973_v59 }
 0xd2f   :  { %v5964_v9 = vsel %vm395_vm2, %v5948_v44, %v8768_v6  ;;  %v5965_v50 = vsel %vm395_vm2, %v5949_v3, %v8769_v60  ;;  %v5951_v63 = vsel %vm354_vm1, %v5811_v33, %v8764_v23  ;;  %v5950_v19 = vsel %vm354_vm1, %v5810_v35, %v8763_v15 }
 0xd30   :  { %v5974_v26 = vpack.c.bf16 %v5965_v50, %v5964_v9  ;;  %v8772_v56 = vpop.permute.xlu1 %8771 }
 0xd31   :  { %v8774_v25 = vunpack.i.h.bf16 %v8772_v56  ;;  %v8773_v36 = vunpack.i.l.bf16 %v8772_v56 }
 0xd32   :  { %8160 = vmatprep.mubr.msk.bf16.mxu0 %vm469_vm3, %v5974_v26 }
 0xd33   :  { %v5966_v57 = vsel %vm395_vm2, %v5950_v19, %v8773_v36  ;;  %v5967_v53 = vsel %vm395_vm2, %v5951_v63, %v8774_v25 }
 0xd34   :  { %v5975_v16 = vpack.c.bf16 %v5967_v53, %v5966_v57 }
 0xd36   :  { %8161 = vmatmul.mubr.msk.bf16.gmra.mrb[176].mxu0 %vm469_vm3, %v5975_v16 }
 0xde3   :  { %v8150_v54 = vpop.f32.mrb[164].mxu0 }
 0xde4   :  { %v12200_v33 = vadd.f32 %v8150_v54, %v12197_v20  ;;  %v6050_v22 = vpop.f32.mrb[165].mxu0 }
 0xde5   :  { %v8151_v35 = vpop.f32.mrb[166].mxu0  ;;  %v12237_v37 = vadd.f32 %v12197_v20, %v6050_v22 }
 0xde6   :  { %v7460_v47 = vmul.f32 -1.442695, %v12200_v33  ;;  %v12204_v55 = vadd.f32 %v8151_v35, %v12197_v20  ;;  %v6053_v42 = vpop.f32.mrb[167].mxu0 }
 0xde7   :  { %v12247_v15 = vadd.f32 %v12197_v20, %v6053_v42  ;;  %v7458_v25 = vmul.f32 -1.442695, %v12237_v37 }
 0xde8   :  { %9241 = vpow2.f32 %v7460_v47  ;;  %v7461_v46 = vmul.f32 -1.442695, %v12204_v55 }
 0xde9   :  { %v7459_v57 = vmul.f32 -1.442695, %v12247_v15 }
 0xdea   :  { %9243 = vpow2.f32 %v7461_v46 }
 0xdf1   :  { %v8154_v51 = vpop.f32.mrb[168].mxu0 }
 0xdf2   :  { %v9242_v31 = vpop.eup %9241  ;;  %v12208_v29 = vadd.f32 %v8154_v51, %v12197_v20  ;;  %v6066_v43 = vpop.f32.mrb[169].mxu0 }
 0xdf3   :  { %v6163_v10 = vadd.f32 1.0, %v9242_v31  ;;  %v12211_v62 = vadd.f32 %v12197_v20, %v6066_v43  ;;  %v8155_v40 = vpop.f32.mrb[170].mxu0 }
 0xdf4   :  { %v9244_v21 = vpop.eup %9243  ;;  %v12214_v7 = vadd.f32 %v8155_v40, %v12197_v20  ;;  %v6069_v24 = vpop.f32.mrb[171].mxu0  ;;  %v7464_v12 = vmul.f32 -1.442695, %v12208_v29 }
 0xdf5   :  { %9245 = vrcp.f32 %v6163_v10  ;;  %v6164_v39 = vadd.f32 1.0, %v9244_v21  ;;  %v12218_v4 = vadd.f32 %v12197_v20, %v6069_v24  ;;  %v7462_v0 = vmul.f32 -1.442695, %v12211_v62 }
 0xdf6   :  { %v7465_v49 = vmul.f32 -1.442695, %v12214_v7 }
 0xdf7   :  { %9247 = vrcp.f32 %v6164_v39  ;;  %v7463_v45 = vmul.f32 -1.442695, %v12218_v4 }
 0xdf8   :  { %9249 = vpow2.f32 %v7464_v12 }
 0xdf9   :  { %9251 = vpow2.f32 %v7462_v0 }
 0xdfa   :  { %9253 = vpow2.f32 %v7465_v49 }
 0xdfb   :  { %9255 = vpow2.f32 %v7463_v45 }
 0xdff   :  { %v9246_v13 = vpop.eup %9245 }
 0xe00   :  { %6229 = vrot.lane.b32.xlu0 %v9246_v13, %s9368_s15 }
 0xe01   :  { %v9248_v61 = vpop.eup %9247  ;;  %v8158_v17 = vpop.f32.mrb[172].mxu0 }
 0xe02   :  { %v12225_v48 = vadd.f32 %v8158_v17, %v12197_v20  ;;  %v6082_v38 = vpop.f32.mrb[173].mxu0  ;;  %6231 = vrot.lane.b32.xlu1 %v9248_v61, %s9368_s15  ;;  %v9250_v5 = vpop.eup %9249 }
 0xe03   :  { %v8159_v30 = vpop.f32.mrb[174].mxu0  ;;  %v9252_v28 = vpop.eup %9251  ;;  %v6167_v41 = vadd.f32 1.0, %v9250_v5  ;;  %v12254_v26 = vadd.f32 %v12197_v20, %v6082_v38 }
 0xe04   :  { %v12229_v34 = vadd.f32 %v8159_v30, %v12197_v20  ;;  %v6085_v27 = vpop.f32.mrb[175].mxu0  ;;  %v9254_v58 = vpop.eup %9253  ;;  %v6165_v1 = vadd.f32 1.0, %v9252_v28  ;;  %v7468_v18 = vmul.f32 -1.442695, %v12225_v48 }
 0xe05   :  { %v9256_v32 = vpop.eup %9255  ;;  %9257 = vrcp.f32 %v6167_v41  ;;  %v6168_v2 = vadd.f32 1.0, %v9254_v58  ;;  %v12260_v19 = vadd.f32 %v12197_v20, %v6085_v27  ;;  %v7466_v16 = vmul.f32 -1.442695, %v12254_v26 }
 0xe06   :  { %v6166_v52 = vadd.f32 1.0, %v9256_v32  ;;  %v7469_v11 = vmul.f32 -1.442695, %v12229_v34 }
 0xe07   :  { %9259 = vrcp.f32 %v6168_v2  ;;  %v7467_v35 = vmul.f32 -1.442695, %v12260_v19 }
 0xe08   :  { %9261 = vrcp.f32 %v6165_v1 }
 0xe09   :  { %v8162_v14 = vpop.f32.mrb[176].mxu0  ;;  %9263 = vpow2.f32 %v7468_v18 }
 0xe0a   :  { %v12234_v59 = vadd.f32 %v8162_v14, %v12197_v20  ;;  %v6098_v8 = vpop.f32.mrb[177].mxu0  ;;  %9265 = vrcp.f32 %v6166_v52 }
 0xe0b   :  { %v12240_v60 = vadd.f32 %v12197_v20, %v6098_v8  ;;  %v8163_v6 = vpop.f32.mrb[178].mxu0  ;;  %9267 = vpow2.f32 %v7469_v11 }
 0xe0c   :  { %v7472_v3 = vmul.f32 -1.442695, %v12234_v59  ;;  %v12244_v44 = vadd.f32 %v8163_v6, %v12197_v20  ;;  %v6101_v23 = vpop.f32.mrb[179].mxu0 }
 0xe0d   :  { %v7470_v9 = vmul.f32 -1.442695, %v12240_v60  ;;  %v12251_v50 = vadd.f32 %v12197_v20, %v6101_v23 }
 0xe0e   :  { %9269 = vpow2.f32 %v7472_v3  ;;  %v7473_v56 = vmul.f32 -1.442695, %v12244_v44 }
 0xe0f   :  { %9271 = vpow2.f32 %v7470_v9  ;;  %v7471_v36 = vmul.f32 -1.442695, %v12251_v50  ;;  %v9258_v63 = vpop.eup %9257 }
 0xe10   :  { %9273 = vpow2.f32 %v7473_v56  ;;  %6237 = vrot.lane.b32.xlu0 %v9258_v63, %s9368_s15 }
 0xe11   :  { %9275 = vpow2.f32 %v7471_v36  ;;  %v9260_v53 = vpop.eup %9259 }
 0xe12   :  { %v9262_v54 = vpop.eup %9261  ;;  %9277 = vpow2.f32 %v7458_v25  ;;  %6239 = vrot.lane.b32.xlu1 %v9260_v53, %s9368_s15 }
 0xe13   :  { %v9264_v22 = vpop.eup %9263  ;;  %9279 = vpow2.f32 %v7459_v57 }
 0xe14   :  { %v9266_v47 = vpop.eup %9265  ;;  %v6171_v20 = vadd.f32 1.0, %v9264_v22  ;;  %6233 = vrot.lane.b32.xlu0 %v9262_v54, %s9368_s15  ;;  %9281 = vpow2.f32 %v7466_v16 }
 0xe15   :  { %v9268_v42 = vpop.eup %9267 }
 0xe16   :  { %9283 = vrcp.f32 %v6171_v20  ;;  %v6172_v46 = vadd.f32 1.0, %v9268_v42  ;;  %6235 = vrot.lane.b32.xlu1 %v9266_v47, %s9368_s15 }
 0xe17   :  { %9285 = vpow2.f32 %v7467_v35 }
 0xe18   :  { %v9270_v51 = vpop.eup %9269  ;;  %9287 = vrcp.f32 %v6172_v46 }
 0xe19   :  { %v9272_v31 = vpop.eup %9271  ;;  %v6175_v21 = vadd.f32 1.0, %v9270_v51 }
 0xe1a   :  { %v9274_v43 = vpop.eup %9273  ;;  %v6173_v10 = vadd.f32 1.0, %v9272_v31 }
 0xe1b   :  { %v9276_v40 = vpop.eup %9275  ;;  %v6176_v12 = vadd.f32 1.0, %v9274_v43 }
 0xe1c   :  { %9289 = vrcp.f32 %v6173_v10  ;;  %v6174_v24 = vadd.f32 1.0, %v9276_v40  ;;  %v9278_v39 = vpop.eup %9277 }
 0xe1d   :  { %v9280_v0 = vpop.eup %9279  ;;  %v6161_v45 = vadd.f32 1.0, %v9278_v39 }
 0xe1e   :  { %9291 = vrcp.f32 %v6174_v24  ;;  %v9282_v49 = vpop.eup %9281  ;;  %v6162_v17 = vadd.f32 1.0, %v9280_v0 }
 0xe1f   :  { %9293 = vrcp.f32 %v6175_v21  ;;  %v6169_v5 = vadd.f32 1.0, %v9282_v49 }
 0xe20   :  { %v9284_v13 = vpop.eup %9283  ;;  %9295 = vrcp.f32 %v6176_v12 }
 0xe21   :  { %v9286_v61 = vpop.eup %9285  ;;  %6245 = vrot.lane.b32.xlu0 %v9284_v13, %s9368_s15  ;;  %9297 = vrcp.f32 %v6161_v45 }
 0xe22   :  { %v9288_v38 = vpop.eup %9287  ;;  %9299 = vrcp.f32 %v6162_v17  ;;  %v6170_v28 = vadd.f32 1.0, %v9286_v61 }
 0xe23   :  { %6247 = vrot.lane.b32.xlu1 %v9288_v38, %s9368_s15  ;;  %9301 = vrcp.f32 %v6169_v5 }
 0xe24   :  { %9303 = vrcp.f32 %v6170_v28 }
 0xe26   :  { %v9290_v30 = vpop.eup %9289 }
 0xe27   :  { %6249 = vrot.lane.b32.xlu0 %v9290_v30, %s9368_s15 }
 0xe28   :  { %v9292_v41 = vpop.eup %9291 }
 0xe29   :  { %6251 = vrot.lane.b32.xlu1 %v9292_v41, %s9368_s15  ;;  %v9294_v27 = vpop.eup %9293 }
 0xe2a   :  { %v9296_v58 = vpop.eup %9295 }
 0xe2b   :  { %6253 = vrot.lane.b32.xlu0 %v9294_v27, %s9368_s15  ;;  %v9298_v1 = vpop.eup %9297 }
 0xe2c   :  { %v9300_v32 = vpop.eup %9299 }
 0xe2d   :  { %6255 = vrot.lane.b32.xlu1 %v9296_v58, %s9368_s15  ;;  %v9302_v2 = vpop.eup %9301 }
 0xe2e   :  { %v9304_v18 = vpop.eup %9303 }
 0xe2f   :  { %6225 = vrot.lane.b32.xlu0 %v9298_v1, %s9368_s15 }
 0xe31   :  { %6227 = vrot.lane.b32.xlu1 %v9300_v32, %s9368_s15 }
 0xe33   :  { %6241 = vrot.lane.b32.xlu0 %v9302_v2, %s9368_s15 }
 0xe35   :  { %6243 = vrot.lane.b32.xlu1 %v9304_v18, %s9368_s15 }
 0xe72   :  { %v6230_v52 = vpop.permute.xlu0 %6229 }
 0xe73   :  { %v12280_v11 = vmul.f32 %v6230_v52, %v12200_v33 }
 0xe74   :  { %v6232_v14 = vpop.permute.xlu1 %6231 }
 0xe75   :  { %v12283_v8 = vmul.f32 %v6232_v14, %v12204_v55  ;;  %v6299_v6 = vsel %vm395_vm2, %v12280_v11, 0.0 }
 0xe76   :  { %6300 = vadd.xlane.f32.xlu0 %v6299_v6 }
 0xe77   :  { %v6302_v3 = vsel %vm395_vm2, %v12283_v8, 0.0 }
 0xe78   :  { %6303 = vadd.xlane.f32.xlu1 %v6302_v3 }
 0xe82   :  { %v6238_v23 = vpop.permute.xlu0 %6237 }
 0xe83   :  { %v12290_v9 = vmul.f32 %v6238_v23, %v12208_v29 }
 0xe84   :  { %v6240_v56 = vpop.permute.xlu1 %6239 }
 0xe85   :  { %v6311_v33 = vsel %vm395_vm2, %v12290_v9, 0.0  ;;  %v12298_v36 = vmul.f32 %v6240_v56, %v12214_v7 }
 0xe86   :  { %v6234_v25 = vpop.permute.xlu0 %6233  ;;  %6312 = vadd.xlane.f32.xlu1 %v6311_v33 }
 0xe87   :  { %v12295_v55 = vmul.f32 %v6234_v25, %v12211_v62  ;;  %v6314_v53 = vsel %vm395_vm2, %v12298_v36, 0.0 }
 0xe88   :  { %v6236_v57 = vpop.permute.xlu1 %6235 }
 0xe89   :  { %v6305_v63 = vsel %vm395_vm2, %v12295_v55, 0.0  ;;  %v12303_v29 = vmul.f32 %v6236_v57, %v12218_v4 }
 0xe8a   :  { %6306 = vadd.xlane.f32.xlu0 %v6305_v63 }
 0xe8b   :  { %v6308_v16 = vsel %vm395_vm2, %v12303_v29, 0.0 }
 0xe8e   :  { %6315 = vadd.xlane.f32.xlu0 %v6314_v53 }
 0xe92   :  { %6309 = vadd.xlane.f32.xlu0 %v6308_v16 }
 0xe93   :  { %v6246_v62 = vpop.permute.xlu0 %6245 }
 0xe94   :  { %v12310_v7 = vmul.f32 %v6246_v62, %v12225_v48 }
 0xe95   :  { %v6248_v54 = vpop.permute.xlu1 %6247 }
 0xe96   :  { %v12313_v22 = vmul.f32 %v6248_v54, %v12229_v34  ;;  %v6323_v4 = vsel %vm395_vm2, %v12310_v7, 0.0 }
 0xe97   :  { %6324 = vadd.xlane.f32.xlu1 %v6323_v4 }
 0xe98   :  { %v6326_v35 = vsel %vm395_vm2, %v12313_v22, 0.0 }
 0xe99   :  { %v6250_v47 = vpop.permute.xlu0 %6249  ;;  %6327 = vadd.xlane.f32.xlu0 %v6326_v35 }
 0xe9a   :  { %v12320_v20 = vmul.f32 %v6250_v47, %v12240_v60 }
 0xe9b   :  { %v6252_v42 = vpop.permute.xlu1 %6251 }
 0xe9c   :  { %v12323_v48 = vmul.f32 %v6252_v42, %v12251_v50  ;;  %v6329_v34 = vsel %vm395_vm2, %v12320_v20, 0.0 }
 0xe9d   :  { %v6254_v46 = vpop.permute.xlu0 %6253  ;;  %6330 = vadd.xlane.f32.xlu1 %v6329_v34 }
 0xe9e   :  { %v12328_v51 = vmul.f32 %v6254_v46, %v12234_v59  ;;  %v6332_v31 = vsel %vm395_vm2, %v12323_v48, 0.0 }
 0xe9f   :  { %v6256_v43 = vpop.permute.xlu1 %6255  ;;  %6333 = vadd.xlane.f32.xlu0 %v6332_v31 }
 0xea0   :  { %v12333_v60 = vmul.f32 %v6256_v43, %v12244_v44  ;;  %v6335_v50 = vsel %vm395_vm2, %v12328_v51, 0.0 }
 0xea1   :  { %6336 = vadd.xlane.f32.xlu1 %v6335_v50  ;;  %v6226_v10 = vpop.permute.xlu0 %6225 }
 0xea2   :  { %v12338_v40 = vmul.f32 %v6226_v10, %v12237_v37  ;;  %v6338_v59 = vsel %vm395_vm2, %v12333_v60, 0.0 }
 0xea3   :  { %v6228_v21 = vpop.permute.xlu1 %6227  ;;  %6339 = vadd.xlane.f32.xlu0 %v6338_v59 }
 0xea4   :  { %v12343_v24 = vmul.f32 %v6228_v21, %v12247_v15  ;;  %v6293_v44 = vsel %vm395_vm2, %v12338_v40, 0.0 }
 0xea5   :  { %6294 = vadd.xlane.f32.xlu1 %v6293_v44  ;;  %v6242_v39 = vpop.permute.xlu0 %6241 }
 0xea6   :  { %v12348_v12 = vmul.f32 %v6242_v39, %v12254_v26  ;;  %v6296_v37 = vsel %vm395_vm2, %v12343_v24, 0.0 }
 0xea7   :  { %v6244_v0 = vpop.permute.xlu1 %6243  ;;  %6297 = vadd.xlane.f32.xlu0 %v6296_v37 }
 0xea8   :  { %v12353_v49 = vmul.f32 %v6244_v0, %v12260_v19  ;;  %v6317_v15 = vsel %vm395_vm2, %v12348_v12, 0.0 }
 0xea9   :  { %6318 = vadd.xlane.f32.xlu1 %v6317_v15 }
 0xeaa   :  { %v6320_v45 = vsel %vm395_vm2, %v12353_v49, 0.0 }
 0xeab   :  { %6321 = vadd.xlane.f32.xlu0 %v6320_v45 }
 0xf03   :  { %v6301_v13 = vpop.xlane.xlu0 %6300 }
 0xf05   :  { %v6304_v61 = vpop.xlane.xlu1 %6303 }
 0xf06   :  { %v6348_v26 = vadd.f32 %v6304_v61, %v6301_v13 }
 0xf08   :  { %v6349_v17 = vrot.slane %v6348_v26, 4 }
 0xf0a   :  { %v6350_v38 = vadd.f32 %v6349_v17, %v6348_v26 }
 0xf0c   :  { %v6351_v5 = vrot.slane %v6350_v38, 2 }
 0xf0e   :  { %v6352_v30 = vadd.f32 %v6351_v5, %v6350_v38 }
 0xf10   :  { %v6353_v28 = vrot.slane %v6352_v30, 1 }
 0xf12   :  { %v6354_v41 = vadd.f32 %v6353_v28, %v6352_v30 }
 0xf13   :  { %v6313_v14 = vpop.xlane.xlu1 %6312 }
 0xf14   :  { %v6398_v27 = vmul.f32 0.00390625, %v6354_v41 }
 0xf16   :  { %v12360_v19 = vsub.f32 %v12283_v8, %v6398_v27  ;;  %v12363_v58 = vsub.f32 %v12280_v11, %v6398_v27 }
 0xf17   :  { %v6307_v1 = vpop.xlane.xlu0 %6306 }
 0xf18   :  { %v6424_v32 = vmul.f32 %v12360_v19, %v12360_v19  ;;  %v6423_v2 = vmul.f32 %v12363_v58, %v12363_v58 }
 0xf1a   :  { %v6446_v18 = vsel %vm395_vm2, %v6424_v32, 0.0  ;;  %v6443_v52 = vsel %vm395_vm2, %v6423_v2, 0.0 }
 0xf1b   :  { %6447 = vadd.xlane.f32.xlu0 %v6446_v18  ;;  %6444 = vadd.xlane.f32.xlu1 %v6443_v52  ;;  %v6316_v6 = vpop.xlane.xlu0 %6315 }
 0xf1c   :  { %v6362_v8 = vadd.f32 %v6316_v6, %v6313_v14 }
 0xf1e   :  { %v6363_v3 = vrot.slane %v6362_v8, 4 }
 0xf1f   :  { %v6310_v23 = vpop.xlane.xlu0 %6309 }
 0xf20   :  { %v6364_v11 = vadd.f32 %v6363_v3, %v6362_v8  ;;  %v6355_v56 = vadd.f32 %v6310_v23, %v6307_v1 }
 0xf22   :  { %v6365_v33 = vrot.slane %v6364_v11, 2  ;;  %v6356_v25 = vrot.slane %v6355_v56, 4 }
 0xf24   :  { %v6366_v63 = vadd.f32 %v6365_v33, %v6364_v11  ;;  %v6357_v57 = vadd.f32 %v6356_v25, %v6355_v56  ;;  %v6325_v53 = vpop.xlane.xlu1 %6324 }
 0xf26   :  { %v6367_v16 = vrot.slane %v6366_v63, 1  ;;  %v6358_v62 = vrot.slane %v6357_v57, 2  ;;  %v6328_v54 = vpop.xlane.xlu0 %6327 }
 0xf27   :  { %v6376_v4 = vadd.f32 %v6328_v54, %v6325_v53 }
 0xf28   :  { %v6368_v35 = vadd.f32 %v6367_v16, %v6366_v63  ;;  %v6359_v47 = vadd.f32 %v6358_v62, %v6357_v57 }
 0xf29   :  { %v6377_v42 = vrot.slane %v6376_v4, 4 }
 0xf2a   :  { %v6331_v34 = vpop.xlane.xlu1 %6330  ;;  %v6400_v46 = vmul.f32 0.00390625, %v6368_v35  ;;  %v6360_v31 = vrot.slane %v6359_v47, 1 }
 0xf2b   :  { %v6378_v43 = vadd.f32 %v6377_v42, %v6376_v4 }
 0xf2c   :  { %v6334_v50 = vpop.xlane.xlu0 %6333  ;;  %v6361_v10 = vadd.f32 %v6360_v31, %v6359_v47  ;;  %v12372_v21 = vsub.f32 %v12298_v36, %v6400_v46  ;;  %v12375_v44 = vsub.f32 %v12290_v9, %v6400_v46 }
 0xf2d   :  { %v6383_v59 = vadd.f32 %v6334_v50, %v6331_v34  ;;  %v6379_v39 = vrot.slane %v6378_v43, 2 }
 0xf2e   :  { %v6337_v37 = vpop.xlane.xlu1 %6336  ;;  %v6399_v0 = vmul.f32 0.00390625, %v6361_v10  ;;  %v6428_v45 = vmul.f32 %v12372_v21, %v12372_v21  ;;  %v6427_v13 = vmul.f32 %v12375_v44, %v12375_v44 }
 0xf2f   :  { %v6384_v15 = vrot.slane %v6383_v59, 4  ;;  %v6380_v61 = vadd.f32 %v6379_v39, %v6378_v43 }
 0xf30   :  { %v6340_v26 = vpop.xlane.xlu0 %6339  ;;  %v6458_v38 = vsel %vm395_vm2, %v6428_v45, 0.0  ;;  %v6455_v36 = vsel %vm395_vm2, %v6427_v13, 0.0  ;;  %v12384_v28 = vsub.f32 %v12303_v29, %v6399_v0  ;;  %v12387_v41 = vsub.f32 %v12295_v55, %v6399_v0 }
 0xf31   :  { %v6385_v17 = vadd.f32 %v6384_v15, %v6383_v59  ;;  %v6390_v5 = vadd.f32 %v6340_v26, %v6337_v37  ;;  %v6381_v9 = vrot.slane %v6380_v61, 1  ;;  %6459 = vadd.xlane.f32.xlu0 %v6458_v38  ;;  %6456 = vadd.xlane.f32.xlu1 %v6455_v36 }
 0xf32   :  { %v6295_v30 = vpop.xlane.xlu1 %6294  ;;  %v6426_v2 = vmul.f32 %v12384_v28, %v12384_v28  ;;  %v6425_v18 = vmul.f32 %v12387_v41, %v12387_v41 }
 0xf33   :  { %v6386_v27 = vrot.slane %v6385_v17, 2  ;;  %v6391_v1 = vrot.slane %v6390_v5, 4  ;;  %v6382_v32 = vadd.f32 %v6381_v9, %v6380_v61 }
 0xf34   :  { %v6298_v52 = vpop.xlane.xlu0 %6297  ;;  %v6452_v29 = vsel %vm395_vm2, %v6426_v2, 0.0  ;;  %v6449_v23 = vsel %vm395_vm2, %v6425_v18, 0.0 }
 0xf35   :  { %v6387_v14 = vadd.f32 %v6386_v27, %v6385_v17  ;;  %v6392_v6 = vadd.f32 %v6391_v1, %v6390_v5  ;;  %v6341_v8 = vadd.f32 %v6298_v52, %v6295_v30  ;;  %v6402_v3 = vmul.f32 0.00390625, %v6382_v32  ;;  %6453 = vadd.xlane.f32.xlu0 %v6452_v29  ;;  %6450 = vadd.xlane.f32.xlu1 %v6449_v23 }
 0xf36   :  { %v6319_v33 = vpop.xlane.xlu1 %6318 }
 0xf37   :  { %v6388_v55 = vrot.slane %v6387_v14, 1  ;;  %v6393_v11 = vrot.slane %v6392_v6, 2  ;;  %v6342_v56 = vrot.slane %v6341_v8, 4  ;;  %v12396_v63 = vsub.f32 %v12313_v22, %v6402_v3 }
 0xf38   :  { %v6322_v25 = vpop.xlane.xlu0 %6321  ;;  %v12399_v57 = vsub.f32 %v12310_v7, %v6402_v3 }
 0xf39   :  { %v6389_v53 = vadd.f32 %v6388_v55, %v6387_v14  ;;  %v6394_v16 = vadd.f32 %v6393_v11, %v6392_v6  ;;  %v6343_v62 = vadd.f32 %v6342_v56, %v6341_v8  ;;  %v6369_v54 = vadd.f32 %v6322_v25, %v6319_v33 }
 0xf3a   :  { %v6432_v4 = vmul.f32 %v12396_v63, %v12396_v63  ;;  %v6431_v35 = vmul.f32 %v12399_v57, %v12399_v57 }
 0xf3b   :  { %v6403_v47 = vmul.f32 0.00390625, %v6389_v53  ;;  %v6395_v42 = vrot.slane %v6394_v16, 1  ;;  %v6344_v34 = vrot.slane %v6343_v62, 2  ;;  %v6370_v46 = vrot.slane %v6369_v54, 4 }
 0xf3c   :  { %v6470_v22 = vsel %vm395_vm2, %v6432_v4, 0.0  ;;  %v6467_v31 = vsel %vm395_vm2, %v6431_v35, 0.0 }
 0xf3d   :  { %v6396_v7 = vadd.f32 %v6395_v42, %v6394_v16  ;;  %v6345_v43 = vadd.f32 %v6344_v34, %v6343_v62  ;;  %v6371_v50 = vadd.f32 %v6370_v46, %v6369_v54  ;;  %6471 = vadd.xlane.f32.xlu0 %v6470_v22  ;;  %6468 = vadd.xlane.f32.xlu1 %v6467_v31 }
 0xf3e   :  { %v12408_v10 = vsub.f32 %v12323_v48, %v6403_v47  ;;  %v12411_v59 = vsub.f32 %v12320_v20, %v6403_v47 }
 0xf3f   :  { %v6404_v39 = vmul.f32 0.00390625, %v6396_v7  ;;  %v6346_v37 = vrot.slane %v6345_v43, 1  ;;  %v6372_v0 = vrot.slane %v6371_v50, 2  ;;  %v12458_v7 = vld [vmem:[%s12646_s2 + $0x60] sm:$0xff] }
 0xf40   :  { %v6434_v15 = vmul.f32 %v12408_v10, %v12408_v10  ;;  %v6433_v45 = vmul.f32 %v12411_v59, %v12411_v59 }
 0xf41   :  { %v6347_v13 = vadd.f32 %v6346_v37, %v6345_v43  ;;  %v6373_v61 = vadd.f32 %v6372_v0, %v6371_v50  ;;  %v12418_v26 = vsub.f32 %v12333_v60, %v6404_v39  ;;  %v12421_v48 = vsub.f32 %v12328_v51, %v6404_v39  ;;  %v12463_v43 = vld [vmem:[%s12646_s2 + $0x68] sm:$0xff] }
 0xf42   :  { %v6476_v20 = vsel %vm395_vm2, %v6434_v15, 0.0  ;;  %v6473_v17 = vsel %vm395_vm2, %v6433_v45, 0.0  ;;  %v12470_v15 = vld [vmem:[%s12646_s2 + $0x70] sm:$0xff]  ;;  %v12475_v45 = vld [vmem:[%s12646_s2 + $0x78] sm:$0xff] }
 0xf43   :  { %v6397_v38 = vmul.f32 0.00390625, %v6347_v13  ;;  %v6374_v36 = vrot.slane %v6373_v61, 1  ;;  %6477 = vadd.xlane.f32.xlu0 %v6476_v20  ;;  %6474 = vadd.xlane.f32.xlu1 %v6473_v17  ;;  %v6436_v5 = vmul.f32 %v12418_v26, %v12418_v26  ;;  %v6435_v9 = vmul.f32 %v12421_v48, %v12421_v48 }
 0xf45   :  { %v6375_v30 = vadd.f32 %v6374_v36, %v6373_v61  ;;  %v6482_v60 = vsel %vm395_vm2, %v6436_v5, 0.0  ;;  %v6479_v51 = vsel %vm395_vm2, %v6435_v9, 0.0  ;;  %v12432_v27 = vsub.f32 %v12343_v24, %v6397_v38 }
 0xf46   :  { %v12435_v1 = vsub.f32 %v12338_v40, %v6397_v38 }
 0xf47   :  { %v6401_v32 = vmul.f32 0.00390625, %v6375_v30  ;;  %6483 = vadd.xlane.f32.xlu0 %v6482_v60  ;;  %6480 = vadd.xlane.f32.xlu1 %v6479_v51  ;;  %v6422_v2 = vmul.f32 %v12432_v27, %v12432_v27 }
 0xf48   :  { %v6421_v18 = vmul.f32 %v12435_v1, %v12435_v1 }
 0xf49   :  { %v6440_v52 = vsel %vm395_vm2, %v6422_v2, 0.0  ;;  %v12443_v14 = vsub.f32 %v12353_v49, %v6401_v32  ;;  %v12446_v24 = vsub.f32 %v12348_v12, %v6401_v32 }
 0xf4a   :  { %v6437_v40 = vsel %vm395_vm2, %v6421_v18, 0.0 }
 0xf4b   :  { %6441 = vadd.xlane.f32.xlu0 %v6440_v52  ;;  %6438 = vadd.xlane.f32.xlu1 %v6437_v40  ;;  %v6430_v6 = vmul.f32 %v12443_v14, %v12443_v14  ;;  %v6429_v8 = vmul.f32 %v12446_v24, %v12446_v24 }
 0xf4d   :  { %v6464_v3 = vsel %vm395_vm2, %v6430_v6, 0.0  ;;  %v6461_v29 = vsel %vm395_vm2, %v6429_v8, 0.0 }
 0xf4f   :  { %6465 = vadd.xlane.f32.xlu0 %v6464_v3  ;;  %6462 = vadd.xlane.f32.xlu1 %v6461_v29 }
 0xfa8   :  { %v6445_v49 = vpop.xlane.xlu1 %6444  ;;  %v6448_v23 = vpop.xlane.xlu0 %6447 }
 0xfa9   :  { %v6492_v12 = vadd.f32 %v6448_v23, %v6445_v49 }
 0xfab   :  { %v6493_v55 = vrot.slane %v6492_v12, 4 }
 0xfad   :  { %v6494_v11 = vadd.f32 %v6493_v55, %v6492_v12 }
 0xfaf   :  { %v6495_v56 = vrot.slane %v6494_v11, 2 }
 0xfb1   :  { %v6496_v33 = vadd.f32 %v6495_v56, %v6494_v11 }
 0xfb3   :  { %v6497_v25 = vrot.slane %v6496_v33, 1 }
 0xfb5   :  { %v6498_v53 = vadd.f32 %v6497_v25, %v6496_v33 }
 0xfb7   :  { %v6542_v16 = vmul.f32 0.00390625, %v6498_v53 }
 0xfb9   :  { %v6550_v62 = vadd.f32 1e-05, %v6542_v16 }
 0xfbb   :  { %9305 = vrsqrt.f32 %v6550_v62 }
 0xfbe   :  { %v6457_v54 = vpop.xlane.xlu1 %6456  ;;  %v6460_v4 = vpop.xlane.xlu0 %6459 }
 0xfbf   :  { %v6506_v35 = vadd.f32 %v6460_v4, %v6457_v54 }
 0xfc1   :  { %v6507_v47 = vrot.slane %v6506_v35, 4 }
 0xfc2   :  { %v6451_v34 = vpop.xlane.xlu1 %6450  ;;  %v6454_v46 = vpop.xlane.xlu0 %6453 }
 0xfc3   :  { %v6508_v42 = vadd.f32 %v6507_v47, %v6506_v35  ;;  %v6499_v31 = vadd.f32 %v6454_v46, %v6451_v34 }
 0xfc5   :  { %v9306_v22 = vpop.eup %9305  ;;  %v6509_v50 = vrot.slane %v6508_v42, 2  ;;  %v6500_v0 = vrot.slane %v6499_v31, 4 }
 0xfc6   :  { %v6567_v39 = vmul.f32 %v9306_v22, %v12363_v58  ;;  %v6568_v37 = vmul.f32 %v9306_v22, %v12360_v19 }
 0xfc7   :  { %v6510_v13 = vadd.f32 %v6509_v50, %v6508_v42  ;;  %v6501_v17 = vadd.f32 %v6500_v0, %v6499_v31 }
 0xfc8   :  { %v6583_v61 = vmul.f32 %v6567_v39, %v12458_v7  ;;  %v6584_v20 = vmul.f32 %v6568_v37, %v12463_v43 }
 0xfc9   :  { %v6511_v58 = vrot.slane %v6510_v13, 1  ;;  %v6502_v9 = vrot.slane %v6501_v17, 2 }
 0xfca   :  { %v6469_v38 = vpop.xlane.xlu1 %6468  ;;  %v6472_v19 = vpop.xlane.xlu0 %6471  ;;  %v6599_v36 = vadd.f32 %v6583_v61, %v12470_v15  ;;  %v6600_v5 = vadd.f32 %v6584_v20, %v12475_v45 }
 0xfcb   :  { %v6520_v30 = vadd.f32 %v6472_v19, %v6469_v38  ;;  %v6512_v60 = vadd.f32 %v6511_v58, %v6510_v13  ;;  %v6503_v32 = vadd.f32 %v6502_v9, %v6501_v17 }
 0xfcc   :  { %v8775_v51 = vpack.i.bf16 %v6600_v5, %v6599_v36 }
 0xfcd   :  { %v6521_v2 = vrot.slane %v6520_v30, 4  ;;  %v6504_v18 = vrot.slane %v6503_v32, 1  ;;  %v6544_v40 = vmul.f32 0.00390625, %v6512_v60 }
 0xfce   :  { %8776 = vrot.lane.b32.xlu1 %v8775_v51, %s9367_s25 }
 0xfcf   :  { %v6522_v52 = vadd.f32 %v6521_v2, %v6520_v30  ;;  %v6505_v3 = vadd.f32 %v6504_v18, %v6503_v32  ;;  %v6552_v11 = vadd.f32 1e-05, %v6544_v40 }
 0xfd0   :  { %v6475_v6 = vpop.xlane.xlu1 %6474  ;;  %v6478_v8 = vpop.xlane.xlu0 %6477 }
 0xfd1   :  { %v6523_v29 = vrot.slane %v6522_v52, 2  ;;  %v6527_v49 = vadd.f32 %v6478_v8, %v6475_v6  ;;  %v6543_v23 = vmul.f32 0.00390625, %v6505_v3 }
 0xfd3   :  { %v6524_v12 = vadd.f32 %v6523_v29, %v6522_v52  ;;  %v6528_v55 = vrot.slane %v6527_v49, 4  ;;  %v6551_v25 = vadd.f32 1e-05, %v6543_v23  ;;  %v8817_v23 = vld [vmem:[%s12645_s1 + $0x70] sm:$0xff]  }
 0xfd4   :  { %v6481_v56 = vpop.xlane.xlu1 %6480  ;;  %v6484_v33 = vpop.xlane.xlu0 %6483  ;;  %8164 = vmatprep.subr.bf16.mxu0 %v8817_v23 }
 0xfd5   :  { %v6525_v53 = vrot.slane %v6524_v12, 1  ;;  %v6529_v16 = vadd.f32 %v6528_v55, %v6527_v49  ;;  %v6534_v62 = vadd.f32 %v6484_v33, %v6481_v56  ;;  %9307 = vrsqrt.f32 %v6551_v25  ;;  %8165 = vmatpush3.bf16.msra.mxu0 %v8817_v23 }
 0xfd6   :  { %9309 = vrsqrt.f32 %v6552_v11 }
 0xfd7   :  { %v6526_v54 = vadd.f32 %v6525_v53, %v6524_v12  ;;  %v6530_v4 = vrot.slane %v6529_v16, 2  ;;  %v6535_v35 = vrot.slane %v6534_v62, 4 }
 0xfd8   :  { %v6439_v47 = vpop.xlane.xlu1 %6438  ;;  %v6442_v42 = vpop.xlane.xlu0 %6441 }
 0xfd9   :  { %v6546_v34 = vmul.f32 0.00390625, %v6526_v54  ;;  %v6531_v46 = vadd.f32 %v6530_v4, %v6529_v16  ;;  %v6536_v22 = vadd.f32 %v6535_v35, %v6534_v62  ;;  %v6485_v31 = vadd.f32 %v6442_v42, %v6439_v47 }
 0xfdb   :  { %v6554_v50 = vadd.f32 1e-05, %v6546_v34  ;;  %v6532_v39 = vrot.slane %v6531_v46, 1  ;;  %v6537_v37 = vrot.slane %v6536_v22, 2  ;;  %v6486_v0 = vrot.slane %v6485_v31, 4 }
 0xfdc   :  { %v6463_v13 = vpop.xlane.xlu1 %6462  ;;  %v6466_v61 = vpop.xlane.xlu0 %6465 }
 0xfdd   :  { %9311 = vrsqrt.f32 %v6554_v50  ;;  %v6533_v20 = vadd.f32 %v6532_v39, %v6531_v46  ;;  %v6538_v17 = vadd.f32 %v6537_v37, %v6536_v22  ;;  %v6487_v58 = vadd.f32 %v6486_v0, %v6485_v31  ;;  %v8819_v31 = vld [vmem:[%s12645_s1 + $0x80] sm:$0xff]  }
 0xfde   :  { %v6513_v38 = vadd.f32 %v6466_v61, %v6463_v13 }
 0xfdf   :  { %v6547_v19 = vmul.f32 0.00390625, %v6533_v20  ;;  %v6539_v36 = vrot.slane %v6538_v17, 1  ;;  %v6488_v5 = vrot.slane %v6487_v58, 2  ;;  %v9308_v30 = vpop.eup %9307 }
 0xfe0   :  { %v6514_v9 = vrot.slane %v6513_v38, 4  ;;  %v9310_v2 = vpop.eup %9309  ;;  %v6569_v52 = vmul.f32 %v9308_v30, %v12387_v41  ;;  %v6570_v40 = vmul.f32 %v9308_v30, %v12384_v28 }
 0xfe1   :  { %v6555_v60 = vadd.f32 1e-05, %v6547_v19  ;;  %v6540_v51 = vadd.f32 %v6539_v36, %v6538_v17  ;;  %v6489_v32 = vadd.f32 %v6488_v5, %v6487_v58  ;;  %v6571_v11 = vmul.f32 %v9310_v2, %v12375_v44 }
 0xfe2   :  { %v6515_v18 = vadd.f32 %v6514_v9, %v6513_v38  ;;  %v6585_v29 = vmul.f32 %v6569_v52, %v12458_v7  ;;  %v6586_v49 = vmul.f32 %v6570_v40, %v12463_v43  ;;  %v6572_v41 = vmul.f32 %v9310_v2, %v12372_v21  ;;  %v8818_v21 = vld [vmem:[%s12645_s1 + $0x78] sm:$0xff]   ;;  %v8820_v38 = vld [vmem:[%s12645_s1 + $0x88] sm:$0xff]  }
 0xfe3   :  { %9313 = vrsqrt.f32 %v6555_v60  ;;  %v6548_v6 = vmul.f32 0.00390625, %v6540_v51  ;;  %v6490_v8 = vrot.slane %v6489_v32, 1  ;;  %v6587_v35 = vmul.f32 %v6571_v11, %v12458_v7  ;;  %8166 = vmatprep.subr.bf16.mxu0 %v8818_v21 }
 0xfe4   :  { %v6516_v3 = vrot.slane %v6515_v18, 2  ;;  %v6601_v28 = vadd.f32 %v6585_v29, %v12470_v15  ;;  %v6602_v33 = vadd.f32 %v6586_v49, %v12475_v45  ;;  %v6588_v47 = vmul.f32 %v6572_v41, %v12463_v43  ;;  %8167 = vmatpush3.bf16.msra.mxu0 %v8818_v21 }
 0xfe5   :  { %v6556_v12 = vadd.f32 1e-05, %v6548_v6  ;;  %v6491_v55 = vadd.f32 %v6490_v8, %v6489_v32  ;;  %v6603_v39 = vadd.f32 %v6587_v35, %v12470_v15  ;;  %8168 = vmatprep.subr.bf16.mxu0 %v8819_v31 }
 0xfe6   :  { %v6517_v56 = vadd.f32 %v6516_v3, %v6515_v18  ;;  %v8780_v62 = vpack.i.bf16 %v6602_v33, %v6601_v28  ;;  %v6604_v37 = vadd.f32 %v6588_v47, %v12475_v45 }
 0xfe7   :  { %v9312_v25 = vpop.eup %9311  ;;  %9315 = vrsqrt.f32 %v6556_v12  ;;  %v6541_v53 = vmul.f32 0.00390625, %v6491_v55 }
 0xfe8   :  { %v6518_v16 = vrot.slane %v6517_v56, 1  ;;  %v6575_v54 = vmul.f32 %v9312_v25, %v12399_v57  ;;  %v6576_v4 = vmul.f32 %v9312_v25, %v12396_v63  ;;  %8781 = vrot.lane.b32.xlu1 %v8780_v62, %s9371_s14  ;;  %8169 = vmatpush3.bf16.msra.mxu0 %v8819_v31  ;;  %v8790_v36 = vpack.i.bf16 %v6604_v37, %v6603_v39 }
 0xfe9   :  { %v6549_v44 = vadd.f32 1e-05, %v6541_v53  ;;  %8170 = vmatprep.subr.bf16.mxu0 %v8820_v38 }
 0xfea   :  { %v6519_v42 = vadd.f32 %v6518_v16, %v6517_v56  ;;  %v6591_v34 = vmul.f32 %v6575_v54, %v12458_v7  ;;  %v6592_v46 = vmul.f32 %v6576_v4, %v12463_v43 }
 0xfeb   :  { %9317 = vrsqrt.f32 %v6549_v44 }
 0xfec   :  { %v6545_v63 = vmul.f32 0.00390625, %v6519_v42  ;;  %v6607_v57 = vadd.f32 %v6591_v34, %v12470_v15  ;;  %v6608_v22 = vadd.f32 %v6592_v46, %v12475_v45  ;;  %8171 = vmatpush3.bf16.msra.mxu0 %v8820_v38 }
 0xfed   :  { %v9314_v50 = vpop.eup %9313 }
 0xfee   :  { %v6553_v0 = vadd.f32 1e-05, %v6545_v63  ;;  %v8785_v13 = vpack.i.bf16 %v6608_v22, %v6607_v57  ;;  %v6577_v61 = vmul.f32 %v9314_v50, %v12411_v59  ;;  %v6578_v20 = vmul.f32 %v9314_v50, %v12408_v10 }
 0xff0   :  { %9319 = vrsqrt.f32 %v6553_v0  ;;  %8786 = vrot.lane.b32.xlu0 %v8785_v13, %s9367_s25  ;;  %v6593_v17 = vmul.f32 %v6577_v61, %v12458_v7  ;;  %v6594_v58 = vmul.f32 %v6578_v20, %v12463_v43  ;;  %v7474_v13 = vld [vmem:[%s12646_s2 + $0x80] ss:$0 sm:$0xff] }
 0xff1   :  { %v9316_v19 = vpop.eup %9315 }
 0xff2   :  { %v6609_v5 = vadd.f32 %v6593_v17, %v12470_v15  ;;  %v6610_v59 = vadd.f32 %v6594_v58, %v12475_v45  ;;  %v6579_v10 = vmul.f32 %v9316_v19, %v12421_v48  ;;  %v6580_v9 = vmul.f32 %v9316_v19, %v12418_v26 }
 0xff4   :  { %8791 = vrot.lane.b32.xlu0 %v8790_v36, %s9372_s5  ;;  %v8795_v30 = vpack.i.bf16 %v6610_v59, %v6609_v5  ;;  %v6595_v60 = vmul.f32 %v6579_v10, %v12458_v7  ;;  %v6596_v51 = vmul.f32 %v6580_v9, %v12463_v43 }
 0xff5   :  { %v9318_v32 = vpop.eup %9317 }
 0xff6   :  { %8796 = vrot.lane.b32.xlu1 %v8795_v30, %s9371_s14  ;;  %v6611_v2 = vadd.f32 %v6595_v60, %v12470_v15  ;;  %v6612_v18 = vadd.f32 %v6596_v51, %v12475_v45  ;;  %v6565_v48 = vmul.f32 %v9318_v32, %v12435_v1  ;;  %v6566_v26 = vmul.f32 %v9318_v32, %v12432_v27 }
 0xff8   :  { %v8800_v52 = vpack.i.bf16 %v6612_v18, %v6611_v2  ;;  %v6581_v40 = vmul.f32 %v6565_v48, %v12458_v7  ;;  %v6582_v6 = vmul.f32 %v6566_v26, %v12463_v43 }
 0xffa   :  { %v9320_v8 = vpop.eup %9319  ;;  %8801 = vrot.lane.b32.xlu1 %v8800_v52, %s9372_s5  ;;  %v6597_v3 = vadd.f32 %v6581_v40, %v12470_v15  ;;  %v6598_v29 = vadd.f32 %v6582_v6, %v12475_v45 }
 0xffb   :  { %v6573_v49 = vmul.f32 %v9320_v8, %v12446_v24  ;;  %v6574_v23 = vmul.f32 %v9320_v8, %v12443_v14 }
 0xffd   :  { %v6589_v1 = vmul.f32 %v6573_v49, %v12458_v7  ;;  %v6590_v27 = vmul.f32 %v6574_v23, %v12463_v43 }
 0xfff   :  { %v6605_v12 = vadd.f32 %v6589_v1, %v12470_v15  ;;  %v6606_v55 = vadd.f32 %v6590_v27, %v12475_v45 }
0x1040   :  { %v8777_v11 = vpop.permute.xlu1 %8776 }
0x1041   :  { %v8779_v28 = vunpack.i.h.bf16 %v8777_v11  ;;  %v8778_v33 = vunpack.i.l.bf16 %v8777_v11 }
0x1043   :  { %v6670_v24 = vsel %vm395_vm2, %v6597_v3, %v8778_v33  ;;  %v6671_v14 = vsel %vm395_vm2, %v6598_v29, %v8779_v28 }
0x105a   :  { %v8782_v41 = vpop.permute.xlu1 %8781 }
0x105b   :  { %v8784_v25 = vunpack.i.h.bf16 %v8782_v41  ;;  %v8783_v53 = vunpack.i.l.bf16 %v8782_v41 }
0x105d   :  { %v6674_v43 = vsel %vm4399_vm5, %v6670_v24, %v8783_v53  ;;  %v6675_v15 = vsel %vm4399_vm5, %v6671_v14, %v8784_v25 }
0x1062   :  { %v8787_v56 = vpop.permute.xlu0 %8786 }
0x1063   :  { %v8789_v45 = vunpack.i.h.bf16 %v8787_v56  ;;  %v8788_v4 = vunpack.i.l.bf16 %v8787_v56 }
0x1065   :  { %v6673_v46 = vsel %vm395_vm2, %v6606_v55, %v8789_v45  ;;  %v6672_v63 = vsel %vm395_vm2, %v6605_v12, %v8788_v4 }
0x1066   :  { %v8792_v16 = vpop.permute.xlu0 %8791 }
0x1067   :  { %v8794_v62 = vunpack.i.h.bf16 %v8792_v16  ;;  %v8793_v7 = vunpack.i.l.bf16 %v8792_v16 }
0x1068   :  { %v8797_v54 = vpop.permute.xlu1 %8796 }
0x1069   :  { %v6679_v21 = vsel %vm4458_vm6, %v6675_v15, %v8794_v62  ;;  %v6678_v44 = vsel %vm4458_vm6, %v6674_v43, %v8793_v7  ;;  %v8799_v47 = vunpack.i.h.bf16 %v8797_v54  ;;  %v8798_v42 = vunpack.i.l.bf16 %v8797_v54 }
0x106a   :  { %v6682_v35 = vpack.c.bf16 %v6679_v21, %v6678_v44 }
0x106b   :  { %v6676_v31 = vsel %vm4399_vm5, %v6672_v63, %v8798_v42  ;;  %v6677_v50 = vsel %vm4399_vm5, %v6673_v46, %v8799_v47 }
0x106c   :  { %8172 = vmatprep.mubr.msk.bf16.mxu0 %vm6712_vm7, %v6682_v35  ;;  %v8802_v34 = vpop.permute.xlu1 %8801 }
0x106d   :  { %v8804_v57 = vunpack.i.h.bf16 %v8802_v34  ;;  %v8803_v22 = vunpack.i.l.bf16 %v8802_v34 }
0x106f   :  { %v6680_v39 = vsel %vm4458_vm6, %v6676_v31, %v8803_v22  ;;  %v6681_v37 = vsel %vm4458_vm6, %v6677_v50, %v8804_v57 }
0x1070   :  { %v6683_v0 = vpack.c.bf16 %v6681_v37, %v6680_v39 }
0x1072   :  { %8173 = vmatmul.mubr.msk.bf16.vlgmr.msra.gmra.mrb[180].mxu0 %vm6712_vm7, %v6683_v0 }
0x1145   :  { %v8174_v61 = vpop.f32.mrb[180].mxu0 }
0x1146   :  { %v6762_v20 = vadd.f32 %v8174_v61, %v7474_v13  ;;  %v6753_v17 = vpop.f32.mrb[181].mxu0 }
0x1147   :  { %v6754_v58 = vadd.f32 %v7474_v13, %v6753_v17  ;;  %v8175_v38 = vpop.f32.mrb[182].mxu0 }
0x1148   :  { %v7483_v19 = vmul.f32 -1.442695, %v6762_v20  ;;  %v6765_v36 = vadd.f32 %v8175_v38, %v7474_v13  ;;  %v6756_v5 = vpop.f32.mrb[183].mxu0  ;;  %v8821_v38 = vld [vmem:[%s12645_s1 + $0x90] sm:$0xff]  }
0x1149   :  { %v7481_v59 = vmul.f32 -1.442695, %v6754_v58  ;;  %v6757_v10 = vadd.f32 %v7474_v13, %v6756_v5  ;;  %8176 = vmatprep.subr.bf16.mxu0 %v8821_v38 }
0x114a   :  { %9321 = vpow2.f32 %v7483_v19  ;;  %v7484_v9 = vmul.f32 -1.442695, %v6765_v36  ;;  %8177 = vmatpush3.bf16.msra.mxu0 %v8821_v38  ;;  %v8822_v19 = vld [vmem:[%s12645_s1 + $0x98] sm:$0xff]  }
0x114b   :  { %9323 = vpow2.f32 %v7481_v59  ;;  %v7482_v30 = vmul.f32 -1.442695, %v6757_v10  ;;  %8178 = vmatprep.subr.bf16.mxu0 %v8822_v19 }
0x114c   :  { %9325 = vpow2.f32 %v7484_v9 }
0x114d   :  { %9327 = vpow2.f32 %v7482_v30 }
0x114e   :  { %8179 = vmatpush3.bf16.msra.mxu0 %v8822_v19 }
0x1154   :  { %v9322_v60 = vpop.eup %9321 }
0x1155   :  { %v9324_v51 = vpop.eup %9323  ;;  %v6782_v48 = vadd.f32 1.0, %v9322_v60 }
0x1156   :  { %v9326_v32 = vpop.eup %9325  ;;  %v6780_v2 = vadd.f32 1.0, %v9324_v51 }
0x1157   :  { %v9328_v18 = vpop.eup %9327  ;;  %v6783_v52 = vadd.f32 1.0, %v9326_v32 }
0x1158   :  { %9329 = vrcp.f32 %v6780_v2  ;;  %v6781_v26 = vadd.f32 1.0, %v9328_v18 }
0x115a   :  { %9331 = vrcp.f32 %v6781_v26 }
0x115b   :  { %9333 = vrcp.f32 %v6782_v48 }
0x115c   :  { %9335 = vrcp.f32 %v6783_v52 }
0x1162   :  { %v9330_v40 = vpop.eup %9329 }
0x1163   :  { %6796 = vrot.lane.b32.xlu0 %v9330_v40, %s9373_s8 }
0x1164   :  { %v9332_v6 = vpop.eup %9331 }
0x1165   :  { %6798 = vrot.lane.b32.xlu1 %v9332_v6, %s9373_s8  ;;  %v9334_v8 = vpop.eup %9333 }
0x1166   :  { %v9336_v3 = vpop.eup %9335 }
0x1167   :  { %6800 = vrot.lane.b32.xlu0 %v9334_v8, %s9373_s8 }
0x1169   :  { %6802 = vrot.lane.b32.xlu1 %v9336_v3, %s9373_s8 }
0x11d5   :  { %v6797_v29 = vpop.permute.xlu0 %6796 }
0x11d6   :  { %v6808_v49 = vmul.f32 %v6797_v29, %v6754_v58 }
0x11d7   :  { %v6799_v23 = vpop.permute.xlu1 %6798 }
0x11d8   :  { %v6809_v1 = vmul.f32 %v6799_v23, %v6757_v10  ;;  %v6816_v27 = vsel %vm4399_vm5, %v6808_v49, 0.0 }
0x11d9   :  { %6817 = vadd.xlane.f32.xlu0 %v6816_v27  ;;  %v6801_v12 = vpop.permute.xlu0 %6800 }
0x11da   :  { %v6810_v55 = vmul.f32 %v6801_v12, %v6762_v20  ;;  %v6819_v11 = vsel %vm4399_vm5, %v6809_v1, 0.0  ;;  %v6812_v12 = vld [vmem:[%s12646_s2 + $0x88] sm:$0xff] }
0x11db   :  { %6820 = vadd.xlane.f32.xlu1 %v6819_v11  ;;  %v6803_v41 = vpop.permute.xlu1 %6802 }
0x11dc   :  { %v6811_v56 = vmul.f32 %v6803_v41, %v6765_v36  ;;  %v6822_v28 = vsel %vm4399_vm5, %v6810_v55, 0.0 }
0x11dd   :  { %6823 = vadd.xlane.f32.xlu0 %v6822_v28  ;;  %v6815_v28 = vld [vmem:[%s12646_s2 + $0xa0] sm:$0xff] }
0x11de   :  { %v6825_v33 = vsel %vm4399_vm5, %v6811_v56, 0.0 }
0x11e1   :  { %6826 = vadd.xlane.f32.xlu0 %v6825_v33 }
0x1266   :  { %v6818_v25 = vpop.xlane.xlu0 %6817 }
0x1268   :  { %v6821_v53 = vpop.xlane.xlu1 %6820 }
0x1269   :  { %v6828_v16 = vadd.f32 %v6821_v53, %v6818_v25 }
0x126a   :  { %v6824_v24 = vpop.xlane.xlu0 %6823 }
0x126b   :  { %v6829_v14 = vrot.slane %v6828_v16, 4 }
0x126d   :  { %v6830_v62 = vadd.f32 %v6829_v14, %v6828_v16 }
0x126e   :  { %v6827_v7 = vpop.xlane.xlu0 %6826 }
0x126f   :  { %v6831_v43 = vrot.slane %v6830_v62, 2  ;;  %v6835_v15 = vadd.f32 %v6827_v7, %v6824_v24 }
0x1271   :  { %v6832_v54 = vadd.f32 %v6831_v43, %v6830_v62  ;;  %v6836_v45 = vrot.slane %v6835_v15, 4 }
0x1273   :  { %v6833_v4 = vrot.slane %v6832_v54, 1  ;;  %v6837_v21 = vadd.f32 %v6836_v45, %v6835_v15 }
0x1275   :  { %v6834_v44 = vadd.f32 %v6833_v4, %v6832_v54  ;;  %v6838_v35 = vrot.slane %v6837_v21, 2 }
0x1277   :  { %v6842_v47 = vmul.f32 0.001953125, %v6834_v44  ;;  %v6839_v42 = vadd.f32 %v6838_v35, %v6837_v21  ;;  %v8823_v21 = vld [vmem:[%s12645_s1 + $0xa0] sm:$0xff]   ;;  %v8824_v44 = vld [vmem:[%s12645_s1 + $0xa8] sm:$0xff]  }
0x1278   :  { %8184 = vmatprep.subr.bf16.mxu1 %v8823_v21  ;;  %v7485_v35 = vld [vmem:[%s12646_s2 + $0xa8] ss:$0 sm:$0xff] }
0x1279   :  { %v6840_v34 = vrot.slane %v6839_v42, 1  ;;  %v6845_v46 = vsub.f32 %v6809_v1, %v6842_v47  ;;  %v6844_v63 = vsub.f32 %v6808_v49, %v6842_v47  ;;  %8185 = vmatpush3.bf16.msra.mxu1 %v8823_v21 }
0x127a   :  { %8186 = vmatprep.subr.bf16.mxu1 %v8824_v44 }
0x127b   :  { %v6841_v57 = vadd.f32 %v6840_v34, %v6839_v42  ;;  %v6849_v22 = vmul.f32 %v6845_v46, %v6845_v46  ;;  %v6848_v31 = vmul.f32 %v6844_v63, %v6844_v63 }
0x127d   :  { %v6843_v50 = vmul.f32 0.001953125, %v6841_v57  ;;  %v6855_v39 = vsel %vm4399_vm5, %v6849_v22, 0.0  ;;  %v6852_v37 = vsel %vm4399_vm5, %v6848_v31, 0.0  ;;  %8187 = vmatpush3.bf16.msra.mxu1 %v8824_v44 }
0x127e   :  { %6856 = vadd.xlane.f32.xlu0 %v6855_v39  ;;  %6853 = vadd.xlane.f32.xlu1 %v6852_v37 }
0x127f   :  { %v6847_v0 = vsub.f32 %v6811_v56, %v6843_v50  ;;  %v6846_v13 = vsub.f32 %v6810_v55, %v6843_v50  ;;  %v6813_v55 = vld [vmem:[%s12646_s2 + $0x90] sm:$0xff]  ;;  %v6814_v56 = vld [vmem:[%s12646_s2 + $0x98] sm:$0xff] }
0x1281   :  { %v6851_v61 = vmul.f32 %v6847_v0, %v6847_v0  ;;  %v6850_v20 = vmul.f32 %v6846_v13, %v6846_v13 }
0x1283   :  { %v6861_v17 = vsel %vm4399_vm5, %v6851_v61, 0.0  ;;  %v6858_v58 = vsel %vm4399_vm5, %v6850_v20, 0.0  ;;  %v7490_v20 = vld [vmem:[%s12646_s2 + $0xb0] ss:$0 sm:$0xff]  ;;  %s9374_s2 = smov 40  }
0x1284   :  { %6862 = vadd.xlane.f32.xlu0 %v6861_v17  ;;  %6859 = vadd.xlane.f32.xlu1 %v6858_v58 }
0x130b   :  { %v6854_v36 = vpop.xlane.xlu1 %6853  ;;  %v6857_v5 = vpop.xlane.xlu0 %6856 }
0x130c   :  { %v6864_v59 = vadd.f32 %v6857_v5, %v6854_v36 }
0x130e   :  { %v6865_v10 = vrot.slane %v6864_v59, 4 }
0x1310   :  { %v6866_v9 = vadd.f32 %v6865_v10, %v6864_v59 }
0x1311   :  { %v6860_v30 = vpop.xlane.xlu1 %6859  ;;  %v6863_v60 = vpop.xlane.xlu0 %6862 }
0x1312   :  { %v6867_v51 = vrot.slane %v6866_v9, 2  ;;  %v6871_v32 = vadd.f32 %v6863_v60, %v6860_v30 }
0x1314   :  { %v6868_v2 = vadd.f32 %v6867_v51, %v6866_v9  ;;  %v6872_v18 = vrot.slane %v6871_v32, 4 }
0x1316   :  { %v6869_v48 = vrot.slane %v6868_v2, 1  ;;  %v6873_v26 = vadd.f32 %v6872_v18, %v6871_v32 }
0x1318   :  { %v6870_v52 = vadd.f32 %v6869_v48, %v6868_v2  ;;  %v6874_v40 = vrot.slane %v6873_v26, 2 }
0x131a   :  { %v6878_v6 = vmul.f32 0.001953125, %v6870_v52  ;;  %v6875_v8 = vadd.f32 %v6874_v40, %v6873_v26 }
0x131c   :  { %v6880_v3 = vadd.f32 1e-05, %v6878_v6  ;;  %v6876_v29 = vrot.slane %v6875_v8, 1 }
0x131e   :  { %9337 = vrsqrt.f32 %v6880_v3  ;;  %v6877_v49 = vadd.f32 %v6876_v29, %v6875_v8 }
0x1320   :  { %v6879_v23 = vmul.f32 0.001953125, %v6877_v49 }
0x1322   :  { %v6881_v1 = vadd.f32 1e-05, %v6879_v23 }
0x1324   :  { %9339 = vrsqrt.f32 %v6881_v1 }
0x1328   :  { %v9338_v27 = vpop.eup %9337 }
0x1329   :  { %v6884_v11 = vmul.f32 %v9338_v27, %v6844_v63  ;;  %v6885_v41 = vmul.f32 %v9338_v27, %v6845_v46 }
0x132b   :  { %v6888_v33 = vmul.f32 %v6884_v11, %v6812_v12  ;;  %v6889_v25 = vmul.f32 %v6885_v41, %v6813_v55 }
0x132d   :  { %v6892_v53 = vadd.f32 %v6888_v33, %v6814_v56  ;;  %v6893_v16 = vadd.f32 %v6889_v25, %v6815_v28 }
0x132e   :  { %v9340_v24 = vpop.eup %9339 }
0x132f   :  { %v6886_v14 = vmul.f32 %v9340_v24, %v6846_v13  ;;  %v6887_v62 = vmul.f32 %v9340_v24, %v6847_v0  ;;  %v6896_v7 = vpack.c.bf16 %v6893_v16, %v6892_v53 }
0x1331   :  { %v6890_v43 = vmul.f32 %v6886_v14, %v6812_v12  ;;  %v6891_v15 = vmul.f32 %v6887_v62, %v6813_v55  ;;  %8180 = vmatprep.mubr.msk.bf16.mxu0 %vm4399_vm5, %v6896_v7 }
0x1333   :  { %v6894_v54 = vadd.f32 %v6890_v43, %v6814_v56  ;;  %v6895_v45 = vadd.f32 %v6891_v15, %v6815_v28 }
0x1335   :  { %v6897_v4 = vpack.c.bf16 %v6895_v45, %v6894_v54 }
0x1337   :  { %8181 = vmatmul.mubr.msk.bf16.vlgmr.msra.gmra.mrb[184].mxu0 %vm4399_vm5, %v6897_v4 }
0x140a   :  { %v8182_v47 = vpop.f32.mrb[184].mxu0 }
0x140b   :  { %v6968_v42 = vadd.f32 %v8182_v47, %v7485_v35  ;;  %v6959_v34 = vpop.f32.mrb[185].mxu0 }
0x140c   :  { %v6960_v46 = vadd.f32 %v7485_v35, %v6959_v34  ;;  %v8183_v63 = vpop.f32.mrb[186].mxu0 }
0x140d   :  { %v6971_v57 = vadd.f32 %v8183_v63, %v7485_v35  ;;  %v6962_v22 = vpop.f32.mrb[187].mxu0  ;;  %v6976_v50 = vmax.f32 %v6968_v42, 0.0 }
0x140e   :  { %v6963_v31 = vadd.f32 %v7485_v35, %v6962_v22  ;;  %v6974_v37 = vmax.f32 %v6960_v46, 0.0 }
0x140f   :  { %v6977_v39 = vmax.f32 %v6971_v57, 0.0 }
0x1410   :  { %v6975_v0 = vmax.f32 %v6963_v31, 0.0 }
0x1411   :  { %v6979_v13 = vpack.c.bf16 %v6977_v39, %v6976_v50 }
0x1412   :  { %v6978_v61 = vpack.c.bf16 %v6975_v0, %v6974_v37 }
0x1414   :  { %8188 = vmatprep.mubr.msk.bf16.mxu1 %vm4399_vm5, %v6978_v61 }
0x1415   :  { %8189 = vmatmul.mubr.msk.bf16.vlgmr.msra.gmra.mrb[188].mxu1 %vm4399_vm5, %v6979_v13 }
0x14e8   :  { %v8190_v17 = vpop.f32.mrb[188].mxu1 }
0x14e9   :  { %v7050_v58 = vadd.f32 %v8190_v17, %v7490_v20  ;;  %v7041_v38 = vpop.f32.mrb[189].mxu1 }
0x14ea   :  { %v7042_v19 = vadd.f32 %v7490_v20, %v7041_v38  ;;  %v8191_v36 = vpop.f32.mrb[190].mxu1 }
0x14eb   :  { %v7053_v5 = vadd.f32 %v8191_v36, %v7490_v20  ;;  %v7044_v59 = vpop.f32.mrb[191].mxu1  ;;  %v7068_v10 = vrot.slane %v7050_v58, 1  ;;  %v7086_v9 = vrot.slane %v7050_v58, 4  ;;  %v7074_v30 = vrot.slane %v7050_v58, 2 }
0x14ec   :  { %v7045_v60 = vadd.f32 %v7490_v20, %v7044_v59  ;;  %v7067_v51 = vrot.slane %v7042_v19, 2  ;;  %v7062_v32 = vrot.slane %v7042_v19, 1  ;;  %v7085_v2 = vrot.slane %v7042_v19, 5 }
0x14ed   :  { %v7073_v18 = vrot.slane %v7042_v19, 3  ;;  %v7097_v48 = vrot.slane %v7042_v19, 7  ;;  %v7098_v26 = vrot.slane %v7050_v58, 6  ;;  %v7079_v52 = vrot.slane %v7042_v19, 4 }
0x14ee   :  { %v7069_v40 = vsel %vm7059_vm8, %v7068_v10, %v7067_v51  ;;  %v7063_v6 = vsel %vm7059_vm8, %v7050_v58, %v7062_v32  ;;  %v7087_v8 = vsel %vm7059_vm8, %v7086_v9, %v7085_v2  ;;  %v7080_v3 = vrot.slane %v7050_v58, 3 }
0x14ef   :  { %7070 = vrot.lane.b32.xlu0 %v7069_v40, %s9367_s25  ;;  %7064 = vrot.lane.b32.xlu1 %v7063_v6, %s9366_s24  ;;  %v7075_v29 = vsel %vm7059_vm8, %v7074_v30, %v7073_v18  ;;  %v7099_v49 = vsel %vm7059_vm8, %v7098_v26, %v7097_v48  ;;  %v7110_v23 = vrot.slane %v7045_v60, 1  ;;  %v7091_v1 = vrot.slane %v7042_v19, 6  ;;  %s9375_s24 = smov 24   ;;  %s9376_s25 = smov 56  }
0x14f0   :  { %v7081_v27 = vsel %vm7059_vm8, %v7080_v3, %v7079_v52  ;;  %v7092_v12 = vrot.slane %v7050_v58, 5  ;;  %v7121_v55 = vrot.slane %v7045_v60, 3  ;;  %v7122_v11 = vrot.slane %v7053_v5, 2 }
0x14f1   :  { %v7111_v41 = vsel %vm7059_vm8, %v7053_v5, %v7110_v23  ;;  %v7105_v56 = vrot.slane %v7053_v5, 7  ;;  %v7133_v28 = vrot.slane %v7045_v60, 5  ;;  %v7134_v33 = vrot.slane %v7053_v5, 4 }
0x14f2   :  { %v7093_v25 = vsel %vm7059_vm8, %v7092_v12, %v7091_v1  ;;  %v7123_v53 = vsel %vm7059_vm8, %v7122_v11, %v7121_v55  ;;  %v7115_v16 = vrot.slane %v7045_v60, 2  ;;  %v7116_v24 = vrot.slane %v7053_v5, 1 }
0x14f3   :  { %7088 = vrot.lane.b32.xlu0 %v7087_v8, %s9374_s2  ;;  %7076 = vrot.lane.b32.xlu1 %v7075_v29, %s9375_s24  ;;  %v7106_v14 = vsel %vm7059_vm8, %v7105_v56, %v7045_v60  ;;  %v7135_v62 = vsel %vm7059_vm8, %v7134_v33, %v7133_v28  ;;  %v7145_v7 = vrot.slane %v7045_v60, 7  ;;  %v7146_v43 = vrot.slane %v7053_v5, 6 }
0x14f4   :  { %v7117_v15 = vsel %vm7059_vm8, %v7116_v24, %v7115_v16  ;;  %v7127_v54 = vrot.slane %v7045_v60, 4  ;;  %v7128_v45 = vrot.slane %v7053_v5, 3  ;;  %v7139_v4 = vrot.slane %v7045_v60, 6 }
0x14f5   :  { %v7147_v21 = vsel %vm7059_vm8, %v7146_v43, %v7145_v7  ;;  %v7140_v44 = vrot.slane %v7053_v5, 5  ;;  %v7058_v35 = vrot.slane %v7050_v58, 7 }
0x14f6   :  { %v7129_v47 = vsel %vm7059_vm8, %v7128_v45, %v7127_v54 }
0x14f7   :  { %7100 = vrot.lane.b32.xlu0 %v7099_v49, %s9376_s25  ;;  %7082 = vrot.lane.b32.xlu1 %v7081_v27, %s9371_s14  ;;  %v7141_v42 = vsel %vm7059_vm8, %v7140_v44, %v7139_v4  ;;  %v7060_v34 = vsel %vm7059_vm8, %v7058_v35, %v7042_v19 }
0x14fb   :  { %7112 = vrot.lane.b32.xlu0 %v7111_v41, %s9377_s4  ;;  %7094 = vrot.lane.b32.xlu1 %v7093_v25, %s9372_s5 }
0x14ff   :  { %7124 = vrot.lane.b32.xlu0 %v7123_v53, %s9378_s6  ;;  %7107 = vrot.lane.b32.xlu1 %v7106_v14, %s9379_s7 }
0x1503   :  { %7136 = vrot.lane.b32.xlu0 %v7135_v62, %s9380_s9  ;;  %7118 = vrot.lane.b32.xlu1 %v7117_v15, %s9381_s10 }
0x1507   :  { %7148 = vrot.lane.b32.xlu0 %v7147_v21, %s9382_s11  ;;  %7130 = vrot.lane.b32.xlu1 %v7129_v47, %s9373_s8 }
0x150b   :  { %7142 = vrot.lane.b32.xlu1 %v7141_v42, %s9368_s15  ;;  %s9383_s15 = smov [#allocation2]  }
0x150c   :  { %s7182_s14 = sshll.u32 %s9383_s15, 4  ;;  %s7183_s14 = int_to_ptr.vmem [resolvable:$true] %s7182_s14 }
0x150d   :  { %s9342_s5 = scalar_lea.vmem %s7183_s14, 32  ;;  %p9347_p1 = scmp.lt.s32.totalorder %s7183_s14, %s7183_s14 }
0x150e   :  { %p9343_p0 = scmp.ne.s32.totalorder %s7183_s14, %s9342_s5  ;;  %p9348_p2 = scmp.lt.s32.totalorder %s9342_s5, %s9342_s5 }
0x1510   :  { %p9349_p3 = por %p9348_p2, %p9347_p1 }
0x1512   :  { %p9350_p4 = pnand %p9349_p3, %p9343_p0 }
0x1561   :  { %v7071_v46 = vpop.permute.xlu0 %7070  ;;  %v7065_v63 = vpop.permute.xlu1 %7064 }
0x1562   :  { %v7151_v57 = vsel %vm354_vm1, %v7060_v34, %v7065_v63  ;;  %vm7173_vm1 = vcmask 982016  }
0x1563   :  { %v7152_v50 = vsel %vm395_vm2, %v7151_v57, %v7071_v46 }
0x1565   :  { %v7089_v22 = vpop.permute.xlu0 %7088  ;;  %v7077_v31 = vpop.permute.xlu1 %7076 }
0x1566   :  { %v7153_v39 = vsel %vm469_vm3, %v7152_v50, %v7077_v31 }
0x1569   :  { %v7101_v37 = vpop.permute.xlu0 %7100  ;;  %v7083_v0 = vpop.permute.xlu1 %7082 }
0x156a   :  { %v7154_v13 = vsel %vm4399_vm5, %v7153_v39, %v7083_v0 }
0x156b   :  { %v7156_v17 = vsel %vm7155_vm9, %v7154_v13, %v7089_v22 }
0x156d   :  { %v7113_v61 = vpop.permute.xlu0 %7112  ;;  %v7095_v20 = vpop.permute.xlu1 %7094 }
0x156e   :  { %v7157_v58 = vsel %vm4458_vm6, %v7156_v17, %v7095_v20 }
0x156f   :  { %v7159_v19 = vsel %vm7158_vm10, %v7157_v58, %v7101_v37 }
0x1571   :  { %v7108_v38 = vpop.permute.xlu1 %7107  ;;  %v7125_v36 = vpop.permute.xlu0 %7124 }
0x1572   :  { %v7160_v5 = vsel %vm6712_vm7, %v7159_v19, %v7108_v38 }
0x1573   :  { %v7162_v10 = vsel %vm7161_vm11, %v7160_v5, %v7113_v61 }
0x1575   :  { %v7119_v59 = vpop.permute.xlu1 %7118  ;;  %v7137_v30 = vpop.permute.xlu0 %7136 }
0x1576   :  { %v7164_v9 = vsel %vm7163_vm12, %v7162_v10, %v7119_v59 }
0x1577   :  { %v7166_v51 = vsel %vm7165_vm13, %v7164_v9, %v7125_v36 }
0x1579   :  { %v7131_v60 = vpop.permute.xlu1 %7130  ;;  %v7149_v48 = vpop.permute.xlu0 %7148 }
0x157a   :  { %v7168_v32 = vsel %vm7167_vm14, %v7166_v51, %v7131_v60 }
0x157b   :  { %v7170_v18 = vsel %vm7169_vm15, %v7168_v32, %v7137_v30 }
0x157d   :  { %v7143_v2 = vpop.permute.xlu1 %7142 }
0x157e   :  { %v7172_v26 = vsel %vm7171_vm0, %v7170_v18, %v7143_v2 }
0x157f   :  { %v7174_v52 = vsel %vm7173_vm1, %v7172_v26, %v7149_v48 }
0x1580   :  { %7175 = vst [vmem:[#allocation2] sm:$0x3] %v7174_v52 }
0x1581   :  { %9353 = shalt.err (!%p9350_p4)
}
0x1582   :  { %s9354_s12 = scalar_lea.hbm %s12647_s3, 32 }
0x1583   :  { %p9355_p5 = scmp.ne.s32.totalorder %s12647_s3, %s9354_s12  ;;  %p9358_p6 = scmp.lt.u32.totalorder %s9354_s12, %s12647_s3 }
0x1585   :  { %p9360_p7 = pnand %p9358_p6, %p9355_p5 }
0x1587   :  { %9363 = shalt.err (!%p9360_p7)
}
0x1588   :  { %7185 = dma.vmem_to_hbm [thread:$0]  %s7183_s14, 32, %s12647_s3, [#allocation3]  }
0x1589   :  { %9364 = dma.done.wait [#allocation3], 32  }
0x158a   :  { %9365 = vsyncadd [#allocation3], 4294967264 }
0x158b   :  { %7189 = vsyncpa [#allocation3], 1 }

</bundles_post_ra>
